<compile_context>
chip_gen: v7x
topology: tpu7x:2x2x1
jax: 0.10.0
libtpu: 0.0.40
codegen_flags: <defaults>
</compile_context>

<pallas_src>
import numpy as np
import jax
import jax.numpy as jnp
from jax.experimental import pallas as pl
from jax.experimental.pallas import tpu as pltpu

MATMUL_DTYPE = jnp.bfloat16   # MXU operand dtype; accumulation is always f32.
_LANE = 128
_SUBLANE = 8


def _round_up(x, m):
    return ((x + m - 1) // m) * m


# ----------------------------------------------------------------------------- in-kernel math

def _erf(x):
    # Abramowitz & Stegun 7.1.26, max abs error 1.5e-7.
    a1 = np.float32(0.254829592)
    a2 = np.float32(-0.284496736)
    a3 = np.float32(1.421413741)
    a4 = np.float32(-1.453152027)
    a5 = np.float32(1.061405429)
    p = np.float32(0.3275911)
    s = jnp.where(x >= 0, jnp.float32(1.0), jnp.float32(-1.0))
    z = jnp.abs(x)
    t = 1.0 / (1.0 + p * z)
    poly = ((((a5 * t + a4) * t + a3) * t + a2) * t + a1) * t
    return s * (1.0 - poly * jnp.exp(-z * z))


def _gelu_exact(x):
    # Matches nn.GELU() (exact erf form) to ~1e-7.
    return jnp.float32(0.5) * x * (1.0 + _erf(x * np.float32(1.0 / np.sqrt(2.0))))


def _layer_norm(x, g, b, eps=1e-5):
    mean = jnp.mean(x, axis=-1, keepdims=True)
    var = jnp.mean((x - mean) ** 2, axis=-1, keepdims=True)
    return (x - mean) * jax.lax.rsqrt(var + eps) * g + b


# ----------------------------------------------------------------------------- kernel

def _make_mlp_kernel(n_hidden_stages):
    """Fused MLP kernel: n_hidden_stages x (Linear+LayerNorm+GELU) + final Linear."""

    def kernel(*refs):
        x_ref = refs[0]
        o_ref = refs[-1]
        h = x_ref[...].astype(jnp.float32)           # (tm, in_ch)
        idx = 1
        for _ in range(n_hidden_stages):
            w_ref, b_ref, g_ref, be_ref = refs[idx:idx + 4]
            idx += 4
            w = w_ref[...]                           # (cin, hid), bf16
            h = jnp.dot(h.astype(w.dtype), w,
                        preferred_element_type=jnp.float32) + b_ref[...]
            h = _layer_norm(h, g_ref[...], be_ref[...])
            h = _gelu_exact(h)
        w_ref, b_ref = refs[idx], refs[idx + 1]
        w = w_ref[...]                               # (hid, c_out_padded), bf16
        out = jnp.dot(h.astype(w.dtype), w,
                      preferred_element_type=jnp.float32) + b_ref[...]
        o_ref[...] = out.astype(o_ref.dtype)         # lane-dense (tm, c_out_padded) store

    return kernel


# ----------------------------------------------------------------------------- wrapper

def mlp_block_forward(x, params, *, tm_max=512):
    """MLPBlock.forward.  x: (..., in_ch) f32 -> (..., out_ch) complex64."""
    out_ch = params['out_ch']
    lead = x.shape[:-1]
    in_ch = x.shape[-1]
    rows = int(np.prod(lead)) if lead else 1
    xr = x.reshape(rows, in_ch).astype(jnp.float32)

    # Row tiling: big tiles, cdiv-grid with zero padding (no "one giant block" fallback).
    tm = min(tm_max, _round_up(rows, _SUBLANE))
    rows_p = _round_up(rows, tm)
    if rows_p != rows:
        xr = jnp.pad(xr, ((0, rows_p - rows), (0, 0)))

    hidden_stages = params['hidden']
    w_out, b_out = params['w_out'], params['b_out']
    c_out_p = w_out.shape[1]                         # padded to a multiple of 128

    operands = [xr]
    in_specs = [pl.BlockSpec((tm, in_ch), lambda i: (i, 0))]
    for st in hidden_stages:
        for name in ('w', 'b', 'g', 'beta'):
            arr = st[name]
            operands.append(arr)
            in_specs.append(pl.BlockSpec(arr.shape, lambda i: (0, 0)))
    for arr in (w_out, b_out):
        operands.append(arr)
        in_specs.append(pl.BlockSpec(arr.shape, lambda i: (0, 0)))

    out = pl.pallas_call(
        _make_mlp_kernel(len(hidden_stages)),
        out_shape=jax.ShapeDtypeStruct((rows_p, c_out_p), jnp.float32),
        grid=(rows_p // tm,),
        in_specs=in_specs,
        out_specs=pl.BlockSpec((tm, c_out_p), lambda i: (i, 0)),
        compiler_params=pltpu.CompilerParams(
            dimension_semantics=("parallel",),       # shards row tiles across v7x's 2 TCs
            vmem_limit_bytes=64 * 1024 * 1024),
    )(*operands)

    out = out[:rows, :2 * out_ch]
    real = out[:, :out_ch]
    imag = out[:, out_ch:]
    return jax.lax.complex(real, imag).reshape(lead + (out_ch,))


# ----------------------------------------------------------------------------- params

def init_mlp_block(key, in_ch, out_ch, hidden_dim=64, num_layers=2):
    """PyTorch-style init (nn.Linear U(-1/sqrt(fan_in), 1/sqrt(fan_in)); LN gamma=1, beta=0).

    Weights are stored kernel-ready: transposed to (fan_in, fan_out), matmul operands in
    MATMUL_DTYPE, and the final layer zero-padded to a lane-dense output width.
    """
    # TODO(synk): dropout > 0.0 (nn.Dropout) is not implemented; module default is 0.0.
    def linear_init(k, fan_in, fan_out):
        kw, kb = jax.random.split(k)
        bound = 1.0 / np.sqrt(fan_in)
        w = jax.random.uniform(kw, (fan_in, fan_out), jnp.float32, -bound, bound)
        b = jax.random.uniform(kb, (1, fan_out), jnp.float32, -bound, bound)
        return w, b

    keys = jax.random.split(key, num_layers + 1)
    hidden = []
    fan_in = in_ch
    for l in range(num_layers):
        w, b = linear_init(keys[l], fan_in, hidden_dim)
        hidden.append(dict(
            w=w.astype(MATMUL_DTYPE),
            b=b,
            g=jnp.ones((1, hidden_dim), jnp.float32),
            beta=jnp.zeros((1, hidden_dim), jnp.float32)))
        fan_in = hidden_dim

    c_out = 2 * out_ch
    c_out_p = _round_up(c_out, _LANE)                # lane-dense HBM output store
    w, b = linear_init(keys[num_layers], hidden_dim, c_out)
    w_p = jnp.zeros((hidden_dim, c_out_p), jnp.float32).at[:, :c_out].set(w)
    b_p = jnp.zeros((1, c_out_p), jnp.float32).at[:, :c_out].set(b)

    return dict(hidden=hidden,
                w_out=w_p.astype(MATMUL_DTYPE),
                b_out=b_p,
                out_ch=out_ch)


# ----------------------------------------------------------------------------- pure-JAX reference

def mlp_block_reference(x, params):
    """Plain-JAX reference with identical parameters (exact-erf GELU, f32 norms)."""
    out_ch = params['out_ch']
    h = x.astype(jnp.float32)
    for st in params['hidden']:
        h = jnp.dot(h.astype(st['w'].dtype), st['w'],
                    preferred_element_type=jnp.float32) + st['b']
        mean = jnp.mean(h, axis=-1, keepdims=True)
        var = jnp.mean((h - mean) ** 2, axis=-1, keepdims=True)
        h = (h - mean) * jax.lax.rsqrt(var + 1e-5) * st['g'] + st['beta']
        h = jax.nn.gelu(h, approximate=False)
    out = jnp.dot(h.astype(params['w_out'].dtype), params['w_out'],
                  preferred_element_type=jnp.float32) + params['b_out']
    out = out[..., :2 * out_ch]
    return jax.lax.complex(out[..., :out_ch], out[..., out_ch:])


# ----------------------------------------------------------------------------- main

if __name__ == "__main__":
    in_ch, out_ch = 2, 16          # normalized coordinate input, 16 complex modes out
    hidden_dim, num_layers = 64, 2
    batch, seq = 2, 257            # rows = 514 -> exercises row padding + a 2-step grid

    key = jax.random.PRNGKey(0)
    kx, kp = jax.random.split(key)
    x = jax.random.normal(kx, (batch, seq, in_ch), jnp.float32)
    params = init_mlp_block(kp, in_ch, out_ch, hidden_dim, num_layers)

    out = mlp_block_forward(x, params)
    out = jax.block_until_ready(out)

    assert out.shape == (batch, seq, out_ch), out.shape
    assert out.dtype == jnp.complex64, out.dtype
    assert bool(jnp.all(jnp.isfinite(out)))

    ref = jax.block_until_ready(mlp_block_reference(x, params))
    np.testing.assert_allclose(np.asarray(out), np.asarray(ref), atol=5e-2, rtol=5e-2)

    print("KERNEL_OK")
</pallas_src>

<mosaic_0001>
module attributes {stable_mosaic.version = 11 : i64} {
  func.func @kernel(%arg0: i32, %arg1: memref<512x2xf32, #tpu.memory_space<vmem>>, %arg2: memref<2x64xbf16, #tpu.memory_space<vmem>>, %arg3: memref<1x64xf32, #tpu.memory_space<vmem>>, %arg4: memref<1x64xf32, #tpu.memory_space<vmem>>, %arg5: memref<1x64xf32, #tpu.memory_space<vmem>>, %arg6: memref<64x64xbf16, #tpu.memory_space<vmem>>, %arg7: memref<1x64xf32, #tpu.memory_space<vmem>>, %arg8: memref<1x64xf32, #tpu.memory_space<vmem>>, %arg9: memref<1x64xf32, #tpu.memory_space<vmem>>, %arg10: memref<64x128xbf16, #tpu.memory_space<vmem>>, %arg11: memref<1x128xf32, #tpu.memory_space<vmem>>, %arg12: memref<512x128xf32, #tpu.memory_space<vmem>>) attributes {dimension_semantics = [#tpu.dimension_semantics<parallel>], iteration_bounds = array<i64: 2>, scalar_prefetch = 0 : i64, scratch_operands = 0 : i64, tpu.core_type = #tpu.core_type<tc>, window_params = [{transform_indices = @transform_0, window_bounds = array<i64: 512, 2>}, {pipeline_mode = #tpu.pipeline_mode<synchronous>, transform_indices = @transform_1, window_bounds = array<i64: 2, 64>}, {pipeline_mode = #tpu.pipeline_mode<synchronous>, transform_indices = @transform_2, window_bounds = array<i64: 1, 64>}, {pipeline_mode = #tpu.pipeline_mode<synchronous>, transform_indices = @transform_3, window_bounds = array<i64: 1, 64>}, {pipeline_mode = #tpu.pipeline_mode<synchronous>, transform_indices = @transform_4, window_bounds = array<i64: 1, 64>}, {pipeline_mode = #tpu.pipeline_mode<synchronous>, transform_indices = @transform_5, window_bounds = array<i64: 64, 64>}, {pipeline_mode = #tpu.pipeline_mode<synchronous>, transform_indices = @transform_6, window_bounds = array<i64: 1, 64>}, {pipeline_mode = #tpu.pipeline_mode<synchronous>, transform_indices = @transform_7, window_bounds = array<i64: 1, 64>}, {pipeline_mode = #tpu.pipeline_mode<synchronous>, transform_indices = @transform_8, window_bounds = array<i64: 1, 64>}, {pipeline_mode = #tpu.pipeline_mode<synchronous>, transform_indices = @transform_9, window_bounds = array<i64: 64, 128>}, {pipeline_mode = #tpu.pipeline_mode<synchronous>, transform_indices = @transform_10, window_bounds = array<i64: 1, 128>}, {transform_indices = @transform_11, window_bounds = array<i64: 512, 128>}]} {
    %c0 = arith.constant 0 : index
    %c0_0 = arith.constant 0 : index
    %0 = vector.load %arg1[%c0, %c0_0] : memref<512x2xf32, #tpu.memory_space<vmem>>, vector<512x2xf32>
    %c0_1 = arith.constant 0 : index
    %c0_2 = arith.constant 0 : index
    %1 = vector.load %arg2[%c0_1, %c0_2] : memref<2x64xbf16, #tpu.memory_space<vmem>>, vector<2x64xbf16>
    %2 = arith.truncf %0 : vector<512x2xf32> to vector<512x2xbf16>
    %cst = arith.constant dense<0.000000e+00> : vector<512x64xf32>
    %3 = tpu.matmul %2, %1, %cst {dimension_numbers = #tpu.dot_dimension_numbers<[1], [0], [0], [1], [0, 0, 1, 1], [], []>} : vector<512x2xbf16>, vector<2x64xbf16>, vector<512x64xf32> -> vector<512x64xf32>
    %c0_3 = arith.constant 0 : index
    %c0_4 = arith.constant 0 : index
    %4 = vector.load %arg3[%c0_3, %c0_4] : memref<1x64xf32, #tpu.memory_space<vmem>>, vector<1x64xf32>
    %5 = vector.broadcast %4 : vector<1x64xf32> to vector<512x64xf32>
    %6 = arith.addf %3, %5 : vector<512x64xf32>
    %c0_5 = arith.constant 0 : index
    %c0_6 = arith.constant 0 : index
    %7 = vector.load %arg4[%c0_5, %c0_6] : memref<1x64xf32, #tpu.memory_space<vmem>>, vector<1x64xf32>
    %c0_7 = arith.constant 0 : index
    %c0_8 = arith.constant 0 : index
    %8 = vector.load %arg5[%c0_7, %c0_8] : memref<1x64xf32, #tpu.memory_space<vmem>>, vector<1x64xf32>
    %cst_9 = arith.constant dense<0.000000e+00> : vector<512xf32>
    %9 = vector.multi_reduction <add>, %6, %cst_9 [1] : vector<512x64xf32> to vector<512xf32>
    %10 = vector.shape_cast %9 : vector<512xf32> to vector<512x1xf32>
    %cst_10 = arith.constant 6.400000e+01 : f32
    %11 = vector.broadcast %cst_10 : f32 to vector<512x1xf32>
    %12 = arith.divf %10, %11 : vector<512x1xf32>
    %13 = vector.broadcast %12 : vector<512x1xf32> to vector<512x64xf32>
    %14 = arith.subf %6, %13 : vector<512x64xf32>
    %15 = arith.mulf %14, %14 : vector<512x64xf32>
    %cst_11 = arith.constant dense<0.000000e+00> : vector<512xf32>
    %16 = vector.multi_reduction <add>, %15, %cst_11 [1] : vector<512x64xf32> to vector<512xf32>
    %17 = vector.shape_cast %16 : vector<512xf32> to vector<512x1xf32>
    %cst_12 = arith.constant 6.400000e+01 : f32
    %18 = vector.broadcast %cst_12 : f32 to vector<512x1xf32>
    %19 = arith.divf %17, %18 : vector<512x1xf32>
    %20 = vector.broadcast %12 : vector<512x1xf32> to vector<512x64xf32>
    %21 = arith.subf %6, %20 : vector<512x64xf32>
    %cst_13 = arith.constant 9.99999974E-6 : f32
    %22 = vector.broadcast %cst_13 : f32 to vector<512x1xf32>
    %23 = arith.addf %19, %22 : vector<512x1xf32>
    %24 = math.rsqrt %23 : vector<512x1xf32>
    %25 = vector.broadcast %24 : vector<512x1xf32> to vector<512x64xf32>
    %26 = arith.mulf %21, %25 : vector<512x64xf32>
    %27 = vector.broadcast %7 : vector<1x64xf32> to vector<512x64xf32>
    %28 = arith.mulf %26, %27 : vector<512x64xf32>
    %29 = vector.broadcast %8 : vector<1x64xf32> to vector<512x64xf32>
    %30 = arith.addf %28, %29 : vector<512x64xf32>
    %cst_14 = arith.constant 5.000000e-01 : f32
    %31 = vector.broadcast %cst_14 : f32 to vector<512x64xf32>
    %32 = arith.mulf %31, %30 : vector<512x64xf32>
    %cst_15 = arith.constant 0.707106769 : f32
    %33 = vector.broadcast %cst_15 : f32 to vector<512x64xf32>
    %34 = arith.mulf %30, %33 : vector<512x64xf32>
    %cst_16 = arith.constant 0.000000e+00 : f32
    %35 = vector.broadcast %cst_16 : f32 to vector<512x64xf32>
    %36 = arith.cmpf oge, %34, %35 : vector<512x64xf32>
    %cst_17 = arith.constant 1.000000e+00 : f32
    %cst_18 = arith.constant -1.000000e+00 : f32
    %37 = vector.broadcast %cst_17 : f32 to vector<512x64xf32>
    %38 = vector.broadcast %cst_18 : f32 to vector<512x64xf32>
    %39 = arith.select %36, %37, %38 : vector<512x64xi1>, vector<512x64xf32>
    %40 = math.absf %34 : vector<512x64xf32>
    %cst_19 = arith.constant 0.327591091 : f32
    %41 = vector.broadcast %cst_19 : f32 to vector<512x64xf32>
    %42 = arith.mulf %41, %40 : vector<512x64xf32>
    %cst_20 = arith.constant 1.000000e+00 : f32
    %43 = vector.broadcast %cst_20 : f32 to vector<512x64xf32>
    %44 = arith.addf %43, %42 : vector<512x64xf32>
    %cst_21 = arith.constant 1.000000e+00 : f32
    %45 = vector.broadcast %cst_21 : f32 to vector<512x64xf32>
    %46 = arith.divf %45, %44 : vector<512x64xf32>
    %cst_22 = arith.constant 1.06140542 : f32
    %47 = vector.broadcast %cst_22 : f32 to vector<512x64xf32>
    %48 = arith.mulf %47, %46 : vector<512x64xf32>
    %cst_23 = arith.constant -1.45315206 : f32
    %49 = vector.broadcast %cst_23 : f32 to vector<512x64xf32>
    %50 = arith.addf %48, %49 : vector<512x64xf32>
    %51 = arith.mulf %50, %46 : vector<512x64xf32>
    %cst_24 = arith.constant 1.42141378 : f32
    %52 = vector.broadcast %cst_24 : f32 to vector<512x64xf32>
    %53 = arith.addf %51, %52 : vector<512x64xf32>
    %54 = arith.mulf %53, %46 : vector<512x64xf32>
    %cst_25 = arith.constant -0.284496725 : f32
    %55 = vector.broadcast %cst_25 : f32 to vector<512x64xf32>
    %56 = arith.addf %54, %55 : vector<512x64xf32>
    %57 = arith.mulf %56, %46 : vector<512x64xf32>
    %cst_26 = arith.constant 0.254829586 : f32
    %58 = vector.broadcast %cst_26 : f32 to vector<512x64xf32>
    %59 = arith.addf %57, %58 : vector<512x64xf32>
    %60 = arith.mulf %59, %46 : vector<512x64xf32>
    %cst_27 = arith.constant 0.000000e+00 : f32
    %61 = vector.broadcast %cst_27 : f32 to vector<512x64xf32>
    %62 = arith.subf %61, %40 : vector<512x64xf32>
    %63 = arith.mulf %62, %40 : vector<512x64xf32>
    %64 = math.exp %63 : vector<512x64xf32>
    %65 = arith.mulf %60, %64 : vector<512x64xf32>
    %cst_28 = arith.constant 1.000000e+00 : f32
    %66 = vector.broadcast %cst_28 : f32 to vector<512x64xf32>
    %67 = arith.subf %66, %65 : vector<512x64xf32>
    %68 = arith.mulf %39, %67 : vector<512x64xf32>
    %cst_29 = arith.constant 1.000000e+00 : f32
    %69 = vector.broadcast %cst_29 : f32 to vector<512x64xf32>
    %70 = arith.addf %69, %68 : vector<512x64xf32>
    %71 = arith.mulf %32, %70 : vector<512x64xf32>
    %c0_30 = arith.constant 0 : index
    %c0_31 = arith.constant 0 : index
    %72 = vector.load %arg6[%c0_30, %c0_31] : memref<64x64xbf16, #tpu.memory_space<vmem>>, vector<64x64xbf16>
    %73 = arith.truncf %71 : vector<512x64xf32> to vector<512x64xbf16>
    %cst_32 = arith.constant dense<0.000000e+00> : vector<512x64xf32>
    %74 = tpu.matmul %73, %72, %cst_32 {dimension_numbers = #tpu.dot_dimension_numbers<[1], [0], [0], [1], [0, 0, 1, 1], [], []>} : vector<512x64xbf16>, vector<64x64xbf16>, vector<512x64xf32> -> vector<512x64xf32>
    %c0_33 = arith.constant 0 : index
    %c0_34 = arith.constant 0 : index
    %75 = vector.load %arg7[%c0_33, %c0_34] : memref<1x64xf32, #tpu.memory_space<vmem>>, vector<1x64xf32>
    %76 = vector.broadcast %75 : vector<1x64xf32> to vector<512x64xf32>
    %77 = arith.addf %74, %76 : vector<512x64xf32>
    %c0_35 = arith.constant 0 : index
    %c0_36 = arith.constant 0 : index
    %78 = vector.load %arg8[%c0_35, %c0_36] : memref<1x64xf32, #tpu.memory_space<vmem>>, vector<1x64xf32>
    %c0_37 = arith.constant 0 : index
    %c0_38 = arith.constant 0 : index
    %79 = vector.load %arg9[%c0_37, %c0_38] : memref<1x64xf32, #tpu.memory_space<vmem>>, vector<1x64xf32>
    %cst_39 = arith.constant dense<0.000000e+00> : vector<512xf32>
    %80 = vector.multi_reduction <add>, %77, %cst_39 [1] : vector<512x64xf32> to vector<512xf32>
    %81 = vector.shape_cast %80 : vector<512xf32> to vector<512x1xf32>
    %cst_40 = arith.constant 6.400000e+01 : f32
    %82 = vector.broadcast %cst_40 : f32 to vector<512x1xf32>
    %83 = arith.divf %81, %82 : vector<512x1xf32>
    %84 = vector.broadcast %83 : vector<512x1xf32> to vector<512x64xf32>
    %85 = arith.subf %77, %84 : vector<512x64xf32>
    %86 = arith.mulf %85, %85 : vector<512x64xf32>
    %cst_41 = arith.constant dense<0.000000e+00> : vector<512xf32>
    %87 = vector.multi_reduction <add>, %86, %cst_41 [1] : vector<512x64xf32> to vector<512xf32>
    %88 = vector.shape_cast %87 : vector<512xf32> to vector<512x1xf32>
    %cst_42 = arith.constant 6.400000e+01 : f32
    %89 = vector.broadcast %cst_42 : f32 to vector<512x1xf32>
    %90 = arith.divf %88, %89 : vector<512x1xf32>
    %91 = vector.broadcast %83 : vector<512x1xf32> to vector<512x64xf32>
    %92 = arith.subf %77, %91 : vector<512x64xf32>
    %cst_43 = arith.constant 9.99999974E-6 : f32
    %93 = vector.broadcast %cst_43 : f32 to vector<512x1xf32>
    %94 = arith.addf %90, %93 : vector<512x1xf32>
    %95 = math.rsqrt %94 : vector<512x1xf32>
    %96 = vector.broadcast %95 : vector<512x1xf32> to vector<512x64xf32>
    %97 = arith.mulf %92, %96 : vector<512x64xf32>
    %98 = vector.broadcast %78 : vector<1x64xf32> to vector<512x64xf32>
    %99 = arith.mulf %97, %98 : vector<512x64xf32>
    %100 = vector.broadcast %79 : vector<1x64xf32> to vector<512x64xf32>
    %101 = arith.addf %99, %100 : vector<512x64xf32>
    %cst_44 = arith.constant 5.000000e-01 : f32
    %102 = vector.broadcast %cst_44 : f32 to vector<512x64xf32>
    %103 = arith.mulf %102, %101 : vector<512x64xf32>
    %cst_45 = arith.constant 0.707106769 : f32
    %104 = vector.broadcast %cst_45 : f32 to vector<512x64xf32>
    %105 = arith.mulf %101, %104 : vector<512x64xf32>
    %cst_46 = arith.constant 0.000000e+00 : f32
    %106 = vector.broadcast %cst_46 : f32 to vector<512x64xf32>
    %107 = arith.cmpf oge, %105, %106 : vector<512x64xf32>
    %cst_47 = arith.constant 1.000000e+00 : f32
    %cst_48 = arith.constant -1.000000e+00 : f32
    %108 = vector.broadcast %cst_47 : f32 to vector<512x64xf32>
    %109 = vector.broadcast %cst_48 : f32 to vector<512x64xf32>
    %110 = arith.select %107, %108, %109 : vector<512x64xi1>, vector<512x64xf32>
    %111 = math.absf %105 : vector<512x64xf32>
    %cst_49 = arith.constant 0.327591091 : f32
    %112 = vector.broadcast %cst_49 : f32 to vector<512x64xf32>
    %113 = arith.mulf %112, %111 : vector<512x64xf32>
    %cst_50 = arith.constant 1.000000e+00 : f32
    %114 = vector.broadcast %cst_50 : f32 to vector<512x64xf32>
    %115 = arith.addf %114, %113 : vector<512x64xf32>
    %cst_51 = arith.constant 1.000000e+00 : f32
    %116 = vector.broadcast %cst_51 : f32 to vector<512x64xf32>
    %117 = arith.divf %116, %115 : vector<512x64xf32>
    %cst_52 = arith.constant 1.06140542 : f32
    %118 = vector.broadcast %cst_52 : f32 to vector<512x64xf32>
    %119 = arith.mulf %118, %117 : vector<512x64xf32>
    %cst_53 = arith.constant -1.45315206 : f32
    %120 = vector.broadcast %cst_53 : f32 to vector<512x64xf32>
    %121 = arith.addf %119, %120 : vector<512x64xf32>
    %122 = arith.mulf %121, %117 : vector<512x64xf32>
    %cst_54 = arith.constant 1.42141378 : f32
    %123 = vector.broadcast %cst_54 : f32 to vector<512x64xf32>
    %124 = arith.addf %122, %123 : vector<512x64xf32>
    %125 = arith.mulf %124, %117 : vector<512x64xf32>
    %cst_55 = arith.constant -0.284496725 : f32
    %126 = vector.broadcast %cst_55 : f32 to vector<512x64xf32>
    %127 = arith.addf %125, %126 : vector<512x64xf32>
    %128 = arith.mulf %127, %117 : vector<512x64xf32>
    %cst_56 = arith.constant 0.254829586 : f32
    %129 = vector.broadcast %cst_56 : f32 to vector<512x64xf32>
    %130 = arith.addf %128, %129 : vector<512x64xf32>
    %131 = arith.mulf %130, %117 : vector<512x64xf32>
    %cst_57 = arith.constant 0.000000e+00 : f32
    %132 = vector.broadcast %cst_57 : f32 to vector<512x64xf32>
    %133 = arith.subf %132, %111 : vector<512x64xf32>
    %134 = arith.mulf %133, %111 : vector<512x64xf32>
    %135 = math.exp %134 : vector<512x64xf32>
    %136 = arith.mulf %131, %135 : vector<512x64xf32>
    %cst_58 = arith.constant 1.000000e+00 : f32
    %137 = vector.broadcast %cst_58 : f32 to vector<512x64xf32>
    %138 = arith.subf %137, %136 : vector<512x64xf32>
    %139 = arith.mulf %110, %138 : vector<512x64xf32>
    %cst_59 = arith.constant 1.000000e+00 : f32
    %140 = vector.broadcast %cst_59 : f32 to vector<512x64xf32>
    %141 = arith.addf %140, %139 : vector<512x64xf32>
    %142 = arith.mulf %103, %141 : vector<512x64xf32>
    %c0_60 = arith.constant 0 : index
    %c0_61 = arith.constant 0 : index
    %143 = vector.load %arg10[%c0_60, %c0_61] : memref<64x128xbf16, #tpu.memory_space<vmem>>, vector<64x128xbf16>
    %144 = arith.truncf %142 : vector<512x64xf32> to vector<512x64xbf16>
    %cst_62 = arith.constant dense<0.000000e+00> : vector<512x128xf32>
    %145 = tpu.matmul %144, %143, %cst_62 {dimension_numbers = #tpu.dot_dimension_numbers<[1], [0], [0], [1], [0, 0, 1, 1], [], []>} : vector<512x64xbf16>, vector<64x128xbf16>, vector<512x128xf32> -> vector<512x128xf32>
    %c0_63 = arith.constant 0 : index
    %c0_64 = arith.constant 0 : index
    %146 = vector.load %arg11[%c0_63, %c0_64] : memref<1x128xf32, #tpu.memory_space<vmem>>, vector<1x128xf32>
    %147 = vector.broadcast %146 : vector<1x128xf32> to vector<512x128xf32>
    %148 = arith.addf %145, %147 : vector<512x128xf32>
    %c0_65 = arith.constant 0 : index
    %c0_66 = arith.constant 0 : index
    %149 = vector.load %arg12[%c0_65, %c0_66] : memref<512x128xf32, #tpu.memory_space<vmem>>, vector<512x128xf32>
    tpu.vector_store %arg12[%c0_65, %c0_66], %148 {strides = array<i32>} : memref<512x128xf32, #tpu.memory_space<vmem>>, vector<512x128xf32>,
    return
  }
  func.func @transform_0(%arg0: i32) -> (i32, i32) {
    %c0_i32 = arith.constant 0 : i32
    %c0_i32_0 = arith.constant 0 : i32
    return %arg0, %c0_i32 : i32, i32
  }
  func.func @transform_1(%arg0: i32) -> (i32, i32) {
    %c0_i32 = arith.constant 0 : i32
    %c0_i32_0 = arith.constant 0 : i32
    %c0_i32_1 = arith.constant 0 : i32
    return %c0_i32, %c0_i32_0 : i32, i32
  }
  func.func @transform_2(%arg0: i32) -> (i32, i32) {
    %c0_i32 = arith.constant 0 : i32
    %c0_i32_0 = arith.constant 0 : i32
    %c0_i32_1 = arith.constant 0 : i32
    return %c0_i32, %c0_i32_0 : i32, i32
  }
  func.func @transform_3(%arg0: i32) -> (i32, i32) {
    %c0_i32 = arith.constant 0 : i32
    %c0_i32_0 = arith.constant 0 : i32
    %c0_i32_1 = arith.constant 0 : i32
    return %c0_i32, %c0_i32_0 : i32, i32
  }
  func.func @transform_4(%arg0: i32) -> (i32, i32) {
    %c0_i32 = arith.constant 0 : i32
    %c0_i32_0 = arith.constant 0 : i32
    %c0_i32_1 = arith.constant 0 : i32
    return %c0_i32, %c0_i32_0 : i32, i32
  }
  func.func @transform_5(%arg0: i32) -> (i32, i32) {
    %c0_i32 = arith.constant 0 : i32
    %c0_i32_0 = arith.constant 0 : i32
    %c0_i32_1 = arith.constant 0 : i32
    return %c0_i32, %c0_i32_0 : i32, i32
  }
  func.func @transform_6(%arg0: i32) -> (i32, i32) {
    %c0_i32 = arith.constant 0 : i32
    %c0_i32_0 = arith.constant 0 : i32
    %c0_i32_1 = arith.constant 0 : i32
    return %c0_i32, %c0_i32_0 : i32, i32
  }
  func.func @transform_7(%arg0: i32) -> (i32, i32) {
    %c0_i32 = arith.constant 0 : i32
    %c0_i32_0 = arith.constant 0 : i32
    %c0_i32_1 = arith.constant 0 : i32
    return %c0_i32, %c0_i32_0 : i32, i32
  }
  func.func @transform_8(%arg0: i32) -> (i32, i32) {
    %c0_i32 = arith.constant 0 : i32
    %c0_i32_0 = arith.constant 0 : i32
    %c0_i32_1 = arith.constant 0 : i32
    return %c0_i32, %c0_i32_0 : i32, i32
  }
  func.func @transform_9(%arg0: i32) -> (i32, i32) {
    %c0_i32 = arith.constant 0 : i32
    %c0_i32_0 = arith.constant 0 : i32
    %c0_i32_1 = arith.constant 0 : i32
    return %c0_i32, %c0_i32_0 : i32, i32
  }
  func.func @transform_10(%arg0: i32) -> (i32, i32) {
    %c0_i32 = arith.constant 0 : i32
    %c0_i32_0 = arith.constant 0 : i32
    %c0_i32_1 = arith.constant 0 : i32
    return %c0_i32, %c0_i32_0 : i32, i32
  }
  func.func @transform_11(%arg0: i32) -> (i32, i32) {
    %c0_i32 = arith.constant 0 : i32
    %c0_i32_0 = arith.constant 0 : i32
    return %arg0, %c0_i32 : i32, i32
  }
}

</mosaic_0001>

<bundles_post_ra>
// kernel: tpu_custom_call.1
= control target key start
LH: loop header
LB: loop body
LE: loop exit
PB: predicated region body
PF: predicated region fallthrough
CT: control target
= control target key end

     0   :  { %s15793_s0 = inlined_call_operand.hbm [shape: f32[1024,2], index: 0, kind: input, shape index: {}]   ;;  %s15794_s1 = inlined_call_operand.hbm [shape: bf16[2,64], index: 1, kind: input, shape index: {}]   ;;  %s15795_s2 = inlined_call_operand.hbm [shape: f32[1,64], index: 2, kind: input, shape index: {}]   ;;  %s15796_s3 = inlined_call_operand.hbm [shape: f32[1,64], index: 3, kind: input, shape index: {}]   ;;  %s15797_s4 = inlined_call_operand.hbm [shape: f32[1,64], index: 4, kind: input, shape index: {}]   ;;  %s15798_s5 = inlined_call_operand.hbm [shape: bf16[64,64], index: 5, kind: input, shape index: {}]   ;;  %s15799_s6 = inlined_call_operand.hbm [shape: f32[1,64], index: 6, kind: input, shape index: {}]   ;;  %s15800_s7 = inlined_call_operand.hbm [shape: f32[1,64], index: 7, kind: input, shape index: {}]   ;;  %s15801_s8 = inlined_call_operand.hbm [shape: f32[1,64], index: 8, kind: input, shape index: {}]   ;;  %s15802_s9 = inlined_call_operand.hbm [shape: bf16[64,128], index: 9, kind: input, shape index: {}]   ;;  %s15803_s10 = inlined_call_operand.hbm [shape: f32[1,128], index: 10, kind: input, shape index: {}]   ;;  %s15804_s11 = inlined_call_operand.hbm [shape: f32[1024,128], index: 11, kind: output, shape index: {}]  }
   0x1   :  { %15946 = sst [smem:[#allocation81_spill]] %s15793_s0 }
   0x2   :  { %15947 = sst [smem:[#allocation82_spill]] %s15794_s1 }
   0x3   :  { %15948 = sst [smem:[#allocation83_spill]] %s15796_s3 }
   0x4   :  { %15949 = sst [smem:[#allocation84_spill]] %s15804_s11 }
   0x5   :  { %16 = vsyncpa [#allocation3], 0 }
   0x6   :  { %18 = vsyncpa [#allocation3 + $0x1], 0 }
   0x7   :  { %19 = vsyncpa [#allocation6], 0 }
   0x8   :  { %20 = vsyncpa [#allocation9], 0 }
   0x9   :  { %21 = vsyncpa [#allocation12], 0 }
   0xa   :  { %22 = vsyncpa [#allocation15], 0 }
   0xb   :  { %23 = vsyncpa [#allocation18], 0 }
   0xc   :  { %24 = vsyncpa [#allocation4], 0 }
   0xd   :  { %26 = vsyncpa [#allocation4 + $0x1], 0  ;;  %s9484_s17 = smov 0   ;;  %s9486_s18 = smov 0  }
   0xe   :  { %s9488_s19 = smov 0   ;;  %s9490_s20 = smov 0  }
   0xf LB: > { %s9405_s21 = smov [#allocation5]   ;;  %s9505_s23 = sadd.s32 4294967295, %s9403_s20   ;;  %s9403_s20 = sphi %s9490_s20, %s16340_s20   ;;  %s9399_s19 = sphi %s9488_s19, %s16339_s19   ;;  %s9395_s18 = sphi %s9486_s18, %s16338_s18   ;;  %s9391_s17 = sphi %s9484_s17, %s16337_s17  }
  0x10   : > { %s312_s22 = sshll.u32 %s9405_s21, 4  ;;  %p7596_p0 = scmp.ge.s32.totalorder %s9403_s20, 1  ;;  %s9510_s22 = int_to_ptr.vmem [resolvable:$true] %s312_s22 }
  0x11   : > { %p15808_p1 = scmp.eq.s32.totalorder %s9505_s23, 0  ;;  %p299_p2 = scmp.lt.s32.totalorder %s9403_s20, 3 }
  0x12   : > { %s9406_s25 = smov [#allocation8]   ;;  %s9407_s27 = smov [#allocation11]  }
  0x13   : > { %p9512_p3 = pnand %p7596_p0, %p299_p2  ;;  %s334_s26 = sshll.u32 %s9406_s25, 4  ;;  %s9519_s26 = int_to_ptr.vmem [resolvable:$true] %s334_s26 }
  0x14   : > { %s355_s28 = sshll.u32 %s9407_s27, 4  ;;  %s15953_s1 = sld [smem:[#allocation82_spill]]  ;;  %s9527_s28 = int_to_ptr.vmem [resolvable:$true] %s355_s28 }
  0x15   : > { %s15950_s24 = scalar_select %p9512_p3, 1, 0 }
  0x16   : > { %p8105_p5 = pneg %p9512_p3 }
  0x17   : > { %15951 = sst [smem:[#allocation28_spill]] %s15950_s24 }
  0x18   : > { %p9523_p6 = pnand %p8105_p5, %p15808_p1 }
  0x1a   : > { %s9007_s13 = scalar_lea.hbm %s15953_s1, 16  ;;  %p9537_p8 = pneg %p9523_p6 }
  0x1b   : > { %p9008_p7 = scmp.ne.s32.totalorder %s15953_s1, %s9007_s13  ;;  %p9014_p11 = scmp.lt.u32.totalorder %s9007_s13, %s15953_s1 }
  0x1d   : > { %p9010_p9 = pnand %p9537_p8, %p9008_p7 }
  0x1f   : > { %p9011_p10 = pneg %p9010_p9 }
  0x21   : > { %p9016_p12 = pnand %p9014_p11, %p9011_p10 }
  0x23   : > { %9019 = shalt.err (!%p9016_p12)
}
  0x24   : > { %s9020_s27 = scalar_lea.vmem %s9510_s22, 16  ;;  %s9027_s30 = scalar_lea.vmem %s9510_s22, 32 }
  0x25   : > { %p9021_p13 = scmp.ne.s32.totalorder %s9510_s22, %s9020_s27  ;;  %p9028_p5 = scmp.lt.s32.totalorder %s9510_s22, %s9510_s22 }
  0x26   : > { %p9029_p7 = scmp.lt.s32.totalorder %s9027_s30, %s9020_s27 }
  0x27   : > { %p9023_p0 = pnand %p9021_p13, %p9537_p8 }
  0x28   : > { %p9030_p9 = por %p9029_p7, %p9028_p5 }
  0x29   : > { %p9024_p2 = pneg %p9023_p0 }
  0x2b   : > { %p9031_p4 = pnand %p9030_p9, %p9024_p2 }
  0x2d   : > { %9034 = shalt.err (!%p9031_p4)
}
  0x2e   : > { %8108 = dma.hbm_to_vmem [thread:$0]  (!%p9523_p6), %s15953_s1, 16, %s9510_s22, [#allocation6]  }
  0x2f   : > { %s15955_s3 = sld [smem:[#allocation83_spill]] }
  0x35   : > { %s9035_s21 = scalar_lea.hbm %s15955_s3, 16 }
  0x36   : > { %p9036_p10 = scmp.ne.s32.totalorder %s15955_s3, %s9035_s21  ;;  %p9042_p4 = scmp.lt.u32.totalorder %s9035_s21, %s15955_s3 }
  0x38   : > { %p9038_p11 = pnand %p9036_p10, %p9537_p8 }
  0x3a   : > { %p9039_p12 = pneg %p9038_p11 }
  0x3c   : > { %p9044_p13 = pnand %p9042_p4, %p9039_p12 }
  0x3e   : > { %9047 = shalt.err (!%p9044_p13)
}
  0x3f   : > { %s9048_s22 = scalar_lea.vmem %s9519_s26, 16  ;;  %s9055_s11 = scalar_lea.vmem %s9519_s26, 32 }
  0x40   : > { %p9049_p0 = scmp.ne.s32.totalorder %s9519_s26, %s9048_s22  ;;  %p9056_p7 = scmp.lt.s32.totalorder %s9519_s26, %s9519_s26 }
  0x41   : > { %p9057_p9 = scmp.lt.s32.totalorder %s9055_s11, %s9048_s22 }
  0x42   : > { %p9051_p2 = pnand %p9049_p0, %p9537_p8 }
  0x43   : > { %p9058_p10 = por %p9057_p9, %p9056_p7 }
  0x44   : > { %p9052_p5 = pneg %p9051_p2 }
  0x46   : > { %p9059_p11 = pnand %p9058_p10, %p9052_p5 }
  0x48   : > { %9062 = shalt.err (!%p9059_p11)
}
  0x49   : > { %8114 = dma.hbm_to_vmem [thread:$0]  (!%p9523_p6), %s15955_s3, 16, %s9519_s26, [#allocation9]  }
  0x4a   : > { %s9063_s21 = scalar_lea.hbm %s15798_s5, 512 }
  0x4b   : > { %p9064_p12 = scmp.ne.s32.totalorder %s15798_s5, %s9063_s21  ;;  %p9070_p0 = scmp.lt.u32.totalorder %s9063_s21, %s15798_s5 }
  0x4d   : > { %p9066_p4 = pnand %p9064_p12, %p9537_p8 }
  0x4f   : > { %p9067_p13 = pneg %p9066_p4 }
  0x51   : > { %p9072_p2 = pnand %p9070_p0, %p9067_p13 }
  0x53   : > { %9075 = shalt.err (!%p9072_p2)
}
  0x54   : > { %s9076_s26 = scalar_lea.vmem %s9527_s28, 512  ;;  %p9084_p10 = scmp.lt.s32.totalorder %s9527_s28, %s9527_s28 }
  0x55   : > { %p9077_p5 = scmp.ne.s32.totalorder %s9527_s28, %s9076_s26  ;;  %p9085_p11 = scmp.lt.s32.totalorder %s9076_s26, %s9076_s26 }
  0x57   : > { %p9079_p7 = pnand %p9077_p5, %p9537_p8  ;;  %p9086_p12 = por %p9085_p11, %p9084_p10 }
  0x59   : > { %p9080_p9 = pneg %p9079_p7 }
  0x5b   : > { %p9087_p4 = pnand %p9086_p12, %p9080_p9 }
  0x5d   : > { %9090 = shalt.err (!%p9087_p4)
}
  0x5e   : > { %s9408_s11 = smov 64   ;;  %s9409_s12 = smov 4  }
  0x5f   : > { %8120 = dma.hbm_to_vmem [thread:$0]  (!%p9523_p6), %s15798_s5, 512, %s9527_s28, [#allocation12], %s9408_s11, %s9408_s11, %s9409_s12  }
  0x60   : > { %s9410_s15 = smov [#allocation14]   ;;  %s9411_s25 = smov [#allocation17]  }
  0x61   : > { %s380_s21 = sshll.u32 %s9410_s15, 4  ;;  %s401_s27 = sshll.u32 %s9411_s25, 4  ;;  %s381_s21 = int_to_ptr.vmem [resolvable:$true] %s380_s21  ;;  %s402_s27 = int_to_ptr.vmem [resolvable:$true] %s401_s27 }
  0x62   : > { %s9091_s26 = scalar_lea.hbm %s15800_s7, 16 }
  0x63   : > { %p9092_p13 = scmp.ne.s32.totalorder %s15800_s7, %s9091_s26  ;;  %p9098_p5 = scmp.lt.u32.totalorder %s9091_s26, %s15800_s7 }
  0x65   : > { %p9094_p0 = pnand %p9092_p13, %p9537_p8 }
  0x67   : > { %p9095_p2 = pneg %p9094_p0 }
  0x69   : > { %p9100_p7 = pnand %p9098_p5, %p9095_p2 }
  0x6b   : > { %9103 = shalt.err (!%p9100_p7)
}
  0x6c   : > { %s9104_s28 = scalar_lea.vmem %s381_s21, 16  ;;  %s9111_s13 = scalar_lea.vmem %s381_s21, 32 }
  0x6d   : > { %p9105_p9 = scmp.ne.s32.totalorder %s381_s21, %s9104_s28  ;;  %p9112_p12 = scmp.lt.s32.totalorder %s381_s21, %s381_s21 }
  0x6e   : > { %p9113_p4 = scmp.lt.s32.totalorder %s9111_s13, %s9104_s28 }
  0x6f   : > { %p9107_p10 = pnand %p9105_p9, %p9537_p8 }
  0x70   : > { %p9114_p1 = por %p9113_p4, %p9112_p12 }
  0x71   : > { %p9108_p11 = pneg %p9107_p10 }
  0x73   : > { %p9115_p3 = pnand %p9114_p1, %p9108_p11 }
  0x75   : > { %9118 = shalt.err (!%p9115_p3)
}
  0x76   : > { %8126 = dma.hbm_to_vmem [thread:$0]  (!%p9523_p6), %s15800_s7, 16, %s381_s21, [#allocation15]  }
  0x77   : > { %s9119_s14 = scalar_lea.hbm %s15802_s9, 512 }
  0x78   : > { %p9120_p13 = scmp.ne.s32.totalorder %s15802_s9, %s9119_s14  ;;  %p9126_p3 = scmp.lt.u32.totalorder %s9119_s14, %s15802_s9 }
  0x7a   : > { %p9122_p0 = pnand %p9120_p13, %p9537_p8 }
  0x7c   : > { %p9123_p1 = pneg %p9122_p0 }
  0x7e   : > { %p9128_p2 = pnand %p9126_p3, %p9123_p1 }
  0x80   : > { %9131 = shalt.err (!%p9128_p2)
}
  0x81   : > { %s9132_s26 = scalar_lea.vmem %s402_s27, 512  ;;  %p9140_p10 = scmp.lt.s32.totalorder %s402_s27, %s402_s27 }
  0x82   : > { %p9133_p5 = scmp.ne.s32.totalorder %s402_s27, %s9132_s26  ;;  %p9141_p11 = scmp.lt.s32.totalorder %s9132_s26, %s9132_s26 }
  0x84   : > { %p9135_p7 = pnand %p9133_p5, %p9537_p8  ;;  %p9142_p12 = por %p9141_p11, %p9140_p10 }
  0x86   : > { %p9136_p9 = pneg %p9135_p7 }
  0x88   : > { %p9143_p4 = pnand %p9142_p12, %p9136_p9 }
  0x8a   : > { %9146 = shalt.err (!%p9143_p4)
}
  0x8b   : > { %8132 = dma.hbm_to_vmem [thread:$0]  (!%p9523_p6), %s15802_s9, 512, %s402_s27, [#allocation18], %s9408_s11, %s9408_s11, %s9409_s12  }
  0x8c   : > { %s9412_s13 = smov [#allocation7]   ;;  %s9413_s3 = smov [#allocation10]  }
  0x8d   : > { %s323_s1 = sshll.u32 %s9412_s13, 4  ;;  %s345_s0 = sshll.u32 %s9413_s3, 4  ;;  %s324_s1 = int_to_ptr.vmem [resolvable:$true] %s323_s1  ;;  %s346_s0 = int_to_ptr.vmem [resolvable:$true] %s345_s0 }
  0x8e   : > { %s9147_s15 = scalar_lea.hbm %s15795_s2, 16 }
  0x8f   : > { %p9148_p13 = scmp.ne.s32.totalorder %s15795_s2, %s9147_s15  ;;  %p9154_p3 = scmp.lt.u32.totalorder %s9147_s15, %s15795_s2 }
  0x91   : > { %p9150_p0 = pnand %p9148_p13, %p9537_p8 }
  0x93   : > { %p9151_p1 = pneg %p9150_p0 }
  0x95   : > { %p9156_p2 = pnand %p9154_p3, %p9151_p1 }
  0x97   : > { %9159 = shalt.err (!%p9156_p2)
}
  0x98   : > { %s9160_s11 = scalar_lea.vmem %s324_s1, 16  ;;  %s9167_s12 = scalar_lea.vmem %s324_s1, 32 }
  0x99   : > { %p9161_p5 = scmp.ne.s32.totalorder %s324_s1, %s9160_s11  ;;  %p9168_p10 = scmp.lt.s32.totalorder %s324_s1, %s324_s1 }
  0x9a   : > { %p9169_p11 = scmp.lt.s32.totalorder %s9167_s12, %s9160_s11 }
  0x9b   : > { %p9163_p7 = pnand %p9161_p5, %p9537_p8 }
  0x9c   : > { %p9170_p12 = por %p9169_p11, %p9168_p10 }
  0x9d   : > { %p9164_p9 = pneg %p9163_p7 }
  0x9f   : > { %p9171_p4 = pnand %p9170_p12, %p9164_p9 }
  0xa1   : > { %9174 = shalt.err (!%p9171_p4)
}
  0xa2   : > { %8111 = dma.hbm_to_vmem [thread:$0]  (!%p9523_p6), %s15795_s2, 16, %s324_s1, [#allocation6]  }
  0xa3   : > { %s9175_s3 = scalar_lea.hbm %s15797_s4, 16 }
  0xa4   : > { %p9176_p13 = scmp.ne.s32.totalorder %s15797_s4, %s9175_s3  ;;  %p9182_p3 = scmp.lt.u32.totalorder %s9175_s3, %s15797_s4 }
  0xa6   : > { %p9178_p0 = pnand %p9176_p13, %p9537_p8 }
  0xa8   : > { %p9179_p1 = pneg %p9178_p0 }
  0xaa   : > { %p9184_p2 = pnand %p9182_p3, %p9179_p1 }
  0xac   : > { %9187 = shalt.err (!%p9184_p2)
}
  0xad   : > { %s9188_s30 = scalar_lea.vmem %s346_s0, 16  ;;  %s9195_s1 = scalar_lea.vmem %s346_s0, 32 }
  0xae   : > { %p9189_p5 = scmp.ne.s32.totalorder %s346_s0, %s9188_s30  ;;  %p9196_p10 = scmp.lt.s32.totalorder %s346_s0, %s346_s0 }
  0xaf   : > { %p9197_p11 = scmp.lt.s32.totalorder %s9195_s1, %s9188_s30 }
  0xb0   : > { %p9191_p7 = pnand %p9189_p5, %p9537_p8 }
  0xb1   : > { %p9198_p12 = por %p9197_p11, %p9196_p10 }
  0xb2   : > { %p9192_p9 = pneg %p9191_p7 }
  0xb4   : > { %p9199_p4 = pnand %p9198_p12, %p9192_p9 }
  0xb6   : > { %9202 = shalt.err (!%p9199_p4)
}
  0xb7   : > { %8117 = dma.hbm_to_vmem [thread:$0]  (!%p9523_p6), %s15797_s4, 16, %s346_s0, [#allocation9]  }
  0xb8   : > { %s9414_s11 = smov [#allocation13]   ;;  %s9415_s27 = smov [#allocation16]  }
  0xb9   : > { %s369_s12 = sshll.u32 %s9414_s11, 4  ;;  %s391_s21 = sshll.u32 %s9415_s27, 4  ;;  %s370_s12 = int_to_ptr.vmem [resolvable:$true] %s369_s12  ;;  %s392_s21 = int_to_ptr.vmem [resolvable:$true] %s391_s21 }
  0xba   : > { %s9203_s3 = scalar_lea.hbm %s15799_s6, 16 }
  0xbb   : > { %p9204_p13 = scmp.ne.s32.totalorder %s15799_s6, %s9203_s3  ;;  %p9210_p3 = scmp.lt.u32.totalorder %s9203_s3, %s15799_s6 }
  0xbd   : > { %p9206_p0 = pnand %p9204_p13, %p9537_p8 }
  0xbf   : > { %p9207_p1 = pneg %p9206_p0 }
  0xc1   : > { %p9212_p2 = pnand %p9210_p3, %p9207_p1 }
  0xc3   : > { %9215 = shalt.err (!%p9212_p2)
}
  0xc4   : > { %s9216_s0 = scalar_lea.vmem %s370_s12, 16  ;;  %s9223_s30 = scalar_lea.vmem %s370_s12, 32 }
  0xc5   : > { %p9217_p5 = scmp.ne.s32.totalorder %s370_s12, %s9216_s0  ;;  %p9224_p10 = scmp.lt.s32.totalorder %s370_s12, %s370_s12 }
  0xc6   : > { %p9225_p11 = scmp.lt.s32.totalorder %s9223_s30, %s9216_s0 }
  0xc7   : > { %p9219_p7 = pnand %p9217_p5, %p9537_p8 }
  0xc8   : > { %p9226_p12 = por %p9225_p11, %p9224_p10 }
  0xc9   : > { %p9220_p9 = pneg %p9219_p7 }
  0xcb   : > { %p9227_p4 = pnand %p9226_p12, %p9220_p9 }
  0xcd   : > { %9230 = shalt.err (!%p9227_p4)
}
  0xce   : > { %8123 = dma.hbm_to_vmem [thread:$0]  (!%p9523_p6), %s15799_s6, 16, %s370_s12, [#allocation12]  }
  0xcf   : > { %s9231_s27 = scalar_lea.hbm %s15801_s8, 16 }
  0xd0   : > { %p9232_p13 = scmp.ne.s32.totalorder %s15801_s8, %s9231_s27  ;;  %p9238_p3 = scmp.lt.u32.totalorder %s9231_s27, %s15801_s8 }
  0xd2   : > { %p9234_p0 = pnand %p9232_p13, %p9537_p8 }
  0xd4   : > { %p9235_p1 = pneg %p9234_p0 }
  0xd6   : > { %p9240_p2 = pnand %p9238_p3, %p9235_p1 }
  0xd8   : > { %9243 = shalt.err (!%p9240_p2)
}
  0xd9   : > { %s9244_s14 = scalar_lea.vmem %s392_s21, 16  ;;  %s9251_s12 = scalar_lea.vmem %s392_s21, 32 }
  0xda   : > { %p9245_p5 = scmp.ne.s32.totalorder %s392_s21, %s9244_s14  ;;  %p9252_p10 = scmp.lt.s32.totalorder %s392_s21, %s392_s21 }
  0xdb   : > { %p9253_p11 = scmp.lt.s32.totalorder %s9251_s12, %s9244_s14 }
  0xdc   : > { %p9247_p7 = pnand %p9245_p5, %p9537_p8 }
  0xdd   : > { %p9254_p12 = por %p9253_p11, %p9252_p10 }
  0xde   : > { %p9248_p9 = pneg %p9247_p7 }
  0xe0   : > { %p9255_p4 = pnand %p9254_p12, %p9248_p9 }
  0xe2   : > { %9258 = shalt.err (!%p9255_p4)
}
  0xe3   : > { %8129 = dma.hbm_to_vmem [thread:$0]  (!%p9523_p6), %s15801_s8, 16, %s392_s21, [#allocation15]  }
  0xe4   : > { %s9416_s0 = smov [#allocation19]   ;;  %s9259_s26 = scalar_lea.hbm %s15803_s10, 16 }
  0xe5   : > { %s415_s30 = sshll.u32 %s9416_s0, 4  ;;  %p9260_p13 = scmp.ne.s32.totalorder %s15803_s10, %s9259_s26  ;;  %s416_s30 = int_to_ptr.vmem [resolvable:$true] %s415_s30 }
  0xe6   : > { %p9266_p3 = scmp.lt.u32.totalorder %s9259_s26, %s15803_s10 }
  0xe7   : > { %p9262_p0 = pnand %p9260_p13, %p9537_p8 }
  0xe9   : > { %p9263_p1 = pneg %p9262_p0 }
  0xeb   : > { %p9268_p2 = pnand %p9266_p3, %p9263_p1 }
  0xed   : > { %9271 = shalt.err (!%p9268_p2)
}
  0xee   : > { %s9272_s21 = scalar_lea.vmem %s416_s30, 16  ;;  %s9279_s3 = scalar_lea.vmem %s416_s30, 32 }
  0xef   : > { %p9273_p5 = scmp.ne.s32.totalorder %s416_s30, %s9272_s21  ;;  %p9280_p10 = scmp.lt.s32.totalorder %s416_s30, %s416_s30 }
  0xf0   : > { %p9281_p11 = scmp.lt.s32.totalorder %s9279_s3, %s9272_s21 }
  0xf1   : > { %p9275_p7 = pnand %p9273_p5, %p9537_p8 }
  0xf2   : > { %p9282_p12 = por %p9281_p11, %p9280_p10 }
  0xf3   : > { %p9276_p9 = pneg %p9275_p7 }
  0xf5   : > { %p9283_p4 = pnand %p9282_p12, %p9276_p9 }
  0xf7   : > { %9286 = shalt.err (!%p9283_p4)
}
  0xf8   : > { %8135 = dma.hbm_to_vmem [thread:$0]  (!%p9523_p6), %s15803_s10, 16, %s416_s30, [#allocation18]  }
  0xf9   : > { %s7595_s16 = sadd.s32 4294967294, %s9403_s20   ;;  %s9740_s29 = sadd.s32 1, %s9403_s20  }
  0xfa   : > { %s36_s12 = ssub.s32 %s9403_s20, %s9740_s29  ;;  %s39_s15 = sadd.s32 1, %s9399_s19 }
  0xfb   : > { %p37_p8 = scmp.eq.s32.totalorder %s36_s12, 0  ;;  %p46_p13 = scmp.ne.s32.totalorder %s9399_s19, %s9395_s18 }
  0xfc   : > { %p47_p0 = scmp.eq.s32.totalorder %s9403_s20, 0  ;;  %p52_p1 = scmp.ne.s32.totalorder %s9395_s18, %s9391_s17 }
  0xfd   : > { %s9751_s25 = scalar_select %p37_p8, %s9399_s19, %s39_s15  }
  0xfe   : > { %p9753_p3 = por %p47_p0, %p46_p13  ;;  %p15957_p2 = scmp.eq.s32.totalorder %s9505_s23, 0 }
  0xff   : > { %p286_p5 = scmp.eq.s32.totalorder %s9505_s23, 1  ;;  %p292_p7 = scmp.eq.s32.totalorder %s7595_s16, 1 }
 0x100   : > { %p9759_p6 = por %p15957_p2, %p52_p1  ;;  %p8154_p9 = scmp.lt.s32.totalorder %s9403_s20, 2 }
 0x101   : > { %s426_s1 = sand.u32 1, %s9399_s19   ;;  %p9766_p10 = por %p286_p5, %p46_p13 }
 0x102   : > { %p9770_p11 = por %p292_p7, %p52_p1  ;;  %s7608_s11 = sshll.u32 %s426_s1, 9 }
 0x103   : > { %s15959_s22 = scalar_select %p9766_p10, 1, 0 }
 0x104   : > { %s15960_s26 = scalar_select %p9770_p11, 1, 0 }
 0x105   : > { %s7740_s27 = sshll.u32 %s9403_s20, 13  ;;  %s15961_s21 = sld [smem:[#allocation81_spill]] }
 0x106   : > { %s430_s24 = scalar_lea.vmem [#allocation2], %s7608_s11  ;;  %p9784_p12 = pnand %p8154_p9, %p9753_p3 }
 0x107   : > { %s437_s14 = sshll.u32 %s430_s24, 4  ;;  %s9788_s12 = scalar_lea.sflag [#allocation3], %s426_s1  ;;  %s9780_s14 = int_to_ptr.vmem [resolvable:$true] %s437_s14 }
 0x108   : > { %p9289_p8 = pneg %p9784_p12 }
 0x10b   : > { %s9778_s3 = scalar_lea.hbm %s15961_s21, %s7740_s27  ;;  %s9292_s0 = scalar_lea.hbm %s15961_s21, 16384 }
 0x10c   : > { %s9287_s15 = scalar_lea.hbm %s9778_s3, 8192  ;;  %p9293_p1 = scmp.lt.u32.totalorder %s9778_s3, %s15961_s21 }
 0x10d   : > { %p9288_p4 = scmp.ne.s32.totalorder %s9778_s3, %s9287_s15  ;;  %p9294_p3 = scmp.lt.u32.totalorder %s9292_s0, %s9287_s15 }
 0x10e   : > { %p9296_p5 = scmp.lt.u32.totalorder %s9287_s15, %s9778_s3 }
 0x10f   : > { %p9290_p13 = pnand %p9289_p8, %p9288_p4  ;;  %p9295_p2 = por %p9294_p3, %p9293_p1 }
 0x111   : > { %p9291_p0 = pneg %p9290_p13  ;;  %p9297_p7 = por %p9296_p5, %p9295_p2 }
 0x113   : > { %p9298_p9 = pnand %p9297_p7, %p9291_p0 }
 0x115   : > { %9301 = shalt.err (!%p9298_p9)
}
 0x116   : > { %s9302_s1 = scalar_lea.vmem %s9780_s14, 8192  ;;  %s9417_s24 = smov [#allocation2]  }
 0x117   : > { %p9303_p4 = scmp.ne.s32.totalorder %s9780_s14, %s9302_s1  ;;  %s9307_s11 = sshll.u32 %s9417_s24, 4  ;;  %s9308_s11 = int_to_ptr.vmem [resolvable:$false] %s9307_s11 }
 0x118   : > { %s9309_s27 = scalar_lea.vmem %s9308_s11, 16384  ;;  %p9310_p10 = scmp.lt.s32.totalorder %s9780_s14, %s9308_s11 }
 0x119   : > { %p9305_p13 = pnand %p9303_p4, %p9289_p8  ;;  %p9311_p1 = scmp.lt.s32.totalorder %s9309_s27, %s9302_s1 }
 0x11b   : > { %p9306_p11 = pneg %p9305_p13  ;;  %p9312_p3 = por %p9311_p1, %p9310_p10 }
 0x11d   : > { %p9313_p2 = pnand %p9312_p3, %p9306_p11 }
 0x11f   : > { %9316 = shalt.err (!%p9313_p2)
}
 0x120   : > { %s9418_s15 = smov 128   ;;  %s9419_s0 = smov 8  }
 0x121   : > { %8139 = dma.hbm_to_vmem [thread:$0]  (!%p9784_p12), %s9778_s3, 8192, %s9780_s14, %s9788_s12, %s9418_s15, %s9418_s15, %s9419_s0  }
 0x122   : > { %s15963_s28 = sld [smem:[#allocation28_spill]] }
 0x128   : > { %p15964_p8 = scmp.ne.s32.totalorder %s15963_s28, 0 }
 0x12a   : > { %449 = sbr.rel (%p15964_p8) target bundleno = 2562 (0xa02), region = 64 }
 0x131   : > { %s9819_s13 = sand.u32 1, %s9395_s18  }
 0x132   : > { %s7612_s1 = sshll.u32 %s9819_s13, 9  ;;  %s452_s24 = scalar_lea.sflag [#allocation3], %s9819_s13 }
 0x133   : > { %s9825_s11 = scalar_lea.vmem [#allocation2], %s7612_s1 }
 0x134   : > { %9362 = dma.done.wait (%p9759_p6), %s452_s24, 8192  }
 0x135   : > { %9364 = vsyncadd (%p9759_p6), %s452_s24, 4294959104  ;;  %p15965_p10 = scmp.eq.s32.totalorder %s9505_s23, 0 }
 0x137   : > { %9366 = dma.done.wait (%p15965_p10), [#allocation6], 32   ;;  %p15966_p11 = pmov %p15965_p10 }
 0x138   : > { %p15967_p12 = pmov %p15965_p10 }
 0x139   : > { %9368 = vsyncadd (%p15966_p11), [#allocation6], 4294967264 }
 0x13a   : > { %9370 = dma.done.wait (%p15967_p12), [#allocation9], 32   ;;  %p15968_p0 = pmov %p15965_p10 }
 0x13c   : > { %9372 = vsyncadd (%p15968_p0), [#allocation9], 4294967264  ;;  %p15969_p5 = pmov %p15968_p0 }
 0x13d   : > { %p15970_p7 = pmov %p15968_p0 }
 0x13e   : > { %9374 = dma.done.wait (%p15969_p5), [#allocation12], 528  }
 0x13f   : > { %9376 = vsyncadd (%p15970_p7), [#allocation12], 4294966768  ;;  %p15971_p6 = pmov %p15968_p0 }
 0x140   : > { %p15972_p9 = pmov %p15968_p0 }
 0x141   : > { %9378 = dma.done.wait (%p15971_p6), [#allocation15], 32  }
 0x142   : > { %9380 = vsyncadd (%p15972_p9), [#allocation15], 4294967264  ;;  %p15973_p4 = pmov %p15968_p0 }
 0x143   : > { %p15974_p13 = pmov %p15968_p0 }
 0x144   : > { %9382 = dma.done.wait (%p15973_p4), [#allocation18], 528  }
 0x145   : > { %9384 = vsyncadd (%p15974_p13), [#allocation18], 4294966768  ;;  %vm738_vm0 = vcmask 1040384   ;;  %v601_v0 = vld [vmem:[#allocation5] sm:$0x1]  ;;  %v538_v2 = vld [vmem:[%s9825_s11 + $0x8] sm:$0xff] }
 0x146   : > { %v537_v1 = vld [vmem:[%s9825_s11] sm:$0xff]  ;;  %vm641_vm1 = vcmask 15360   ;;  %8059 = vmatprep.subr.msk.bf16.mxu0 %vm738_vm0, %v601_v0  ;;  %8060 = vmatprep.subr.msk.bf16.mxu1 %vm738_vm0, %v601_v0  ;;  %v740_v3 = vsel %vm738_vm0, %v601_v0, 0  ;;  %v570_v6 = vld [vmem:[%s9825_s11 + $0x108] sm:$0xff]  ;;  %v539_v7 = vld [vmem:[%s9825_s11 + $0x10] sm:$0xff]  ;;  %vm1033_vm2 = vcmask 523264  }
 0x147   : > { %v602_v4 = vpack.c.bf16 %v538_v2, %v537_v1  ;;  %v569_v5 = vld [vmem:[%s9825_s11 + $0x100] sm:$0xff]  ;;  %7848 = vmatpush3.bf16.msra.mxu0 %v740_v3  ;;  %8058 = vmatpush3.bf16.msra.mxu1 %v740_v3  ;;  %v540_v9 = vld [vmem:[%s9825_s11 + $0x18] sm:$0xff]  ;;  %v571_v10 = vld [vmem:[%s9825_s11 + $0x110] sm:$0xff]  ;;  %s15515_s30 = scalar_lea.vmem [#allocation20], %s7612_s1  ;;  %s7741_s3 = sshll.u32 %s9505_s23, 13 }
 0x148   : > { %v618_v8 = vpack.c.bf16 %v570_v6, %v569_v5  ;;  %v572_v11 = vld [vmem:[%s9825_s11 + $0x118] sm:$0xff]  ;;  %v603_v12 = vpack.c.bf16 %v540_v9, %v539_v7  ;;  %v541_v14 = vld [vmem:[%s9825_s11 + $0x20] sm:$0xff]  ;;  %v542_v15 = vld [vmem:[%s9825_s11 + $0x28] sm:$0xff]  ;;  %s7427_s14 = sshll.u32 %s15515_s30, 4  ;;  %s16333_s27 = sld [smem:[#allocation84_spill]]  ;;  %s15745_s14 = int_to_ptr.vmem [resolvable:$true] %s7427_s14 }
 0x149   : > { %7849 = vmatprep.mubr.msk.bf16.mxu0 %vm641_vm1, %v602_v4  ;;  %v619_v13 = vpack.c.bf16 %v572_v11, %v571_v10  ;;  %v604_v16 = vpack.c.bf16 %v542_v15, %v541_v14  ;;  %v573_v17 = vld [vmem:[%s9825_s11 + $0x120] sm:$0xff]  ;;  %v574_v18 = vld [vmem:[%s9825_s11 + $0x128] sm:$0xff]  ;;  %v543_v19 = vld [vmem:[%s9825_s11 + $0x30] sm:$0xff]  ;;  %s7414_s23 = scalar_lea.sflag [#allocation4], %s9819_s13  ;;  %s9317_s0 = scalar_lea.vmem %s15745_s14, 8192 }
 0x14a   : > { %7881 = vmatprep.mubr.msk.bf16.mxu1 %vm641_vm1, %v618_v8  ;;  %7850 = vmatmul.mubr.msk.bf16.vlgmr.msra.gmra.mrb[0].mxu0 %vm641_vm1, %v603_v12  ;;  %v544_v20 = vld [vmem:[%s9825_s11 + $0x38] sm:$0xff]  ;;  %v620_v21 = vpack.c.bf16 %v574_v18, %v573_v17  ;;  %v575_v22 = vld [vmem:[%s9825_s11 + $0x130] sm:$0xff]  ;;  %v545_v24 = vld [vmem:[%s9825_s11 + $0x40] sm:$0xff]  ;;  %p9318_p1 = scmp.ne.s32.totalorder %s15745_s14, %s9317_s0  ;;  %p16334_p3 = scmp.ne.s32.totalorder %s15959_s22, 0 }
 0x14b   : > { %7882 = vmatmul.mubr.msk.bf16.vlgmr.msra.gmra.mrb[0].mxu1 %vm641_vm1, %v619_v13  ;;  %7853 = vmatprep.mubr.msk.bf16.mxu0 %vm641_vm1, %v604_v16  ;;  %v576_v23 = vld [vmem:[%s9825_s11 + $0x138] sm:$0xff]  ;;  %v546_v25 = vld [vmem:[%s9825_s11 + $0x48] sm:$0xff]  ;;  %v577_v26 = vld [vmem:[%s9825_s11 + $0x140] sm:$0xff]  ;;  %v605_v28 = vpack.c.bf16 %v544_v20, %v543_v19  ;;  %s9421_s28 = smov [#allocation20]  }
 0x14c   : > { %7885 = vmatprep.mubr.msk.bf16.mxu1 %vm641_vm1, %v620_v21  ;;  %v578_v27 = vld [vmem:[%s9825_s11 + $0x148] sm:$0xff]  ;;  %v621_v29 = vpack.c.bf16 %v576_v23, %v575_v22  ;;  %v606_v30 = vpack.c.bf16 %v546_v25, %v545_v24  ;;  %v547_v32 = vld [vmem:[%s9825_s11 + $0x50] sm:$0xff]  ;;  %v548_v33 = vld [vmem:[%s9825_s11 + $0x58] sm:$0xff]  ;;  %p9319_p2 = pnand %p9318_p1, %p16334_p3  ;;  %s9321_s1 = sshll.u32 %s9421_s28, 4  ;;  %s9322_s1 = int_to_ptr.vmem [resolvable:$false] %s9321_s1 }
 0x14d   : > { %v622_v31 = vpack.c.bf16 %v578_v27, %v577_v26  ;;  %v579_v34 = vld [vmem:[%s9825_s11 + $0x150] sm:$0xff]  ;;  %v580_v35 = vld [vmem:[%s9825_s11 + $0x158] sm:$0xff]  ;;  %v549_v36 = vld [vmem:[%s9825_s11 + $0x60] sm:$0xff]  ;;  %v607_v40 = vpack.c.bf16 %v548_v33, %v547_v32  ;;  %s9323_s24 = scalar_lea.vmem %s9322_s1, 16384  ;;  %p9324_p10 = scmp.lt.s32.totalorder %s15745_s14, %s9322_s1 }
 0x14e   : > { %v550_v37 = vld [vmem:[%s9825_s11 + $0x68] sm:$0xff]  ;;  %v581_v38 = vld [vmem:[%s9825_s11 + $0x160] sm:$0xff]  ;;  %v623_v41 = vpack.c.bf16 %v580_v35, %v579_v34  ;;  %v551_v44 = vld [vmem:[%s9825_s11 + $0x70] sm:$0xff]  ;;  %s15743_s15 = scalar_lea.hbm %s16333_s27, %s7741_s3  ;;  %p9320_p8 = pneg %p9319_p2 }
 0x14f   : > { %v582_v39 = vld [vmem:[%s9825_s11 + $0x168] sm:$0xff]  ;;  %v608_v42 = vpack.c.bf16 %v550_v37, %v549_v36  ;;  %v552_v45 = vld [vmem:[%s9825_s11 + $0x78] sm:$0xff]  ;;  %v583_v46 = vld [vmem:[%s9825_s11 + $0x170] sm:$0xff]  ;;  %p9325_p11 = scmp.lt.s32.totalorder %s9323_s24, %s9317_s0 }
 0x150   : > { %v624_v43 = vpack.c.bf16 %v582_v39, %v581_v38  ;;  %v584_v47 = vld [vmem:[%s9825_s11 + $0x178] sm:$0xff]  ;;  %v553_v48 = vld [vmem:[%s9825_s11 + $0x80] sm:$0xff]  ;;  %v554_v49 = vld [vmem:[%s9825_s11 + $0x88] sm:$0xff]  ;;  %v609_v52 = vpack.c.bf16 %v552_v45, %v551_v44 }
 0x151   : > { %v585_v50 = vld [vmem:[%s9825_s11 + $0x180] sm:$0xff]  ;;  %v586_v51 = vld [vmem:[%s9825_s11 + $0x188] sm:$0xff]  ;;  %v625_v53 = vpack.c.bf16 %v584_v47, %v583_v46  ;;  %v610_v54 = vpack.c.bf16 %v554_v49, %v553_v48  ;;  %v555_v56 = vld [vmem:[%s9825_s11 + $0x90] sm:$0xff]  ;;  %p9326_p12 = por %p9325_p11, %p9324_p10 }
 0x152   : > { %7854 = vmatmul.mubr.msk.bf16.gmra.mrb[4].mxu0 %vm641_vm1, %v605_v28  ;;  %v626_v55 = vpack.c.bf16 %v586_v51, %v585_v50  ;;  %v556_v57 = vld [vmem:[%s9825_s11 + $0x98] sm:$0xff]  ;;  %v587_v58 = vld [vmem:[%s9825_s11 + $0x190] sm:$0xff]  ;;  %v557_v60 = vld [vmem:[%s9825_s11 + $0xa0] sm:$0xff] }
 0x153   : > { %7886 = vmatmul.mubr.msk.bf16.gmra.mrb[4].mxu1 %vm641_vm1, %v621_v29  ;;  %7857 = vmatprep.mubr.msk.bf16.mxu0 %vm641_vm1, %v606_v30  ;;  %v588_v59 = vld [vmem:[%s9825_s11 + $0x198] sm:$0xff]  ;;  %v558_v61 = vld [vmem:[%s9825_s11 + $0xa8] sm:$0xff]  ;;  %v589_v62 = vld [vmem:[%s9825_s11 + $0x1a0] sm:$0xff]  ;;  %v611_v0 = vpack.c.bf16 %v556_v57, %v555_v56  ;;  %p9327_p0 = pnand %p9326_p12, %p9320_p8 }
 0x154   : > { %7889 = vmatprep.mubr.msk.bf16.mxu1 %vm641_vm1, %v622_v31  ;;  %v590_v63 = vld [vmem:[%s9825_s11 + $0x1a8] sm:$0xff]  ;;  %v627_v1 = vpack.c.bf16 %v588_v59, %v587_v58  ;;  %v612_v2 = vpack.c.bf16 %v558_v61, %v557_v60  ;;  %v559_v4 = vld [vmem:[%s9825_s11 + $0xb0] sm:$0xff]  ;;  %v560_v5 = vld [vmem:[%s9825_s11 + $0xb8] sm:$0xff] }
 0x155   : > { %v628_v3 = vpack.c.bf16 %v590_v63, %v589_v62  ;;  %v591_v6 = vld [vmem:[%s9825_s11 + $0x1b0] sm:$0xff]  ;;  %v592_v7 = vld [vmem:[%s9825_s11 + $0x1b8] sm:$0xff]  ;;  %v561_v8 = vld [vmem:[%s9825_s11 + $0xc0] sm:$0xff]  ;;  %v613_v12 = vpack.c.bf16 %v560_v5, %v559_v4 }
 0x156   : > { %v562_v9 = vld [vmem:[%s9825_s11 + $0xc8] sm:$0xff]  ;;  %v593_v10 = vld [vmem:[%s9825_s11 + $0x1c0] sm:$0xff]  ;;  %v629_v13 = vpack.c.bf16 %v592_v7, %v591_v6  ;;  %v563_v16 = vld [vmem:[%s9825_s11 + $0xd0] sm:$0xff] }
 0x157   : > { %v594_v11 = vld [vmem:[%s9825_s11 + $0x1c8] sm:$0xff]  ;;  %v614_v14 = vpack.c.bf16 %v562_v9, %v561_v8  ;;  %v564_v17 = vld [vmem:[%s9825_s11 + $0xd8] sm:$0xff]  ;;  %v565_v18 = vld [vmem:[%s9825_s11 + $0xe0] sm:$0xff] }
 0x158   : > { %v630_v15 = vpack.c.bf16 %v594_v11, %v593_v10  ;;  %v595_v19 = vld [vmem:[%s9825_s11 + $0x1d0] sm:$0xff]  ;;  %v596_v20 = vld [vmem:[%s9825_s11 + $0x1d8] sm:$0xff]  ;;  %v566_v21 = vld [vmem:[%s9825_s11 + $0xe8] sm:$0xff]  ;;  %v615_v24 = vpack.c.bf16 %v564_v17, %v563_v16 }
 0x159   : > { %v597_v22 = vld [vmem:[%s9825_s11 + $0x1e0] sm:$0xff]  ;;  %v598_v23 = vld [vmem:[%s9825_s11 + $0x1e8] sm:$0xff]  ;;  %v631_v25 = vpack.c.bf16 %v596_v20, %v595_v19  ;;  %v616_v26 = vpack.c.bf16 %v566_v21, %v565_v18  ;;  %v567_v28 = vld [vmem:[%s9825_s11 + $0xf0] sm:$0xff] }
 0x15a   : > { %7858 = vmatmul.mubr.msk.bf16.gmra.mrb[8].mxu0 %vm641_vm1, %v607_v40  ;;  %v632_v27 = vpack.c.bf16 %v598_v23, %v597_v22  ;;  %v568_v29 = vld [vmem:[%s9825_s11 + $0xf8] sm:$0xff]  ;;  %v599_v30 = vld [vmem:[%s9825_s11 + $0x1f0] sm:$0xff]  ;;  %v9947_v34 = vld [vmem:[#allocation7] ss:$0 sm:$0xff] }
 0x15b   : > { %7890 = vmatmul.mubr.msk.bf16.gmra.mrb[8].mxu1 %vm641_vm1, %v623_v41  ;;  %7861 = vmatprep.mubr.msk.bf16.mxu0 %vm641_vm1, %v608_v42  ;;  %v600_v31 = vld [vmem:[%s9825_s11 + $0x1f8] sm:$0xff]  ;;  %v617_v32 = vpack.c.bf16 %v568_v29, %v567_v28 }
 0x15c   : > { %7893 = vmatprep.mubr.msk.bf16.mxu1 %vm641_vm1, %v624_v43  ;;  %v633_v33 = vpack.c.bf16 %v600_v31, %v599_v30 }
 0x162   : > { %7862 = vmatmul.mubr.msk.bf16.gmra.mrb[12].mxu0 %vm641_vm1, %v609_v52 }
 0x163   : > { %7894 = vmatmul.mubr.msk.bf16.gmra.mrb[12].mxu1 %vm641_vm1, %v625_v53  ;;  %7865 = vmatprep.mubr.msk.bf16.mxu0 %vm641_vm1, %v610_v54 }
 0x164   : > { %7897 = vmatprep.mubr.msk.bf16.mxu1 %vm641_vm1, %v626_v55 }
 0x16a   : > { %7866 = vmatmul.mubr.msk.bf16.gmra.mrb[16].mxu0 %vm641_vm1, %v611_v0 }
 0x16b   : > { %7898 = vmatmul.mubr.msk.bf16.gmra.mrb[16].mxu1 %vm641_vm1, %v627_v1  ;;  %7869 = vmatprep.mubr.msk.bf16.mxu0 %vm641_vm1, %v612_v2 }
 0x16c   : > { %7901 = vmatprep.mubr.msk.bf16.mxu1 %vm641_vm1, %v628_v3 }
 0x172   : > { %7870 = vmatmul.mubr.msk.bf16.gmra.mrb[20].mxu0 %vm641_vm1, %v613_v12 }
 0x173   : > { %7902 = vmatmul.mubr.msk.bf16.gmra.mrb[20].mxu1 %vm641_vm1, %v629_v13  ;;  %7873 = vmatprep.mubr.msk.bf16.mxu0 %vm641_vm1, %v614_v14 }
 0x174   : > { %7905 = vmatprep.mubr.msk.bf16.mxu1 %vm641_vm1, %v630_v15 }
 0x17a   : > { %7874 = vmatmul.mubr.msk.bf16.gmra.mrb[24].mxu0 %vm641_vm1, %v615_v24 }
 0x17b   : > { %7906 = vmatmul.mubr.msk.bf16.gmra.mrb[24].mxu1 %vm641_vm1, %v631_v25  ;;  %7877 = vmatprep.mubr.msk.bf16.mxu0 %vm641_vm1, %v616_v26 }
 0x17c   : > { %7909 = vmatprep.mubr.msk.bf16.mxu1 %vm641_vm1, %v632_v27 }
 0x182   : > { %7878 = vmatmul.mubr.msk.bf16.gmra.mrb[28].mxu0 %vm641_vm1, %v617_v32 }
 0x183   : > { %7910 = vmatmul.mubr.msk.bf16.gmra.mrb[28].mxu1 %vm641_vm1, %v633_v33 }
 0x21d   : > { %v7851_v35 = vpop.f32.mrb[0].mxu0 }
 0x21e   : > { %v7883_v36 = vpop.f32.mrb[0].mxu1  ;;  %v9950_v37 = vadd.f32 %v7851_v35, %v9947_v34  ;;  %v776_v39 = vpop.f32.mrb[1].mxu0 }
 0x21f   : > { %v9953_v38 = vadd.f32 %v7883_v36, %v9947_v34  ;;  %v904_v40 = vpop.f32.mrb[1].mxu1  ;;  %v7852_v41 = vpop.f32.mrb[2].mxu0  ;;  %v9956_v43 = vadd.f32 %v9947_v34, %v776_v39 }
 0x220   : > { %v7884_v42 = vpop.f32.mrb[2].mxu1  ;;  %v9959_v44 = vadd.f32 %v7852_v41, %v9947_v34  ;;  %v779_v45 = vpop.f32.mrb[3].mxu0  ;;  %v1040_v48 = vsel %vm1033_vm2, %v9950_v37, 0.0  ;;  %v9966_v49 = vadd.f32 %v9947_v34, %v904_v40 }
 0x221   : > { %v907_v46 = vpop.f32.mrb[3].mxu1  ;;  %v1136_v47 = vsel %vm1033_vm2, %v9953_v38, 0.0  ;;  %1041 = vadd.xlane.f32.xlu1 %v1040_v48  ;;  %v9969_v50 = vadd.f32 %v7884_v42, %v9947_v34  ;;  %v1034_v52 = vsel %vm1033_vm2, %v9956_v43, 0.0  ;;  %v9976_v59 = vadd.f32 %v9947_v34, %v779_v45 }
 0x222   : > { %1137 = vadd.xlane.f32.xlu0 %v1136_v47  ;;  %v1043_v51 = vsel %vm1033_vm2, %v9959_v44, 0.0  ;;  %v9979_v60 = vadd.f32 %v9947_v34, %v907_v46  ;;  %v1130_v62 = vsel %vm1033_vm2, %v9966_v49, 0.0 }
 0x223   : > { %v1139_v61 = vsel %vm1033_vm2, %v9969_v50, 0.0  ;;  %v1037_v4 = vsel %vm1033_vm2, %v9976_v59, 0.0 }
 0x224   : > { %v1133_v3 = vsel %vm1033_vm2, %v9979_v60, 0.0 }
 0x225   : > { %1044 = vadd.xlane.f32.xlu1 %v1043_v51  ;;  %v7855_v53 = vpop.f32.mrb[4].mxu0 }
 0x226   : > { %1035 = vadd.xlane.f32.xlu0 %v1034_v52  ;;  %v7887_v54 = vpop.f32.mrb[4].mxu1  ;;  %v792_v55 = vpop.f32.mrb[5].mxu0  ;;  %v9986_v1 = vadd.f32 %v7855_v53, %v9947_v34 }
 0x227   : > { %v920_v56 = vpop.f32.mrb[5].mxu1  ;;  %v7856_v57 = vpop.f32.mrb[6].mxu0  ;;  %v9998_v11 = vadd.f32 %v7887_v54, %v9947_v34  ;;  %v10010_v17 = vadd.f32 %v9947_v34, %v792_v55 }
 0x228   : > { %v7888_v58 = vpop.f32.mrb[6].mxu1  ;;  %v795_v63 = vpop.f32.mrb[7].mxu0  ;;  %v9989_v2 = vadd.f32 %v7856_v57, %v9947_v34  ;;  %v1052_v14 = vsel %vm1033_vm2, %v9986_v1, 0.0  ;;  %v10032_v27 = vadd.f32 %v9947_v34, %v920_v56 }
 0x229   : > { %v923_v0 = vpop.f32.mrb[7].mxu1  ;;  %1140 = vadd.xlane.f32.xlu1 %v1139_v61  ;;  %15975 = vst [vmem:[#allocation29_spill] sm:$0xff] %v9998_v11  ;;  %v10001_v12 = vadd.f32 %v7888_v58, %v9947_v34  ;;  %v10013_v18 = vadd.f32 %v9947_v34, %v795_v63  ;;  %v1148_v20 = vsel %vm1033_vm2, %v9998_v11, 0.0  ;;  %v1046_v30 = vsel %vm1033_vm2, %v10010_v17, 0.0 }
 0x22a   : > { %1131 = vadd.xlane.f32.xlu0 %v1130_v62  ;;  %v1055_v13 = vsel %vm1033_vm2, %v9989_v2, 0.0  ;;  %v10035_v28 = vadd.f32 %v9947_v34, %v923_v0  ;;  %v1142_v39 = vsel %vm1033_vm2, %v10032_v27, 0.0 }
 0x22b   : > { %15976 = vst [vmem:[#allocation30_spill] sm:$0xff] %v10001_v12  ;;  %v1151_v19 = vsel %vm1033_vm2, %v10001_v12, 0.0  ;;  %v1049_v29 = vsel %vm1033_vm2, %v10013_v18, 0.0 }
 0x22c   : > { %v1145_v36 = vsel %vm1033_vm2, %v10035_v28, 0.0 }
 0x22d   : > { %1134 = vadd.xlane.f32.xlu1 %v1133_v3  ;;  %v7859_v5 = vpop.f32.mrb[8].mxu0 }
 0x22e   : > { %1038 = vadd.xlane.f32.xlu0 %v1037_v4  ;;  %v7891_v6 = vpop.f32.mrb[8].mxu1  ;;  %v808_v7 = vpop.f32.mrb[9].mxu0  ;;  %v10046_v33 = vadd.f32 %v7859_v5, %v9947_v34 }
 0x22f   : > { %v9995_v8 = vpop.f32.mrb[9].mxu1  ;;  %v7860_v9 = vpop.f32.mrb[10].mxu0  ;;  %v10062_v48 = vadd.f32 %v7891_v6, %v9947_v34  ;;  %v10090_v4 = vadd.f32 %v9947_v34, %v808_v7 }
 0x230   : > { %v7892_v10 = vpop.f32.mrb[10].mxu1  ;;  %v811_v15 = vpop.f32.mrb[11].mxu0  ;;  %v10049_v35 = vadd.f32 %v7860_v9, %v9947_v34  ;;  %v1064_v57 = vsel %vm1033_vm2, %v10046_v33, 0.0 }
 0x231   : > { %v10007_v16 = vpop.f32.mrb[11].mxu1  ;;  %1056 = vadd.xlane.f32.xlu1 %v1055_v13  ;;  %15977 = vst [vmem:[#allocation31_spill] sm:$0xff] %v10062_v48  ;;  %v10065_v51 = vadd.f32 %v7892_v10, %v9947_v34  ;;  %v10093_v5 = vadd.f32 %v9947_v34, %v811_v15  ;;  %v1160_v9 = vsel %vm1033_vm2, %v10062_v48, 0.0  ;;  %v10107_v15 = vadd.f32 %v9947_v34, %v9995_v8 }
 0x232   : > { %1053 = vadd.xlane.f32.xlu0 %v1052_v14  ;;  %v1067_v56 = vsel %vm1033_vm2, %v10049_v35, 0.0 }
 0x233   : > { %15978 = vst [vmem:[#allocation32_spill] sm:$0xff] %v10065_v51  ;;  %v1163_v6 = vsel %vm1033_vm2, %v10065_v51, 0.0  ;;  %15979 = vst [vmem:[#allocation33_spill] sm:$0xff] %v10107_v15 }
 0x235   : > { %1152 = vadd.xlane.f32.xlu1 %v1151_v19  ;;  %v10019_v21 = vpop.f32.mrb[12].mxu0 }
 0x236   : > { %1149 = vadd.xlane.f32.xlu0 %v1148_v20  ;;  %v10021_v22 = vpop.f32.mrb[12].mxu1  ;;  %v10023_v23 = vpop.f32.mrb[13].mxu0 }
 0x237   : > { %v10025_v24 = vpop.f32.mrb[13].mxu1  ;;  %v10027_v25 = vpop.f32.mrb[14].mxu0 }
 0x238   : > { %v10029_v26 = vpop.f32.mrb[14].mxu1  ;;  %v10041_v31 = vpop.f32.mrb[15].mxu0 }
 0x239   : > { %v10043_v32 = vpop.f32.mrb[15].mxu1  ;;  %1050 = vadd.xlane.f32.xlu1 %v1049_v29  ;;  %v10111_v29 = vadd.f32 %v9947_v34, %v10007_v16 }
 0x23a   : > { %1047 = vadd.xlane.f32.xlu0 %v1046_v30 }
 0x23b   : > { %15980 = vst [vmem:[#allocation34_spill] sm:$0xff] %v10111_v29 }
 0x23d   : > { %1146 = vadd.xlane.f32.xlu1 %v1145_v36  ;;  %v7867_v40 = vpop.f32.mrb[16].mxu0 }
 0x23e   : > { %1143 = vadd.xlane.f32.xlu0 %v1142_v39  ;;  %v7899_v41 = vpop.f32.mrb[16].mxu1  ;;  %v10056_v42 = vadd.f32 %v7867_v40, %v9947_v34  ;;  %v840_v45 = vpop.f32.mrb[17].mxu0 }
 0x23f   : > { %v10059_v46 = vadd.f32 %v7899_v41, %v9947_v34  ;;  %v968_v47 = vpop.f32.mrb[17].mxu1  ;;  %v10068_v52 = vadd.f32 %v9947_v34, %v840_v45  ;;  %v7868_v53 = vpop.f32.mrb[18].mxu0  ;;  %v1061_v41 = vsel %vm1033_vm2, %v10093_v5, 0.0  ;;  %v1058_v45 = vsel %vm1033_vm2, %v10090_v4, 0.0 }
 0x240   : > { %v10071_v54 = vadd.f32 %v9947_v34, %v968_v47  ;;  %v7900_v55 = vpop.f32.mrb[18].mxu1  ;;  %v10078_v58 = vadd.f32 %v7868_v53, %v9947_v34  ;;  %v843_v61 = vpop.f32.mrb[19].mxu0 }
 0x241   : > { %v10081_v62 = vadd.f32 %v7900_v55, %v9947_v34  ;;  %v971_v63 = vpop.f32.mrb[19].mxu1  ;;  %1068 = vadd.xlane.f32.xlu1 %v1067_v56  ;;  %v10084_v0 = vadd.f32 %v9947_v34, %v843_v61  ;;  %v10141_v61 = vadd.f32 %v10027_v25, %v9947_v34  ;;  %v10155_v25 = vadd.f32 %v10021_v22, %v9947_v34 }
 0x242   : > { %1065 = vadd.xlane.f32.xlu0 %v1064_v57  ;;  %v10087_v3 = vadd.f32 %v9947_v34, %v971_v63  ;;  %v10137_v57 = vadd.f32 %v10019_v21, %v9947_v34  ;;  %v1157_v63 = vsel %vm1033_vm2, %v10111_v29, 0.0 }
 0x243   : > { %15982 = vst [vmem:[#allocation36_spill] sm:$0xff] %v10155_v25 }
 0x245   : > { %1164 = vadd.xlane.f32.xlu1 %v1163_v6  ;;  %v7871_v10 = vpop.f32.mrb[20].mxu0  ;;  %v1154_v6 = vsel %vm1033_vm2, %v10107_v15, 0.0 }
 0x246   : > { %1161 = vadd.xlane.f32.xlu0 %v1160_v9  ;;  %v7903_v13 = vpop.f32.mrb[20].mxu1  ;;  %v10100_v14 = vadd.f32 %v7871_v10, %v9947_v34  ;;  %v856_v19 = vpop.f32.mrb[21].mxu0 }
 0x247   : > { %v10103_v7 = vadd.f32 %v7903_v13, %v9947_v34  ;;  %v984_v20 = vpop.f32.mrb[21].mxu1  ;;  %v10114_v30 = vadd.f32 %v9947_v34, %v856_v19  ;;  %v7872_v36 = vpop.f32.mrb[22].mxu0 }
 0x248   : > { %v10117_v39 = vadd.f32 %v9947_v34, %v984_v20  ;;  %v7904_v40 = vpop.f32.mrb[22].mxu1  ;;  %v10124_v8 = vadd.f32 %v7872_v36, %v9947_v34  ;;  %v859_v47 = vpop.f32.mrb[23].mxu0  ;;  %v10159_v36 = vadd.f32 %v10029_v26, %v9947_v34 }
 0x249   : > { %v10127_v16 = vadd.f32 %v7904_v40, %v9947_v34  ;;  %v987_v53 = vpop.f32.mrb[23].mxu1  ;;  %1062 = vadd.xlane.f32.xlu1 %v1061_v41  ;;  %v10130_v55 = vadd.f32 %v9947_v34, %v859_v47 }
 0x24a   : > { %1059 = vadd.xlane.f32.xlu0 %v1058_v45  ;;  %v10133_v56 = vadd.f32 %v9947_v34, %v987_v53  ;;  %15983 = vst [vmem:[#allocation37_spill] sm:$0xff] %v10159_v36  ;;  %v1079_v53 = vsel %vm1033_vm2, %v10141_v61, 0.0 }
 0x24d   : > { %1158 = vadd.xlane.f32.xlu1 %v1157_v63  ;;  %v7875_v9 = vpop.f32.mrb[24].mxu0  ;;  %v1076_v63 = vsel %vm1033_vm2, %v10137_v57, 0.0 }
 0x24e   : > { %1155 = vadd.xlane.f32.xlu0 %v1154_v6  ;;  %v7907_v10 = vpop.f32.mrb[24].mxu1  ;;  %v10148_v13 = vadd.f32 %v7875_v9, %v9947_v34  ;;  %v872_v19 = vpop.f32.mrb[25].mxu0 }
 0x24f   : > { %v10151_v21 = vadd.f32 %v7907_v10, %v9947_v34  ;;  %v1000_v20 = vpop.f32.mrb[25].mxu1  ;;  %v10162_v40 = vadd.f32 %v9947_v34, %v872_v19  ;;  %v7876_v41 = vpop.f32.mrb[26].mxu0 }
 0x250   : > { %v10165_v45 = vadd.f32 %v9947_v34, %v1000_v20  ;;  %v7908_v47 = vpop.f32.mrb[26].mxu1  ;;  %v10172_v22 = vadd.f32 %v7876_v41, %v9947_v34  ;;  %v875_v6 = vpop.f32.mrb[27].mxu0  ;;  %v10185_v20 = vadd.f32 %v9947_v34, %v10023_v23  ;;  %v10189_v41 = vadd.f32 %v9947_v34, %v10041_v31 }
 0x251   : > { %15981 = vst [vmem:[#allocation35_spill] sm:$0xff] %v10151_v21  ;;  %v10175_v26 = vadd.f32 %v7908_v47, %v9947_v34  ;;  %v1003_v9 = vpop.f32.mrb[27].mxu1  ;;  %1080 = vadd.xlane.f32.xlu1 %v1079_v53  ;;  %v10178_v10 = vadd.f32 %v9947_v34, %v875_v6  ;;  %v1175_v47 = vsel %vm1033_vm2, %v10159_v36, 0.0  ;;  %v1172_v53 = vsel %vm1033_vm2, %v10155_v25, 0.0 }
 0x252   : > { %15984 = vst [vmem:[#allocation38_spill] sm:$0xff] %v10165_v45  ;;  %1077 = vadd.xlane.f32.xlu0 %v1076_v63  ;;  %v10181_v19 = vadd.f32 %v9947_v34, %v1003_v9  ;;  %v10203_v31 = vadd.f32 %v9947_v34, %v10025_v24  ;;  %v10207_v36 = vadd.f32 %v9947_v34, %v10043_v32  ;;  %v1070_v15 = vsel %vm1033_vm2, %v10185_v20, 0.0 }
 0x253   : > { %15985 = vst [vmem:[#allocation39_spill] sm:$0xff] %v10175_v26 }
 0x254   : > { %15986 = vst [vmem:[#allocation40_spill] sm:$0xff] %v10181_v19  ;;  %v1169_v12 = vsel %vm1033_vm2, %v10207_v36, 0.0 }
 0x255   : > { %1176 = vadd.xlane.f32.xlu1 %v1175_v47  ;;  %v7879_v63 = vpop.f32.mrb[28].mxu0 }
 0x256   : > { %1173 = vadd.xlane.f32.xlu0 %v1172_v53  ;;  %v7911_v6 = vpop.f32.mrb[28].mxu1  ;;  %v10196_v9 = vadd.f32 %v7879_v63, %v9947_v34  ;;  %v888_v48 = vpop.f32.mrb[29].mxu0 }
 0x257   : > { %v10199_v23 = vadd.f32 %v7911_v6, %v9947_v34  ;;  %v1016_v51 = vpop.f32.mrb[29].mxu1  ;;  %v10210_v47 = vadd.f32 %v9947_v34, %v888_v48  ;;  %v7880_v53 = vpop.f32.mrb[30].mxu0  ;;  %v1073_v6 = vsel %vm1033_vm2, %v10189_v41, 0.0 }
 0x258   : > { %v10213_v63 = vadd.f32 %v9947_v34, %v1016_v51  ;;  %v7912_v25 = vpop.f32.mrb[30].mxu1  ;;  %v10220_v24 = vadd.f32 %v7880_v53, %v9947_v34  ;;  %v891_v29 = vpop.f32.mrb[31].mxu0  ;;  %v1166_v53 = vsel %vm1033_vm2, %v10203_v31, 0.0 }
 0x259   : > { %v10223_v32 = vadd.f32 %v7912_v25, %v9947_v34  ;;  %v1019_v48 = vpop.f32.mrb[31].mxu1  ;;  %1074 = vadd.xlane.f32.xlu1 %v1073_v6  ;;  %v10226_v51 = vadd.f32 %v9947_v34, %v891_v29  ;;  %v1091_v25 = vsel %vm1033_vm2, %v10078_v58, 0.0  ;;  %v1184_v29 = vsel %vm1033_vm2, %v10059_v46, 0.0 }
 0x25a   : > { %15987 = vst [vmem:[#allocation41_spill] sm:$0xff] %v10213_v63  ;;  %1071 = vadd.xlane.f32.xlu0 %v1070_v15  ;;  %v10229_v11 = vadd.f32 %v9947_v34, %v1019_v48  ;;  %v1088_v15 = vsel %vm1033_vm2, %v10056_v42, 0.0  ;;  %v1187_v34 = vsel %vm1033_vm2, %v10081_v62, 0.0  ;;  %v1082_v6 = vsel %vm1033_vm2, %v10068_v52, 0.0 }
 0x25b   : > { %v1181_v48 = vsel %vm1033_vm2, %v10087_v3, 0.0 }
 0x25c   : > { %15988 = vst [vmem:[#allocation42_spill] sm:$0xff] %v10229_v11 }
 0x25d   : > { %1170 = vadd.xlane.f32.xlu1 %v1169_v12  ;;  %v1085_v12 = vsel %vm1033_vm2, %v10084_v0, 0.0 }
 0x25e   : > { %1167 = vadd.xlane.f32.xlu0 %v1166_v53  ;;  %v1178_v53 = vsel %vm1033_vm2, %v10071_v54, 0.0 }
 0x261   : > { %1092 = vadd.xlane.f32.xlu1 %v1091_v25  ;;  %v1103_v25 = vsel %vm1033_vm2, %v10124_v8, 0.0 }
 0x262   : > { %1089 = vadd.xlane.f32.xlu0 %v1088_v15  ;;  %v1100_v15 = vsel %vm1033_vm2, %v10100_v14, 0.0 }
 0x265   : > { %1188 = vadd.xlane.f32.xlu1 %v1187_v34  ;;  %v1199_v34 = vsel %vm1033_vm2, %v10127_v16, 0.0 }
 0x266   : > { %1185 = vadd.xlane.f32.xlu0 %v1184_v29  ;;  %v1196_v29 = vsel %vm1033_vm2, %v10103_v7, 0.0 }
 0x269   : > { %1086 = vadd.xlane.f32.xlu1 %v1085_v12  ;;  %v1097_v12 = vsel %vm1033_vm2, %v10130_v55, 0.0 }
 0x26a   : > { %1083 = vadd.xlane.f32.xlu0 %v1082_v6  ;;  %v1094_v6 = vsel %vm1033_vm2, %v10114_v30, 0.0 }
 0x26d   : > { %1182 = vadd.xlane.f32.xlu1 %v1181_v48  ;;  %v1193_v48 = vsel %vm1033_vm2, %v10133_v56, 0.0 }
 0x26e   : > { %1179 = vadd.xlane.f32.xlu0 %v1178_v53  ;;  %v1190_v53 = vsel %vm1033_vm2, %v10117_v39, 0.0 }
 0x271   : > { %1104 = vadd.xlane.f32.xlu1 %v1103_v25  ;;  %v1115_v25 = vsel %vm1033_vm2, %v10172_v22, 0.0 }
 0x272   : > { %1101 = vadd.xlane.f32.xlu0 %v1100_v15  ;;  %v1112_v15 = vsel %vm1033_vm2, %v10148_v13, 0.0 }
 0x275   : > { %1200 = vadd.xlane.f32.xlu1 %v1199_v34  ;;  %v1109_v34 = vsel %vm1033_vm2, %v10178_v10, 0.0 }
 0x276   : > { %1197 = vadd.xlane.f32.xlu0 %v1196_v29  ;;  %v1106_v29 = vsel %vm1033_vm2, %v10162_v40, 0.0 }
 0x279   : > { %1098 = vadd.xlane.f32.xlu1 %v1097_v12  ;;  %v1127_v12 = vsel %vm1033_vm2, %v10220_v24, 0.0 }
 0x27a   : > { %1095 = vadd.xlane.f32.xlu0 %v1094_v6  ;;  %v1124_v6 = vsel %vm1033_vm2, %v10196_v9, 0.0 }
 0x27d   : > { %1194 = vadd.xlane.f32.xlu1 %v1193_v48  ;;  %v1121_v48 = vsel %vm1033_vm2, %v10226_v51, 0.0 }
 0x27e   : > { %1191 = vadd.xlane.f32.xlu0 %v1190_v53  ;;  %v1118_v53 = vsel %vm1033_vm2, %v10210_v47, 0.0 }
 0x281   : > { %1116 = vadd.xlane.f32.xlu1 %v1115_v25  ;;  %v1205_v25 = vsel %vm1033_vm2, %v10181_v19, 0.0 }
 0x282   : > { %1113 = vadd.xlane.f32.xlu0 %v1112_v15  ;;  %v1202_v15 = vsel %vm1033_vm2, %v10165_v45, 0.0 }
 0x285   : > { %1110 = vadd.xlane.f32.xlu1 %v1109_v34  ;;  %v1211_v34 = vsel %vm1033_vm2, %v10175_v26, 0.0 }
 0x286   : > { %1107 = vadd.xlane.f32.xlu0 %v1106_v29  ;;  %v1208_v29 = vsel %vm1033_vm2, %v10151_v21, 0.0 }
 0x289   : > { %1128 = vadd.xlane.f32.xlu1 %v1127_v12  ;;  %v1217_v12 = vsel %vm1033_vm2, %v10229_v11, 0.0 }
 0x28a   : > { %1125 = vadd.xlane.f32.xlu0 %v1124_v6  ;;  %v1214_v6 = vsel %vm1033_vm2, %v10213_v63, 0.0 }
 0x28d   : > { %1122 = vadd.xlane.f32.xlu1 %v1121_v48 }
 0x28e   : > { %1119 = vadd.xlane.f32.xlu0 %v1118_v53 }
 0x291   : > { %1206 = vadd.xlane.f32.xlu1 %v1205_v25 }
 0x292   : > { %1203 = vadd.xlane.f32.xlu0 %v1202_v15 }
 0x295   : > { %1212 = vadd.xlane.f32.xlu1 %v1211_v34 }
 0x296   : > { %1209 = vadd.xlane.f32.xlu0 %v1208_v29 }
 0x299   : > { %1218 = vadd.xlane.f32.xlu1 %v1217_v12 }
 0x29a   : > { %1215 = vadd.xlane.f32.xlu0 %v1214_v6 }
 0x2ae   : > { %v1042_v53 = vpop.xlane.xlu1 %1041 }
 0x2af   : > { %v10295_v48 = vpop.xlane.xlu0 %1137  ;;  %v1229_v25 = vmul.f32 0.015625, %v1042_v53 }
 0x2b1   : > { %v10298_v15 = vsub.f32 %v9950_v37, %v1229_v25 }
 0x2b2   : > { %v1045_v26 = vpop.xlane.xlu1 %1044 }
 0x2b3   : > { %15989 = vst [vmem:[#allocation43_spill] sm:$0xff] %v10298_v15  ;;  %v1036_v45 = vpop.xlane.xlu0 %1035  ;;  %v1230_v21 = vmul.f32 0.015625, %v1045_v26  ;;  %v1357_v29 = vmul.f32 %v10298_v15, %v10298_v15 }
 0x2b4   : > { %v1227_v34 = vmul.f32 0.015625, %v1036_v45 }
 0x2b5   : > { %v10303_v11 = vsub.f32 %v9959_v44, %v1230_v21  ;;  %v1425_v6 = vsel %vm1033_vm2, %v1357_v29, 0.0 }
 0x2b6   : > { %v10306_v12 = vsub.f32 %v9956_v43, %v1227_v34  ;;  %v10309_v63 = vpop.xlane.xlu1 %1140  ;;  %1426 = vadd.xlane.f32.xlu0 %v1425_v6 }
 0x2b7   : > { %15990 = vst [vmem:[#allocation44_spill] sm:$0xff] %v10303_v11  ;;  %v10311_v37 = vpop.xlane.xlu0 %1131  ;;  %v1358_v26 = vmul.f32 %v10303_v11, %v10303_v11 }
 0x2b8   : > { %15991 = vst [vmem:[#allocation45_spill] sm:$0xff] %v10306_v12  ;;  %v1355_v45 = vmul.f32 %v10306_v12, %v10306_v12 }
 0x2b9   : > { %v1428_v53 = vsel %vm1033_vm2, %v1358_v26, 0.0 }
 0x2ba   : > { %v1419_v44 = vsel %vm1033_vm2, %v1355_v45, 0.0  ;;  %v10319_v21 = vpop.xlane.xlu1 %1134  ;;  %1429 = vadd.xlane.f32.xlu1 %v1428_v53 }
 0x2bb   : > { %1420 = vadd.xlane.f32.xlu0 %v1419_v44  ;;  %v1039_v43 = vpop.xlane.xlu0 %1038 }
 0x2bc   : > { %v1228_v25 = vmul.f32 0.015625, %v1039_v43 }
 0x2be   : > { %v10322_v34 = vsub.f32 %v9976_v59, %v1228_v25  ;;  %v1057_v29 = vpop.xlane.xlu1 %1056 }
 0x2bf   : > { %v1054_v6 = vpop.xlane.xlu0 %1053  ;;  %v1234_v15 = vmul.f32 0.015625, %v1057_v29 }
 0x2c0   : > { %15992 = vst [vmem:[#allocation46_spill] sm:$0xff] %v10322_v34  ;;  %v1233_v11 = vmul.f32 0.015625, %v1054_v6  ;;  %v1356_v12 = vmul.f32 %v10322_v34, %v10322_v34 }
 0x2c1   : > { %v10327_v26 = vsub.f32 %v9989_v2, %v1234_v15 }
 0x2c2   : > { %v10330_v45 = vsub.f32 %v9986_v1, %v1233_v11  ;;  %v1422_v53 = vsel %vm1033_vm2, %v1356_v12, 0.0  ;;  %v10333_v44 = vpop.xlane.xlu1 %1152 }
 0x2c3   : > { %15993 = vst [vmem:[#allocation47_spill] sm:$0xff] %v10327_v26  ;;  %1423 = vadd.xlane.f32.xlu1 %v1422_v53  ;;  %v10335_v59 = vpop.xlane.xlu0 %1149  ;;  %v1362_v43 = vmul.f32 %v10327_v26, %v10327_v26 }
 0x2c4   : > { %15994 = vst [vmem:[#allocation48_spill] sm:$0xff] %v10330_v45  ;;  %v1361_v25 = vmul.f32 %v10330_v45, %v10330_v45 }
 0x2c5   : > { %v1440_v29 = vsel %vm1033_vm2, %v1362_v43, 0.0 }
 0x2c6   : > { %v1437_v2 = vsel %vm1033_vm2, %v1361_v25, 0.0  ;;  %v1051_v15 = vpop.xlane.xlu1 %1050 }
 0x2c7   : > { %1441 = vadd.xlane.f32.xlu1 %v1440_v29  ;;  %1438 = vadd.xlane.f32.xlu0 %v1437_v2  ;;  %v1048_v1 = vpop.xlane.xlu0 %1047  ;;  %v1232_v11 = vmul.f32 0.015625, %v1051_v15 }
 0x2c8   : > { %v1231_v12 = vmul.f32 0.015625, %v1048_v1 }
 0x2c9   : > { %v10344_v6 = vsub.f32 %v10013_v18, %v1232_v11 }
 0x2ca   : > { %v10347_v53 = vsub.f32 %v10010_v17, %v1231_v12  ;;  %v10349_v26 = vpop.xlane.xlu1 %1146 }
 0x2cb   : > { %15995 = vst [vmem:[#allocation49_spill] sm:$0xff] %v10344_v6  ;;  %v10351_v34 = vpop.xlane.xlu0 %1143  ;;  %v1360_v43 = vmul.f32 %v10344_v6, %v10344_v6 }
 0x2cc   : > { %15996 = vst [vmem:[#allocation50_spill] sm:$0xff] %v10347_v53  ;;  %v1359_v25 = vmul.f32 %v10347_v53, %v10347_v53 }
 0x2cd   : > { %v1434_v29 = vsel %vm1033_vm2, %v1360_v43, 0.0 }
 0x2ce   : > { %v1431_v2 = vsel %vm1033_vm2, %v1359_v25, 0.0  ;;  %v1069_v15 = vpop.xlane.xlu1 %1068  ;;  %1435 = vadd.xlane.f32.xlu1 %v1434_v29 }
 0x2cf   : > { %1432 = vadd.xlane.f32.xlu0 %v1431_v2  ;;  %v1066_v18 = vpop.xlane.xlu0 %1065  ;;  %v1238_v17 = vmul.f32 0.015625, %v1069_v15 }
 0x2d0   : > { %v1237_v1 = vmul.f32 0.015625, %v1066_v18 }
 0x2d1   : > { %v10360_v11 = vsub.f32 %v10049_v35, %v1238_v17 }
 0x2d2   : > { %v10363_v12 = vsub.f32 %v10046_v33, %v1237_v1  ;;  %v10365_v45 = vpop.xlane.xlu1 %1164 }
 0x2d3   : > { %15997 = vst [vmem:[#allocation51_spill] sm:$0xff] %v10360_v11  ;;  %v10367_v6 = vpop.xlane.xlu0 %1161  ;;  %v1366_v43 = vmul.f32 %v10360_v11, %v10360_v11 }
 0x2d4   : > { %15998 = vst [vmem:[#allocation52_spill] sm:$0xff] %v10363_v12  ;;  %v1365_v25 = vmul.f32 %v10363_v12, %v10363_v12 }
 0x2d5   : > { %v1452_v29 = vsel %vm1033_vm2, %v1366_v43, 0.0 }
 0x2d6   : > { %v1449_v2 = vsel %vm1033_vm2, %v1365_v25, 0.0  ;;  %v1063_v15 = vpop.xlane.xlu1 %1062  ;;  %1453 = vadd.xlane.f32.xlu1 %v1452_v29 }
 0x2d7   : > { %1450 = vadd.xlane.f32.xlu0 %v1449_v2  ;;  %v1060_v35 = vpop.xlane.xlu0 %1059  ;;  %v1236_v33 = vmul.f32 0.015625, %v1063_v15 }
 0x2d8   : > { %v1235_v18 = vmul.f32 0.015625, %v1060_v35 }
 0x2d9   : > { %v10376_v17 = vsub.f32 %v10093_v5, %v1236_v33 }
 0x2da   : > { %v10379_v1 = vsub.f32 %v10090_v4, %v1235_v18  ;;  %v10381_v11 = vpop.xlane.xlu1 %1158 }
 0x2db   : > { %15999 = vst [vmem:[#allocation53_spill] sm:$0xff] %v10376_v17  ;;  %v10383_v53 = vpop.xlane.xlu0 %1155  ;;  %v1364_v43 = vmul.f32 %v10376_v17, %v10376_v17 }
 0x2dc   : > { %16000 = vst [vmem:[#allocation54_spill] sm:$0xff] %v10379_v1  ;;  %v1363_v25 = vmul.f32 %v10379_v1, %v10379_v1 }
 0x2dd   : > { %v1446_v29 = vsel %vm1033_vm2, %v1364_v43, 0.0 }
 0x2de   : > { %v1443_v2 = vsel %vm1033_vm2, %v1363_v25, 0.0  ;;  %v1081_v15 = vpop.xlane.xlu1 %1080  ;;  %1447 = vadd.xlane.f32.xlu1 %v1446_v29 }
 0x2df   : > { %1444 = vadd.xlane.f32.xlu0 %v1443_v2  ;;  %v1078_v5 = vpop.xlane.xlu0 %1077  ;;  %v1242_v4 = vmul.f32 0.015625, %v1081_v15 }
 0x2e0   : > { %v1241_v35 = vmul.f32 0.015625, %v1078_v5 }
 0x2e1   : > { %v10392_v33 = vsub.f32 %v10141_v61, %v1242_v4 }
 0x2e2   : > { %v10395_v18 = vsub.f32 %v10137_v57, %v1241_v35  ;;  %v10397_v17 = vpop.xlane.xlu1 %1176 }
 0x2e3   : > { %16001 = vst [vmem:[#allocation55_spill] sm:$0xff] %v10392_v33  ;;  %v10399_v12 = vpop.xlane.xlu0 %1173  ;;  %v1370_v43 = vmul.f32 %v10392_v33, %v10392_v33 }
 0x2e4   : > { %16002 = vst [vmem:[#allocation56_spill] sm:$0xff] %v10395_v18  ;;  %v1369_v25 = vmul.f32 %v10395_v18, %v10395_v18 }
 0x2e5   : > { %v1464_v29 = vsel %vm1033_vm2, %v1370_v43, 0.0 }
 0x2e6   : > { %v1461_v2 = vsel %vm1033_vm2, %v1369_v25, 0.0  ;;  %v1075_v15 = vpop.xlane.xlu1 %1074  ;;  %1465 = vadd.xlane.f32.xlu1 %v1464_v29 }
 0x2e7   : > { %1462 = vadd.xlane.f32.xlu0 %v1461_v2  ;;  %v1072_v61 = vpop.xlane.xlu0 %1071  ;;  %v1240_v57 = vmul.f32 0.015625, %v1075_v15 }
 0x2e8   : > { %v1239_v5 = vmul.f32 0.015625, %v1072_v61 }
 0x2e9   : > { %v10408_v4 = vsub.f32 %v10189_v41, %v1240_v57 }
 0x2ea   : > { %v10411_v35 = vsub.f32 %v10185_v20, %v1239_v5  ;;  %v10413_v33 = vpop.xlane.xlu1 %1170 }
 0x2eb   : > { %16003 = vst [vmem:[#allocation57_spill] sm:$0xff] %v10408_v4  ;;  %v10415_v1 = vpop.xlane.xlu0 %1167  ;;  %v1368_v43 = vmul.f32 %v10408_v4, %v10408_v4 }
 0x2ec   : > { %16004 = vst [vmem:[#allocation58_spill] sm:$0xff] %v10411_v35  ;;  %v1367_v25 = vmul.f32 %v10411_v35, %v10411_v35 }
 0x2ed   : > { %v1458_v29 = vsel %vm1033_vm2, %v1368_v43, 0.0 }
 0x2ee   : > { %v1455_v2 = vsel %vm1033_vm2, %v1367_v25, 0.0  ;;  %v1093_v15 = vpop.xlane.xlu1 %1092  ;;  %1459 = vadd.xlane.f32.xlu1 %v1458_v29 }
 0x2ef   : > { %1456 = vadd.xlane.f32.xlu0 %v1455_v2  ;;  %v1090_v41 = vpop.xlane.xlu0 %1089  ;;  %v1246_v20 = vmul.f32 0.015625, %v1093_v15 }
 0x2f0   : > { %v1245_v61 = vmul.f32 0.015625, %v1090_v41 }
 0x2f1   : > { %v10424_v57 = vsub.f32 %v10078_v58, %v1246_v20 }
 0x2f2   : > { %v10427_v5 = vsub.f32 %v10056_v42, %v1245_v61  ;;  %v10429_v4 = vpop.xlane.xlu1 %1188 }
 0x2f3   : > { %16005 = vst [vmem:[#allocation59_spill] sm:$0xff] %v10424_v57  ;;  %v10431_v18 = vpop.xlane.xlu0 %1185  ;;  %v1374_v43 = vmul.f32 %v10424_v57, %v10424_v57 }
 0x2f4   : > { %16006 = vst [vmem:[#allocation60_spill] sm:$0xff] %v10427_v5  ;;  %v1373_v25 = vmul.f32 %v10427_v5, %v10427_v5 }
 0x2f5   : > { %v1476_v29 = vsel %vm1033_vm2, %v1374_v43, 0.0 }
 0x2f6   : > { %v1473_v2 = vsel %vm1033_vm2, %v1373_v25, 0.0  ;;  %v1087_v15 = vpop.xlane.xlu1 %1086  ;;  %1477 = vadd.xlane.f32.xlu1 %v1476_v29 }
 0x2f7   : > { %1474 = vadd.xlane.f32.xlu0 %v1473_v2  ;;  %v1084_v58 = vpop.xlane.xlu0 %1083  ;;  %v1244_v42 = vmul.f32 0.015625, %v1087_v15 }
 0x2f8   : > { %v1243_v41 = vmul.f32 0.015625, %v1084_v58 }
 0x2f9   : > { %v10440_v20 = vsub.f32 %v10084_v0, %v1244_v42 }
 0x2fa   : > { %v10443_v61 = vsub.f32 %v10068_v52, %v1243_v41  ;;  %v10445_v57 = vpop.xlane.xlu1 %1182 }
 0x2fb   : > { %16007 = vst [vmem:[#allocation61_spill] sm:$0xff] %v10440_v20  ;;  %v10447_v35 = vpop.xlane.xlu0 %1179  ;;  %v1372_v43 = vmul.f32 %v10440_v20, %v10440_v20 }
 0x2fc   : > { %16008 = vst [vmem:[#allocation62_spill] sm:$0xff] %v10443_v61  ;;  %v1371_v25 = vmul.f32 %v10443_v61, %v10443_v61 }
 0x2fd   : > { %v1470_v29 = vsel %vm1033_vm2, %v1372_v43, 0.0 }
 0x2fe   : > { %v1467_v2 = vsel %vm1033_vm2, %v1371_v25, 0.0  ;;  %v1105_v15 = vpop.xlane.xlu1 %1104  ;;  %1471 = vadd.xlane.f32.xlu1 %v1470_v29 }
 0x2ff   : > { %1468 = vadd.xlane.f32.xlu0 %v1467_v2  ;;  %v1102_v0 = vpop.xlane.xlu0 %1101  ;;  %v1250_v52 = vmul.f32 0.015625, %v1105_v15 }
 0x300   : > { %v1249_v58 = vmul.f32 0.015625, %v1102_v0 }
 0x301   : > { %v10456_v42 = vsub.f32 %v10124_v8, %v1250_v52  ;;  %v8215_v52 = vld [vmem:[#allocation11] sm:$0xff]  }
 0x302   : > { %v10459_v41 = vsub.f32 %v10100_v14, %v1249_v58  ;;  %v10461_v20 = vpop.xlane.xlu1 %1200  ;;  %7913 = vmatprep.subr.bf16.mxu1 %v8215_v52 }
 0x303   : > { %16009 = vst [vmem:[#allocation63_spill] sm:$0xff] %v10456_v42  ;;  %v10463_v5 = vpop.xlane.xlu0 %1197  ;;  %v1378_v43 = vmul.f32 %v10456_v42, %v10456_v42  ;;  %7914 = vmatpush3.bf16.msra.mxu1 %v8215_v52  ;;  %v1223_v52 = vsel %vm1033_vm2, %v10223_v32, 0.0 }
 0x304   : > { %16010 = vst [vmem:[#allocation64_spill] sm:$0xff] %v10459_v41  ;;  %v1377_v25 = vmul.f32 %v10459_v41, %v10459_v41 }
 0x305   : > { %v1488_v29 = vsel %vm1033_vm2, %v1378_v43, 0.0 }
 0x306   : > { %v1485_v2 = vsel %vm1033_vm2, %v1377_v25, 0.0  ;;  %v1099_v15 = vpop.xlane.xlu1 %1098  ;;  %1489 = vadd.xlane.f32.xlu1 %v1488_v29  ;;  %v8216_v29 = vld [vmem:[#allocation11 + $0x8] sm:$0xff]  }
 0x307   : > { %1486 = vadd.xlane.f32.xlu0 %v1485_v2  ;;  %v1096_v8 = vpop.xlane.xlu0 %1095  ;;  %v1248_v14 = vmul.f32 0.015625, %v1099_v15  ;;  %7915 = vmatprep.subr.bf16.mxu1 %v8216_v29 }
 0x308   : > { %v1247_v0 = vmul.f32 0.015625, %v1096_v8  ;;  %7916 = vmatpush3.bf16.msra.mxu1 %v8216_v29  ;;  %v8217_v8 = vld [vmem:[#allocation11 + $0x10] sm:$0xff]  }
 0x309   : > { %v10472_v58 = vsub.f32 %v10130_v55, %v1248_v14  ;;  %7917 = vmatprep.subr.bf16.mxu1 %v8217_v8 }
 0x30a   : > { %v10475_v61 = vsub.f32 %v10114_v30, %v1247_v0  ;;  %v10477_v42 = vpop.xlane.xlu1 %1194 }
 0x30b   : > { %16011 = vst [vmem:[#allocation65_spill] sm:$0xff] %v10472_v58  ;;  %v10479_v41 = vpop.xlane.xlu0 %1191  ;;  %v1376_v43 = vmul.f32 %v10472_v58, %v10472_v58 }
 0x30c   : > { %16012 = vst [vmem:[#allocation66_spill] sm:$0xff] %v10475_v61  ;;  %v1375_v25 = vmul.f32 %v10475_v61, %v10475_v61  ;;  %v1220_v61 = vsel %vm1033_vm2, %v10199_v23, 0.0  ;;  %7918 = vmatpush3.bf16.msra.mxu1 %v8217_v8 }
 0x30d   : > { %v1482_v2 = vsel %vm1033_vm2, %v1376_v43, 0.0 }
 0x30e   : > { %v1479_v55 = vsel %vm1033_vm2, %v1375_v25, 0.0  ;;  %v1117_v30 = vpop.xlane.xlu1 %1116  ;;  %1483 = vadd.xlane.f32.xlu1 %v1482_v2  ;;  %v8218_v2 = vld [vmem:[#allocation11 + $0x18] sm:$0xff]  }
 0x30f   : > { %1480 = vadd.xlane.f32.xlu0 %v1479_v55  ;;  %v1114_v15 = vpop.xlane.xlu0 %1113  ;;  %v1254_v14 = vmul.f32 0.015625, %v1117_v30  ;;  %7919 = vmatprep.subr.bf16.mxu1 %v8218_v2 }
 0x310   : > { %v1253_v0 = vmul.f32 0.015625, %v1114_v15  ;;  %7920 = vmatpush3.bf16.msra.mxu1 %v8218_v2  ;;  %v1259_v2 = vmul.f32 0.015625, %v10311_v37 }
 0x311   : > { %v10492_v29 = vsub.f32 %v10172_v22, %v1254_v14 }
 0x312   : > { %v1111_v58 = vpop.xlane.xlu1 %1110  ;;  %1224 = vadd.xlane.f32.xlu1 %v1223_v52  ;;  %v10495_v55 = vsub.f32 %v10148_v13, %v1253_v0 }
 0x313   : > { %1221 = vadd.xlane.f32.xlu0 %v1220_v61  ;;  %v1108_v43 = vpop.xlane.xlu0 %1107  ;;  %v1252_v25 = vmul.f32 0.015625, %v1111_v58  ;;  %16013 = vst [vmem:[#allocation67_spill] sm:$0xff] %v10492_v29  ;;  %v1382_v13 = vmul.f32 %v10492_v29, %v10492_v29 }
 0x314   : > { %v1251_v19 = vmul.f32 0.015625, %v1108_v43  ;;  %16014 = vst [vmem:[#allocation68_spill] sm:$0xff] %v10495_v55  ;;  %v1381_v22 = vmul.f32 %v10495_v55, %v10495_v55 }
 0x315   : > { %v10498_v30 = vsub.f32 %v10178_v10, %v1252_v25  ;;  %v1500_v29 = vsel %vm1033_vm2, %v1382_v13, 0.0  ;;  %v1262_v13 = vmul.f32 0.015625, %v10309_v63 }
 0x316   : > { %v10501_v15 = vsub.f32 %v10162_v40, %v1251_v19  ;;  %v1129_v52 = vpop.xlane.xlu1 %1128  ;;  %v1497_v55 = vsel %vm1033_vm2, %v1381_v22, 0.0  ;;  %v1263_v22 = vmul.f32 0.015625, %v10351_v34 }
 0x317   : > { %16015 = vst [vmem:[#allocation69_spill] sm:$0xff] %v10498_v30  ;;  %v1126_v61 = vpop.xlane.xlu0 %1125  ;;  %v1380_v58 = vmul.f32 %v10498_v30, %v10498_v30  ;;  %v1258_v10 = vmul.f32 0.015625, %v1129_v52 }
 0x318   : > { %16016 = vst [vmem:[#allocation70_spill] sm:$0xff] %v10501_v15  ;;  %v1379_v8 = vmul.f32 %v10501_v15, %v10501_v15  ;;  %v1257_v14 = vmul.f32 0.015625, %v1126_v61  ;;  %v1260_v15 = vmul.f32 0.015625, %v10319_v21 }
 0x319   : > { %v1494_v40 = vsel %vm1033_vm2, %v1380_v58, 0.0  ;;  %v10518_v52 = vsub.f32 %v10220_v24, %v1258_v10  ;;  %v1261_v24 = vmul.f32 0.015625, %v10295_v48 }
 0x31a   : > { %v1491_v19 = vsel %vm1033_vm2, %v1379_v8, 0.0  ;;  %v1123_v0 = vpop.xlane.xlu1 %1122  ;;  %1495 = vadd.xlane.f32.xlu1 %v1494_v40  ;;  %v10521_v61 = vsub.f32 %v10196_v9, %v1257_v14  ;;  %v10536_v9 = vsub.f32 %v9966_v49, %v1259_v2  ;;  %v10551_v49 = vsub.f32 %v9969_v50, %v1262_v13 }
 0x31b   : > { %1492 = vadd.xlane.f32.xlu0 %v1491_v19  ;;  %v1120_v43 = vpop.xlane.xlu0 %1119  ;;  %v1256_v25 = vmul.f32 0.015625, %v1123_v0  ;;  %v10548_v63 = vsub.f32 %v9953_v38, %v1261_v24  ;;  %v1266_v38 = vmul.f32 0.015625, %v10333_v44  ;;  %v10572_v0 = vsub.f32 %v10032_v27, %v1263_v22  ;;  %v16017_v44 = vld [vmem:[#allocation30_spill] sm:$0xff] }
 0x31c   : > { %v1255_v30 = vmul.f32 0.015625, %v1120_v43  ;;  %v1387_v48 = vmul.f32 %v10536_v9, %v10536_v9  ;;  %v1390_v40 = vmul.f32 %v10551_v49, %v10551_v49  ;;  %v1268_v2 = vmul.f32 0.015625, %v10381_v11 }
 0x31d   : > { %v10524_v58 = vsub.f32 %v10226_v51, %v1256_v25  ;;  %v10539_v51 = vsub.f32 %v9979_v60, %v1260_v15  ;;  %v1264_v15 = vmul.f32 0.015625, %v10349_v26  ;;  %v1389_v19 = vmul.f32 %v10548_v63, %v10548_v63 }
 0x31e   : > { %v10527_v8 = vsub.f32 %v10210_v47, %v1255_v30  ;;  %1501 = vadd.xlane.f32.xlu1 %v1500_v29  ;;  %v1385_v30 = vmul.f32 %v10521_v61, %v10521_v61  ;;  %v1515_v50 = vsel %vm1033_vm2, %v1387_v48, 0.0  ;;  %v1265_v26 = vmul.f32 0.015625, %v10335_v59  ;;  %v16019_v59 = vld [vmem:[#allocation29_spill] sm:$0xff] }
 0x31f   : > { %1498 = vadd.xlane.f32.xlu0 %v1497_v55  ;;  %v1384_v37 = vmul.f32 %v10524_v58, %v10524_v58  ;;  %v1386_v55 = vmul.f32 %v10518_v52, %v10518_v52  ;;  %v1388_v60 = vmul.f32 %v10539_v51, %v10539_v51  ;;  %v10569_v34 = vsub.f32 %v10035_v28, %v1264_v15 }
 0x320   : > { %v1383_v21 = vmul.f32 %v10527_v8, %v10527_v8  ;;  %v1509_v14 = vsel %vm1033_vm2, %v1385_v30, 0.0  ;;  %v10576_v25 = vsub.f32 %v16017_v44, %v1266_v38  ;;  %v10582_v24 = vsub.f32 %v16019_v59, %v1265_v26 }
 0x321   : > { %v1506_v47 = vsel %vm1033_vm2, %v1384_v37, 0.0  ;;  %v1512_v10 = vsel %vm1033_vm2, %v1386_v55, 0.0  ;;  %v1518_v43 = vsel %vm1033_vm2, %v1388_v60, 0.0  ;;  %v1524_v37 = vsel %vm1033_vm2, %v1390_v40, 0.0  ;;  %v16023_v60 = vld [vmem:[#allocation33_spill] sm:$0xff] }
 0x322   : > { %v1503_v29 = vsel %vm1033_vm2, %v1383_v21, 0.0  ;;  %1507 = vadd.xlane.f32.xlu1 %v1506_v47  ;;  %16018 = vst [vmem:[#allocation30_spill] sm:$0xff] %v10576_v25  ;;  %v1521_v21 = vsel %vm1033_vm2, %v1389_v19, 0.0  ;;  %16020 = vst [vmem:[#allocation29_spill] sm:$0xff] %v10582_v24  ;;  %v1267_v28 = vmul.f32 0.015625, %v10383_v53  ;;  %v1392_v27 = vmul.f32 %v10569_v34, %v10569_v34 }
 0x323   : > { %1504 = vadd.xlane.f32.xlu0 %v1503_v29  ;;  %v1391_v13 = vmul.f32 %v10572_v0, %v10572_v0  ;;  %v1270_v47 = vmul.f32 0.015625, %v10365_v45  ;;  %v1269_v11 = vmul.f32 0.015625, %v10367_v6  ;;  %v16021_v29 = vld [vmem:[#allocation34_spill] sm:$0xff]  ;;  %v1394_v30 = vmul.f32 %v10576_v25, %v10576_v25  ;;  %v10603_v45 = vpop.xlane.xlu0 %1203  ;;  %v16025_v6 = vld [vmem:[#allocation32_spill] sm:$0xff] }
 0x324   : > { %v10592_v55 = vsub.f32 %v16021_v29, %v1268_v2  ;;  %v10597_v53 = vsub.f32 %v16023_v60, %v1267_v28  ;;  %v1530_v48 = vsel %vm1033_vm2, %v1392_v27, 0.0  ;;  %v1393_v22 = vmul.f32 %v10582_v24, %v10582_v24  ;;  %v10619_v2 = vpop.xlane.xlu1 %1206 }
 0x325   : > { %v1527_v15 = vsel %vm1033_vm2, %v1391_v13, 0.0  ;;  %v1272_v19 = vmul.f32 0.015625, %v10413_v33  ;;  %v1271_v26 = vmul.f32 0.015625, %v10415_v1  ;;  %v1273_v1 = vmul.f32 0.015625, %v10399_v12 }
 0x326   : > { %1513 = vadd.xlane.f32.xlu1 %v1512_v10  ;;  %16022 = vst [vmem:[#allocation34_spill] sm:$0xff] %v10592_v55  ;;  %16024 = vst [vmem:[#allocation33_spill] sm:$0xff] %v10597_v53  ;;  %v10606_v10 = vsub.f32 %v16025_v6, %v1270_v47  ;;  %v1396_v40 = vmul.f32 %v10592_v55, %v10592_v55  ;;  %v1395_v44 = vmul.f32 %v10597_v53, %v10597_v53  ;;  %v16031_v47 = vld [vmem:[#allocation37_spill] sm:$0xff]  ;;  %v16064_v53 = vld [vmem:[#allocation51_spill] sm:$0xff] }
 0x327   : > { %1510 = vadd.xlane.f32.xlu0 %v1509_v14  ;;  %v16027_v14 = vld [vmem:[#allocation31_spill] sm:$0xff]  ;;  %v10629_v28 = vsub.f32 %v10207_v36, %v1272_v19  ;;  %v10632_v27 = vsub.f32 %v10203_v31, %v1271_v26  ;;  %v10634_v13 = vpop.xlane.xlu0 %1209  ;;  %v1276_v29 = vmul.f32 0.015625, %v10445_v57  ;;  %v16033_v36 = vld [vmem:[#allocation36_spill] sm:$0xff]  ;;  %v1275_v31 = vmul.f32 0.015625, %v10447_v35 }
 0x328   : > { %16026 = vst [vmem:[#allocation32_spill] sm:$0xff] %v10606_v10  ;;  %v10609_v38 = vsub.f32 %v16027_v14, %v1269_v11  ;;  %v1398_v59 = vmul.f32 %v10606_v10, %v10606_v10  ;;  %v10644_v60 = vsub.f32 %v16033_v36, %v1273_v1  ;;  %v1278_v57 = vmul.f32 0.015625, %v10429_v4 }
 0x329   : > { %16029 = vst [vmem:[#allocation71_spill] sm:$0xff] %v10629_v28  ;;  %16030 = vst [vmem:[#allocation72_spill] sm:$0xff] %v10632_v27  ;;  %v1277_v6 = vmul.f32 0.015625, %v10431_v18 }
 0x32a   : > { %1519 = vadd.xlane.f32.xlu1 %v1518_v43  ;;  %16028 = vst [vmem:[#allocation31_spill] sm:$0xff] %v10609_v38  ;;  %v1533_v43 = vsel %vm1033_vm2, %v1393_v22, 0.0  ;;  %v1397_v33 = vmul.f32 %v10609_v38, %v10609_v38  ;;  %16034 = vst [vmem:[#allocation36_spill] sm:$0xff] %v10644_v60  ;;  %v1399_v22 = vmul.f32 %v10632_v27, %v10632_v27 }
 0x32b   : > { %1516 = vadd.xlane.f32.xlu0 %v1515_v50  ;;  %v1536_v50 = vsel %vm1033_vm2, %v1394_v30, 0.0  ;;  %v1548_v30 = vsel %vm1033_vm2, %v1398_v59, 0.0  ;;  %v10653_v14 = vpop.xlane.xlu0 %1215  ;;  %v1401_v4 = vmul.f32 %v10644_v60, %v10644_v60  ;;  %v10668_v18 = vsub.f32 %v10081_v62, %v1278_v57 }
 0x32c   : > { %v1545_v12 = vsel %vm1033_vm2, %v1397_v33, 0.0  ;;  %v1551_v26 = vsel %vm1033_vm2, %v1399_v22, 0.0  ;;  %v1280_v59 = vmul.f32 0.015625, %v10477_v42  ;;  %v1279_v33 = vmul.f32 0.015625, %v10479_v41 }
 0x32d   : > { %16037 = vst [vmem:[#allocation75_spill] sm:$0xff] %v10668_v18  ;;  %v1557_v1 = vsel %vm1033_vm2, %v1401_v4, 0.0 }
 0x32e   : > { %1525 = vadd.xlane.f32.xlu1 %v1524_v37  ;;  %v1274_v37 = vmul.f32 0.015625, %v10397_v17  ;;  %v1539_v17 = vsel %vm1033_vm2, %v1395_v44, 0.0 }
 0x32f   : > { %1522 = vadd.xlane.f32.xlu0 %v1521_v21  ;;  %v1542_v21 = vsel %vm1033_vm2, %v1396_v40, 0.0  ;;  %v10661_v40 = vsub.f32 %v10071_v54, %v1275_v31  ;;  %v1281_v31 = vmul.f32 0.015625, %v10463_v5  ;;  %v1283_v5 = vmul.f32 0.015625, %v10603_v45 }
 0x330   : > { %v10638_v11 = vsub.f32 %v16031_v47, %v1274_v37 }
 0x331   : > { %16036 = vst [vmem:[#allocation74_spill] sm:$0xff] %v10661_v40  ;;  %v1403_v62 = vmul.f32 %v10661_v40, %v10661_v40 }
 0x332   : > { %1531 = vadd.xlane.f32.xlu1 %v1530_v48  ;;  %16032 = vst [vmem:[#allocation37_spill] sm:$0xff] %v10638_v11  ;;  %v1213_v48 = vpop.xlane.xlu1 %1212  ;;  %v1402_v35 = vmul.f32 %v10638_v11, %v10638_v11 }
 0x333   : > { %1528 = vadd.xlane.f32.xlu0 %v1527_v15  ;;  %v1400_v15 = vmul.f32 %v10629_v28, %v10629_v28  ;;  %v1563_v22 = vsel %vm1033_vm2, %v1403_v62, 0.0 }
 0x334   : > { %v1560_v37 = vsel %vm1033_vm2, %v1402_v35, 0.0 }
 0x335   : > { %v1554_v19 = vsel %vm1033_vm2, %v1400_v15, 0.0  ;;  %v10691_v15 = vsub.f32 %v10133_v56, %v1280_v59  ;;  %v1285_v59 = vmul.f32 0.015625, %v10634_v13 }
 0x336   : > { %1537 = vadd.xlane.f32.xlu1 %v1536_v50  ;;  %v10656_v50 = vsub.f32 %v10087_v3, %v1276_v29  ;;  %v10671_v3 = vsub.f32 %v10059_v46, %v1277_v6 }
 0x337   : > { %1534 = vadd.xlane.f32.xlu0 %v1533_v43  ;;  %v10673_v43 = vpop.xlane.xlu1 %1218  ;;  %16039 = vst [vmem:[#allocation77_spill] sm:$0xff] %v10691_v15  ;;  %v1408_v4 = vmul.f32 %v10691_v15, %v10691_v15 }
 0x338   : > { %16035 = vst [vmem:[#allocation73_spill] sm:$0xff] %v10656_v50  ;;  %16038 = vst [vmem:[#allocation76_spill] sm:$0xff] %v10671_v3  ;;  %v1405_v42 = vmul.f32 %v10671_v3, %v10671_v3  ;;  %v16063_v3 = vmov -1.0  }
 0x33a   : > { %1543 = vadd.xlane.f32.xlu1 %v1542_v21  ;;  %v1404_v21 = vmul.f32 %v10656_v50, %v10656_v50  ;;  %v1569_v56 = vsel %vm1033_vm2, %v1405_v42, 0.0  ;;  %v16049_v42 = vld [vmem:[#allocation43_spill] sm:$0xff] }
 0x33b   : > { %1540 = vadd.xlane.f32.xlu0 %v1539_v17  ;;  %v1282_v17 = vmul.f32 0.015625, %v10461_v20  ;;  %v10694_v20 = vsub.f32 %v10117_v39, %v1279_v33  ;;  %v10705_v39 = vsub.f32 %v10103_v7, %v1281_v31 }
 0x33c   : > { %v1566_v36 = vsel %vm1033_vm2, %v1404_v21, 0.0  ;;  %v16045_v21 = vld [vmem:[#allocation38_spill] sm:$0xff] }
 0x33d   : > { %16040 = vst [vmem:[#allocation78_spill] sm:$0xff] %v10694_v20  ;;  %v10698_v35 = vsub.f32 %v10127_v16, %v1282_v17  ;;  %16042 = vst [vmem:[#allocation80_spill] sm:$0xff] %v10705_v39  ;;  %v1407_v16 = vmul.f32 %v10694_v20, %v10694_v20  ;;  %v10717_v7 = vsub.f32 %v16045_v21, %v1283_v5  ;;  %v10724_v17 = vld [vmem:[#allocation8] ss:$0 sm:$0xff]  ;;  %v1287_v5 = vmul.f32 0.015625, %v10653_v14 }
 0x33e   : > { %1549 = vadd.xlane.f32.xlu1 %v1548_v30  ;;  %v1406_v30 = vmul.f32 %v10668_v18, %v10668_v18 }
 0x33f   : > { %1546 = vadd.xlane.f32.xlu0 %v1545_v12  ;;  %16041 = vst [vmem:[#allocation79_spill] sm:$0xff] %v10698_v35  ;;  %v1410_v45 = vmul.f32 %v10698_v35, %v10698_v35  ;;  %16046 = vst [vmem:[#allocation38_spill] sm:$0xff] %v10717_v7  ;;  %v1575_v62 = vsel %vm1033_vm2, %v1407_v16, 0.0 }
 0x342   : > { %1555 = vadd.xlane.f32.xlu1 %v1554_v19  ;;  %v1572_v19 = vsel %vm1033_vm2, %v1406_v30, 0.0 }
 0x343   : > { %1552 = vadd.xlane.f32.xlu0 %v1551_v26  ;;  %v1427_v44 = vpop.xlane.xlu0 %1426  ;;  %v1284_v26 = vmul.f32 0.015625, %v10619_v2  ;;  %v16043_v2 = vld [vmem:[#allocation40_spill] sm:$0xff] }
 0x344   : > { %v1613_v54 = vmul.f32 0.015625, %v1427_v44  ;;  %v1286_v44 = vmul.f32 0.015625, %v1213_v48  ;;  %v1409_v48 = vmul.f32 %v10705_v39, %v10705_v39 }
 0x346   : > { %v1677_v46 = vadd.f32 1e-05, %v1613_v54  ;;  %1561 = vadd.xlane.f32.xlu1 %v1560_v37  ;;  %v10714_v37 = vsub.f32 %v16043_v2, %v1284_v26  ;;  %v1288_v26 = vmul.f32 0.015625, %v10673_v43  ;;  %v16052_v2 = vld [vmem:[#allocation44_spill] sm:$0xff] }
 0x347   : > { %1558 = vadd.xlane.f32.xlu0 %v1557_v1  ;;  %v1430_v47 = vpop.xlane.xlu1 %1429  ;;  %v1578_v1 = vsel %vm1033_vm2, %v1408_v4, 0.0  ;;  %v1581_v4 = vsel %vm1033_vm2, %v1409_v48, 0.0 }
 0x348   : > { %v1421_v29 = vpop.xlane.xlu0 %1420  ;;  %8223 = vrsqrt.f32 %v1677_v46  ;;  %v1614_v41 = vmul.f32 0.015625, %v1430_v47  ;;  %16044 = vst [vmem:[#allocation40_spill] sm:$0xff] %v10714_v37 }
 0x349   : > { %v1611_v12 = vmul.f32 0.015625, %v1421_v29  ;;  %v16047_v29 = vld [vmem:[#allocation39_spill] sm:$0xff] }
 0x34a   : > { %v1678_v57 = vadd.f32 1e-05, %v1614_v41  ;;  %1567 = vadd.xlane.f32.xlu1 %v1566_v36  ;;  %v10727_v30 = vsub.f32 %v16047_v29, %v1286_v44  ;;  %v16050_v36 = vld [vmem:[#allocation35_spill] sm:$0xff]  ;;  %v16056_v29 = vld [vmem:[#allocation41_spill] sm:$0xff] }
 0x34b   : > { %v1675_v6 = vadd.f32 1e-05, %v1611_v12  ;;  %1564 = vadd.xlane.f32.xlu0 %v1563_v22  ;;  %v1584_v12 = vsel %vm1033_vm2, %v1410_v45, 0.0  ;;  %v10732_v31 = vsub.f32 %v16050_v36, %v1285_v59  ;;  %v10734_v22 = vld [vmem:[#allocation10] ss:$0 sm:$0xff] }
 0x34c   : > { %8225 = vrsqrt.f32 %v1678_v57  ;;  %16048 = vst [vmem:[#allocation39_spill] sm:$0xff] %v10727_v30  ;;  %v1414_v43 = vmul.f32 %v10727_v30, %v10727_v30 }
 0x34d   : > { %8227 = vrsqrt.f32 %v1675_v6  ;;  %16051 = vst [vmem:[#allocation43_spill] sm:$0xff] %v10732_v31  ;;  %v1412_v6 = vmul.f32 %v10714_v37, %v10714_v37  ;;  %v1413_v48 = vmul.f32 %v10732_v31, %v10732_v31 }
 0x34e   : > { %1573 = vadd.xlane.f32.xlu1 %v1572_v19  ;;  %v1411_v19 = vmul.f32 %v10717_v7, %v10717_v7  ;;  %v16060_v7 = vld [vmem:[#allocation48_spill] sm:$0xff] }
 0x34f   : > { %1570 = vadd.xlane.f32.xlu0 %v1569_v56 }
 0x350   : > { %v1424_v54 = vpop.xlane.xlu1 %1423 }
 0x351   : > { %v1612_v33 = vmul.f32 0.015625, %v1424_v54 }
 0x352   : > { %v8224_v46 = vpop.eup %8223  ;;  %1579 = vadd.xlane.f32.xlu1 %v1578_v1  ;;  %v1590_v1 = vsel %vm1033_vm2, %v1412_v6, 0.0 }
 0x353   : > { %v1676_v47 = vadd.f32 1e-05, %v1612_v33  ;;  %1576 = vadd.xlane.f32.xlu0 %v1575_v62  ;;  %v1805_v41 = vmul.f32 %v8224_v46, %v16049_v42  ;;  %v16053_v33 = vld [vmem:[#allocation45_spill] sm:$0xff]  ;;  %v1587_v62 = vsel %vm1033_vm2, %v1411_v19, 0.0  ;;  %v16054_v46 = vld [vmem:[#allocation42_spill] sm:$0xff]  ;;  %v10759_v42 = vsub.f32 %v16056_v29, %v1287_v5 }
 0x354   : > { %v1442_v13 = vpop.xlane.xlu1 %1441  ;;  %v1439_v57 = vpop.xlane.xlu0 %1438  ;;  %v16058_v29 = vld [vmem:[#allocation46_spill] sm:$0xff] }
 0x355   : > { %8229 = vrsqrt.f32 %v1676_v47  ;;  %v1875_v56 = vmul.f32 %v10724_v17, %v1805_v41  ;;  %v1618_v44 = vmul.f32 0.015625, %v1442_v13  ;;  %v1617_v59 = vmul.f32 0.015625, %v1439_v57  ;;  %16057 = vst [vmem:[#allocation44_spill] sm:$0xff] %v10759_v42 }
 0x356   : > { %v8226_v16 = vpop.eup %8225  ;;  %1585 = vadd.xlane.f32.xlu1 %v1584_v12  ;;  %v10756_v47 = vsub.f32 %v16054_v46, %v1288_v26  ;;  %v1596_v26 = vsel %vm1033_vm2, %v1414_v43, 0.0 }
 0x357   : > { %1582 = vadd.xlane.f32.xlu0 %v1581_v4  ;;  %v8228_v54 = vpop.eup %8227  ;;  %v10745_v45 = vadd.f32 %v10734_v22, %v1875_v56  ;;  %v1806_v21 = vmul.f32 %v8226_v16, %v16052_v2  ;;  %v1682_v12 = vadd.f32 1e-05, %v1618_v44  ;;  %v1681_v19 = vadd.f32 1e-05, %v1617_v59 }
 0x358   : > { %v1803_v14 = vmul.f32 %v8228_v54, %v16053_v33  ;;  %16055 = vst [vmem:[#allocation35_spill] sm:$0xff] %v10756_v47  ;;  %v1593_v54 = vsel %vm1033_vm2, %v1413_v48, 0.0  ;;  %v1416_v33 = vmul.f32 %v10756_v47, %v10756_v47 }
 0x359   : > { %v2073_v41 = vmul.f32 0.70710677, %v10745_v45  ;;  %v1876_v13 = vmul.f32 %v10724_v17, %v1806_v21  ;;  %8231 = vrsqrt.f32 %v1682_v12 }
 0x35a   : > { %1591 = vadd.xlane.f32.xlu1 %v1590_v1  ;;  %v1873_v36 = vmul.f32 %v10724_v17, %v1803_v14  ;;  %v1415_v14 = vmul.f32 %v10759_v42, %v10759_v42  ;;  %8233 = vrsqrt.f32 %v1681_v19 }
 0x35b   : > { %1588 = vadd.xlane.f32.xlu0 %v1587_v62  ;;  %v2265_v57 = vand.u32 2147483647, %v2073_v41  ;;  %v1946_v6 = vadd.f32 %v10734_v22, %v1876_v13  ;;  %v1436_v56 = vpop.xlane.xlu1 %1435  ;;  %vm2137_vm3 = vcmp.ge.f32.partialorder %v2073_v41, 0.0 }
 0x35c   : > { %v1433_v4 = vpop.xlane.xlu0 %1432  ;;  %v1616_v16 = vmul.f32 0.015625, %v1436_v56  ;;  %v1943_v2 = vadd.f32 %v10734_v22, %v1873_v36  ;;  %v1599_v42 = vsel %vm1033_vm2, %v1415_v14, 0.0 }
 0x35d   : > { %v1615_v5 = vmul.f32 0.015625, %v1433_v4  ;;  %v2329_v21 = vmul.f32 0.3275911, %v2265_v57  ;;  %v2074_v44 = vmul.f32 0.70710677, %v1946_v6  ;;  %v3161_v48 = vsub.f32 0.0, %v2265_v57 }
 0x35e   : > { %v1680_v59 = vadd.f32 1e-05, %v1616_v16  ;;  %1597 = vadd.xlane.f32.xlu1 %v1596_v26  ;;  %v2071_v36 = vmul.f32 0.70710677, %v1943_v2  ;;  %v1602_v4 = vsel %vm1033_vm2, %v1416_v33, 0.0 }
 0x35f   : > { %v8230_v1 = vpop.eup %8229  ;;  %v1679_v62 = vadd.f32 1e-05, %v1615_v5  ;;  %1594 = vadd.xlane.f32.xlu0 %v1593_v54  ;;  %v2393_v43 = vadd.f32 1.0, %v2329_v21  ;;  %v2266_v46 = vand.u32 2147483647, %v2074_v44  ;;  %v3225_v5 = vmul.f32 %v3161_v48, %v2265_v57 }
 0x360   : > { %v1804_v13 = vmul.f32 %v8230_v1, %v16058_v29  ;;  %8235 = vrsqrt.f32 %v1680_v59  ;;  %v2263_v26 = vand.u32 2147483647, %v2071_v36  ;;  %vm2138_vm4 = vcmp.ge.f32.partialorder %v2074_v44, 0.0 }
 0x361   : > { %8237 = vrcp.f32 %v2393_v43  ;;  %v2330_v56 = vmul.f32 0.3275911, %v2266_v46  ;;  %v3162_v21 = vsub.f32 0.0, %v2266_v46  ;;  %v3291_v14 = vmul.f32 1.442695, %v3225_v5 }
 0x362   : > { %8239 = vrsqrt.f32 %v1679_v62  ;;  %1603 = vadd.xlane.f32.xlu1 %v1602_v4  ;;  %v1874_v12 = vmul.f32 %v10724_v17, %v1804_v13  ;;  %v2327_v54 = vmul.f32 0.3275911, %v2263_v26  ;;  %v15861_v13 = vmov -1.0  }
 0x363   : > { %1600 = vadd.xlane.f32.xlu0 %v1599_v42  ;;  %v2394_v16 = vadd.f32 1.0, %v2330_v56  ;;  %v1454_v1 = vpop.xlane.xlu1 %1453  ;;  %v8232_v43 = vpop.eup %8231  ;;  %v10780_v42 = vmul.f32 0.5, %v10745_v45  ;;  %v10783_v57 = vsel %vm2137_vm3, 1.0, %v15861_v13  ;;  %v10786_v56 = vmul.f32 0.5, %v1946_v6 }
 0x364   : > { %v1944_v19 = vadd.f32 %v10734_v22, %v1874_v12  ;;  %v2391_v33 = vadd.f32 1.0, %v2327_v54  ;;  %v1451_v62 = vpop.xlane.xlu0 %1450  ;;  %v8234_v29 = vpop.eup %8233  ;;  %v1622_v4 = vmul.f32 0.015625, %v1454_v1  ;;  %v10788_v12 = vmul.f32 0.5, %v1943_v2  ;;  %v16059_v54 = vld [vmem:[#allocation49_spill] sm:$0xff]  ;;  %v16061_v2 = vld [vmem:[#allocation50_spill] sm:$0xff] }
 0x365   : > { %8241 = vrcp.f32 %v2394_v16  ;;  %v3226_v5 = vmul.f32 %v3162_v21, %v2266_v46  ;;  %v1621_v47 = vmul.f32 0.015625, %v1451_v62  ;;  %v10794_v44 = vsel %vm2138_vm4, 1.0, %v15861_v13  ;;  %v16062_v46 = vld [vmem:[#allocation47_spill] sm:$0xff] }
 0x366   : > { %v10777_v59 = vmul.f32 0.70710677, %v1944_v19  ;;  %8243 = vrcp.f32 %v2391_v33  ;;  %vm2135_vm5 = vcmp.ge.f32.partialorder %v2071_v36, 0.0  ;;  %v1809_v1 = vmul.f32 %v8234_v29, %v16060_v7 }
 0x367   : > { %8245 = vpow2.f32 %v3291_v14  ;;  %v1810_v21 = vmul.f32 %v8232_v43, %v16062_v46  ;;  %v3159_v62 = vsub.f32 0.0, %v2263_v26  ;;  %v3293_v14 = vmul.f32 1.442695, %v3226_v5 }
 0x368   : > { %v2264_v48 = vand.u32 2147483647, %v10777_v59  ;;  %v1685_v13 = vadd.f32 1e-05, %v1621_v47  ;;  %v10806_v7 = vsel %vm2135_vm5, 1.0, %v16063_v3  ;;  %vm2136_vm6 = vcmp.ge.f32.partialorder %v10777_v59, 0.0 }
 0x369   : > { %v3223_v5 = vmul.f32 %v3159_v62, %v2263_v26 }
 0x36a   : > { %v8236_v41 = vpop.eup %8235  ;;  %v2328_v31 = vmul.f32 0.3275911, %v2264_v48 }
 0x36b   : > { %v10790_v16 = vpop.eup %8237  ;;  %v1808_v45 = vmul.f32 %v8236_v41, %v16059_v54  ;;  %v1686_v41 = vadd.f32 1e-05, %v1622_v4  ;;  %v1448_v15 = vpop.xlane.xlu1 %1447  ;;  %v10811_v4 = vmul.f32 0.5, %v1944_v19 }
 0x36c   : > { %v8240_v30 = vpop.eup %8239  ;;  %v2585_v6 = vmul.f32 1.0614054, %v10790_v16  ;;  %v2392_v33 = vadd.f32 1.0, %v2328_v31  ;;  %v1445_v29 = vpop.xlane.xlu0 %1444 }
 0x36d   : > { %v1807_v37 = vmul.f32 %v8240_v30, %v16061_v2  ;;  %v1878_v39 = vmul.f32 %v10724_v17, %v1808_v45  ;;  %v3160_v45 = vsub.f32 0.0, %v2264_v48  ;;  %v1620_v2 = vmul.f32 0.015625, %v1448_v15 }
 0x36e   : > { %v2649_v54 = vadd.f32 -1.4531521, %v2585_v6  ;;  %8247 = vrcp.f32 %v2392_v33  ;;  %v1880_v33 = vmul.f32 %v10724_v17, %v1810_v21  ;;  %v1619_v19 = vmul.f32 0.015625, %v1445_v29 }
 0x36f   : > { %v10801_v35 = vpop.eup %8241  ;;  %v1877_v20 = vmul.f32 %v10724_v17, %v1807_v37  ;;  %v1948_v43 = vadd.f32 %v10734_v22, %v1878_v39  ;;  %v1879_v37 = vmul.f32 %v10724_v17, %v1809_v1  ;;  %8249 = vrsqrt.f32 %v1686_v41 }
 0x370   : > { %v2586_v30 = vmul.f32 1.0614054, %v10801_v35  ;;  %v2713_v31 = vmul.f32 %v10790_v16, %v2649_v54  ;;  %8251 = vrsqrt.f32 %v1685_v13  ;;  %v10819_v39 = vpop.eup %8243  ;;  %v3224_v1 = vmul.f32 %v3160_v45, %v2264_v48 }
 0x371   : > { %v10814_v47 = vadd.f32 %v10734_v22, %v1877_v20  ;;  %v10825_v54 = vmul.f32 0.70710677, %v1948_v43  ;;  %v2583_v26 = vmul.f32 1.0614054, %v10819_v39  ;;  %v1949_v15 = vadd.f32 %v10734_v22, %v1879_v37  ;;  %v8246_v59 = vpop.eup %8245 }
 0x372   : > { %v2650_v36 = vadd.f32 -1.4531521, %v2586_v30  ;;  %v2777_v6 = vadd.f32 1.4214138, %v2713_v31  ;;  %8253 = vpow2.f32 %v3293_v14  ;;  %v10831_v21 = vsel %vm2136_vm6, 1.0, %v16063_v3 }
 0x373   : > { %v10823_v20 = vmul.f32 0.70710677, %v10814_v47  ;;  %v3287_v41 = vmul.f32 1.442695, %v3223_v5  ;;  %v1684_v30 = vadd.f32 1e-05, %v1620_v2 }
 0x374   : > { %v2714_v46 = vmul.f32 %v10801_v35, %v2650_v36  ;;  %v2841_v13 = vmul.f32 %v10790_v16, %v2777_v6  ;;  %v2647_v31 = vadd.f32 -1.4531521, %v2583_v26  ;;  %v10834_v36 = vadd.f32 %v10734_v22, %v1880_v33 }
 0x375   : > { %v1683_v18 = vadd.f32 1e-05, %v1619_v19  ;;  %v10838_v45 = vand.u32 2147483647, %v10823_v20  ;;  %v10841_v37 = vand.u32 2147483647, %v10825_v54  ;;  %8255 = vpow2.f32 %v3287_v41 }
 0x376   : > { %v2778_v62 = vadd.f32 1.4214138, %v2714_v46  ;;  %v2905_v29 = vadd.f32 -0.28449672, %v2841_v13  ;;  %v2711_v5 = vmul.f32 %v10819_v39, %v2647_v31  ;;  %v3289_v6 = vmul.f32 1.442695, %v3224_v1  ;;  %v1466_v13 = vpop.xlane.xlu1 %1465  ;;  %v1463_v31 = vpop.xlane.xlu0 %1462 }
 0x377   : > { %v10847_v46 = vmul.f32 0.5, %v1949_v15  ;;  %v2331_v26 = vmul.f32 0.3275911, %v10838_v45  ;;  %8257 = vrsqrt.f32 %v1684_v30  ;;  %v2332_v50 = vmul.f32 0.3275911, %v10841_v37 }
 0x378   : > { %v2842_v48 = vmul.f32 %v10801_v35, %v2778_v62  ;;  %v10843_v14 = vpop.eup %8247  ;;  %v2969_v2 = vmul.f32 %v10790_v16, %v2905_v29  ;;  %v2775_v62 = vadd.f32 1.4214138, %v2711_v5  ;;  %8259 = vrsqrt.f32 %v1683_v18 }
 0x379   : > { %v2584_v33 = vmul.f32 1.0614054, %v10843_v14  ;;  %v8250_v60 = vpop.eup %8249  ;;  %v10852_v11 = vmul.f32 0.5, %v1948_v43  ;;  %v10855_v29 = vmul.f32 0.5, %v10834_v36  ;;  %8261 = vpow2.f32 %v3289_v6 }
 0x37a   : > { %v2906_v19 = vadd.f32 -0.28449672, %v2842_v48  ;;  %v3033_v40 = vadd.f32 0.2548296, %v2969_v2  ;;  %v8252_v27 = vpop.eup %8251  ;;  %v2839_v41 = vmul.f32 %v10819_v39, %v2775_v62  ;;  %v2395_v48 = vadd.f32 1.0, %v2331_v26 }
 0x37b   : > { %v2648_v1 = vadd.f32 -1.4531521, %v2584_v33  ;;  %v1626_v5 = vmul.f32 0.015625, %v1466_v13  ;;  %v2396_v18 = vadd.f32 1.0, %v2332_v50  ;;  %v1625_v38 = vmul.f32 0.015625, %v1463_v31  ;;  %v1460_v24 = vpop.xlane.xlu1 %1459 }
 0x37c   : > { %v2970_v30 = vmul.f32 %v10801_v35, %v2906_v19  ;;  %v3097_v28 = vmul.f32 %v10790_v16, %v3033_v40  ;;  %v2903_v33 = vadd.f32 -0.28449672, %v2839_v41  ;;  %8263 = vrcp.f32 %v2395_v48  ;;  %v8254_v10 = vpop.eup %8253  ;;  %v16065_v19 = vld [vmem:[#allocation52_spill] sm:$0xff]  ;;  %v1457_v16 = vpop.xlane.xlu0 %1456 }
 0x37d   : > { %v2712_v2 = vmul.f32 %v10843_v14, %v2648_v1  ;;  %v1814_v55 = vmul.f32 %v8250_v60, %v16064_v53  ;;  %vm2140_vm7 = vcmp.ge.f32.partialorder %v10825_v54, 0.0  ;;  %v10863_v6 = vmul.f32 0.70710677, %v1949_v15 }
 0x37e   : > { %v3034_v43 = vadd.f32 0.2548296, %v2970_v30  ;;  %v1813_v26 = vmul.f32 %v8252_v27, %v16065_v19  ;;  %v2967_v13 = vmul.f32 %v10819_v39, %v2903_v33  ;;  %vm2139_vm8 = vcmp.ge.f32.partialorder %v10823_v20, 0.0 }
 0x37f   : > { %v2776_v25 = vadd.f32 1.4214138, %v2712_v2  ;;  %v1690_v50 = vadd.f32 1e-05, %v1626_v5  ;;  %v3417_v31 = vmul.f32 %v8246_v59, %v3097_v28  ;;  %8265 = vrcp.f32 %v2396_v18  ;;  %v8256_v15 = vpop.eup %8255 }
 0x380   : > { %v3098_v40 = vmul.f32 %v10801_v35, %v3034_v43  ;;  %v1689_v53 = vadd.f32 1e-05, %v1625_v38  ;;  %v1624_v60 = vmul.f32 0.015625, %v1460_v24  ;;  %v3031_v1 = vadd.f32 0.2548296, %v2967_v13 }
 0x381   : > { %v2840_v62 = vmul.f32 %v10843_v14, %v2776_v25  ;;  %v10871_v27 = vmul.f32 0.5, %v10814_v47  ;;  %v10876_v35 = vsel %vm2140_vm7, 1.0, %v16063_v3  ;;  %v3163_v48 = vsub.f32 0.0, %v10838_v45  ;;  %v8258_v5 = vpop.eup %8257 }
 0x382   : > { %v3418_v41 = vmul.f32 %v8254_v10, %v3098_v40  ;;  %v1623_v25 = vmul.f32 0.015625, %v1457_v16  ;;  %v3095_v28 = vmul.f32 %v10819_v39, %v3031_v1  ;;  %v10883_v24 = vsel %vm2139_vm8, 1.0, %v16063_v3  ;;  %v8260_v38 = vpop.eup %8259 }
 0x383   : > { %v2904_v30 = vadd.f32 -0.28449672, %v2840_v62  ;;  %v10886_v10 = vmul.f32 %v10724_v17, %v1813_v26  ;;  %8267 = vrsqrt.f32 %v1690_v50  ;;  %v1478_v47 = vpop.xlane.xlu1 %1477  ;;  %v3481_v59 = vsub.f32 1.0, %v3417_v31  ;;  %v8262_v18 = vpop.eup %8261  ;;  %v16066_v50 = vld [vmem:[#allocation53_spill] sm:$0xff] }
 0x384   : > { %v3164_v2 = vsub.f32 0.0, %v10841_v37  ;;  %8269 = vrsqrt.f32 %v1689_v53  ;;  %v1688_v33 = vadd.f32 1e-05, %v1624_v60  ;;  %v3415_v39 = vmul.f32 %v8256_v15, %v3095_v28 }
 0x385   : > { %v2968_v54 = vmul.f32 %v10843_v14, %v2904_v30  ;;  %v3482_v43 = vsub.f32 1.0, %v3418_v41  ;;  %v3227_v20 = vmul.f32 %v3163_v48, %v10838_v45  ;;  %v10892_v13 = vmul.f32 0.70710677, %v10834_v36  ;;  %v16067_v41 = vld [vmem:[#allocation54_spill] sm:$0xff] }
 0x386   : > { %v10895_v26 = vmul.f32 %v10724_v17, %v1814_v55  ;;  %v10897_v40 = vpop.eup %8263  ;;  %v10900_v16 = vmul.f32 %v8258_v5, %v16066_v50  ;;  %v1687_v62 = vadd.f32 1e-05, %v1623_v25  ;;  %v1630_v31 = vmul.f32 0.015625, %v1478_v47  ;;  %v1475_v55 = vpop.xlane.xlu0 %1474 }
 0x387   : > { %v3032_v19 = vadd.f32 0.2548296, %v2968_v54  ;;  %v3479_v53 = vsub.f32 1.0, %v3415_v39  ;;  %v3545_v1 = vmul.f32 %v3481_v59, %v10783_v57  ;;  %v2587_v45 = vmul.f32 1.0614054, %v10897_v40 }
 0x388   : > { %v3228_v36 = vmul.f32 %v3164_v2, %v10841_v37  ;;  %v10907_v15 = vmul.f32 %v8260_v38, %v16067_v41  ;;  %8271 = vrsqrt.f32 %v1688_v33  ;;  %v3546_v30 = vmul.f32 %v3482_v43, %v10794_v44 }
 0x389   : > { %v3096_v60 = vmul.f32 %v10843_v14, %v3032_v19  ;;  %v10911_v48 = vand.u32 2147483647, %v10863_v6  ;;  %v10913_v5 = vpop.eup %8265  ;;  %v3543_v14 = vmul.f32 %v3479_v53, %v10806_v7  ;;  %v3295_v57 = vmul.f32 1.442695, %v3227_v20 }
 0x38a   : > { %v10917_v28 = vand.u32 2147483647, %v10892_v13  ;;  %8273 = vrsqrt.f32 %v1687_v62  ;;  %v1694_v37 = vadd.f32 1e-05, %v1630_v31  ;;  %v2588_v38 = vmul.f32 1.0614054, %v10913_v5 }
 0x38b   : > { %v3416_v25 = vmul.f32 %v8262_v18, %v3096_v60  ;;  %v2651_v47 = vadd.f32 -1.4531521, %v2587_v45  ;;  %vm2141_vm9 = vcmp.ge.f32.partialorder %v10863_v6, 0.0  ;;  %v1629_v44 = vmul.f32 0.015625, %v1475_v55  ;;  %v1472_v31 = vpop.xlane.xlu1 %1471 }
 0x38c   : > { %v3609_v59 = vadd.f32 1.0, %v3545_v1  ;;  %v3297_v2 = vmul.f32 1.442695, %v3228_v36  ;;  %v3610_v33 = vadd.f32 1.0, %v3546_v30  ;;  %v2652_v39 = vadd.f32 -1.4531521, %v2588_v38  ;;  %v1469_v45 = vpop.xlane.xlu0 %1468 }
 0x38d   : > { %v3480_v54 = vsub.f32 1.0, %v3416_v25  ;;  %v2715_v18 = vmul.f32 %v10897_v40, %v2651_v47  ;;  %v2333_v7 = vmul.f32 0.3275911, %v10911_v48  ;;  %v8268_v43 = vpop.eup %8267  ;;  %v3607_v20 = vadd.f32 1.0, %v3543_v14 }
 0x38e   : > { %8275 = vpow2.f32 %v3295_v57  ;;  %v2334_v50 = vmul.f32 0.3275911, %v10917_v28  ;;  %v8270_v62 = vpop.eup %8269  ;;  %v2716_v53 = vmul.f32 %v10913_v5, %v2652_v39  ;;  %v3673_v41 = vmul.f32 %v3609_v59, %v10780_v42  ;;  %v16068_v59 = vld [vmem:[#allocation55_spill] sm:$0xff] }
 0x38f   : > { %v3544_v19 = vmul.f32 %v3480_v54, %v10831_v21  ;;  %8277 = vrsqrt.f32 %v1694_v37  ;;  %v2779_v60 = vadd.f32 1.4214138, %v2715_v18  ;;  %v2397_v1 = vadd.f32 1.0, %v2333_v7 }
 0x390   : > { %8279 = vpow2.f32 %v3297_v2  ;;  %v2398_v55 = vadd.f32 1.0, %v2334_v50  ;;  %v3674_v30 = vmul.f32 %v3610_v33, %v10786_v56  ;;  %v2780_v21 = vadd.f32 1.4214138, %v2716_v53 }
 0x391   : > { %v3608_v36 = vadd.f32 1.0, %v3544_v19  ;;  %v2843_v25 = vmul.f32 %v10897_v40, %v2779_v60  ;;  %8281 = vrcp.f32 %v2397_v1  ;;  %v1628_v14 = vmul.f32 0.015625, %v1472_v31  ;;  %v16069_v31 = vld [vmem:[#allocation56_spill] sm:$0xff] }
 0x392   : > { %v3671_v57 = vmul.f32 %v3607_v20, %v10788_v12  ;;  %v3165_v38 = vsub.f32 0.0, %v10911_v48  ;;  %v8272_v47 = vpop.eup %8271  ;;  %v1627_v54 = vmul.f32 0.015625, %v1469_v45  ;;  %v2844_v39 = vmul.f32 %v10913_v5, %v2780_v21 }
 0x393   : > { %v3672_v37 = vmul.f32 %v3608_v36, %v10811_v4  ;;  %v2907_v42 = vadd.f32 -0.28449672, %v2843_v25  ;;  %8283 = vrcp.f32 %v2398_v55  ;;  %v10934_v2 = vmul.f32 %v8268_v43, %v16068_v59  ;;  %v1490_v33 = vpop.xlane.xlu1 %1489 }
 0x394   : > { %v1693_v56 = vadd.f32 1e-05, %v1629_v44  ;;  %vm2142_vm10 = vcmp.ge.f32.partialorder %v10892_v13, 0.0  ;;  %v8274_v7 = vpop.eup %8273  ;;  %v1487_v12 = vpop.xlane.xlu0 %1486  ;;  %v3744_v19 = vpack.c.bf16 %v3674_v30, %v3673_v41  ;;  %v2908_v4 = vadd.f32 -0.28449672, %v2844_v39  ;;  %v16070_v13 = vld [vmem:[#allocation57_spill] sm:$0xff] }
 0x395   : > { %v3743_v18 = vpack.c.bf16 %v3672_v37, %v3671_v57  ;;  %v2971_v20 = vmul.f32 %v10897_v40, %v2907_v42  ;;  %v3166_v50 = vsub.f32 0.0, %v10917_v28  ;;  %v10940_v53 = vmul.f32 %v8270_v62, %v16069_v31  ;;  %v16071_v42 = vld [vmem:[#allocation58_spill] sm:$0xff] }
 0x396   : > { %v1692_v60 = vadd.f32 1e-05, %v1628_v14  ;;  %v10946_v44 = vsel %vm2141_vm9, 1.0, %v16063_v3  ;;  %v3229_v43 = vmul.f32 %v3165_v38, %v10911_v48  ;;  %v1691_v1 = vadd.f32 1e-05, %v1627_v54 }
 0x397   : > { %7921 = vmatprep.mubr.msk.bf16.mxu1 %vm1033_vm2, %v3743_v18  ;;  %v1634_v45 = vmul.f32 0.015625, %v1490_v33  ;;  %v2972_v36 = vmul.f32 %v10913_v5, %v2908_v4  ;;  %v3035_v41 = vadd.f32 0.2548296, %v2971_v20  ;;  %8285 = vrsqrt.f32 %v1693_v56 }
 0x398   : > { %7922 = vmatmul.mubr.msk.bf16.vlgmr.msra.gmra.mrb[32].mxu1 %vm1033_vm2, %v3744_v19  ;;  %v8276_v55 = vpop.eup %8275  ;;  %v1633_v62 = vmul.f32 0.015625, %v1487_v12  ;;  %v10954_v30 = vsel %vm2142_vm10, 1.0, %v16063_v3  ;;  %v1881_v6 = vmul.f32 %v10724_v17, %v10907_v15  ;;  %v3230_v37 = vmul.f32 %v3166_v50, %v10917_v28  ;;  %v16072_v28 = vld [vmem:[#allocation59_spill] sm:$0xff] }
 0x399   : > { %v8278_v21 = vpop.eup %8277  ;;  %v3036_v14 = vadd.f32 0.2548296, %v2972_v36  ;;  %v3099_v57 = vmul.f32 %v10897_v40, %v3035_v41  ;;  %v1882_v38 = vmul.f32 %v10724_v17, %v10900_v16  ;;  %v10967_v39 = vmul.f32 %v8272_v47, %v16070_v13 }
 0x39a   : > { %v8280_v54 = vpop.eup %8279  ;;  %v10970_v59 = vmul.f32 %v8274_v7, %v16071_v42  ;;  %8287 = vrsqrt.f32 %v1692_v60  ;;  %v3299_v15 = vmul.f32 1.442695, %v3229_v43  ;;  %v1698_v33 = vadd.f32 1e-05, %v1634_v45 }
 0x39b   : > { %v10958_v48 = vpop.xlane.xlu1 %1483  ;;  %v10972_v56 = vpop.eup %8281  ;;  %8289 = vrsqrt.f32 %v1691_v1  ;;  %v3100_v40 = vmul.f32 %v10913_v5, %v3036_v14  ;;  %v3419_v18 = vmul.f32 %v8276_v55, %v3099_v57  ;;  %v10976_v12 = vmul.f32 %v8278_v21, %v16072_v28 }
 0x39c   : > { %v10960_v25 = vpop.xlane.xlu0 %1480  ;;  %v1697_v16 = vadd.f32 1e-05, %v1633_v62  ;;  %v2589_v19 = vmul.f32 1.0614054, %v10972_v56  ;;  %v10980_v47 = vadd.f32 %v10734_v22, %v1881_v6  ;;  %v3301_v60 = vmul.f32 1.442695, %v3230_v37 }
 0x39d   : > { %v10982_v7 = vpop.eup %8283  ;;  %v3420_v50 = vmul.f32 %v8280_v54, %v3100_v40  ;;  %v3483_v31 = vsub.f32 1.0, %v3419_v18  ;;  %v10985_v43 = vadd.f32 %v10734_v22, %v1882_v38  ;;  %8291 = vpow2.f32 %v3299_v15 }
 0x39e   : > { %v2590_v45 = vmul.f32 1.0614054, %v10982_v7  ;;  %8293 = vrsqrt.f32 %v1698_v33  ;;  %v2653_v55 = vadd.f32 -1.4531521, %v2589_v19  ;;  %v10996_v14 = vmul.f32 0.70710677, %v10980_v47 }
 0x39f   : > { %v1225_v4 = vpop.xlane.xlu1 %1224  ;;  %v3484_v36 = vsub.f32 1.0, %v3420_v50  ;;  %v3547_v41 = vmul.f32 %v3483_v31, %v10883_v24  ;;  %v11001_v54 = vmul.f32 0.70710677, %v10985_v43  ;;  %v1953_v42 = vadd.f32 %v10734_v22, %v10886_v10 }
 0x3a0   : > { %v1222_v20 = vpop.xlane.xlu0 %1221  ;;  %v1290_v5 = vmul.f32 0.015625, %v1225_v4  ;;  %v2654_v21 = vadd.f32 -1.4531521, %v2590_v45  ;;  %v2717_v38 = vmul.f32 %v10972_v56, %v2653_v55  ;;  %v11013_v40 = vadd.f32 %v10734_v22, %v10895_v26 }
 0x3a1   : > { %v1289_v1 = vmul.f32 0.015625, %v1222_v20  ;;  %v3548_v57 = vmul.f32 %v3484_v36, %v10876_v35  ;;  %v3611_v37 = vadd.f32 1.0, %v3547_v41  ;;  %v8286_v24 = vpop.eup %8285  ;;  %v11018_v20 = vand.u32 2147483647, %v10996_v14 }
 0x3a2   : > { %v10990_v62 = vsub.f32 %v10223_v32, %v1290_v5  ;;  %v2718_v13 = vmul.f32 %v10982_v7, %v2654_v21  ;;  %v2781_v33 = vadd.f32 1.4214138, %v2717_v38  ;;  %8295 = vpow2.f32 %v3301_v60  ;;  %v16075_v5 = vld [vmem:[#allocation60_spill] sm:$0xff] }
 0x3a3   : > { %v10993_v6 = vsub.f32 %v10199_v23, %v1289_v1  ;;  %v3612_v15 = vadd.f32 1.0, %v3548_v57  ;;  %v3675_v35 = vmul.f32 %v3611_v37, %v10871_v27  ;;  %v11023_v26 = vand.u32 2147483647, %v11001_v54 }
 0x3a4   : > { %16073 = vst [vmem:[#allocation45_spill] sm:$0xff] %v10990_v62  ;;  %v1418_v32 = vmul.f32 %v10990_v62, %v10990_v62  ;;  %v8288_v18 = vpop.eup %8287  ;;  %v2782_v28 = vadd.f32 1.4214138, %v2718_v13  ;;  %v2845_v31 = vmul.f32 %v10972_v56, %v2781_v33  ;;  %v11026_v1 = vmul.f32 %v8286_v24, %v16075_v5  ;;  %v16076_v13 = vld [vmem:[#allocation61_spill] sm:$0xff]  ;;  %v16077_v33 = vld [vmem:[#allocation62_spill] sm:$0xff] }
 0x3a5   : > { %16074 = vst [vmem:[#allocation42_spill] sm:$0xff] %v10993_v6  ;;  %v1417_v23 = vmul.f32 %v10993_v6, %v10993_v6  ;;  %v8290_v50 = vpop.eup %8289  ;;  %v3676_v10 = vmul.f32 %v3612_v15, %v10852_v11  ;;  %8297 = vrsqrt.f32 %v1697_v16  ;;  %v2335_v36 = vmul.f32 0.3275911, %v11018_v20 }
 0x3a6   : > { %v1608_v19 = vsel %vm1033_vm2, %v1418_v32, 0.0  ;;  %v2846_v45 = vmul.f32 %v10982_v7, %v2782_v28  ;;  %v1632_v11 = vmul.f32 0.015625, %v10958_v48  ;;  %v2909_v55 = vadd.f32 -0.28449672, %v2845_v31 }
 0x3a7   : > { %v1605_v4 = vsel %vm1033_vm2, %v1417_v23, 0.0  ;;  %1609 = vadd.xlane.f32.xlu1 %v1608_v19  ;;  %v1496_v27 = vpop.xlane.xlu1 %1495  ;;  %v3745_v41 = vpack.c.bf16 %v3676_v10, %v3675_v35  ;;  %v2336_v60 = vmul.f32 0.3275911, %v11023_v26  ;;  %v8292_v21 = vpop.eup %8291  ;;  %v1631_v57 = vmul.f32 0.015625, %v10960_v25 }
 0x3a8   : > { %1606 = vadd.xlane.f32.xlu0 %v1605_v4  ;;  %v1493_v22 = vpop.xlane.xlu0 %1492  ;;  %v2910_v37 = vadd.f32 -0.28449672, %v2846_v45  ;;  %v11033_v38 = vmul.f32 0.5, %v1953_v42  ;;  %v11036_v24 = vmul.f32 0.5, %v11013_v40  ;;  %v8294_v16 = vpop.eup %8293  ;;  %v11039_v32 = vmul.f32 %v8288_v18, %v16076_v13 }
 0x3a9   : > { %7925 = vmatprep.mubr.msk.bf16.mxu1 %vm1033_vm2, %v3745_v41  ;;  %v2973_v48 = vmul.f32 %v10972_v56, %v2909_v55  ;;  %v2399_v15 = vadd.f32 1.0, %v2335_v36  ;;  %v2400_v35 = vadd.f32 1.0, %v2336_v60  ;;  %v11044_v28 = vmul.f32 %v8290_v50, %v16077_v33 }
 0x3aa   : > { %v2974_v25 = vmul.f32 %v10982_v7, %v2910_v37  ;;  %v1636_v19 = vmul.f32 0.015625, %v1496_v27  ;;  %v11048_v10 = vmul.f32 0.5, %v10980_v47  ;;  %v1696_v31 = vadd.f32 1e-05, %v1632_v11 }
 0x3ab   : > { %v1502_v23 = vpop.xlane.xlu1 %1501  ;;  %v3037_v18 = vadd.f32 0.2548296, %v2973_v48  ;;  %v1635_v5 = vmul.f32 0.015625, %v1493_v22  ;;  %v11051_v45 = vmul.f32 0.5, %v10985_v43  ;;  %v1695_v41 = vadd.f32 1e-05, %v1631_v57 }
 0x3ac   : > { %v1499_v4 = vpop.xlane.xlu0 %1498  ;;  %v3038_v55 = vadd.f32 0.2548296, %v2974_v25  ;;  %v1638_v36 = vmul.f32 0.015625, %v1502_v23  ;;  %8299 = vrcp.f32 %v2399_v15  ;;  %v11054_v27 = vmul.f32 0.70710677, %v1953_v42  ;;  %v8296_v22 = vpop.eup %8295 }
 0x3ad   : > { %v3101_v50 = vmul.f32 %v10972_v56, %v3037_v18  ;;  %v1637_v60 = vmul.f32 0.015625, %v1499_v4  ;;  %8301 = vrcp.f32 %v2400_v35  ;;  %v1700_v37 = vadd.f32 1e-05, %v1636_v19 }
 0x3ae   : > { %v3102_v47 = vmul.f32 %v10982_v7, %v3038_v55  ;;  %vm2143_vm11 = vcmp.ge.f32.partialorder %v10996_v14, 0.0  ;;  %v11060_v43 = vmul.f32 %v10724_v17, %v10970_v59  ;;  %8303 = vrsqrt.f32 %v1696_v31  ;;  %v16078_v31 = vld [vmem:[#allocation63_spill] sm:$0xff] }
 0x3af   : > { %v1508_v13 = vpop.xlane.xlu1 %1507  ;;  %v3421_v11 = vmul.f32 %v8292_v21, %v3101_v50  ;;  %v1699_v57 = vadd.f32 1e-05, %v1635_v5  ;;  %v8298_v56 = vpop.eup %8297  ;;  %v1702_v15 = vadd.f32 1e-05, %v1638_v36  ;;  %vm2144_vm12 = vcmp.ge.f32.partialorder %v11001_v54, 0.0 }
 0x3b0   : > { %v1640_v48 = vmul.f32 0.015625, %v1508_v13  ;;  %v3422_v23 = vmul.f32 %v8296_v22, %v3102_v47  ;;  %v3167_v42 = vsub.f32 0.0, %v11018_v20  ;;  %v11065_v7 = vmul.f32 0.70710677, %v11013_v40  ;;  %v1505_v21 = vpop.xlane.xlu0 %1504 }
 0x3b1   : > { %8305 = vrsqrt.f32 %v1695_v41  ;;  %v3485_v35 = vsub.f32 1.0, %v3421_v11  ;;  %v1701_v33 = vadd.f32 1e-05, %v1637_v60  ;;  %v11068_v59 = vand.u32 2147483647, %v11054_v27 }
 0x3b2   : > { %v3486_v25 = vsub.f32 1.0, %v3422_v23  ;;  %8307 = vrsqrt.f32 %v1700_v37  ;;  %v11073_v19 = vsel %vm2143_vm11, 1.0, %v16063_v3  ;;  %v3168_v4 = vsub.f32 0.0, %v11023_v26 }
 0x3b3   : > { %v11077_v18 = vmul.f32 %v8294_v16, %v16078_v31  ;;  %v3549_v40 = vmul.f32 %v3485_v35, %v10946_v44  ;;  %8309 = vrsqrt.f32 %v1699_v57  ;;  %v1704_v5 = vadd.f32 1e-05, %v1640_v48  ;;  %v1514_v36 = vpop.xlane.xlu1 %1513  ;;  %v16079_v16 = vld [vmem:[#allocation64_spill] sm:$0xff] }
 0x3b4   : > { %v3550_v41 = vmul.f32 %v3486_v25, %v10954_v30  ;;  %8311 = vrsqrt.f32 %v1702_v15  ;;  %v3231_v55 = vmul.f32 %v3167_v42, %v11018_v20  ;;  %v2274_v50 = vand.u32 2147483647, %v11065_v7 }
 0x3b5   : > { %v3613_v14 = vadd.f32 1.0, %v3549_v40  ;;  %8313 = vrsqrt.f32 %v1701_v33  ;;  %v1639_v60 = vmul.f32 0.015625, %v1505_v21  ;;  %v2337_v13 = vmul.f32 0.3275911, %v11068_v59 }
 0x3b6   : > { %v11084_v47 = vpop.eup %8299  ;;  %v11087_v37 = vmul.f32 %v8298_v56, %v16079_v16  ;;  %v3614_v44 = vadd.f32 1.0, %v3550_v41  ;;  %v3232_v22 = vmul.f32 %v3168_v4, %v11023_v26  ;;  %v2338_v30 = vmul.f32 0.3275911, %v2274_v50  ;;  %v1511_v56 = vpop.xlane.xlu0 %1510 }
 0x3b7   : > { %v11090_v11 = vpop.eup %8301  ;;  %v3677_v20 = vmul.f32 %v3613_v14, %v10847_v46  ;;  %8315 = vrsqrt.f32 %v1704_v5  ;;  %v2591_v57 = vmul.f32 1.0614054, %v11084_v47  ;;  %v2401_v48 = vadd.f32 1.0, %v2337_v13  ;;  %v1520_v40 = vpop.xlane.xlu1 %1519  ;;  %v16080_v13 = vld [vmem:[#allocation65_spill] sm:$0xff] }
 0x3b8   : > { %v3678_v23 = vmul.f32 %v3614_v44, %v10855_v29  ;;  %v2592_v15 = vmul.f32 1.0614054, %v11090_v11  ;;  %v3303_v42 = vmul.f32 1.442695, %v3231_v55  ;;  %v2402_v35 = vadd.f32 1.0, %v2338_v30  ;;  %v8304_v33 = vpop.eup %8303 }
 0x3b9   : > { %v1703_v25 = vadd.f32 1e-05, %v1639_v60  ;;  %v2655_v21 = vadd.f32 -1.4531521, %v2591_v57  ;;  %v1642_v26 = vmul.f32 0.015625, %v1514_v36  ;;  %8317 = vrcp.f32 %v2401_v48  ;;  %v16081_v57 = vld [vmem:[#allocation66_spill] sm:$0xff] }
 0x3ba   : > { %v3746_v4 = vpack.c.bf16 %v3678_v23, %v3677_v20  ;;  %v2656_v31 = vadd.f32 -1.4531521, %v2592_v15  ;;  %8319 = vrcp.f32 %v2402_v35  ;;  %v3169_v46 = vsub.f32 0.0, %v11068_v59  ;;  %v1517_v35 = vpop.xlane.xlu0 %1516 }
 0x3bb   : > { %v8306_v5 = vpop.eup %8305  ;;  %v11100_v29 = vsel %vm2144_vm12, 1.0, %v16063_v3  ;;  %v2719_v41 = vmul.f32 %v11084_v47, %v2655_v21  ;;  %v3305_v55 = vmul.f32 1.442695, %v3232_v22  ;;  %v3170_v14 = vsub.f32 0.0, %v2274_v50 }
 0x3bc   : > { %v8308_v60 = vpop.eup %8307  ;;  %v11104_v36 = vmul.f32 %v8304_v33, %v16080_v13  ;;  %7926 = vmatmul.mubr.msk.bf16.gmra.mrb[36].mxu1 %vm1033_vm2, %v3746_v4  ;;  %v2720_v16 = vmul.f32 %v11090_v11, %v2656_v31  ;;  %vm2145_vm13 = vcmp.ge.f32.partialorder %v11054_v27, 0.0  ;;  %v1886_v44 = vmul.f32 %v10724_v17, %v10967_v39  ;;  %v1526_v31 = vpop.xlane.xlu1 %1525 }
 0x3bd   : > { %v8310_v54 = vpop.eup %8309  ;;  %v2783_v30 = vadd.f32 1.4214138, %v2719_v41  ;;  %8321 = vpow2.f32 %v3303_v42  ;;  %v1706_v20 = vadd.f32 1e-05, %v1642_v26  ;;  %vm2146_vm14 = vcmp.ge.f32.partialorder %v11065_v7, 0.0  ;;  %v16082_v7 = vld [vmem:[#allocation69_spill] sm:$0xff] }
 0x3be   : > { %v8312_v22 = vpop.eup %8311  ;;  %v11113_v48 = vmul.f32 %v8306_v5, %v16081_v57  ;;  %8323 = vrsqrt.f32 %v1703_v25  ;;  %v2784_v23 = vadd.f32 1.4214138, %v2720_v16  ;;  %v3233_v15 = vmul.f32 %v3169_v46, %v11068_v59  ;;  %v16083_v26 = vld [vmem:[#allocation70_spill] sm:$0xff]  ;;  %v16084_v5 = vld [vmem:[#allocation67_spill] sm:$0xff] }
 0x3bf   : > { %v8314_v33 = vpop.eup %8313  ;;  %v2847_v21 = vmul.f32 %v11084_v47, %v2783_v30  ;;  %8325 = vpow2.f32 %v3305_v55  ;;  %v11120_v17 = vsel %vm2145_vm13, 1.0, %v16063_v3  ;;  %v3234_v39 = vmul.f32 %v3170_v14, %v2274_v50  ;;  %v16085_v50 = vld [vmem:[#allocation68_spill] sm:$0xff] }
 0x3c0   : > { %v11123_v42 = vmul.f32 %v8308_v60, %v16082_v7  ;;  %v11126_v4 = vmul.f32 %v8310_v54, %v16083_v26  ;;  %v2848_v25 = vmul.f32 %v11090_v11, %v2784_v23  ;;  %v11130_v59 = vsel %vm2146_vm14, 1.0, %v16063_v3  ;;  %v1532_v6 = vpop.xlane.xlu1 %1531 }
 0x3c1   : > { %v8316_v46 = vpop.eup %8315  ;;  %v11133_v41 = vmul.f32 %v8312_v22, %v16084_v5  ;;  %v2911_v27 = vadd.f32 -0.28449672, %v2847_v21  ;;  %8327 = vrsqrt.f32 %v1706_v20  ;;  %v1641_v55 = vmul.f32 0.015625, %v1511_v56  ;;  %v11148_v21 = vld [vmem:[#allocation10] ss:$0 sm:$0xff] }
 0x3c2   : > { %v11136_v14 = vmul.f32 %v8314_v33, %v16085_v50  ;;  %v2912_v60 = vadd.f32 -0.28449672, %v2848_v25  ;;  %v3307_v13 = vmul.f32 1.442695, %v3233_v15  ;;  %v1644_v16 = vmul.f32 0.015625, %v1520_v40  ;;  %v1523_v33 = vpop.xlane.xlu0 %1522 }
 0x3c3   : > { %v11138_v54 = vpop.eup %8317  ;;  %v2975_v30 = vmul.f32 %v11084_v47, %v2911_v27  ;;  %v3309_v57 = vmul.f32 1.442695, %v3234_v39  ;;  %v1643_v23 = vmul.f32 0.015625, %v1517_v35  ;;  %v1646_v7 = vmul.f32 0.015625, %v1526_v31 }
 0x3c4   : > { %v11141_v26 = vpop.eup %8319  ;;  %v11144_v22 = vmul.f32 %v8316_v46, %v10524_v58  ;;  %v2976_v56 = vmul.f32 %v11090_v11, %v2912_v60  ;;  %v2593_v20 = vmul.f32 1.0614054, %v11138_v54  ;;  %v11152_v40 = vadd.f32 %v11148_v21, %v11060_v43 }
 0x3c5   : > { %v3039_v15 = vadd.f32 0.2548296, %v2975_v30  ;;  %v2594_v35 = vmul.f32 1.0614054, %v11141_v26  ;;  %v1705_v39 = vadd.f32 1e-05, %v1641_v55  ;;  %v11156_v25 = vadd.f32 %v11148_v21, %v1886_v44 }
 0x3c6   : > { %16086 = vst [vmem:[#allocation41_spill] sm:$0xff] %v11144_v22  ;;  %v3040_v58 = vadd.f32 0.2548296, %v2976_v56  ;;  %v2657_v31 = vadd.f32 -1.4531521, %v2593_v20  ;;  %8329 = vpow2.f32 %v3307_v13  ;;  %v1645_v55 = vmul.f32 0.015625, %v1523_v33 }
 0x3c7   : > { %v1708_v46 = vadd.f32 1e-05, %v1644_v16  ;;  %v8322_v5 = vpop.eup %8321  ;;  %v3103_v27 = vmul.f32 %v11084_v47, %v3039_v15  ;;  %v2658_v50 = vadd.f32 -1.4531521, %v2594_v35  ;;  %8331 = vpow2.f32 %v3309_v57  ;;  %v1529_v15 = vpop.xlane.xlu0 %1528 }
 0x3c8   : > { %v1707_v60 = vadd.f32 1e-05, %v1643_v23  ;;  %v8324_v43 = vpop.eup %8323  ;;  %v3104_v30 = vmul.f32 %v11090_v11, %v3040_v58  ;;  %v2721_v62 = vmul.f32 %v11138_v54, %v2657_v31  ;;  %v11162_v44 = vmul.f32 0.70710677, %v11152_v40 }
 0x3c9   : > { %v8326_v56 = vpop.eup %8325  ;;  %v3423_v20 = vmul.f32 %v8322_v5, %v3103_v27  ;;  %v2722_v13 = vmul.f32 %v11141_v26, %v2658_v50  ;;  %8333 = vrsqrt.f32 %v1705_v39  ;;  %v11166_v47 = vmul.f32 0.70710677, %v11156_v25 }
 0x3ca   : > { %v3424_v16 = vmul.f32 %v8326_v56, %v3104_v30  ;;  %v2785_v57 = vadd.f32 1.4214138, %v2721_v62  ;;  %8335 = vrsqrt.f32 %v1708_v46  ;;  %v1648_v23 = vmul.f32 0.015625, %v1532_v6 }
 0x3cb   : > { %v8328_v11 = vpop.eup %8327  ;;  %v3487_v35 = vsub.f32 1.0, %v3423_v20  ;;  %v2786_v58 = vadd.f32 1.4214138, %v2722_v13  ;;  %8337 = vrsqrt.f32 %v1707_v60  ;;  %v1710_v33 = vadd.f32 1e-05, %v1646_v7 }
 0x3cc   : > { %v3488_v31 = vsub.f32 1.0, %v3424_v16  ;;  %v2849_v22 = vmul.f32 %v11138_v54, %v2785_v57  ;;  %v1709_v5 = vadd.f32 1e-05, %v1645_v55  ;;  %v11170_v27 = vand.u32 2147483647, %v11162_v44 }
 0x3cd   : > { %v3551_v39 = vmul.f32 %v3487_v35, %v11073_v19  ;;  %v2850_v50 = vmul.f32 %v11141_v26, %v2786_v58  ;;  %v1647_v62 = vmul.f32 0.015625, %v1529_v15  ;;  %v11175_v6 = vand.u32 2147483647, %v11166_v47  ;;  %v1538_v15 = vpop.xlane.xlu1 %1537 }
 0x3ce   : > { %v3552_v46 = vmul.f32 %v3488_v31, %v11100_v29  ;;  %v2913_v30 = vadd.f32 -0.28449672, %v2849_v22  ;;  %v1712_v60 = vadd.f32 1e-05, %v1648_v23  ;;  %v2339_v7 = vmul.f32 0.3275911, %v11170_v27 }
 0x3cf   : > { %v3615_v56 = vadd.f32 1.0, %v3551_v39  ;;  %v2914_v20 = vadd.f32 -0.28449672, %v2850_v50  ;;  %8339 = vrsqrt.f32 %v1710_v33  ;;  %v2340_v55 = vmul.f32 0.3275911, %v11175_v6 }
 0x3d0   : > { %v8330_v13 = vpop.eup %8329  ;;  %v3616_v16 = vadd.f32 1.0, %v3552_v46  ;;  %v2977_v19 = vmul.f32 %v11138_v54, %v2913_v30  ;;  %8341 = vrsqrt.f32 %v1709_v5  ;;  %v2403_v57 = vadd.f32 1.0, %v2339_v7  ;;  %v11183_v23 = vld [vmem:[#allocation8] ss:$0 sm:$0xff] }
 0x3d1   : > { %v8332_v35 = vpop.eup %8331  ;;  %v3679_v58 = vmul.f32 %v3615_v56, %v11048_v10  ;;  %v2978_v29 = vmul.f32 %v11141_v26, %v2914_v20  ;;  %v2404_v22 = vadd.f32 1.0, %v2340_v55  ;;  %v1887_v33 = vmul.f32 %v11183_v23, %v10940_v53 }
 0x3d2   : > { %v3680_v31 = vmul.f32 %v3616_v16, %v11051_v45  ;;  %v3041_v39 = vadd.f32 0.2548296, %v2977_v19  ;;  %v1711_v50 = vadd.f32 1e-05, %v1647_v62  ;;  %8343 = vrcp.f32 %v2403_v57 }
 0x3d3   : > { %v8334_v46 = vpop.eup %8333  ;;  %v3042_v5 = vadd.f32 0.2548296, %v2978_v29  ;;  %8345 = vrcp.f32 %v2404_v22  ;;  %v1650_v30 = vmul.f32 0.015625, %v1538_v15  ;;  %v1888_v10 = vmul.f32 %v11183_v23, %v10934_v2 }
 0x3d4   : > { %v8336_v7 = vpop.eup %8335  ;;  %v11191_v56 = vmul.f32 %v8324_v43, %v10527_v8  ;;  %v3747_v20 = vpack.c.bf16 %v3680_v31, %v3679_v58  ;;  %v11194_v55 = vmul.f32 %v8328_v11, %v10518_v52  ;;  %v3105_v53 = vmul.f32 %v11138_v54, %v3041_v39 }
 0x3d5   : > { %v8338_v45 = vpop.eup %8337  ;;  %v3106_v62 = vmul.f32 %v11141_v26, %v3042_v5  ;;  %8347 = vrsqrt.f32 %v1712_v60  ;;  %v11199_v16 = vadd.f32 %v11148_v21, %v1887_v33  ;;  %v11202_v19 = vadd.f32 %v11148_v21, %v1888_v10  ;;  %v1535_v5 = vpop.xlane.xlu0 %1534 }
 0x3d6   : > { %7929 = vmatprep.mubr.msk.bf16.mxu1 %vm1033_vm2, %v3747_v20  ;;  %v3425_v8 = vmul.f32 %v8330_v13, %v3105_v53  ;;  %8349 = vrsqrt.f32 %v1711_v50  ;;  %v11206_v2 = vmul.f32 0.5, %v11152_v40  ;;  %vm2147_vm15 = vcmp.ge.f32.partialorder %v11162_v44, 0.0 }
 0x3d7   : > { %v3426_v52 = vmul.f32 %v8332_v35, %v3106_v62  ;;  %vm2148_vm0 = vcmp.ge.f32.partialorder %v11166_v47, 0.0  ;;  %v3171_v54 = vsub.f32 0.0, %v11170_v27  ;;  %v1714_v26 = vadd.f32 1e-05, %v1650_v30  ;;  %v1544_v30 = vpop.xlane.xlu1 %1543 }
 0x3d8   : > { %v3489_v43 = vsub.f32 1.0, %v3425_v8  ;;  %v3172_v11 = vsub.f32 0.0, %v11175_v6  ;;  %v11213_v60 = vmul.f32 0.70710677, %v11199_v16  ;;  %v11216_v13 = vmul.f32 0.70710677, %v11202_v19 }
 0x3d9   : > { %v8340_v57 = vpop.eup %8339  ;;  %v3490_v40 = vsub.f32 1.0, %v3426_v52  ;;  %v11219_v15 = vmul.f32 %v8334_v46, %v10521_v61  ;;  %v11222_v44 = vmul.f32 0.5, %v11156_v25  ;;  %v11225_v47 = vsel %vm2147_vm15, 1.0, %v16063_v3 }
 0x3da   : > { %v8342_v35 = vpop.eup %8341  ;;  %v3553_v58 = vmul.f32 %v3489_v43, %v11120_v17  ;;  %v11229_v29 = vmul.f32 %v8336_v7, %v10539_v51  ;;  %v11232_v22 = vsel %vm2148_vm0, 1.0, %v16063_v3  ;;  %v2277_v33 = vand.u32 2147483647, %v11213_v60 }
 0x3db   : > { %v3554_v61 = vmul.f32 %v3490_v40, %v11130_v59  ;;  %v11237_v31 = vmul.f32 %v8338_v45, %v10536_v9  ;;  %v3235_v25 = vmul.f32 %v3171_v54, %v11170_v27  ;;  %v2278_v39 = vand.u32 2147483647, %v11216_v13 }
 0x3dc   : > { %v11241_v50 = vpop.eup %8343  ;;  %v3617_v17 = vadd.f32 1.0, %v3553_v58  ;;  %v3236_v51 = vmul.f32 %v3172_v11, %v11175_v6  ;;  %8351 = vrsqrt.f32 %v1714_v26  ;;  %v2341_v46 = vmul.f32 0.3275911, %v2277_v33 }
 0x3dd   : > { %v11244_v10 = vpop.eup %8345  ;;  %v3618_v7 = vadd.f32 1.0, %v3554_v61  ;;  %v11247_v59 = vmul.f32 %v8340_v57, %v10551_v49  ;;  %v2595_v9 = vmul.f32 1.0614054, %v11241_v50  ;;  %v2342_v27 = vmul.f32 0.3275911, %v2278_v39 }
 0x3de   : > { %v3681_v20 = vmul.f32 %v3617_v17, %v11033_v38  ;;  %v11252_v53 = vmul.f32 %v8342_v35, %v10548_v63  ;;  %v2596_v6 = vmul.f32 1.0614054, %v11244_v10  ;;  %v2405_v45 = vadd.f32 1.0, %v2341_v46  ;;  %v1541_v17 = vpop.xlane.xlu0 %1540 }
 0x3df   : > { %v8348_v62 = vpop.eup %8347  ;;  %v3682_v8 = vmul.f32 %v3618_v7, %v11036_v24  ;;  %v2659_v52 = vadd.f32 -1.4531521, %v2595_v9  ;;  %v3311_v54 = vmul.f32 1.442695, %v3235_v25  ;;  %v2406_v26 = vadd.f32 1.0, %v2342_v27  ;;  %v1550_v25 = vpop.xlane.xlu1 %1549 }
 0x3e0   : > { %v8350_v43 = vpop.eup %8349  ;;  %v2660_v49 = vadd.f32 -1.4531521, %v2596_v6  ;;  %v3313_v11 = vmul.f32 1.442695, %v3236_v51  ;;  %8353 = vrcp.f32 %v2405_v45  ;;  %v3173_v57 = vsub.f32 0.0, %v2277_v33 }
 0x3e1   : > { %v3748_v40 = vpack.c.bf16 %v3682_v8, %v3681_v20  ;;  %v2723_v38 = vmul.f32 %v11241_v50, %v2659_v52  ;;  %8355 = vrcp.f32 %v2406_v26  ;;  %v1649_v63 = vmul.f32 0.015625, %v1535_v5 }
 0x3e2   : > { %v11258_v35 = vmul.f32 %v8348_v62, %v10569_v34  ;;  %v2724_v58 = vmul.f32 %v11244_v10, %v2660_v49  ;;  %v3174_v61 = vsub.f32 0.0, %v2278_v39  ;;  %v1652_v24 = vmul.f32 0.015625, %v1544_v30 }
 0x3e3   : > { %7930 = vmatmul.mubr.msk.bf16.gmra.mrb[40].mxu1 %vm1033_vm2, %v3748_v40  ;;  %v11263_v51 = vmul.f32 %v8350_v43, %v10572_v0  ;;  %v2787_v46 = vadd.f32 1.4214138, %v2723_v38  ;;  %8357 = vpow2.f32 %v3311_v54  ;;  %v11266_v7 = vmul.f32 0.5, %v11199_v16  ;;  %v1547_v54 = vpop.xlane.xlu0 %1546  ;;  %v1556_v26 = vpop.xlane.xlu1 %1555  ;;  %v16087_v43 = vld [vmem:[#allocation30_spill] sm:$0xff] }
 0x3e4   : > { %v2788_v5 = vadd.f32 1.4214138, %v2724_v58  ;;  %v11269_v34 = vmul.f32 0.5, %v11202_v19  ;;  %vm2149_vm1 = vcmp.ge.f32.partialorder %v11213_v60, 0.0  ;;  %v3237_v9 = vmul.f32 %v3173_v57, %v2277_v33 }
 0x3e5   : > { %v2851_v30 = vmul.f32 %v11241_v50, %v2787_v46  ;;  %8359 = vpow2.f32 %v3313_v11  ;;  %vm2150_vm3 = vcmp.ge.f32.partialorder %v11216_v13, 0.0  ;;  %v1713_v27 = vadd.f32 1e-05, %v1649_v63 }
 0x3e6   : > { %v8352_v0 = vpop.eup %8351  ;;  %v2852_v20 = vmul.f32 %v11244_v10, %v2788_v5  ;;  %v3238_v6 = vmul.f32 %v3174_v61, %v2278_v39  ;;  %v1716_v45 = vadd.f32 1e-05, %v1652_v24  ;;  %v1889_v16 = vmul.f32 %v11183_v23, %v11044_v28 }
 0x3e7   : > { %v2915_v62 = vadd.f32 -0.28449672, %v2851_v30  ;;  %v11278_v19 = vsel %vm2149_vm1, 1.0, %v16063_v3  ;;  %v1651_v60 = vmul.f32 0.015625, %v1541_v17  ;;  %v1890_v33 = vmul.f32 %v11183_v23, %v11039_v32 }
 0x3e8   : > { %v2916_v8 = vadd.f32 -0.28449672, %v2852_v20  ;;  %v11283_v13 = vsel %vm2150_vm3, 1.0, %v16063_v3  ;;  %v3315_v52 = vmul.f32 1.442695, %v3237_v9  ;;  %v11286_v39 = vadd.f32 %v11148_v21, %v1889_v16 }
 0x3e9   : > { %v2979_v28 = vmul.f32 %v11241_v50, %v2915_v62  ;;  %v11290_v49 = vmul.f32 %v8352_v0, %v16087_v43  ;;  %8361 = vrsqrt.f32 %v1713_v27  ;;  %v11293_v11 = vadd.f32 %v11148_v21, %v1890_v33  ;;  %v1553_v33 = vpop.xlane.xlu0 %1552 }
 0x3ea   : > { %v11295_v32 = vpop.eup %8353  ;;  %v2980_v57 = vmul.f32 %v11244_v10, %v2916_v8  ;;  %v3317_v40 = vmul.f32 1.442695, %v3238_v6  ;;  %v1654_v38 = vmul.f32 0.015625, %v1550_v25  ;;  %v11299_v63 = vmul.f32 0.70710677, %v11286_v39 }
 0x3eb   : > { %16088 = vst [vmem:[#allocation46_spill] sm:$0xff] %v11290_v49  ;;  %v11301_v58 = vpop.eup %8355  ;;  %v3043_v61 = vadd.f32 0.2548296, %v2979_v28  ;;  %v2597_v24 = vmul.f32 1.0614054, %v11295_v32  ;;  %v1653_v17 = vmul.f32 0.015625, %v1547_v54  ;;  %8363 = vpow2.f32 %v3315_v52 }
 0x3ec   : > { %v1656_v46 = vmul.f32 0.015625, %v1556_v26  ;;  %v3044_v5 = vadd.f32 0.2548296, %v2980_v57  ;;  %v2598_v9 = vmul.f32 1.0614054, %v11301_v58  ;;  %8365 = vrsqrt.f32 %v1716_v45 }
 0x3ed   : > { %v11306_v30 = vmul.f32 0.70710677, %v11293_v11  ;;  %v8358_v27 = vpop.eup %8357  ;;  %v3107_v25 = vmul.f32 %v11241_v50, %v3043_v61  ;;  %v2661_v0 = vadd.f32 -1.4531521, %v2597_v24  ;;  %v11310_v20 = vand.u32 2147483647, %v11299_v63  ;;  %v1562_v61 = vpop.xlane.xlu1 %1561 }
 0x3ee   : > { %v3108_v6 = vmul.f32 %v11244_v10, %v3044_v5  ;;  %v2662_v16 = vadd.f32 -1.4531521, %v2598_v9  ;;  %8367 = vpow2.f32 %v3317_v40  ;;  %v1715_v62 = vadd.f32 1e-05, %v1651_v60 }
 0x3ef   : > { %v8360_v8 = vpop.eup %8359  ;;  %v3427_v54 = vmul.f32 %v8358_v27, %v3107_v25  ;;  %v2725_v52 = vmul.f32 %v11295_v32, %v2661_v0  ;;  %v1718_v26 = vadd.f32 1e-05, %v1654_v38  ;;  %v1717_v28 = vadd.f32 1e-05, %v1653_v17 }
 0x3f0   : > { %v3428_v43 = vmul.f32 %v8360_v8, %v3108_v6  ;;  %v2726_v50 = vmul.f32 %v11301_v58, %v2662_v16  ;;  %v1720_v57 = vadd.f32 1e-05, %v1656_v46  ;;  %v11316_v45 = vand.u32 2147483647, %v11306_v30 }
 0x3f1   : > { %v3491_v24 = vsub.f32 1.0, %v3427_v54  ;;  %v2789_v10 = vadd.f32 1.4214138, %v2725_v52  ;;  %v1655_v5 = vmul.f32 0.015625, %v1553_v33  ;;  %v2343_v60 = vmul.f32 0.3275911, %v11310_v20 }
 0x3f2   : > { %v3492_v40 = vsub.f32 1.0, %v3428_v43  ;;  %v2790_v9 = vadd.f32 1.4214138, %v2726_v50  ;;  %8369 = vrsqrt.f32 %v1715_v62  ;;  %v2344_v27 = vmul.f32 0.3275911, %v11316_v45 }
 0x3f3   : > { %v8362_v38 = vpop.eup %8361  ;;  %v3555_v17 = vmul.f32 %v3491_v24, %v11225_v47  ;;  %v2853_v25 = vmul.f32 %v11295_v32, %v2789_v10  ;;  %v2407_v46 = vadd.f32 1.0, %v2343_v60  ;;  %v1658_v0 = vmul.f32 0.015625, %v1562_v61  ;;  %v16089_v60 = vld [vmem:[#allocation29_spill] sm:$0xff] }
 0x3f4   : > { %v3556_v6 = vmul.f32 %v3492_v40, %v11232_v22  ;;  %v2854_v16 = vmul.f32 %v11301_v58, %v2790_v9  ;;  %v2408_v8 = vadd.f32 1.0, %v2344_v27  ;;  %v1891_v33 = vmul.f32 %v11183_v23, %v11026_v1 }
 0x3f5   : > { %v3619_v54 = vadd.f32 1.0, %v3555_v17  ;;  %v2917_v52 = vadd.f32 -0.28449672, %v2853_v25  ;;  %8371 = vrcp.f32 %v2407_v46  ;;  %v1892_v62 = vmul.f32 %v11183_v23, %v10976_v12  ;;  %v8364_v43 = vpop.eup %8363 }
 0x3f6   : > { %v3620_v47 = vadd.f32 1.0, %v3556_v6  ;;  %v2918_v50 = vadd.f32 -0.28449672, %v2854_v16  ;;  %v1719_v24 = vadd.f32 1e-05, %v1655_v5  ;;  %8373 = vrcp.f32 %v2408_v8  ;;  %v8366_v61 = vpop.eup %8365  ;;  %v16091_v8 = vld [vmem:[#allocation34_spill] sm:$0xff] }
 0x3f7   : > { %v3683_v22 = vmul.f32 %v3619_v54, %v11206_v2  ;;  %v2981_v10 = vmul.f32 %v11295_v32, %v2917_v52  ;;  %v11331_v40 = vmul.f32 %v8362_v38, %v16089_v60  ;;  %8375 = vrsqrt.f32 %v1718_v26 }
 0x3f8   : > { %v8368_v1 = vpop.eup %8367  ;;  %v3684_v9 = vmul.f32 %v3620_v47, %v11222_v44  ;;  %v2982_v27 = vmul.f32 %v11301_v58, %v2918_v50  ;;  %8377 = vrsqrt.f32 %v1717_v28  ;;  %v11336_v12 = vadd.f32 %v11148_v21, %v1891_v33 }
 0x3f9   : > { %16090 = vst [vmem:[#allocation49_spill] sm:$0xff] %v11331_v40  ;;  %v3045_v5 = vadd.f32 0.2548296, %v2981_v10  ;;  %8379 = vrsqrt.f32 %v1720_v57  ;;  %v1722_v17 = vadd.f32 1e-05, %v1658_v0  ;;  %v11339_v2 = vadd.f32 %v11148_v21, %v1892_v62  ;;  %v1559_v62 = vpop.xlane.xlu0 %1558 }
 0x3fa   : > { %v3749_v25 = vpack.c.bf16 %v3684_v9, %v3683_v22  ;;  %v3046_v46 = vadd.f32 0.2548296, %v2982_v27  ;;  %8381 = vrsqrt.f32 %v1719_v24  ;;  %v3175_v26 = vsub.f32 0.0, %v11310_v20 }
 0x3fb   : > { %v3109_v38 = vmul.f32 %v11295_v32, %v3045_v5  ;;  %v11344_v44 = vmul.f32 0.5, %v11286_v39  ;;  %v3176_v28 = vsub.f32 0.0, %v11316_v45  ;;  %v11348_v6 = vmul.f32 0.70710677, %v11336_v12 }
 0x3fc   : > { %v8370_v57 = vpop.eup %8369  ;;  %7933 = vmatprep.mubr.msk.bf16.mxu1 %vm1033_vm2, %v3749_v25  ;;  %v3110_v0 = vmul.f32 %v11301_v58, %v3046_v46  ;;  %v11353_v16 = vmul.f32 0.5, %v11293_v11  ;;  %vm2151_vm4 = vcmp.ge.f32.partialorder %v11299_v63, 0.0  ;;  %v11357_v32 = vmul.f32 0.70710677, %v11339_v2  ;;  %v1568_v25 = vpop.xlane.xlu1 %1567 }
 0x3fd   : > { %v3429_v39 = vmul.f32 %v8364_v43, %v3109_v38  ;;  %v11360_v33 = vmul.f32 %v8366_v61, %v16091_v8  ;;  %8383 = vrsqrt.f32 %v1722_v17  ;;  %v2281_v54 = vand.u32 2147483647, %v11348_v6 }
 0x3fe   : > { %v3430_v52 = vmul.f32 %v8368_v1, %v3110_v0  ;;  %vm2152_vm5 = vcmp.ge.f32.partialorder %v11306_v30, 0.0  ;;  %v3239_v58 = vmul.f32 %v3175_v26, %v11310_v20  ;;  %v2282_v11 = vand.u32 2147483647, %v11357_v32 }
 0x3ff   : > { %16092 = vst [vmem:[#allocation48_spill] sm:$0xff] %v11360_v33  ;;  %v11366_v47 = vpop.eup %8371  ;;  %v3493_v63 = vsub.f32 1.0, %v3429_v39  ;;  %v11369_v50 = vsel %vm2151_vm4, 1.0, %v16063_v3  ;;  %v3240_v43 = vmul.f32 %v3176_v28, %v11316_v45  ;;  %v2345_v24 = vmul.f32 0.3275911, %v2281_v54 }
 0x400   : > { %v11372_v61 = vpop.eup %8373  ;;  %v3494_v22 = vsub.f32 1.0, %v3430_v52  ;;  %v2599_v10 = vmul.f32 1.0614054, %v11366_v47  ;;  %v2346_v60 = vmul.f32 0.3275911, %v2282_v11  ;;  %v3177_v1 = vsub.f32 0.0, %v2281_v54 }
 0x401   : > { %v8376_v20 = vpop.eup %8375  ;;  %v3557_v9 = vmul.f32 %v3493_v63, %v11278_v19  ;;  %v2600_v27 = vmul.f32 1.0614054, %v11372_v61  ;;  %v2409_v5 = vadd.f32 1.0, %v2345_v24  ;;  %v3178_v17 = vsub.f32 0.0, %v2282_v11  ;;  %v1565_v24 = vpop.xlane.xlu0 %1564 }
 0x402   : > { %v8378_v46 = vpop.eup %8377  ;;  %v3558_v26 = vmul.f32 %v3494_v22, %v11283_v13  ;;  %v2663_v45 = vadd.f32 -1.4531521, %v2599_v10  ;;  %v3319_v38 = vmul.f32 1.442695, %v3239_v58  ;;  %v2410_v28 = vadd.f32 1.0, %v2346_v60  ;;  %v16093_v10 = vld [vmem:[#allocation33_spill] sm:$0xff] }
 0x403   : > { %v8380_v0 = vpop.eup %8379  ;;  %v3621_v39 = vadd.f32 1.0, %v3557_v9  ;;  %v2664_v8 = vadd.f32 -1.4531521, %v2600_v27  ;;  %v3321_v52 = vmul.f32 1.442695, %v3240_v43  ;;  %8385 = vrcp.f32 %v2409_v5  ;;  %v16094_v9 = vld [vmem:[#allocation32_spill] sm:$0xff] }
 0x404   : > { %v8382_v33 = vpop.eup %8381  ;;  %v3622_v49 = vadd.f32 1.0, %v3558_v26  ;;  %v2727_v19 = vmul.f32 %v11366_v47, %v2663_v45  ;;  %8387 = vrcp.f32 %v2410_v28  ;;  %v3241_v63 = vmul.f32 %v3177_v1, %v2281_v54  ;;  %v16095_v5 = vld [vmem:[#allocation31_spill] sm:$0xff]  ;;  %v1574_v45 = vpop.xlane.xlu1 %1573 }
 0x405   : > { %v3685_v40 = vmul.f32 %v3621_v39, %v11266_v7  ;;  %v11383_v13 = vsel %vm2152_vm5, 1.0, %v16063_v3  ;;  %v2728_v58 = vmul.f32 %v11372_v61, %v2664_v8  ;;  %v3242_v22 = vmul.f32 %v3178_v17, %v2282_v11  ;;  %v16097_v17 = vld [vmem:[#allocation72_spill] sm:$0xff] }
 0x406   : > { %v3686_v43 = vmul.f32 %v3622_v49, %v11269_v34  ;;  %v11388_v60 = vmul.f32 %v8370_v57, %v16093_v10  ;;  %v11391_v27 = vmul.f32 %v8376_v20, %v16094_v9  ;;  %v2791_v54 = vadd.f32 1.4214138, %v2727_v19  ;;  %v16096_v49 = vld [vmem:[#allocation71_spill] sm:$0xff] }
 0x407   : > { %v8384_v1 = vpop.eup %8383  ;;  %v11394_v7 = vmul.f32 %v8378_v46, %v16095_v5  ;;  %v2792_v26 = vadd.f32 1.4214138, %v2728_v58  ;;  %8389 = vpow2.f32 %v3319_v38  ;;  %v1657_v30 = vmul.f32 0.015625, %v1559_v62  ;;  %v16098_v38 = vld [vmem:[#allocation37_spill] sm:$0xff] }
 0x408   : > { %v3750_v28 = vpack.c.bf16 %v3686_v43, %v3685_v40  ;;  %v2855_v11 = vmul.f32 %v11366_v47, %v2791_v54  ;;  %8391 = vpow2.f32 %v3321_v52  ;;  %v3323_v34 = vmul.f32 1.442695, %v3241_v63  ;;  %v1571_v52 = vpop.xlane.xlu0 %1570 }
 0x409   : > { %v11398_v57 = vmul.f32 %v8380_v0, %v16096_v49  ;;  %v11401_v20 = vmul.f32 %v8382_v33, %v16097_v17  ;;  %v2856_v39 = vmul.f32 %v11372_v61, %v2792_v26  ;;  %v3325_v8 = vmul.f32 1.442695, %v3242_v22 }
 0x40a   : > { %7934 = vmatmul.mubr.msk.bf16.gmra.mrb[44].mxu1 %vm1033_vm2, %v3750_v28  ;;  %v2919_v46 = vadd.f32 -0.28449672, %v2855_v11  ;;  %v11406_v62 = vmul.f32 %v8384_v1, %v16098_v38  ;;  %v11409_v40 = vmul.f32 0.5, %v11336_v12  ;;  %v1893_v0 = vmul.f32 %v11183_v23, %v11113_v48  ;;  %v1580_v48 = vpop.xlane.xlu1 %1579 }
 0x40b   : > { %v2920_v19 = vadd.f32 -0.28449672, %v2856_v39  ;;  %v1721_v63 = vadd.f32 1e-05, %v1657_v30  ;;  %v1660_v33 = vmul.f32 0.015625, %v1568_v25  ;;  %v1894_v58 = vmul.f32 %v11183_v23, %v11104_v36 }
 0x40c   : > { %v2983_v22 = vmul.f32 %v11366_v47, %v2919_v46  ;;  %v11417_v43 = vmul.f32 0.5, %v11339_v2  ;;  %8393 = vpow2.f32 %v3323_v34  ;;  %v1659_v10 = vmul.f32 0.015625, %v1565_v24  ;;  %v1577_v17 = vpop.xlane.xlu0 %1576 }
 0x40d   : > { %v11419_v9 = vpop.eup %8385  ;;  %v2984_v12 = vmul.f32 %v11372_v61, %v2920_v19  ;;  %8395 = vpow2.f32 %v3325_v8  ;;  %v1662_v54 = vmul.f32 0.015625, %v1574_v45  ;;  %v11423_v1 = vadd.f32 %v11148_v21, %v1893_v0 }
 0x40e   : > { %v11425_v25 = vpop.eup %8387  ;;  %v3047_v36 = vadd.f32 0.2548296, %v2983_v22  ;;  %v2601_v5 = vmul.f32 1.0614054, %v11419_v9  ;;  %v1661_v26 = vmul.f32 0.015625, %v1571_v52  ;;  %v11429_v2 = vadd.f32 %v11148_v21, %v1894_v58 }
 0x40f   : > { %v3048_v24 = vadd.f32 0.2548296, %v2984_v12  ;;  %v2602_v30 = vmul.f32 1.0614054, %v11425_v25  ;;  %8397 = vrsqrt.f32 %v1721_v63  ;;  %v1724_v28 = vadd.f32 1e-05, %v1660_v33 }
 0x410   : > { %v3111_v45 = vmul.f32 %v11366_v47, %v3047_v36  ;;  %vm2153_vm6 = vcmp.ge.f32.partialorder %v11348_v6, 0.0  ;;  %v2665_v11 = vadd.f32 -1.4531521, %v2601_v5  ;;  %v1723_v34 = vadd.f32 1e-05, %v1659_v10 }
 0x411   : > { %v1664_v49 = vmul.f32 0.015625, %v1580_v48  ;;  %v8390_v39 = vpop.eup %8389  ;;  %v3112_v8 = vmul.f32 %v11372_v61, %v3048_v24  ;;  %v2666_v46 = vadd.f32 -1.4531521, %v2602_v30  ;;  %v1726_v38 = vadd.f32 1e-05, %v1662_v54 }
 0x412   : > { %v11436_v52 = vmul.f32 0.70710677, %v11423_v1  ;;  %v8392_v0 = vpop.eup %8391  ;;  %v3431_v19 = vmul.f32 %v8390_v39, %v3111_v45  ;;  %vm2154_vm7 = vcmp.ge.f32.partialorder %v11357_v32, 0.0  ;;  %v2729_v47 = vmul.f32 %v11419_v9, %v2665_v11 }
 0x413   : > { %v1725_v63 = vadd.f32 1e-05, %v1661_v26  ;;  %v11441_v33 = vmul.f32 0.70710677, %v11429_v2  ;;  %v3432_v58 = vmul.f32 %v8392_v0, %v3112_v8  ;;  %v2730_v22 = vmul.f32 %v11425_v25, %v2666_v46 }
 0x414   : > { %8399 = vrsqrt.f32 %v1724_v28  ;;  %v1663_v61 = vmul.f32 0.015625, %v1577_v17  ;;  %v3495_v10 = vsub.f32 1.0, %v3431_v19  ;;  %v2793_v12 = vadd.f32 1.4214138, %v2729_v47 }
 0x415   : > { %8401 = vrsqrt.f32 %v1723_v34  ;;  %v1728_v54 = vadd.f32 1e-05, %v1664_v49  ;;  %v3496_v48 = vsub.f32 1.0, %v3432_v58  ;;  %v2794_v36 = vadd.f32 1.4214138, %v2730_v22 }
 0x416   : > { %8403 = vrsqrt.f32 %v1726_v38  ;;  %v11445_v5 = vand.u32 2147483647, %v11436_v52  ;;  %v8394_v24 = vpop.eup %8393  ;;  %v3559_v26 = vmul.f32 %v3495_v10, %v11369_v50  ;;  %v2857_v30 = vmul.f32 %v11419_v9, %v2793_v12 }
 0x417   : > { %8405 = vrsqrt.f32 %v1725_v63  ;;  %v11450_v45 = vand.u32 2147483647, %v11441_v33  ;;  %v8396_v28 = vpop.eup %8395  ;;  %v3560_v11 = vmul.f32 %v3496_v48, %v11383_v13  ;;  %v2858_v34 = vmul.f32 %v11425_v25, %v2794_v36  ;;  %v1586_v63 = vpop.xlane.xlu1 %1585 }
 0x418   : > { %v1727_v49 = vadd.f32 1e-05, %v1663_v61  ;;  %v2347_v17 = vmul.f32 0.3275911, %v11445_v5  ;;  %v3623_v39 = vadd.f32 1.0, %v3559_v26  ;;  %v1895_v50 = vmul.f32 %v11183_v23, %v11087_v37 }
 0x419   : > { %v2921_v8 = vadd.f32 -0.28449672, %v2857_v30  ;;  %v2348_v46 = vmul.f32 0.3275911, %v11450_v45  ;;  %v8398_v38 = vpop.eup %8397  ;;  %v3624_v0 = vadd.f32 1.0, %v3560_v11  ;;  %8407 = vrsqrt.f32 %v1728_v54 }
 0x41a   : > { %v2922_v19 = vadd.f32 -0.28449672, %v2858_v34  ;;  %v2411_v47 = vadd.f32 1.0, %v2347_v17  ;;  %v3687_v13 = vmul.f32 %v3623_v39, %v11344_v44  ;;  %v1896_v61 = vmul.f32 %v11183_v23, %v11077_v18 }
 0x41b   : > { %v2985_v58 = vmul.f32 %v11419_v9, %v2921_v8  ;;  %v2412_v22 = vadd.f32 1.0, %v2348_v46  ;;  %v3688_v10 = vmul.f32 %v3624_v0, %v11353_v16  ;;  %v2217_v37 = vsel %vm2153_vm6, 1.0, %v16063_v3  ;;  %v16099_v0 = vld [vmem:[#allocation36_spill] sm:$0xff] }
 0x41c   : > { %v2986_v12 = vmul.f32 %v11425_v25, %v2922_v19  ;;  %8409 = vrcp.f32 %v2411_v47  ;;  %v1666_v48 = vmul.f32 0.015625, %v1586_v63  ;;  %v11468_v44 = vadd.f32 %v11148_v21, %v1895_v50 }
 0x41d   : > { %v3049_v54 = vadd.f32 0.2548296, %v2985_v58  ;;  %8411 = vrcp.f32 %v2412_v22  ;;  %v3751_v26 = vpack.c.bf16 %v3688_v10, %v3687_v13  ;;  %v2218_v18 = vsel %vm2154_vm7, 1.0, %v16063_v3 }
 0x41e   : > { %v8400_v36 = vpop.eup %8399  ;;  %v3050_v16 = vadd.f32 0.2548296, %v2986_v12  ;;  %8413 = vrsqrt.f32 %v1727_v49  ;;  %v11475_v11 = vmul.f32 0.5, %v11423_v1  ;;  %v11478_v34 = vmul.f32 0.5, %v11429_v2  ;;  %v16102_v12 = vld [vmem:[#allocation74_spill] sm:$0xff] }
 0x41f   : > { %v8402_v30 = vpop.eup %8401  ;;  %v3113_v6 = vmul.f32 %v11419_v9, %v3049_v54  ;;  %v11481_v17 = vadd.f32 %v11148_v21, %v1896_v61  ;;  %7937 = vmatprep.mubr.msk.bf16.mxu1 %vm1033_vm2, %v3751_v26  ;;  %vm2155_vm8 = vcmp.ge.f32.partialorder %v11436_v52, 0.0  ;;  %v3179_v49 = vsub.f32 0.0, %v11445_v5 }
 0x420   : > { %v8404_v39 = vpop.eup %8403  ;;  %v3114_v32 = vmul.f32 %v11425_v25, %v3050_v16  ;;  %v11488_v9 = vmul.f32 0.70710677, %v11468_v44  ;;  %vm2156_vm9 = vcmp.ge.f32.partialorder %v11441_v33, 0.0  ;;  %v1730_v2 = vadd.f32 1e-05, %v1666_v48  ;;  %v16100_v25 = vld [vmem:[#allocation73_spill] sm:$0xff] }
 0x421   : > { %v8406_v1 = vpop.eup %8405  ;;  %v3433_v8 = vmul.f32 %v8394_v24, %v3113_v6  ;;  %v11492_v46 = vmul.f32 0.70710677, %v11481_v17  ;;  %v11495_v19 = vmul.f32 %v8398_v38, %v16099_v0  ;;  %v11498_v47 = vmul.f32 %v8400_v36, %v16100_v25  ;;  %v16103_v48 = vld [vmem:[#allocation75_spill] sm:$0xff]  ;;  %v1583_v25 = vpop.xlane.xlu0 %1582 }
 0x422   : > { %v3434_v50 = vmul.f32 %v8396_v28, %v3114_v32  ;;  %v2285_v52 = vand.u32 2147483647, %v11488_v9  ;;  %v11502_v13 = vsel %vm2155_vm8, 1.0, %v16063_v3  ;;  %v3180_v24 = vsub.f32 0.0, %v11450_v45  ;;  %v16105_v32 = vld [vmem:[#allocation76_spill] sm:$0xff] }
 0x423   : > { %16101 = vst [vmem:[#allocation50_spill] sm:$0xff] %v11498_v47  ;;  %v3497_v63 = vsub.f32 1.0, %v3433_v8  ;;  %v2286_v33 = vand.u32 2147483647, %v11492_v46  ;;  %v8408_v58 = vpop.eup %8407  ;;  %v11507_v28 = vsel %vm2156_vm9, 1.0, %v16063_v3  ;;  %v3243_v38 = vmul.f32 %v3179_v49, %v11445_v5 }
 0x424   : > { %v3498_v22 = vsub.f32 1.0, %v3434_v50  ;;  %v2349_v61 = vmul.f32 0.3275911, %v2285_v52  ;;  %v11511_v54 = vmul.f32 %v8402_v30, %v16102_v12  ;;  %v11514_v36 = vmul.f32 %v8404_v39, %v16103_v48 }
 0x425   : > { %v3561_v10 = vmul.f32 %v3497_v63, %v2217_v37  ;;  %v2350_v26 = vmul.f32 0.3275911, %v2286_v33  ;;  %v11519_v8 = vmul.f32 %v8406_v1, %v16105_v32  ;;  %v3181_v0 = vsub.f32 0.0, %v2285_v52 }
 0x426   : > { %16104 = vst [vmem:[#allocation47_spill] sm:$0xff] %v11514_v36  ;;  %v11516_v16 = vpop.eup %8409  ;;  %v3562_v6 = vmul.f32 %v3498_v22, %v2218_v18  ;;  %v2413_v50 = vadd.f32 1.0, %v2349_v61  ;;  %v3244_v30 = vmul.f32 %v3180_v24, %v11450_v45  ;;  %v3327_v48 = vmul.f32 1.442695, %v3243_v38  ;;  %v1592_v61 = vpop.xlane.xlu1 %1591 }
 0x427   : > { %16106 = vst [vmem:[#allocation51_spill] sm:$0xff] %v11519_v8  ;;  %v11521_v47 = vpop.eup %8411  ;;  %v3625_v5 = vadd.f32 1.0, %v3561_v10  ;;  %v2603_v37 = vmul.f32 1.0614054, %v11516_v16  ;;  %v2414_v49 = vadd.f32 1.0, %v2350_v26  ;;  %v3182_v22 = vsub.f32 0.0, %v2286_v33 }
 0x428   : > { %v8414_v39 = vpop.eup %8413  ;;  %v3626_v63 = vadd.f32 1.0, %v3562_v6  ;;  %v2604_v12 = vmul.f32 1.0614054, %v11521_v47  ;;  %8415 = vrcp.f32 %v2413_v50  ;;  %v16107_v10 = vld [vmem:[#allocation77_spill] sm:$0xff]  ;;  %v3245_v45 = vmul.f32 %v3181_v0, %v2285_v52 }
 0x429   : > { %v3689_v18 = vmul.f32 %v3625_v5, %v11409_v40  ;;  %v2667_v1 = vadd.f32 -1.4531521, %v2603_v37  ;;  %8417 = vrcp.f32 %v2414_v49  ;;  %v11529_v36 = vmul.f32 %v8408_v58, %v16107_v10  ;;  %v1589_v5 = vpop.xlane.xlu0 %1588 }
 0x42a   : > { %v3690_v32 = vmul.f32 %v3626_v63, %v11417_v43  ;;  %v2668_v8 = vadd.f32 -1.4531521, %v2604_v12  ;;  %v3329_v26 = vmul.f32 1.442695, %v3244_v30  ;;  %8419 = vrsqrt.f32 %v1730_v2 }
 0x42b   : > { %v2731_v24 = vmul.f32 %v11516_v16, %v2667_v1  ;;  %v1665_v6 = vmul.f32 0.015625, %v1583_v25  ;;  %8421 = vpow2.f32 %v3327_v48  ;;  %v11534_v40 = vmul.f32 0.5, %v11468_v44 }
 0x42c   : > { %v3752_v38 = vpack.c.bf16 %v3690_v32, %v3689_v18  ;;  %v2732_v50 = vmul.f32 %v11521_v47, %v2668_v8  ;;  %v11537_v43 = vmul.f32 0.5, %v11481_v17  ;;  %v3246_v58 = vmul.f32 %v3182_v22, %v2286_v33  ;;  %v1598_v17 = vpop.xlane.xlu1 %1597 }
 0x42d   : > { %v2795_v37 = vadd.f32 1.4214138, %v2731_v24  ;;  %v1668_v49 = vmul.f32 0.015625, %v1592_v61  ;;  %v3331_v0 = vmul.f32 1.442695, %v3245_v45  ;;  %v1897_v2 = vmul.f32 %v11183_v23, %v11126_v4  ;;  %v16108_v4 = vld [vmem:[#allocation78_spill] sm:$0xff]  ;;  %v1595_v32 = vpop.xlane.xlu0 %1594 }
 0x42e   : > { %7938 = vmatmul.mubr.msk.bf16.gmra.mrb[48].mxu1 %vm1033_vm2, %v3752_v38  ;;  %v2796_v52 = vadd.f32 1.4214138, %v2732_v50  ;;  %v1898_v8 = vmul.f32 %v11183_v23, %v11123_v42  ;;  %8423 = vpow2.f32 %v3329_v26  ;;  %vm2157_vm10 = vcmp.ge.f32.partialorder %v11488_v9, 0.0 }
 0x42f   : > { %v2859_v44 = vmul.f32 %v11516_v16, %v2795_v37  ;;  %v1729_v25 = vadd.f32 1e-05, %v1665_v6  ;;  %v1667_v30 = vmul.f32 0.015625, %v1589_v5  ;;  %v11548_v63 = vadd.f32 %v11148_v21, %v1897_v2 }
 0x430   : > { %v2860_v33 = vmul.f32 %v11521_v47, %v2796_v52  ;;  %v11551_v12 = vadd.f32 %v11148_v21, %v1898_v8  ;;  %v11554_v48 = vmul.f32 %v8414_v39, %v16108_v4  ;;  %vm2158_vm11 = vcmp.ge.f32.partialorder %v11492_v46, 0.0 }
 0x431   : > { %v2923_v42 = vadd.f32 -0.28449672, %v2859_v44  ;;  %v3333_v23 = vmul.f32 1.442695, %v3246_v58  ;;  %v1732_v18 = vadd.f32 1e-05, %v1668_v49  ;;  %8425 = vpow2.f32 %v3331_v0 }
 0x432   : > { %v11557_v1 = vpop.eup %8415  ;;  %v2924_v22 = vadd.f32 -0.28449672, %v2860_v33  ;;  %v1670_v61 = vmul.f32 0.015625, %v1598_v17  ;;  %v11560_v10 = vmul.f32 0.70710677, %v11548_v63  ;;  %8427 = vrsqrt.f32 %v1729_v25 }
 0x433   : > { %v11562_v45 = vpop.eup %8417  ;;  %v2987_v21 = vmul.f32 %v11516_v16, %v2923_v42  ;;  %v2605_v39 = vmul.f32 1.0614054, %v11557_v1  ;;  %v11567_v24 = vmul.f32 0.70710677, %v11551_v12  ;;  %v1731_v38 = vadd.f32 1e-05, %v1667_v30  ;;  %v1604_v30 = vpop.xlane.xlu1 %1603 }
 0x434   : > { %v2988_v26 = vmul.f32 %v11521_v47, %v2924_v22  ;;  %v2606_v6 = vmul.f32 1.0614054, %v11562_v45  ;;  %v11572_v50 = vand.u32 2147483647, %v11560_v10  ;;  %v8420_v5 = vpop.eup %8419  ;;  %8429 = vpow2.f32 %v3333_v23 }
 0x435   : > { %v3051_v37 = vadd.f32 0.2548296, %v2987_v21  ;;  %v2669_v58 = vadd.f32 -1.4531521, %v2605_v39  ;;  %v1669_v49 = vmul.f32 0.015625, %v1595_v32  ;;  %v8422_v52 = vpop.eup %8421  ;;  %8431 = vrsqrt.f32 %v1732_v18 }
 0x436   : > { %v3052_v0 = vadd.f32 0.2548296, %v2988_v26  ;;  %v2670_v2 = vadd.f32 -1.4531521, %v2606_v6  ;;  %v1734_v8 = vadd.f32 1e-05, %v1670_v61  ;;  %8433 = vrsqrt.f32 %v1731_v38 }
 0x437   : > { %v3115_v44 = vmul.f32 %v11516_v16, %v3051_v37  ;;  %v2733_v25 = vmul.f32 %v11557_v1, %v2669_v58  ;;  %v11577_v17 = vand.u32 2147483647, %v11567_v24  ;;  %v2351_v33 = vmul.f32 0.3275911, %v11572_v50 }
 0x438   : > { %v3116_v4 = vmul.f32 %v11521_v47, %v3052_v0  ;;  %v11584_v42 = vsel %vm2157_vm10, 1.0, %v16063_v3  ;;  %v2734_v23 = vmul.f32 %v11562_v45, %v2670_v2  ;;  %v8424_v18 = vpop.eup %8423  ;;  %v1733_v26 = vadd.f32 1e-05, %v1669_v49  ;;  %v1601_v2 = vpop.xlane.xlu0 %1600 }
 0x439   : > { %v3435_v16 = vmul.f32 %v8422_v52, %v3115_v44  ;;  %v2797_v22 = vadd.f32 1.4214138, %v2733_v25  ;;  %v2352_v61 = vmul.f32 0.3275911, %v11577_v17  ;;  %v2415_v32 = vadd.f32 1.0, %v2351_v33  ;;  %v16109_v25 = vld [vmem:[#allocation79_spill] sm:$0xff] }
 0x43a   : > { %v3436_v21 = vmul.f32 %v8424_v18, %v3116_v4  ;;  %v2798_v39 = vadd.f32 1.4214138, %v2734_v23  ;;  %v1672_v6 = vmul.f32 0.015625, %v1604_v30  ;;  %8435 = vrsqrt.f32 %v1734_v8 }
 0x43b   : > { %v3499_v37 = vsub.f32 1.0, %v3435_v16  ;;  %v2861_v47 = vmul.f32 %v11557_v1, %v2797_v22  ;;  %v2416_v9 = vadd.f32 1.0, %v2352_v61  ;;  %v8426_v58 = vpop.eup %8425  ;;  %v11592_v38 = vsel %vm2158_vm11, 1.0, %v16063_v3 }
 0x43c   : > { %v3500_v0 = vsub.f32 1.0, %v3436_v21  ;;  %v2862_v52 = vmul.f32 %v11562_v45, %v2798_v39  ;;  %8437 = vrcp.f32 %v2415_v32  ;;  %v8428_v44 = vpop.eup %8427  ;;  %v11597_v33 = vmul.f32 %v8420_v5, %v16109_v25  ;;  %v11608_v39 = vld [vmem:[#allocation8] ss:$0 sm:$0xff] }
 0x43d   : > { %v3563_v49 = vmul.f32 %v3499_v37, %v11502_v13  ;;  %v2925_v30 = vadd.f32 -0.28449672, %v2861_v47  ;;  %8439 = vrcp.f32 %v2416_v9  ;;  %v3183_v46 = vsub.f32 0.0, %v11572_v50 }
 0x43e   : > { %16110 = vst [vmem:[#allocation52_spill] sm:$0xff] %v11597_v33  ;;  %v3564_v8 = vmul.f32 %v3500_v0, %v11507_v28  ;;  %v2926_v4 = vadd.f32 -0.28449672, %v2862_v52  ;;  %8441 = vrsqrt.f32 %v1733_v26  ;;  %v8430_v23 = vpop.eup %8429  ;;  %v1736_v22 = vadd.f32 1e-05, %v1672_v6 }
 0x43f   : > { %v3627_v18 = vadd.f32 1.0, %v3563_v49  ;;  %v2989_v16 = vmul.f32 %v11557_v1, %v2925_v30  ;;  %v11602_v61 = vmul.f32 0.015625, %v1601_v2  ;;  %v8432_v32 = vpop.eup %8431  ;;  %v11606_v21 = vmul.f32 0.5, %v11548_v63  ;;  %v11618_v2 = vld [vmem:[#allocation10] ss:$0 sm:$0xff] }
 0x440   : > { %v3628_v13 = vadd.f32 1.0, %v3564_v8  ;;  %v2990_v5 = vmul.f32 %v11562_v45, %v2926_v4  ;;  %v1899_v28 = vmul.f32 %v11608_v39, %v11136_v14  ;;  %v3184_v47 = vsub.f32 0.0, %v11577_v17  ;;  %v8434_v9 = vpop.eup %8433 }
 0x441   : > { %v3691_v26 = vmul.f32 %v3627_v18, %v11475_v11  ;;  %v3053_v37 = vadd.f32 0.2548296, %v2989_v16  ;;  %v1900_v6 = vmul.f32 %v11608_v39, %v11133_v41  ;;  %v3247_v63 = vmul.f32 %v3183_v46, %v11572_v50 }
 0x442   : > { %v3692_v0 = vmul.f32 %v3628_v13, %v11478_v34  ;;  %v3054_v52 = vadd.f32 0.2548296, %v2990_v5  ;;  %v11621_v49 = vadd.f32 %v11618_v2, %v1899_v28  ;;  %v11625_v11 = vmul.f32 0.5, %v11551_v12  ;;  %v16111_v13 = vld [vmem:[#allocation80_spill] sm:$0xff] }
 0x443   : > { %v3117_v14 = vmul.f32 %v11557_v1, %v3053_v37  ;;  %vm2159_vm12 = vcmp.ge.f32.partialorder %v11560_v10, 0.0  ;;  %v11629_v41 = vadd.f32 %v11618_v2, %v1900_v6  ;;  %vm2160_vm13 = vcmp.ge.f32.partialorder %v11567_v24, 0.0 }
 0x444   : > { %v3753_v25 = vpack.c.bf16 %v3692_v0, %v3691_v26  ;;  %v3118_v34 = vmul.f32 %v11562_v45, %v3054_v52  ;;  %v11634_v50 = vmul.f32 0.70710677, %v11621_v49  ;;  %v8436_v30 = vpop.eup %8435  ;;  %v3248_v1 = vmul.f32 %v3184_v47, %v11577_v17 }
 0x445   : > { %v3437_v8 = vmul.f32 %v8426_v58, %v3117_v14  ;;  %8443 = vrsqrt.f32 %v1736_v22  ;;  %v11638_v12 = vmul.f32 0.70710677, %v11629_v41  ;;  %v11644_v45 = vsel %vm2159_vm12, 1.0, %v16063_v3 }
 0x446   : > { %v11640_v10 = vpop.eup %8437  ;;  %7941 = vmatprep.mubr.msk.bf16.mxu1 %vm1033_vm2, %v3753_v25  ;;  %v3438_v4 = vmul.f32 %v8430_v23, %v3118_v34  ;;  %v3335_v46 = vmul.f32 1.442695, %v3247_v63  ;;  %v2289_v18 = vand.u32 2147483647, %v11634_v50  ;;  %v11650_v17 = vmul.f32 %v8428_v44, %v16111_v13 }
 0x447   : > { %v11647_v16 = vpop.eup %8439  ;;  %v3501_v58 = vsub.f32 1.0, %v3437_v8  ;;  %v11655_v22 = vsel %vm2160_vm13, 1.0, %v16063_v3  ;;  %v2607_v5 = vmul.f32 1.0614054, %v11640_v10  ;;  %v2290_v37 = vand.u32 2147483647, %v11638_v12 }
 0x448   : > { %16112 = vst [vmem:[#allocation53_spill] sm:$0xff] %v11650_v17  ;;  %v8442_v23 = vpop.eup %8441  ;;  %v3502_v28 = vsub.f32 1.0, %v3438_v4  ;;  %v2608_v26 = vmul.f32 1.0614054, %v11647_v16  ;;  %v1901_v47 = vmul.f32 %v11608_v39, %v11191_v56  ;;  %v3337_v0 = vmul.f32 1.442695, %v3248_v1 }
 0x449   : > { %v3565_v6 = vmul.f32 %v3501_v58, %v11584_v42  ;;  %v2671_v44 = vadd.f32 -1.4531521, %v2607_v5  ;;  %v2353_v52 = vmul.f32 0.3275911, %v2289_v18  ;;  %8445 = vpow2.f32 %v3335_v46  ;;  %v16113_v4 = vld [vmem:[#allocation41_spill] sm:$0xff] }
 0x44a   : > { %v3566_v24 = vmul.f32 %v3502_v28, %v11592_v38  ;;  %v2672_v63 = vadd.f32 -1.4531521, %v2608_v26  ;;  %v2354_v14 = vmul.f32 0.3275911, %v2290_v37  ;;  %v1902_v13 = vmul.f32 %v11608_v39, %v16113_v4  ;;  %v16114_v38 = vld [vmem:[#allocation40_spill] sm:$0xff]  ;;  %v16116_v28 = vld [vmem:[#allocation38_spill] sm:$0xff] }
 0x44b   : > { %v3629_v25 = vadd.f32 1.0, %v3565_v6  ;;  %v2735_v34 = vmul.f32 %v11640_v10, %v2671_v44  ;;  %v2417_v8 = vadd.f32 1.0, %v2353_v52  ;;  %v11669_v42 = vadd.f32 %v11618_v2, %v1901_v47 }
 0x44c   : > { %v3630_v33 = vadd.f32 1.0, %v3566_v24  ;;  %v2736_v56 = vmul.f32 %v11647_v16, %v2672_v63  ;;  %v2418_v17 = vadd.f32 1.0, %v2354_v14  ;;  %v11673_v58 = vmul.f32 %v8432_v32, %v16114_v38  ;;  %v16118_v24 = vld [vmem:[#allocation39_spill] sm:$0xff] }
 0x44d   : > { %v3693_v1 = vmul.f32 %v3629_v25, %v11534_v40  ;;  %v2799_v46 = vadd.f32 1.4214138, %v2735_v34  ;;  %8447 = vrcp.f32 %v2417_v8  ;;  %v11677_v26 = vmul.f32 %v8434_v9, %v16116_v28  ;;  %v16120_v9 = vld [vmem:[#allocation43_spill] sm:$0xff] }
 0x44e   : > { %16115 = vst [vmem:[#allocation54_spill] sm:$0xff] %v11673_v58  ;;  %v3694_v5 = vmul.f32 %v3630_v33, %v11537_v43  ;;  %v2800_v6 = vadd.f32 1.4214138, %v2736_v56  ;;  %8449 = vrcp.f32 %v2418_v17  ;;  %v3185_v47 = vsub.f32 0.0, %v2289_v18 }
 0x44f   : > { %16117 = vst [vmem:[#allocation55_spill] sm:$0xff] %v11677_v26  ;;  %v11679_v44 = vpop.eup %8443  ;;  %v2863_v52 = vmul.f32 %v11640_v10, %v2799_v46  ;;  %8451 = vpow2.f32 %v3337_v0  ;;  %v11683_v40 = vadd.f32 %v11618_v2, %v1902_v13  ;;  %v11686_v63 = vmul.f32 %v8436_v30, %v16118_v24 }
 0x450   : > { %v3754_v32 = vpack.c.bf16 %v3694_v5, %v3693_v1  ;;  %v2864_v43 = vmul.f32 %v11647_v16, %v2800_v6  ;;  %v11690_v33 = vmul.f32 0.70710677, %v11669_v42  ;;  %v11693_v17 = vmul.f32 %v8442_v23, %v16120_v9 }
 0x451   : > { %16119 = vst [vmem:[#allocation56_spill] sm:$0xff] %v11686_v63  ;;  %v2927_v14 = vadd.f32 -0.28449672, %v2863_v52  ;;  %v11696_v25 = vadd.f32 1e-05, %v11602_v61  ;;  %vm2161_vm14 = vcmp.ge.f32.partialorder %v11634_v50, 0.0  ;;  %v3249_v13 = vmul.f32 %v3185_v47, %v2289_v18 }
 0x452   : > { %16121 = vst [vmem:[#allocation57_spill] sm:$0xff] %v11693_v17  ;;  %v11699_v0 = vmul.f32 0.70710677, %v11683_v40  ;;  %7942 = vmatmul.mubr.msk.bf16.gmra.mrb[52].mxu1 %vm1033_vm2, %v3754_v32  ;;  %v2928_v34 = vadd.f32 -0.28449672, %v2864_v43  ;;  %v3186_v30 = vsub.f32 0.0, %v2290_v37  ;;  %v1903_v61 = vmul.f32 %v11608_v39, %v11219_v15 }
 0x453   : > { %v2291_v8 = vand.u32 2147483647, %v11690_v33  ;;  %v2991_v4 = vmul.f32 %v11640_v10, %v2927_v14  ;;  %v8446_v56 = vpop.eup %8445  ;;  %v11710_v38 = vmul.f32 0.5, %v11621_v49  ;;  %v11713_v46 = vmul.f32 0.5, %v11629_v41 }
 0x454   : > { %v2292_v23 = vand.u32 2147483647, %v11699_v0  ;;  %v2992_v1 = vmul.f32 %v11647_v16, %v2928_v34  ;;  %vm2162_vm15 = vcmp.ge.f32.partialorder %v11638_v12, 0.0  ;;  %v1904_v18 = vmul.f32 %v11608_v39, %v11194_v55 }
 0x455   : > { %v2355_v5 = vmul.f32 0.3275911, %v2291_v8  ;;  %v3055_v28 = vadd.f32 0.2548296, %v2991_v4  ;;  %v11721_v15 = vsel %vm2161_vm14, 1.0, %v16063_v3  ;;  %v3250_v47 = vmul.f32 %v3186_v30, %v2290_v37 }
 0x456   : > { %v2356_v6 = vmul.f32 0.3275911, %v2292_v23  ;;  %v3056_v52 = vadd.f32 0.2548296, %v2992_v1  ;;  %v3339_v24 = vmul.f32 1.442695, %v3249_v13  ;;  %v11727_v9 = vadd.f32 %v11618_v2, %v1903_v61 }
 0x457   : > { %v2419_v49 = vadd.f32 1.0, %v2355_v5  ;;  %v11723_v32 = vpop.eup %8447  ;;  %v3119_v41 = vmul.f32 %v11640_v10, %v3055_v28  ;;  %v11734_v50 = vadd.f32 %v11618_v2, %v1904_v18  ;;  %v3187_v10 = vsub.f32 0.0, %v2291_v8 }
 0x458   : > { %v2420_v43 = vadd.f32 1.0, %v2356_v6  ;;  %v11729_v14 = vpop.eup %8449  ;;  %v3120_v55 = vmul.f32 %v11647_v16, %v3056_v52  ;;  %v2609_v34 = vmul.f32 1.0614054, %v11723_v32  ;;  %v11740_v61 = vsel %vm2162_vm15, 1.0, %v16063_v3 }
 0x459   : > { %8453 = vrcp.f32 %v2419_v49  ;;  %v8452_v37 = vpop.eup %8451  ;;  %v3439_v30 = vmul.f32 %v8446_v56, %v3119_v41  ;;  %v2610_v4 = vmul.f32 1.0614054, %v11729_v14  ;;  %v3341_v16 = vmul.f32 1.442695, %v3250_v47 }
 0x45a   : > { %8455 = vrcp.f32 %v2420_v43  ;;  %v3440_v13 = vmul.f32 %v8452_v37, %v3120_v55  ;;  %v2673_v1 = vadd.f32 -1.4531521, %v2609_v34  ;;  %v3188_v6 = vsub.f32 0.0, %v2292_v23 }
 0x45b   : > { %v3503_v5 = vsub.f32 1.0, %v3439_v30  ;;  %v2674_v28 = vadd.f32 -1.4531521, %v2610_v4  ;;  %8457 = vpow2.f32 %v3339_v24  ;;  %v11744_v56 = vmul.f32 0.70710677, %v11727_v9 }
 0x45c   : > { %v3504_v18 = vsub.f32 1.0, %v3440_v13  ;;  %v2737_v52 = vmul.f32 %v11723_v32, %v2673_v1  ;;  %v11747_v49 = vmul.f32 0.70710677, %v11734_v50  ;;  %v11752_v43 = vmul.f32 0.5, %v11669_v42 }
 0x45d   : > { %v3567_v41 = vmul.f32 %v3503_v5, %v11644_v45  ;;  %v2738_v12 = vmul.f32 %v11729_v14, %v2674_v28  ;;  %v3251_v47 = vmul.f32 %v3187_v10, %v2291_v8  ;;  %8459 = vpow2.f32 %v3341_v16 }
 0x45e   : > { %v3568_v24 = vmul.f32 %v3504_v18, %v11655_v22  ;;  %v2801_v55 = vadd.f32 1.4214138, %v2737_v52  ;;  %v11756_v34 = vmul.f32 0.5, %v11683_v40  ;;  %vm2163_vm0 = vcmp.ge.f32.partialorder %v11690_v33, 0.0 }
 0x45f   : > { %v3631_v37 = vadd.f32 1.0, %v3567_v41  ;;  %v2802_v30 = vadd.f32 1.4214138, %v2738_v12  ;;  %v3252_v4 = vmul.f32 %v3188_v6, %v2292_v23  ;;  %v2293_v1 = vand.u32 2147483647, %v11744_v56 }
 0x460   : > { %v3632_v13 = vadd.f32 1.0, %v3568_v24  ;;  %v2865_v45 = vmul.f32 %v11723_v32, %v2801_v55  ;;  %v2294_v42 = vand.u32 2147483647, %v11747_v49  ;;  %v3343_v10 = vmul.f32 1.442695, %v3251_v47 }
 0x461   : > { %v3695_v8 = vmul.f32 %v3631_v37, %v11606_v21  ;;  %v2866_v22 = vmul.f32 %v11729_v14, %v2802_v30  ;;  %v1905_v40 = vmul.f32 %v11608_v39, %v11237_v31  ;;  %v2357_v28 = vmul.f32 0.3275911, %v2293_v1 }
 0x462   : > { %v3696_v5 = vmul.f32 %v3632_v13, %v11625_v11  ;;  %v2929_v23 = vadd.f32 -0.28449672, %v2865_v45  ;;  %v2358_v6 = vmul.f32 0.3275911, %v2294_v42  ;;  %v3345_v12 = vmul.f32 1.442695, %v3252_v4 }
 0x463   : > { %v11766_v16 = vpop.eup %8453  ;;  %v2930_v52 = vadd.f32 -0.28449672, %v2866_v22  ;;  %v1906_v21 = vmul.f32 %v11608_v39, %v11229_v29  ;;  %v2421_v55 = vadd.f32 1.0, %v2357_v28  ;;  %v11778_v45 = vadd.f32 %v11618_v2, %v1905_v40 }
 0x464   : > { %v11769_v18 = vpop.eup %8455  ;;  %v2611_v41 = vmul.f32 1.0614054, %v11766_v16  ;;  %v3755_v47 = vpack.c.bf16 %v3696_v5, %v3695_v8  ;;  %v2993_v24 = vmul.f32 %v11723_v32, %v2929_v23  ;;  %v2422_v13 = vadd.f32 1.0, %v2358_v6 }
 0x465   : > { %v2612_v31 = vmul.f32 1.0614054, %v11769_v18  ;;  %v8458_v37 = vpop.eup %8457  ;;  %v2994_v11 = vmul.f32 %v11729_v14, %v2930_v52  ;;  %8461 = vrcp.f32 %v2421_v55  ;;  %v3189_v29 = vsub.f32 0.0, %v2293_v1 }
 0x466   : > { %v2675_v30 = vadd.f32 -1.4531521, %v2611_v41  ;;  %7945 = vmatprep.mubr.msk.bf16.mxu1 %vm1033_vm2, %v3755_v47  ;;  %v3057_v4 = vadd.f32 0.2548296, %v2993_v24  ;;  %8463 = vrcp.f32 %v2422_v13  ;;  %v11783_v23 = vadd.f32 %v11618_v2, %v1906_v21 }
 0x467   : > { %v2676_v22 = vadd.f32 -1.4531521, %v2612_v31  ;;  %v3058_v8 = vadd.f32 0.2548296, %v2994_v11  ;;  %v8460_v28 = vpop.eup %8459  ;;  %vm2164_vm1 = vcmp.ge.f32.partialorder %v11699_v0, 0.0  ;;  %v11790_v40 = vsel %vm2163_vm0, 1.0, %v16063_v3 }
 0x468   : > { %v2739_v5 = vmul.f32 %v11766_v16, %v2675_v30  ;;  %v3121_v52 = vmul.f32 %v11723_v32, %v3057_v4  ;;  %8465 = vpow2.f32 %v3343_v10  ;;  %v3190_v24 = vsub.f32 0.0, %v2294_v42 }
 0x469   : > { %v2740_v6 = vmul.f32 %v11769_v18, %v2676_v22  ;;  %v3122_v41 = vmul.f32 %v11729_v14, %v3058_v8  ;;  %v3253_v55 = vmul.f32 %v3189_v29, %v2293_v1  ;;  %v11795_v11 = vmul.f32 0.70710677, %v11778_v45 }
 0x46a   : > { %v2803_v47 = vadd.f32 1.4214138, %v2739_v5  ;;  %v3441_v31 = vmul.f32 %v8458_v37, %v3121_v52  ;;  %8467 = vpow2.f32 %v3345_v12  ;;  %v11799_v33 = vmul.f32 0.70710677, %v11783_v23 }
 0x46b   : > { %v2804_v21 = vadd.f32 1.4214138, %v2740_v6  ;;  %v3442_v32 = vmul.f32 %v8460_v28, %v3122_v41  ;;  %v2228_v14 = vsel %vm2164_vm1, 1.0, %v16063_v3  ;;  %v2295_v37 = vand.u32 2147483647, %v11795_v11 }
 0x46c   : > { %v2867_v30 = vmul.f32 %v11766_v16, %v2803_v47  ;;  %v3505_v13 = vsub.f32 1.0, %v3441_v31  ;;  %v11807_v22 = vmul.f32 0.5, %v11727_v9  ;;  %v3254_v29 = vmul.f32 %v3190_v24, %v2294_v42 }
 0x46d   : > { %v2868_v10 = vmul.f32 %v11769_v18, %v2804_v21  ;;  %v3506_v1 = vsub.f32 1.0, %v3442_v32  ;;  %v3347_v5 = vmul.f32 1.442695, %v3253_v55  ;;  %v2296_v28 = vand.u32 2147483647, %v11799_v33 }
 0x46e   : > { %v2931_v4 = vadd.f32 -0.28449672, %v2867_v30  ;;  %v3569_v12 = vmul.f32 %v3505_v13, %v11721_v15  ;;  %v2359_v6 = vmul.f32 0.3275911, %v2295_v37  ;;  %v1907_v41 = vmul.f32 %v11608_v39, %v11252_v53 }
 0x46f   : > { %v2932_v8 = vadd.f32 -0.28449672, %v2868_v10  ;;  %v3570_v52 = vmul.f32 %v3506_v1, %v11740_v61  ;;  %v11815_v47 = vpop.eup %8461  ;;  %v2360_v42 = vmul.f32 0.3275911, %v2296_v28  ;;  %v3191_v24 = vsub.f32 0.0, %v2295_v37 }
 0x470   : > { %v2995_v0 = vmul.f32 %v11766_v16, %v2931_v4  ;;  %v3633_v31 = vadd.f32 1.0, %v3569_v12  ;;  %v11818_v15 = vpop.eup %8463  ;;  %v2613_v32 = vmul.f32 1.0614054, %v11815_v47  ;;  %v2423_v61 = vadd.f32 1.0, %v2359_v6 }
 0x471   : > { %v2996_v9 = vmul.f32 %v11769_v18, %v2932_v8  ;;  %v3634_v21 = vadd.f32 1.0, %v3570_v52  ;;  %v2614_v10 = vmul.f32 1.0614054, %v11818_v15  ;;  %v2424_v53 = vadd.f32 1.0, %v2360_v42 }
 0x472   : > { %v3059_v55 = vadd.f32 0.2548296, %v2995_v0  ;;  %v3697_v30 = vmul.f32 %v3633_v31, %v11710_v38  ;;  %v8466_v1 = vpop.eup %8465  ;;  %v2677_v8 = vadd.f32 -1.4531521, %v2613_v32  ;;  %8469 = vrcp.f32 %v2423_v61 }
 0x473   : > { %v3060_v13 = vadd.f32 0.2548296, %v2996_v9  ;;  %v3698_v4 = vmul.f32 %v3634_v21, %v11713_v46  ;;  %v2678_v52 = vadd.f32 -1.4531521, %v2614_v10  ;;  %v3349_v0 = vmul.f32 1.442695, %v3254_v29 }
 0x474   : > { %v3123_v12 = vmul.f32 %v11766_v16, %v3059_v55  ;;  %8471 = vrcp.f32 %v2424_v53  ;;  %v8468_v17 = vpop.eup %8467  ;;  %v2741_v38 = vmul.f32 %v11815_v47, %v2677_v8  ;;  %v3192_v31 = vsub.f32 0.0, %v2296_v28 }
 0x475   : > { %v3124_v63 = vmul.f32 %v11769_v18, %v3060_v13  ;;  %v3756_v6 = vpack.c.bf16 %v3698_v4, %v3697_v30  ;;  %v2742_v42 = vmul.f32 %v11818_v15, %v2678_v52  ;;  %v3255_v26 = vmul.f32 %v3191_v24, %v2295_v37 }
 0x476   : > { %v3443_v58 = vmul.f32 %v8466_v1, %v3123_v12  ;;  %v1908_v46 = vmul.f32 %v11608_v39, %v11247_v59  ;;  %vm2165_vm3 = vcmp.ge.f32.partialorder %v11744_v56, 0.0  ;;  %v2805_v18 = vadd.f32 1.4214138, %v2741_v38 }
 0x477   : > { %v3444_v9 = vmul.f32 %v8468_v17, %v3124_v63  ;;  %7946 = vmatmul.mubr.msk.bf16.gmra.mrb[56].mxu1 %vm1033_vm2, %v3756_v6  ;;  %v11833_v29 = vadd.f32 %v11618_v2, %v1907_v41  ;;  %v2806_v55 = vadd.f32 1.4214138, %v2742_v42  ;;  %8473 = vpow2.f32 %v3347_v5 }
 0x478   : > { %v3507_v16 = vsub.f32 1.0, %v3443_v58  ;;  %v11836_v63 = vadd.f32 %v11618_v2, %v1908_v46  ;;  %v2869_v37 = vmul.f32 %v11815_v47, %v2805_v18  ;;  %8475 = vpow2.f32 %v3349_v0 }
 0x479   : > { %v3508_v21 = vsub.f32 1.0, %v3444_v9  ;;  %v3256_v59 = vmul.f32 %v3192_v31, %v2296_v28  ;;  %v2870_v58 = vmul.f32 %v11818_v15, %v2806_v55  ;;  %v3351_v32 = vmul.f32 1.442695, %v3255_v26 }
 0x47a   : > { %v3571_v17 = vmul.f32 %v3507_v16, %v11790_v40  ;;  %v11842_v61 = vmul.f32 0.70710677, %v11833_v29  ;;  %vm2166_vm4 = vcmp.ge.f32.partialorder %v11747_v49, 0.0  ;;  %v2933_v5 = vadd.f32 -0.28449672, %v2869_v37 }
 0x47b   : > { %v3572_v24 = vmul.f32 %v3508_v21, %v2228_v14  ;;  %v11846_v30 = vmul.f32 0.70710677, %v11836_v63  ;;  %v11849_v40 = vmul.f32 0.5, %v11734_v50  ;;  %v2934_v10 = vadd.f32 -0.28449672, %v2870_v58 }
 0x47c   : > { %v3635_v41 = vadd.f32 1.0, %v3571_v17  ;;  %v2297_v14 = vand.u32 2147483647, %v11842_v61  ;;  %v11852_v28 = vpop.eup %8469  ;;  %v2229_v53 = vsel %vm2165_vm3, 1.0, %v16063_v3  ;;  %v2997_v49 = vmul.f32 %v11815_v47, %v2933_v5 }
 0x47d   : > { %v3636_v13 = vadd.f32 1.0, %v3572_v24  ;;  %v3353_v1 = vmul.f32 1.442695, %v3256_v59  ;;  %v2230_v50 = vsel %vm2166_vm4, 1.0, %v16063_v3  ;;  %v2998_v8 = vmul.f32 %v11818_v15, %v2934_v10 }
 0x47e   : > { %v3699_v26 = vmul.f32 %v3635_v41, %v11752_v43  ;;  %v11859_v4 = vpop.eup %8471  ;;  %v2615_v52 = vmul.f32 1.0614054, %v11852_v28  ;;  %v3061_v0 = vadd.f32 0.2548296, %v2997_v49  ;;  %8477 = vpow2.f32 %v3351_v32 }
 0x47f   : > { %v3700_v12 = vmul.f32 %v3636_v13, %v11756_v34  ;;  %v2616_v43 = vmul.f32 1.0614054, %v11859_v4  ;;  %v2298_v56 = vand.u32 2147483647, %v11846_v30  ;;  %v3062_v38 = vadd.f32 0.2548296, %v2998_v8 }
 0x480   : > { %v2679_v31 = vadd.f32 -1.4531521, %v2615_v52  ;;  %v2361_v9 = vmul.f32 0.3275911, %v2297_v14  ;;  %v3125_v42 = vmul.f32 %v11815_v47, %v3061_v0  ;;  %8479 = vpow2.f32 %v3353_v1 }
 0x481   : > { %v3757_v6 = vpack.c.bf16 %v3700_v12, %v3699_v26  ;;  %v2680_v46 = vadd.f32 -1.4531521, %v2616_v43  ;;  %v2362_v34 = vmul.f32 0.3275911, %v2298_v56  ;;  %v8474_v16 = vpop.eup %8473  ;;  %v3126_v18 = vmul.f32 %v11818_v15, %v3062_v38 }
 0x482   : > { %v2743_v21 = vmul.f32 %v11852_v28, %v2679_v31  ;;  %v2425_v55 = vadd.f32 1.0, %v2361_v9  ;;  %v1909_v17 = vmul.f32 %v11608_v39, %v11263_v51  ;;  %v8476_v37 = vpop.eup %8475  ;;  %v3445_v59 = vmul.f32 %v8474_v16, %v3125_v42 }
 0x483   : > { %7949 = vmatprep.mubr.msk.bf16.mxu1 %vm1033_vm2, %v3757_v6  ;;  %v2744_v24 = vmul.f32 %v11859_v4, %v2680_v46  ;;  %v2426_v58 = vadd.f32 1.0, %v2362_v34  ;;  %v1910_v47 = vmul.f32 %v11608_v39, %v11258_v35  ;;  %v3446_v32 = vmul.f32 %v8476_v37, %v3126_v18 }
 0x484   : > { %v11877_v41 = vmul.f32 0.5, %v11778_v45  ;;  %v2807_v5 = vadd.f32 1.4214138, %v2743_v21  ;;  %8481 = vrcp.f32 %v2425_v55  ;;  %v3509_v15 = vsub.f32 1.0, %v3445_v59 }
 0x485   : > { %vm2167_vm5 = vcmp.ge.f32.partialorder %v11795_v11, 0.0  ;;  %v2808_v13 = vadd.f32 1.4214138, %v2744_v24  ;;  %8483 = vrcp.f32 %v2426_v58  ;;  %v3510_v51 = vsub.f32 1.0, %v3446_v32 }
 0x486   : > { %v2871_v10 = vmul.f32 %v11852_v28, %v2807_v5  ;;  %v3193_v26 = vsub.f32 0.0, %v2297_v14  ;;  %v11882_v49 = vadd.f32 %v11618_v2, %v1909_v17  ;;  %v3573_v1 = vmul.f32 %v3509_v15, %v2229_v53 }
 0x487   : > { %v2872_v35 = vmul.f32 %v11859_v4, %v2808_v13  ;;  %v3194_v12 = vsub.f32 0.0, %v2298_v56  ;;  %v11886_v45 = vadd.f32 %v11618_v2, %v1910_v47  ;;  %v3574_v8 = vmul.f32 %v3510_v51, %v2230_v50 }
 0x488   : > { %v11889_v52 = vmul.f32 0.5, %v11783_v23  ;;  %vm2168_vm6 = vcmp.ge.f32.partialorder %v11799_v33, 0.0  ;;  %v2935_v0 = vadd.f32 -0.28449672, %v2871_v10  ;;  %v8478_v43 = vpop.eup %8477  ;;  %v3637_v6 = vadd.f32 1.0, %v3573_v1  ;;  %v16122_v10 = vld [vmem:[#allocation49_spill] sm:$0xff] }
 0x489   : > { %v2231_v38 = vsel %vm2167_vm5, 1.0, %v16063_v3  ;;  %v2936_v53 = vadd.f32 -0.28449672, %v2872_v35  ;;  %v11896_v31 = vmul.f32 0.70710677, %v11882_v49  ;;  %v3638_v9 = vadd.f32 1.0, %v3574_v8 }
 0x48a   : > { %v2999_v42 = vmul.f32 %v11852_v28, %v2935_v0  ;;  %v3257_v50 = vmul.f32 %v3193_v26, %v2297_v14  ;;  %v11900_v23 = vmul.f32 0.70710677, %v11886_v45  ;;  %v8480_v46 = vpop.eup %8479  ;;  %v3701_v34 = vmul.f32 %v3637_v6, %v11807_v22 }
 0x48b   : > { %v3000_v16 = vmul.f32 %v11859_v4, %v2936_v53  ;;  %v3258_v18 = vmul.f32 %v3194_v12, %v2298_v56  ;;  %v11905_v11 = vand.u32 2147483647, %v11896_v31  ;;  %v3702_v21 = vmul.f32 %v3638_v9, %v11849_v40  ;;  %v16123_v12 = vld [vmem:[#allocation46_spill] sm:$0xff] }
 0x48c   : > { %v2232_v55 = vsel %vm2168_vm6, 1.0, %v16063_v3  ;;  %v3063_v17 = vadd.f32 0.2548296, %v2999_v42  ;;  %v11912_v14 = vmul.f32 0.5, %v11833_v29  ;;  %v11915_v59 = vmul.f32 0.5, %v11836_v63 }
 0x48d   : > { %v3064_v37 = vadd.f32 0.2548296, %v3000_v16  ;;  %vm2169_vm7 = vcmp.ge.f32.partialorder %v11842_v61, 0.0  ;;  %v11919_v22 = vand.u32 2147483647, %v11900_v23  ;;  %v3758_v40 = vpack.c.bf16 %v3702_v21, %v3701_v34 }
 0x48e   : > { %v11921_v56 = vpop.eup %8481  ;;  %v3127_v24 = vmul.f32 %v11852_v28, %v3063_v17  ;;  %v3355_v33 = vmul.f32 1.442695, %v3257_v50  ;;  %v2363_v58 = vmul.f32 0.3275911, %v11905_v11  ;;  %v3357_v32 = vmul.f32 1.442695, %v3258_v18 }
 0x48f   : > { %v11925_v47 = vpop.eup %8483  ;;  %v3128_v29 = vmul.f32 %v11859_v4, %v3064_v37  ;;  %v2617_v63 = vmul.f32 1.0614054, %v11921_v56  ;;  %v2364_v5 = vmul.f32 0.3275911, %v11919_v22  ;;  %7950 = vmatmul.mubr.msk.bf16.gmra.mrb[60].mxu1 %vm1033_vm2, %v3758_v40  ;;  %v1911_v28 = vmul.f32 %v11608_v39, %v16122_v10 }
 0x490   : > { %v3447_v15 = vmul.f32 %v8478_v43, %v3127_v24  ;;  %v2618_v13 = vmul.f32 1.0614054, %v11925_v47  ;;  %v2427_v51 = vadd.f32 1.0, %v2363_v58  ;;  %v1912_v4 = vmul.f32 %v11608_v39, %v16123_v12 }
 0x491   : > { %v3448_v26 = vmul.f32 %v8480_v46, %v3128_v29  ;;  %v2681_v1 = vadd.f32 -1.4531521, %v2617_v63  ;;  %v2428_v35 = vadd.f32 1.0, %v2364_v5  ;;  %vm2170_vm8 = vcmp.ge.f32.partialorder %v11846_v30, 0.0 }
 0x492   : > { %v3511_v8 = vsub.f32 1.0, %v3447_v15  ;;  %v2682_v0 = vadd.f32 -1.4531521, %v2618_v13  ;;  %8485 = vrcp.f32 %v2427_v51  ;;  %v11940_v43 = vsel %vm2169_vm7, 1.0, %v16063_v3 }
 0x493   : > { %v3512_v6 = vsub.f32 1.0, %v3448_v26  ;;  %v2745_v53 = vmul.f32 %v11921_v56, %v2681_v1  ;;  %8487 = vrcp.f32 %v2428_v35  ;;  %v11945_v50 = vadd.f32 %v11618_v2, %v1911_v28 }
 0x494   : > { %v3575_v9 = vmul.f32 %v3511_v8, %v2231_v38  ;;  %v2746_v42 = vmul.f32 %v11925_v47, %v2682_v0  ;;  %8489 = vpow2.f32 %v3355_v33  ;;  %v11948_v16 = vadd.f32 %v11618_v2, %v1912_v4 }
 0x495   : > { %v3576_v46 = vmul.f32 %v3512_v6, %v2232_v55  ;;  %v2809_v34 = vadd.f32 1.4214138, %v2745_v53  ;;  %8491 = vpow2.f32 %v3357_v32  ;;  %vm2171_vm9 = vcmp.ge.f32.partialorder %v11896_v31, 0.0 }
 0x496   : > { %v3639_v18 = vadd.f32 1.0, %v3575_v9  ;;  %v2810_v61 = vadd.f32 1.4214138, %v2746_v42  ;;  %v11952_v21 = vmul.f32 0.70710677, %v11945_v50  ;;  %v3195_v37 = vsub.f32 0.0, %v11905_v11 }
 0x497   : > { %v3640_v38 = vadd.f32 1.0, %v3576_v46  ;;  %v2873_v17 = vmul.f32 %v11921_v56, %v2809_v34  ;;  %v11957_v40 = vmul.f32 0.70710677, %v11948_v16  ;;  %v3196_v33 = vsub.f32 0.0, %v11919_v22  ;;  %v16124_v42 = vld [vmem:[#allocation48_spill] sm:$0xff] }
 0x498   : > { %v3703_v55 = vmul.f32 %v3639_v18, %v11877_v41  ;;  %v2874_v24 = vmul.f32 %v11925_v47, %v2810_v61  ;;  %v2301_v58 = vand.u32 2147483647, %v11952_v21  ;;  %v2234_v63 = vsel %vm2170_vm8, 1.0, %v16063_v3 }
 0x499   : > { %v3704_v29 = vmul.f32 %v3640_v38, %v11889_v52  ;;  %v2937_v32 = vadd.f32 -0.28449672, %v2873_v17  ;;  %v11968_v5 = vmul.f32 0.5, %v11882_v49  ;;  %v11971_v13 = vmul.f32 0.5, %v11886_v45 }
 0x49a   : > { %v2938_v15 = vadd.f32 -0.28449672, %v2874_v24  ;;  %v11976_v41 = vsel %vm2171_vm9, 1.0, %v16063_v3  ;;  %v2302_v51 = vand.u32 2147483647, %v11957_v40  ;;  %vm2172_vm10 = vcmp.ge.f32.partialorder %v11900_v23, 0.0 }
 0x49b   : > { %v3759_v52 = vpack.c.bf16 %v3704_v29, %v3703_v55  ;;  %v3001_v10 = vmul.f32 %v11921_v56, %v2937_v32  ;;  %v3259_v30 = vmul.f32 %v3195_v37, %v11905_v11  ;;  %v2365_v49 = vmul.f32 0.3275911, %v2301_v58 }
 0x49c   : > { %v11982_v28 = vpop.eup %8485  ;;  %v3002_v45 = vmul.f32 %v11925_v47, %v2938_v15  ;;  %v3260_v26 = vmul.f32 %v3196_v33, %v11919_v22  ;;  %v2366_v1 = vmul.f32 0.3275911, %v2302_v51  ;;  %v3197_v31 = vsub.f32 0.0, %v2301_v58 }
 0x49d   : > { %v11986_v35 = vpop.eup %8487  ;;  %7953 = vmatprep.mubr.msk.bf16.mxu1 %vm1033_vm2, %v3759_v52  ;;  %v3065_v12 = vadd.f32 0.2548296, %v3001_v10  ;;  %v2619_v4 = vmul.f32 1.0614054, %v11982_v28  ;;  %v2429_v8 = vadd.f32 1.0, %v2365_v49  ;;  %v1913_v11 = vmul.f32 %v11608_v39, %v11388_v60 }
 0x49e   : > { %v8490_v0 = vpop.eup %8489  ;;  %v3066_v6 = vadd.f32 0.2548296, %v3002_v45  ;;  %v2620_v53 = vmul.f32 1.0614054, %v11986_v35  ;;  %v2430_v9 = vadd.f32 1.0, %v2366_v1  ;;  %v1914_v22 = vmul.f32 %v11608_v39, %v16124_v42 }
 0x49f   : > { %v8492_v46 = vpop.eup %8491  ;;  %v3129_v34 = vmul.f32 %v11921_v56, %v3065_v12  ;;  %v2683_v18 = vadd.f32 -1.4531521, %v2619_v4  ;;  %v3359_v61 = vmul.f32 1.442695, %v3259_v30  ;;  %8493 = vrcp.f32 %v2429_v8 }
 0x4a0   : > { %v3130_v38 = vmul.f32 %v11925_v47, %v3066_v6  ;;  %v2684_v17 = vadd.f32 -1.4531521, %v2620_v53  ;;  %v3361_v37 = vmul.f32 1.442695, %v3260_v26  ;;  %8495 = vrcp.f32 %v2430_v9 }
 0x4a1   : > { %v3449_v60 = vmul.f32 %v8490_v0, %v3129_v34  ;;  %v2747_v55 = vmul.f32 %v11982_v28, %v2683_v18  ;;  %v3198_v24 = vsub.f32 0.0, %v2302_v51  ;;  %v11999_v33 = vadd.f32 %v11618_v2, %v1913_v11 }
 0x4a2   : > { %v3450_v29 = vmul.f32 %v8492_v46, %v3130_v38  ;;  %v2748_v32 = vmul.f32 %v11986_v35, %v2684_v17  ;;  %v3261_v15 = vmul.f32 %v3197_v31, %v2301_v58  ;;  %v12003_v56 = vadd.f32 %v11618_v2, %v1914_v22 }
 0x4a3   : > { %v3513_v52 = vsub.f32 1.0, %v3449_v60  ;;  %v2811_v10 = vadd.f32 1.4214138, %v2747_v55  ;;  %8497 = vpow2.f32 %v3359_v61  ;;  %v12006_v47 = vmul.f32 0.70710677, %v11999_v33 }
 0x4a4   : > { %v3514_v30 = vsub.f32 1.0, %v3450_v29  ;;  %v2812_v49 = vadd.f32 1.4214138, %v2748_v32  ;;  %8499 = vpow2.f32 %v3361_v37  ;;  %v12009_v45 = vmul.f32 0.70710677, %v12003_v56 }
 0x4a5   : > { %v3577_v26 = vmul.f32 %v3513_v52, %v11940_v43  ;;  %v2875_v1 = vmul.f32 %v11982_v28, %v2811_v10  ;;  %v3262_v58 = vmul.f32 %v3198_v24, %v2302_v51  ;;  %v2303_v31 = vand.u32 2147483647, %v12006_v47 }
 0x4a6   : > { %v3578_v12 = vmul.f32 %v3514_v30, %v2234_v63  ;;  %v2236_v4 = vsel %vm2172_vm10, 1.0, %v16063_v3  ;;  %v2876_v8 = vmul.f32 %v11986_v35, %v2812_v49  ;;  %v3363_v11 = vmul.f32 1.442695, %v3261_v15 }
 0x4a7   : > { %v3641_v0 = vadd.f32 1.0, %v3577_v26  ;;  %v2939_v6 = vadd.f32 -0.28449672, %v2875_v1  ;;  %v12019_v53 = vmul.f32 0.5, %v11945_v50  ;;  %v2304_v43 = vand.u32 2147483647, %v12009_v45 }
 0x4a8   : > { %v3642_v9 = vadd.f32 1.0, %v3578_v12  ;;  %v2940_v42 = vadd.f32 -0.28449672, %v2876_v8  ;;  %v12023_v51 = vmul.f32 0.5, %v11948_v16  ;;  %v2367_v63 = vmul.f32 0.3275911, %v2303_v31 }
 0x4a9   : > { %v12025_v22 = vpop.eup %8493  ;;  %v3705_v23 = vmul.f32 %v3641_v0, %v11912_v14  ;;  %v3003_v46 = vmul.f32 %v11982_v28, %v2939_v6  ;;  %v3365_v34 = vmul.f32 1.442695, %v3262_v58  ;;  %v2368_v18 = vmul.f32 0.3275911, %v2304_v43 }
 0x4aa   : > { %v12029_v61 = vpop.eup %8495  ;;  %v3706_v50 = vmul.f32 %v3642_v9, %v11915_v59  ;;  %v3004_v38 = vmul.f32 %v11986_v35, %v2940_v42  ;;  %v2621_v17 = vmul.f32 1.0614054, %v12025_v22  ;;  %v2431_v37 = vadd.f32 1.0, %v2367_v63 }
 0x4ab   : > { %v3067_v16 = vadd.f32 0.2548296, %v3003_v46  ;;  %vm2173_vm11 = vcmp.ge.f32.partialorder %v11952_v21, 0.0  ;;  %v2622_v60 = vmul.f32 1.0614054, %v12029_v61  ;;  %v2432_v55 = vadd.f32 1.0, %v2368_v18 }
 0x4ac   : > { %v3760_v14 = vpack.c.bf16 %v3706_v50, %v3705_v23  ;;  %v3068_v24 = vadd.f32 0.2548296, %v3004_v38  ;;  %v2685_v29 = vadd.f32 -1.4531521, %v2621_v17  ;;  %8501 = vrcp.f32 %v2431_v37 }
 0x4ad   : > { %v8498_v32 = vpop.eup %8497  ;;  %v3131_v15 = vmul.f32 %v11982_v28, %v3067_v16  ;;  %vm2174_vm12 = vcmp.ge.f32.partialorder %v11957_v40, 0.0  ;;  %v2686_v59 = vadd.f32 -1.4531521, %v2622_v60  ;;  %8503 = vrcp.f32 %v2432_v55 }
 0x4ae   : > { %v8500_v52 = vpop.eup %8499  ;;  %7954 = vmatmul.mubr.msk.bf16.gmra.mrb[64].mxu1 %vm1033_vm2, %v3760_v14  ;;  %v3132_v10 = vmul.f32 %v11986_v35, %v3068_v24  ;;  %v2749_v30 = vmul.f32 %v12025_v22, %v2685_v29  ;;  %v3199_v49 = vsub.f32 0.0, %v2303_v31  ;;  %v1915_v26 = vmul.f32 %v11608_v39, %v11394_v7 }
 0x4af   : > { %v3451_v1 = vmul.f32 %v8498_v32, %v3131_v15  ;;  %v2750_v58 = vmul.f32 %v12029_v61, %v2686_v59  ;;  %8505 = vpow2.f32 %v3363_v11  ;;  %v1916_v28 = vmul.f32 %v11608_v39, %v11391_v27 }
 0x4b0   : > { %v3452_v12 = vmul.f32 %v8500_v52, %v3132_v10  ;;  %v2813_v8 = vadd.f32 1.4214138, %v2749_v30  ;;  %8507 = vpow2.f32 %v3365_v34  ;;  %v12047_v0 = vadd.f32 %v11618_v2, %v1915_v26 }
 0x4b1   : > { %v3515_v35 = vsub.f32 1.0, %v3451_v1  ;;  %v2814_v6 = vadd.f32 1.4214138, %v2750_v58  ;;  %v3200_v9 = vsub.f32 0.0, %v2304_v43  ;;  %v12050_v42 = vadd.f32 %v11618_v2, %v1916_v28 }
 0x4b2   : > { %v3516_v7 = vsub.f32 1.0, %v3452_v12  ;;  %v2877_v63 = vmul.f32 %v12025_v22, %v2813_v8  ;;  %v3263_v23 = vmul.f32 %v3199_v49, %v2303_v31  ;;  %v12054_v11 = vmul.f32 0.70710677, %v12047_v0 }
 0x4b3   : > { %v3579_v27 = vmul.f32 %v3515_v35, %v11976_v41  ;;  %v2237_v39 = vsel %vm2173_vm11, 1.0, %v16063_v3  ;;  %v2878_v46 = vmul.f32 %v12029_v61, %v2814_v6  ;;  %v12062_v34 = vmul.f32 0.70710677, %v12050_v42 }
 0x4b4   : > { %v3580_v2 = vmul.f32 %v3516_v7, %v2236_v4  ;;  %v2238_v18 = vsel %vm2174_vm12, 1.0, %v16063_v3  ;;  %v2941_v31 = vadd.f32 -0.28449672, %v2877_v63  ;;  %v2305_v50 = vand.u32 2147483647, %v12054_v11 }
 0x4b5   : > { %v3643_v38 = vadd.f32 1.0, %v3579_v27  ;;  %v2942_v17 = vadd.f32 -0.28449672, %v2878_v46  ;;  %v12069_v41 = vmul.f32 0.5, %v11999_v33  ;;  %v3264_v21 = vmul.f32 %v3200_v9, %v2304_v43 }
 0x4b6   : > { %v12071_v37 = vpop.eup %8501  ;;  %v3644_v16 = vadd.f32 1.0, %v3580_v2  ;;  %v3005_v60 = vmul.f32 %v12025_v22, %v2941_v31  ;;  %v3367_v55 = vmul.f32 1.442695, %v3263_v23  ;;  %v12075_v4 = vand.u32 2147483647, %v12062_v34 }
 0x4b7   : > { %v12077_v40 = vpop.eup %8503  ;;  %v3707_v14 = vmul.f32 %v3643_v38, %v11968_v5  ;;  %v3006_v24 = vmul.f32 %v12029_v61, %v2942_v17  ;;  %v2623_v29 = vmul.f32 1.0614054, %v12071_v37  ;;  %v2369_v33 = vmul.f32 0.3275911, %v2305_v50  ;;  %v12101_v38 = vld [vmem:[#allocation10] ss:$0 sm:$0xff] }
 0x4b8   : > { %v3708_v43 = vmul.f32 %v3644_v16, %v11971_v13  ;;  %v3069_v32 = vadd.f32 0.2548296, %v3005_v60  ;;  %v2624_v15 = vmul.f32 1.0614054, %v12077_v40  ;;  %v2370_v59 = vmul.f32 0.3275911, %v12075_v4 }
 0x4b9   : > { %v8506_v52 = vpop.eup %8505  ;;  %v3070_v10 = vadd.f32 0.2548296, %v3006_v24  ;;  %v12086_v30 = vmul.f32 0.5, %v12003_v56  ;;  %v2687_v49 = vadd.f32 -1.4531521, %v2623_v29  ;;  %v2433_v26 = vadd.f32 1.0, %v2369_v33 }
 0x4ba   : > { %v8508_v5 = vpop.eup %8507  ;;  %v3761_v1 = vpack.c.bf16 %v3708_v43, %v3707_v14  ;;  %v3133_v58 = vmul.f32 %v12025_v22, %v3069_v32  ;;  %v2688_v28 = vadd.f32 -1.4531521, %v2624_v15  ;;  %v2434_v12 = vadd.f32 1.0, %v2370_v59  ;;  %v12094_v22 = vld [vmem:[#allocation8] ss:$0 sm:$0xff] }
 0x4bb   : > { %v3134_v13 = vmul.f32 %v12029_v61, %v3070_v10  ;;  %v2751_v8 = vmul.f32 %v12071_v37, %v2687_v49  ;;  %v3369_v35 = vmul.f32 1.442695, %v3264_v21  ;;  %8509 = vrcp.f32 %v2433_v26 }
 0x4bc   : > { %7957 = vmatprep.mubr.msk.bf16.mxu1 %vm1033_vm2, %v3761_v1  ;;  %v3453_v6 = vmul.f32 %v8506_v52, %v3133_v58  ;;  %vm2175_vm13 = vcmp.ge.f32.partialorder %v12006_v47, 0.0  ;;  %v2752_v56 = vmul.f32 %v12077_v40, %v2688_v28  ;;  %8511 = vrcp.f32 %v2434_v12 }
 0x4bd   : > { %v3454_v9 = vmul.f32 %v8508_v5, %v3134_v13  ;;  %v2815_v7 = vadd.f32 1.4214138, %v2751_v8  ;;  %8513 = vpow2.f32 %v3367_v55  ;;  %v1917_v61 = vmul.f32 %v12094_v22, %v11401_v20 }
 0x4be   : > { %v3517_v63 = vsub.f32 1.0, %v3453_v6  ;;  %v2816_v23 = vadd.f32 1.4214138, %v2752_v56  ;;  %v3201_v27 = vsub.f32 0.0, %v2305_v50  ;;  %v1918_v46 = vmul.f32 %v12094_v22, %v11398_v57 }
 0x4bf   : > { %v3518_v2 = vsub.f32 1.0, %v3454_v9  ;;  %v2879_v31 = vmul.f32 %v12071_v37, %v2815_v7  ;;  %8515 = vpow2.f32 %v3369_v35  ;;  %v12104_v17 = vadd.f32 %v12101_v38, %v1917_v61 }
 0x4c0   : > { %v3581_v21 = vmul.f32 %v3517_v63, %v2237_v39  ;;  %vm2176_vm14 = vcmp.ge.f32.partialorder %v12009_v45, 0.0  ;;  %v2880_v20 = vmul.f32 %v12077_v40, %v2816_v23  ;;  %v12109_v16 = vadd.f32 %v12101_v38, %v1918_v46 }
 0x4c1   : > { %v3582_v60 = vmul.f32 %v3518_v2, %v2238_v18  ;;  %v2239_v57 = vsel %vm2175_vm13, 1.0, %v16063_v3  ;;  %v2943_v55 = vadd.f32 -0.28449672, %v2879_v31  ;;  %v3202_v14 = vsub.f32 0.0, %v12075_v4 }
 0x4c2   : > { %v3645_v24 = vadd.f32 1.0, %v3581_v21  ;;  %v2944_v29 = vadd.f32 -0.28449672, %v2880_v20  ;;  %v3265_v33 = vmul.f32 %v3201_v27, %v2305_v50  ;;  %v12116_v39 = vmul.f32 0.70710677, %v12104_v17 }
 0x4c3   : > { %v3646_v45 = vadd.f32 1.0, %v3582_v60  ;;  %v2240_v43 = vsel %vm2176_vm14, 1.0, %v16063_v3  ;;  %v3007_v32 = vmul.f32 %v12071_v37, %v2943_v55  ;;  %v12121_v18 = vmul.f32 0.70710677, %v12109_v16 }
 0x4c4   : > { %v3709_v47 = vmul.f32 %v3645_v24, %v12019_v53  ;;  %v3008_v15 = vmul.f32 %v12077_v40, %v2944_v29  ;;  %v12126_v59 = vmul.f32 0.5, %v12047_v0  ;;  %v12129_v50 = vand.u32 2147483647, %v12116_v39 }
 0x4c5   : > { %v12131_v52 = vpop.eup %8509  ;;  %v3710_v10 = vmul.f32 %v3646_v45, %v12023_v51  ;;  %v3071_v49 = vadd.f32 0.2548296, %v3007_v32  ;;  %v12135_v26 = vmul.f32 0.5, %v12050_v42  ;;  %v3266_v5 = vmul.f32 %v3202_v14, %v12075_v4 }
 0x4c6   : > { %v12138_v1 = vpop.eup %8511  ;;  %8517 = vrsqrt.f32 %v11696_v25  ;;  %v3072_v53 = vadd.f32 0.2548296, %v3008_v15  ;;  %v2625_v0 = vmul.f32 1.0614054, %v12131_v52  ;;  %v3371_v58 = vmul.f32 1.442695, %v3265_v33 }
 0x4c7   : > { %v8514_v28 = vpop.eup %8513  ;;  %v3762_v12 = vpack.c.bf16 %v3710_v10, %v3709_v47  ;;  %v3135_v13 = vmul.f32 %v12071_v37, %v3071_v49  ;;  %v2626_v51 = vmul.f32 1.0614054, %v12138_v1  ;;  %v12145_v8 = vand.u32 2147483647, %v12121_v18 }
 0x4c8   : > { %v3136_v42 = vmul.f32 %v12077_v40, %v3072_v53  ;;  %vm2177_vm15 = vcmp.ge.f32.partialorder %v12054_v11, 0.0  ;;  %v2689_v4 = vadd.f32 -1.4531521, %v2625_v0  ;;  %v2371_v25 = vmul.f32 0.3275911, %v12129_v50 }
 0x4c9   : > { %v8516_v35 = vpop.eup %8515  ;;  %7958 = vmatmul.mubr.msk.bf16.gmra.mrb[68].mxu1 %vm1033_vm2, %v3762_v12  ;;  %v3455_v6 = vmul.f32 %v8514_v28, %v3135_v13  ;;  %v2690_v56 = vadd.f32 -1.4531521, %v2626_v51  ;;  %v3373_v9 = vmul.f32 1.442695, %v3266_v5  ;;  %v2372_v37 = vmul.f32 0.3275911, %v12145_v8 }
 0x4ca   : > { %v3456_v7 = vmul.f32 %v8516_v35, %v3136_v42  ;;  %v2753_v61 = vmul.f32 %v12131_v52, %v2689_v4  ;;  %v2435_v63 = vadd.f32 1.0, %v2371_v25  ;;  %v1919_v40 = vmul.f32 %v12094_v22, %v11495_v19 }
 0x4cb   : > { %v3519_v23 = vsub.f32 1.0, %v3455_v6  ;;  %v2754_v27 = vmul.f32 %v12138_v1, %v2690_v56  ;;  %8519 = vpow2.f32 %v3371_v58  ;;  %v2436_v46 = vadd.f32 1.0, %v2372_v37 }
 0x4cc   : > { %v3520_v2 = vsub.f32 1.0, %v3456_v7  ;;  %v2817_v31 = vadd.f32 1.4214138, %v2753_v61  ;;  %8521 = vrcp.f32 %v2435_v63  ;;  %v1920_v21 = vmul.f32 %v12094_v22, %v11406_v62  ;;  %v16125_v63 = vld [vmem:[#allocation50_spill] sm:$0xff] }
 0x4cd   : > { %v3583_v20 = vmul.f32 %v3519_v23, %v2239_v57  ;;  %vm2178_vm0 = vcmp.ge.f32.partialorder %v12062_v34, 0.0  ;;  %v2818_v60 = vadd.f32 1.4214138, %v2754_v27  ;;  %8523 = vrcp.f32 %v2436_v46 }
 0x4ce   : > { %v3584_v55 = vmul.f32 %v3520_v2, %v2240_v43  ;;  %v2881_v14 = vmul.f32 %v12131_v52, %v2817_v31  ;;  %8525 = vpow2.f32 %v3373_v9  ;;  %v12161_v19 = vadd.f32 %v12101_v38, %v1919_v40 }
 0x4cf   : > { %v3647_v24 = vadd.f32 1.0, %v3583_v20  ;;  %v2241_v29 = vsel %vm2177_vm15, 1.0, %v16063_v3  ;;  %v2882_v33 = vmul.f32 %v12138_v1, %v2818_v60  ;;  %v12168_v62 = vadd.f32 %v12101_v38, %v1920_v21 }
 0x4d0   : > { %v12170_v57 = vpop.eup %8517  ;;  %v3648_v45 = vadd.f32 1.0, %v3584_v55  ;;  %v2945_v43 = vadd.f32 -0.28449672, %v2881_v14  ;;  %v3203_v32 = vsub.f32 0.0, %v12129_v50  ;;  %v12174_v47 = vmul.f32 0.70710677, %v12161_v19 }
 0x4d1   : > { %v3711_v15 = vmul.f32 %v3647_v24, %v12069_v41  ;;  %v2242_v11 = vsel %vm2178_vm0, 1.0, %v16063_v3  ;;  %v2946_v10 = vadd.f32 -0.28449672, %v2882_v33  ;;  %v12181_v49 = vmul.f32 0.70710677, %v12168_v62 }
 0x4d2   : > { %v3712_v5 = vmul.f32 %v3648_v45, %v12086_v30  ;;  %v3009_v53 = vmul.f32 %v12131_v52, %v2945_v43  ;;  %v3204_v0 = vsub.f32 0.0, %v12145_v8  ;;  %v2309_v58 = vand.u32 2147483647, %v12174_v47 }
 0x4d3   : > { %v3010_v28 = vmul.f32 %v12138_v1, %v2946_v10  ;;  %v12189_v41 = vmul.f32 0.5, %v12104_v17  ;;  %v12192_v34 = vmul.f32 0.5, %v12109_v16  ;;  %v12195_v12 = vand.u32 2147483647, %v12181_v49 }
 0x4d4   : > { %v3763_v13 = vpack.c.bf16 %v3712_v5, %v3711_v15  ;;  %v3073_v51 = vadd.f32 0.2548296, %v3009_v53  ;;  %v3267_v30 = vmul.f32 %v3203_v32, %v12129_v50  ;;  %v2373_v42 = vmul.f32 0.3275911, %v2309_v58 }
 0x4d5   : > { %v8520_v4 = vpop.eup %8519  ;;  %v3074_v25 = vadd.f32 0.2548296, %v3010_v28  ;;  %vm2179_vm1 = vcmp.ge.f32.partialorder %v12116_v39, 0.0  ;;  %vm2180_vm3 = vcmp.ge.f32.partialorder %v12121_v18, 0.0  ;;  %v2374_v17 = vmul.f32 0.3275911, %v12195_v12 }
 0x4d6   : > { %v12201_v35 = vpop.eup %8521  ;;  %7961 = vmatprep.mubr.msk.bf16.mxu1 %vm1033_vm2, %v3763_v13  ;;  %v3137_v16 = vmul.f32 %v12131_v52, %v3073_v51  ;;  %v3268_v6 = vmul.f32 %v3204_v0, %v12145_v8  ;;  %v2437_v56 = vadd.f32 1.0, %v2373_v42  ;;  %v1921_v50 = vmul.f32 %v12094_v22, %v11511_v54 }
 0x4d7   : > { %v12208_v9 = vpop.eup %8523  ;;  %v3138_v37 = vmul.f32 %v12138_v1, %v3074_v25  ;;  %v2627_v7 = vmul.f32 1.0614054, %v12201_v35  ;;  %v2438_v61 = vadd.f32 1.0, %v2374_v17  ;;  %v1922_v40 = vmul.f32 %v12094_v22, %v16125_v63 }
 0x4d8   : > { %v8526_v23 = vpop.eup %8525  ;;  %v3457_v27 = vmul.f32 %v8520_v4, %v3137_v16  ;;  %v2628_v52 = vmul.f32 1.0614054, %v12208_v9  ;;  %v3375_v46 = vmul.f32 1.442695, %v3267_v30  ;;  %8527 = vrcp.f32 %v2437_v56 }
 0x4d9   : > { %v3458_v8 = vmul.f32 %v8526_v23, %v3138_v37  ;;  %v12218_v54 = vsel %vm2179_vm1, 1.0, %v16063_v3  ;;  %v2691_v2 = vadd.f32 -1.4531521, %v2627_v7  ;;  %8529 = vrcp.f32 %v2438_v61 }
 0x4da   : > { %v3521_v1 = vsub.f32 1.0, %v3457_v27  ;;  %v2692_v31 = vadd.f32 -1.4531521, %v2628_v52  ;;  %v3205_v21 = vsub.f32 0.0, %v2309_v58  ;;  %v12221_v20 = vadd.f32 %v12101_v38, %v1921_v50 }
 0x4db   : > { %v3522_v60 = vsub.f32 1.0, %v3458_v8  ;;  %v2755_v55 = vmul.f32 %v12201_v35, %v2691_v2  ;;  %v3377_v14 = vmul.f32 1.442695, %v3268_v6  ;;  %v12225_v24 = vadd.f32 %v12101_v38, %v1922_v40  ;;  %v16126_v40 = vld [vmem:[#allocation51_spill] sm:$0xff] }
 0x4dc   : > { %v3585_v33 = vmul.f32 %v3521_v1, %v2241_v29  ;;  %v12230_v39 = vsel %vm2180_vm3, 1.0, %v16063_v3  ;;  %v2756_v45 = vmul.f32 %v12208_v9, %v2692_v31  ;;  %8531 = vpow2.f32 %v3375_v46  ;;  %v16127_v46 = vld [vmem:[#allocation47_spill] sm:$0xff] }
 0x4dd   : > { %v3586_v43 = vmul.f32 %v3522_v60, %v2242_v11  ;;  %v2819_v32 = vadd.f32 1.4214138, %v2755_v55  ;;  %v3206_v15 = vsub.f32 0.0, %v12195_v12  ;;  %v12235_v10 = vmul.f32 0.70710677, %v12221_v20 }
 0x4de   : > { %v3649_v5 = vadd.f32 1.0, %v3585_v33  ;;  %v2820_v53 = vadd.f32 1.4214138, %v2756_v45  ;;  %v3269_v0 = vmul.f32 %v3205_v21, %v2309_v58  ;;  %v12238_v29 = vmul.f32 0.70710677, %v12225_v24 }
 0x4df   : > { %v3650_v28 = vadd.f32 1.0, %v3586_v43  ;;  %v2883_v18 = vmul.f32 %v12201_v35, %v2819_v32  ;;  %8533 = vpow2.f32 %v3377_v14  ;;  %v2311_v13 = vand.u32 2147483647, %v12235_v10 }
 0x4e0   : > { %v3713_v11 = vmul.f32 %v3649_v5, %v12126_v59  ;;  %v2884_v51 = vmul.f32 %v12208_v9, %v2820_v53  ;;  %v12245_v30 = vmul.f32 0.5, %v12161_v19  ;;  %v12248_v42 = vmul.f32 0.5, %v12168_v62 }
 0x4e1   : > { %v3714_v58 = vmul.f32 %v3650_v28, %v12135_v26  ;;  %v2947_v4 = vadd.f32 -0.28449672, %v2883_v18  ;;  %vm2181_vm4 = vcmp.ge.f32.partialorder %v12174_v47, 0.0  ;;  %v12253_v25 = vand.u32 2147483647, %v12238_v29  ;;  %v12295_v47 = vpop.f32.mrb[32].mxu1 }
 0x4e2   : > { %v12255_v17 = vpop.eup %8527  ;;  %v2948_v16 = vadd.f32 -0.28449672, %v2884_v51  ;;  %v3270_v59 = vmul.f32 %v3206_v15, %v12195_v12  ;;  %v3379_v6 = vmul.f32 1.442695, %v3269_v0  ;;  %v2375_v56 = vmul.f32 0.3275911, %v2311_v13 }
 0x4e3   : > { %v12258_v19 = vpop.eup %8529  ;;  %v3764_v50 = vpack.c.bf16 %v3714_v58, %v3713_v11  ;;  %v3011_v62 = vmul.f32 %v12201_v35, %v2947_v4  ;;  %v2629_v26 = vmul.f32 1.0614054, %v12255_v17  ;;  %v2376_v37 = vmul.f32 0.3275911, %v12253_v25 }
 0x4e4   : > { %v3012_v7 = vmul.f32 %v12208_v9, %v2948_v16  ;;  %v2630_v61 = vmul.f32 1.0614054, %v12258_v19  ;;  %v2439_v63 = vadd.f32 1.0, %v2375_v56  ;;  %v1923_v23 = vmul.f32 %v12094_v22, %v16126_v40 }
 0x4e5   : > { %7962 = vmatmul.mubr.msk.bf16.gmra.mrb[72].mxu1 %vm1033_vm2, %v3764_v50  ;;  %v3075_v12 = vadd.f32 0.2548296, %v3011_v62  ;;  %v2693_v27 = vadd.f32 -1.4531521, %v2629_v26  ;;  %v2440_v52 = vadd.f32 1.0, %v2376_v37  ;;  %v1924_v8 = vmul.f32 %v12094_v22, %v16127_v46  ;;  %v12306_v26 = vpop.f32.mrb[33].mxu1 }
 0x4e6   : > { %v8532_v2 = vpop.eup %8531  ;;  %v3076_v1 = vadd.f32 0.2548296, %v3012_v7  ;;  %v2694_v31 = vadd.f32 -1.4531521, %v2630_v61  ;;  %v3381_v21 = vmul.f32 1.442695, %v3270_v59  ;;  %8535 = vrcp.f32 %v2439_v63 }
 0x4e7   : > { %v3139_v60 = vmul.f32 %v12201_v35, %v3075_v12  ;;  %vm2182_vm5 = vcmp.ge.f32.partialorder %v12181_v49, 0.0  ;;  %v2757_v55 = vmul.f32 %v12255_v17, %v2693_v27  ;;  %8537 = vrcp.f32 %v2440_v52 }
 0x4e8   : > { %v3140_v14 = vmul.f32 %v12208_v9, %v3076_v1  ;;  %v2758_v33 = vmul.f32 %v12258_v19, %v2694_v31  ;;  %v3207_v45 = vsub.f32 0.0, %v2311_v13  ;;  %v12276_v43 = vadd.f32 %v12101_v38, %v1923_v23 }
 0x4e9   : > { %v8534_v32 = vpop.eup %8533  ;;  %v3459_v15 = vmul.f32 %v8532_v2, %v3139_v60  ;;  %v2821_v5 = vadd.f32 1.4214138, %v2757_v55  ;;  %8539 = vpow2.f32 %v3379_v6  ;;  %v12279_v53 = vadd.f32 %v12101_v38, %v1924_v8 }
 0x4ea   : > { %v3460_v35 = vmul.f32 %v8534_v32, %v3140_v14  ;;  %v12284_v0 = vsel %vm2181_vm4, 1.0, %v16063_v3  ;;  %v2822_v9 = vadd.f32 1.4214138, %v2758_v33  ;;  %8541 = vpow2.f32 %v3381_v21 }
 0x4eb   : > { %v3523_v28 = vsub.f32 1.0, %v3459_v15  ;;  %v2885_v18 = vmul.f32 %v12255_v17, %v2821_v5  ;;  %v3208_v11 = vsub.f32 0.0, %v12253_v25  ;;  %v12289_v51 = vmul.f32 0.70710677, %v12276_v43 }
 0x4ec   : > { %v3524_v58 = vsub.f32 1.0, %v3460_v35  ;;  %v2886_v4 = vmul.f32 %v12258_v19, %v2822_v9  ;;  %v3271_v16 = vmul.f32 %v3207_v45, %v2311_v13  ;;  %v12293_v59 = vmul.f32 0.70710677, %v12279_v53 }
 0x4ed   : > { %v3587_v6 = vmul.f32 %v3523_v28, %v12218_v54  ;;  %v12301_v56 = vsel %vm2182_vm5, 1.0, %v16063_v3  ;;  %v2949_v50 = vadd.f32 -0.28449672, %v2885_v18  ;;  %v12304_v62 = vand.u32 2147483647, %v12289_v51  ;;  %v12315_v54 = vpop.f32.mrb[34].mxu1 }
 0x4ee   : > { %v3588_v13 = vmul.f32 %v3524_v58, %v12230_v39  ;;  %v2950_v37 = vadd.f32 -0.28449672, %v2886_v4  ;;  %v12310_v7 = vmul.f32 0.5, %v12221_v20  ;;  %v12313_v61 = vmul.f32 0.5, %v12225_v24  ;;  %v12320_v12 = vpop.f32.mrb[35].mxu1 }
 0x4ef   : > { %v3651_v49 = vadd.f32 1.0, %v3587_v6  ;;  %v3013_v63 = vmul.f32 %v12255_v17, %v2949_v50  ;;  %v3272_v40 = vmul.f32 %v3208_v11, %v12253_v25  ;;  %v2314_v23 = vand.u32 2147483647, %v12293_v59  ;;  %v12326_v46 = vpop.f32.mrb[36].mxu1 }
 0x4f0   : > { %v12322_v27 = vpop.eup %8535  ;;  %v3652_v39 = vadd.f32 1.0, %v3588_v13  ;;  %v3014_v20 = vmul.f32 %v12258_v19, %v2950_v37  ;;  %v3383_v52 = vmul.f32 1.442695, %v3271_v16  ;;  %v2377_v24 = vmul.f32 0.3275911, %v12304_v62  ;;  %v12334_v33 = vpop.f32.mrb[37].mxu1 }
 0x4f1   : > { %v12328_v8 = vpop.eup %8537  ;;  %v3715_v2 = vmul.f32 %v3651_v49, %v12189_v41  ;;  %v3077_v1 = vadd.f32 0.2548296, %v3013_v63  ;;  %v2631_v25 = vmul.f32 1.0614054, %v12322_v27  ;;  %v2378_v31 = vmul.f32 0.3275911, %v2314_v23 }
 0x4f2   : > { %v3716_v21 = vmul.f32 %v3652_v39, %v12192_v34  ;;  %v3078_v60 = vadd.f32 0.2548296, %v3014_v20  ;;  %v2632_v55 = vmul.f32 1.0614054, %v12328_v8  ;;  %v2441_v14 = vadd.f32 1.0, %v2377_v24  ;;  %v12339_v35 = vpop.f32.mrb[38].mxu1 }
 0x4f3   : > { %v8540_v45 = vpop.eup %8539  ;;  %v3141_v32 = vmul.f32 %v12255_v17, %v3077_v1  ;;  %v2695_v15 = vadd.f32 -1.4531521, %v2631_v25  ;;  %v2442_v5 = vadd.f32 1.0, %v2378_v31  ;;  %v1925_v41 = vmul.f32 %v12094_v22, %v11554_v48  ;;  %v12342_v11 = vpop.f32.mrb[39].mxu1 }
 0x4f4   : > { %v8542_v9 = vpop.eup %8541  ;;  %v3765_v28 = vpack.c.bf16 %v3716_v21, %v3715_v2  ;;  %v3142_v34 = vmul.f32 %v12258_v19, %v3078_v60  ;;  %v2696_v18 = vadd.f32 -1.4531521, %v2632_v55  ;;  %8543 = vrcp.f32 %v2441_v14 }
 0x4f5   : > { %v3461_v58 = vmul.f32 %v8540_v45, %v3141_v32  ;;  %v2759_v4 = vmul.f32 %v12322_v27, %v2695_v15  ;;  %v3385_v16 = vmul.f32 1.442695, %v3272_v40  ;;  %8545 = vrcp.f32 %v2442_v5 }
 0x4f6   : > { %7965 = vmatprep.mubr.msk.bf16.mxu1 %vm1033_vm2, %v3765_v28  ;;  %v3462_v17 = vmul.f32 %v8542_v9, %v3142_v34  ;;  %v2760_v48 = vmul.f32 %v12328_v8, %v2696_v18  ;;  %v3209_v6 = vsub.f32 0.0, %v12304_v62  ;;  %v1926_v50 = vmul.f32 %v12094_v22, %v11529_v36 }
 0x4f7   : > { %v3525_v19 = vsub.f32 1.0, %v3461_v58  ;;  %v2823_v13 = vadd.f32 1.4214138, %v2759_v4  ;;  %v3210_v37 = vsub.f32 0.0, %v2314_v23  ;;  %v12351_v49 = vadd.f32 %v12101_v38, %v1925_v41 }
 0x4f8   : > { %v3526_v63 = vsub.f32 1.0, %v3462_v17  ;;  %v2824_v39 = vadd.f32 1.4214138, %v2760_v48  ;;  %8547 = vpow2.f32 %v3383_v52  ;;  %v12354_v40 = vadd.f32 %v12101_v38, %v1926_v50 }
 0x4f9   : > { %v3589_v20 = vmul.f32 %v3525_v19, %v12284_v0  ;;  %vm2183_vm6 = vcmp.ge.f32.partialorder %v12235_v10, 0.0  ;;  %v2887_v24 = vmul.f32 %v12322_v27, %v2823_v13  ;;  %8549 = vpow2.f32 %v3385_v16 }
 0x4fa   : > { %v3590_v36 = vmul.f32 %v3526_v63, %v12301_v56  ;;  %vm2184_vm7 = vcmp.ge.f32.partialorder %v12238_v29, 0.0  ;;  %v2888_v2 = vmul.f32 %v12328_v8, %v2824_v39  ;;  %v3273_v1 = vmul.f32 %v3209_v6, %v12304_v62  ;;  %v16129_v6 = vld [vmem:[#allocation53_spill] sm:$0xff]  ;;  %v12401_v63 = vpop.f32.mrb[40].mxu1 }
 0x4fb   : > { %v3653_v25 = vadd.f32 1.0, %v3589_v20  ;;  %v2951_v52 = vadd.f32 -0.28449672, %v2887_v24  ;;  %v3274_v31 = vmul.f32 %v3210_v37, %v2314_v23  ;;  %v12364_v21 = vmul.f32 0.70710677, %v12351_v49 }
 0x4fc   : > { %v3654_v0 = vadd.f32 1.0, %v3590_v36  ;;  %v2247_v10 = vsel %vm2183_vm6, 1.0, %v16063_v3  ;;  %v2952_v60 = vadd.f32 -0.28449672, %v2888_v2  ;;  %v12368_v55 = vmul.f32 0.70710677, %v12354_v40 }
 0x4fd   : > { %v3717_v56 = vmul.f32 %v3653_v25, %v12245_v30  ;;  %v2248_v29 = vsel %vm2184_vm7, 1.0, %v16063_v3  ;;  %v3015_v14 = vmul.f32 %v12322_v27, %v2951_v52  ;;  %v12374_v62 = vand.u32 2147483647, %v12364_v21  ;;  %v16128_v30 = vld [vmem:[#allocation35_spill] sm:$0xff]  ;;  %v16130_v36 = vld [vmem:[#allocation52_spill] sm:$0xff] }
 0x4fe   : > { %v12376_v23 = vpop.eup %8543  ;;  %v3718_v45 = vmul.f32 %v3654_v0, %v12248_v42  ;;  %v3016_v32 = vmul.f32 %v12328_v8, %v2952_v60  ;;  %v12381_v15 = vmul.f32 0.5, %v12276_v43  ;;  %v3387_v5 = vmul.f32 1.442695, %v3273_v1  ;;  %v12406_v1 = vpop.f32.mrb[41].mxu1 }
 0x4ff   : > { %v12383_v41 = vpop.eup %8545  ;;  %v12387_v9 = vmul.f32 %v11679_v44, %v16128_v30  ;;  %v3079_v28 = vadd.f32 0.2548296, %v3015_v14  ;;  %v2633_v34 = vmul.f32 1.0614054, %v12376_v23  ;;  %v3389_v18 = vmul.f32 1.442695, %v3274_v31 }
 0x500   : > { %v3766_v58 = vpack.c.bf16 %v3718_v45, %v3717_v56  ;;  %v3080_v4 = vadd.f32 0.2548296, %v3016_v32  ;;  %v2634_v42 = vmul.f32 1.0614054, %v12383_v41  ;;  %v12392_v16 = vand.u32 2147483647, %v12368_v55 }
 0x501   : > { %v3143_v43 = vmul.f32 %v12322_v27, %v3079_v28  ;;  %v2697_v17 = vadd.f32 -1.4531521, %v2633_v34  ;;  %v2379_v48 = vmul.f32 0.3275911, %v12374_v62  ;;  %v1927_v44 = vmul.f32 %v12094_v22, %v16129_v6  ;;  %v12409_v31 = vpop.f32.mrb[42].mxu1 }
 0x502   : > { %v8548_v50 = vpop.eup %8547  ;;  %7966 = vmatmul.mubr.msk.bf16.gmra.mrb[76].mxu1 %vm1033_vm2, %v3766_v58  ;;  %v3144_v19 = vmul.f32 %v12328_v8, %v3080_v4  ;;  %v2698_v13 = vadd.f32 -1.4531521, %v2634_v42  ;;  %8551 = vpow2.f32 %v3387_v5  ;;  %v2380_v37 = vmul.f32 0.3275911, %v12392_v16  ;;  %v12414_v14 = vpop.f32.mrb[43].mxu1 }
 0x503   : > { %v8550_v39 = vpop.eup %8549  ;;  %v3463_v20 = vmul.f32 %v8548_v50, %v3143_v43  ;;  %v2761_v27 = vmul.f32 %v12376_v23, %v2697_v17  ;;  %v2443_v24 = vadd.f32 1.0, %v2379_v48  ;;  %v1928_v2 = vmul.f32 %v12094_v22, %v16130_v36  ;;  %v12419_v30 = vpop.f32.mrb[44].mxu1 }
 0x504   : > { %v3464_v25 = vmul.f32 %v8550_v39, %v3144_v19  ;;  %v2762_v52 = vmul.f32 %v12383_v41, %v2698_v13  ;;  %8553 = vpow2.f32 %v3389_v18  ;;  %v2444_v8 = vadd.f32 1.0, %v2380_v37  ;;  %v12426_v4 = vpop.f32.mrb[45].mxu1 }
 0x505   : > { %v3527_v0 = vsub.f32 1.0, %v3463_v20  ;;  %v2825_v60 = vadd.f32 1.4214138, %v2761_v27  ;;  %8555 = vrcp.f32 %v2443_v24  ;;  %v12412_v56 = vadd.f32 %v12101_v38, %v1927_v44  ;;  %v12431_v43 = vpop.f32.mrb[46].mxu1  ;;  %v16131_v44 = vld [vmem:[#allocation44_spill] sm:$0xff] }
 0x506   : > { %v3528_v45 = vsub.f32 1.0, %v3464_v25  ;;  %v12417_v32 = vmul.f32 0.5, %v12279_v53  ;;  %v2826_v5 = vadd.f32 1.4214138, %v2762_v52  ;;  %8557 = vrcp.f32 %v2444_v8  ;;  %v12444_v37 = vpop.f32.mrb[47].mxu1 }
 0x507   : > { %v3591_v28 = vmul.f32 %v3527_v0, %v2247_v10  ;;  %v2889_v34 = vmul.f32 %v12376_v23, %v2825_v60  ;;  %v3211_v18 = vsub.f32 0.0, %v12374_v62  ;;  %v12424_v58 = vadd.f32 %v12101_v38, %v1928_v2  ;;  %v12450_v36 = vpop.f32.mrb[48].mxu1 }
 0x508   : > { %v3592_v42 = vmul.f32 %v3528_v45, %v2248_v29  ;;  %vm2185_vm8 = vcmp.ge.f32.partialorder %v12289_v51, 0.0  ;;  %vm2186_vm9 = vcmp.ge.f32.partialorder %v12293_v59, 0.0  ;;  %v2890_v53 = vmul.f32 %v12383_v41, %v2826_v5  ;;  %v12460_v8 = vpop.f32.mrb[49].mxu1 }
 0x509   : > { %v3655_v17 = vadd.f32 1.0, %v3591_v28  ;;  %v2953_v10 = vadd.f32 -0.28449672, %v2889_v34  ;;  %v3212_v48 = vsub.f32 0.0, %v12392_v16  ;;  %v12435_v6 = vmul.f32 0.70710677, %v12412_v56 }
 0x50a   : > { %v12439_v50 = vmul.f32 %v12170_v57, %v16131_v44  ;;  %v3656_v29 = vadd.f32 1.0, %v3592_v42  ;;  %v2954_v19 = vadd.f32 -0.28449672, %v2890_v53  ;;  %v12442_v13 = vmul.f32 0.70710677, %v12424_v58  ;;  %16132 = vst [vmem:[#allocation58_spill] sm:$0xff] %v12460_v8 }
 0x50b   : > { %v3719_v39 = vmul.f32 %v3655_v17, %v12310_v7  ;;  %v3017_v20 = vmul.f32 %v12376_v23, %v2953_v10  ;;  %v3275_v27 = vmul.f32 %v3211_v18, %v12374_v62  ;;  %v2317_v24 = vand.u32 2147483647, %v12435_v6  ;;  %v16133_v34 = vld [vmem:[#allocation55_spill] sm:$0xff]  ;;  %v12469_v18 = vpop.f32.mrb[50].mxu1 }
 0x50c   : > { %v8552_v2 = vpop.eup %8551  ;;  %v3720_v57 = vmul.f32 %v3656_v29, %v12313_v61  ;;  %v2249_v25 = vsel %vm2185_vm8, 1.0, %v16063_v3  ;;  %v2250_v52 = vsel %vm2186_vm9, 1.0, %v16063_v3  ;;  %v3018_v7 = vmul.f32 %v12383_v41, %v2954_v19  ;;  %v12477_v10 = vpop.f32.mrb[51].mxu1 }
 0x50d   : > { %v3081_v62 = vadd.f32 0.2548296, %v3017_v20  ;;  %v12463_v0 = vmul.f32 0.5, %v12351_v49  ;;  %v3276_v60 = vmul.f32 %v3212_v48, %v12392_v16  ;;  %v2318_v61 = vand.u32 2147483647, %v12442_v13  ;;  %16134 = vst [vmem:[#allocation59_spill] sm:$0xff] %v12477_v10 }
 0x50e   : > { %v8554_v45 = vpop.eup %8553  ;;  %v3767_v5 = vpack.c.bf16 %v3720_v57, %v3719_v39  ;;  %v3082_v51 = vadd.f32 0.2548296, %v3018_v7  ;;  %v2381_v28 = vmul.f32 0.3275911, %v2317_v24  ;;  %v1929_v59 = vmul.f32 %v12094_v22, %v16133_v34  ;;  %v16135_v39 = vld [vmem:[#allocation54_spill] sm:$0xff] }
 0x50f   : > { %v12471_v42 = vpop.eup %8555  ;;  %v3145_v53 = vmul.f32 %v12376_v23, %v3081_v62  ;;  %v12475_v49 = vmul.f32 0.5, %v12354_v40  ;;  %v3391_v17 = vmul.f32 1.442695, %v3275_v27  ;;  %v2382_v16 = vmul.f32 0.3275911, %v2318_v61 }
 0x510   : > { %v12479_v48 = vpop.eup %8557  ;;  %7969 = vmatprep.mubr.msk.bf16.mxu1 %vm1033_vm2, %v3767_v5  ;;  %v3146_v44 = vmul.f32 %v12383_v41, %v3082_v51  ;;  %v2635_v29 = vmul.f32 1.0614054, %v12471_v42  ;;  %v2445_v19 = vadd.f32 1.0, %v2381_v28  ;;  %v1930_v20 = vmul.f32 %v12094_v22, %v16135_v39 }
 0x511   : > { %v3465_v23 = vmul.f32 %v8552_v2, %v3145_v53  ;;  %v2636_v40 = vmul.f32 1.0614054, %v12479_v48  ;;  %v3393_v57 = vmul.f32 1.442695, %v3276_v60  ;;  %v2446_v27 = vadd.f32 1.0, %v2382_v16 }
 0x512   : > { %v3466_v7 = vmul.f32 %v8554_v45, %v3146_v44  ;;  %v2699_v62 = vadd.f32 -1.4531521, %v2635_v29  ;;  %8559 = vrcp.f32 %v2445_v19  ;;  %v12488_v34 = vadd.f32 %v12101_v38, %v1929_v59 }
 0x513   : > { %v3529_v5 = vsub.f32 1.0, %v3465_v23  ;;  %vm2187_vm10 = vcmp.ge.f32.partialorder %v12364_v21, 0.0  ;;  %v2700_v41 = vadd.f32 -1.4531521, %v2636_v40  ;;  %8561 = vrcp.f32 %v2446_v27 }
 0x514   : > { %v3530_v51 = vsub.f32 1.0, %v3466_v7  ;;  %v2763_v28 = vmul.f32 %v12471_v42, %v2699_v62  ;;  %v3213_v39 = vsub.f32 0.0, %v2317_v24  ;;  %v12493_v2 = vadd.f32 %v12101_v38, %v1930_v20 }
 0x515   : > { %v3593_v60 = vmul.f32 %v3529_v5, %v2249_v25  ;;  %vm2188_vm11 = vcmp.ge.f32.partialorder %v12368_v55, 0.0  ;;  %v2764_v45 = vmul.f32 %v12479_v48, %v2700_v41  ;;  %8563 = vpow2.f32 %v3391_v17 }
 0x516   : > { %v3594_v59 = vmul.f32 %v3530_v51, %v2250_v52  ;;  %v2827_v53 = vadd.f32 1.4214138, %v2763_v28  ;;  %8565 = vpow2.f32 %v3393_v57  ;;  %v12498_v16 = vmul.f32 0.70710677, %v12488_v34 }
 0x517   : > { %v3657_v44 = vadd.f32 1.0, %v3593_v60  ;;  %v2828_v29 = vadd.f32 1.4214138, %v2764_v45  ;;  %v3214_v19 = vsub.f32 0.0, %v2318_v61  ;;  %v12501_v23 = vmul.f32 0.70710677, %v12493_v2 }
 0x518   : > { %v3658_v20 = vadd.f32 1.0, %v3594_v59  ;;  %v2891_v25 = vmul.f32 %v12471_v42, %v2827_v53  ;;  %v3277_v40 = vmul.f32 %v3213_v39, %v2317_v24  ;;  %v2319_v27 = vand.u32 2147483647, %v12498_v16 }
 0x519   : > { %v3721_v17 = vmul.f32 %v3657_v44, %v12381_v15  ;;  %v2251_v52 = vsel %vm2187_vm10, 1.0, %v16063_v3  ;;  %v2252_v57 = vsel %vm2188_vm11, 1.0, %v16063_v3  ;;  %v2892_v7 = vmul.f32 %v12479_v48, %v2828_v29  ;;  %v16136_v44 = vld [vmem:[#allocation57_spill] sm:$0xff] }
 0x51a   : > { %v3722_v62 = vmul.f32 %v3658_v20, %v12417_v32  ;;  %v2955_v5 = vadd.f32 -0.28449672, %v2891_v25  ;;  %v12515_v41 = vmul.f32 0.5, %v12412_v56  ;;  %v12518_v24 = vand.u32 2147483647, %v12501_v23  ;;  %v16137_v25 = vld [vmem:[#allocation56_spill] sm:$0xff] }
 0x51b   : > { %v2956_v15 = vadd.f32 -0.28449672, %v2892_v7  ;;  %vm2189_vm12 = vcmp.ge.f32.partialorder %v12435_v6, 0.0  ;;  %v3278_v21 = vmul.f32 %v3214_v19, %v2318_v61  ;;  %v2383_v51 = vmul.f32 0.3275911, %v2319_v27 }
 0x51c   : > { %v12521_v28 = vpop.eup %8559  ;;  %v3768_v55 = vpack.c.bf16 %v3722_v62, %v3721_v17  ;;  %v3019_v39 = vmul.f32 %v12471_v42, %v2955_v5  ;;  %v3395_v60 = vmul.f32 1.442695, %v3277_v40  ;;  %v2384_v32 = vmul.f32 0.3275911, %v12518_v24 }
 0x51d   : > { %v12525_v45 = vpop.eup %8561  ;;  %v3020_v56 = vmul.f32 %v12479_v48, %v2956_v15  ;;  %v2637_v59 = vmul.f32 1.0614054, %v12521_v28  ;;  %v2447_v53 = vadd.f32 1.0, %v2383_v51  ;;  %v1931_v29 = vmul.f32 %v12094_v22, %v16136_v44 }
 0x51e   : > { %7970 = vmatmul.mubr.msk.bf16.gmra.mrb[80].mxu1 %vm1033_vm2, %v3768_v55  ;;  %v3083_v61 = vadd.f32 0.2548296, %v3019_v39  ;;  %v2638_v19 = vmul.f32 1.0614054, %v12525_v45  ;;  %v2448_v20 = vadd.f32 1.0, %v2384_v32  ;;  %v1932_v40 = vmul.f32 %v12094_v22, %v16137_v25 }
 0x51f   : > { %v8564_v17 = vpop.eup %8563  ;;  %v3084_v7 = vadd.f32 0.2548296, %v3020_v56  ;;  %v2701_v62 = vadd.f32 -1.4531521, %v2637_v59  ;;  %v3397_v5 = vmul.f32 1.442695, %v3278_v21  ;;  %8567 = vrcp.f32 %v2447_v53 }
 0x520   : > { %v8566_v15 = vpop.eup %8565  ;;  %v3147_v51 = vmul.f32 %v12471_v42, %v3083_v61  ;;  %vm2190_vm13 = vcmp.ge.f32.partialorder %v12442_v13, 0.0  ;;  %v2702_v44 = vadd.f32 -1.4531521, %v2638_v19  ;;  %8569 = vrcp.f32 %v2448_v20 }
 0x521   : > { %v3148_v55 = vmul.f32 %v12479_v48, %v3084_v7  ;;  %v2765_v39 = vmul.f32 %v12521_v28, %v2701_v62  ;;  %v3215_v32 = vsub.f32 0.0, %v2319_v27  ;;  %v12540_v10 = vadd.f32 %v12101_v38, %v1931_v29 }
 0x522   : > { %v3467_v22 = vmul.f32 %v8564_v17, %v3147_v51  ;;  %v2766_v56 = vmul.f32 %v12525_v45, %v2702_v44  ;;  %8571 = vpow2.f32 %v3395_v60  ;;  %v12544_v21 = vadd.f32 %v12101_v38, %v1932_v40 }
 0x523   : > { %v3468_v42 = vmul.f32 %v8566_v15, %v3148_v55  ;;  %v2829_v59 = vadd.f32 1.4214138, %v2765_v39  ;;  %8573 = vpow2.f32 %v3397_v5  ;;  %v12547_v53 = vmul.f32 0.70710677, %v12540_v10 }
 0x524   : > { %v3531_v48 = vsub.f32 1.0, %v3467_v22  ;;  %v2830_v61 = vadd.f32 1.4214138, %v2766_v56  ;;  %v3216_v19 = vsub.f32 0.0, %v12518_v24  ;;  %v12551_v29 = vmul.f32 0.70710677, %v12544_v21 }
 0x525   : > { %v3532_v20 = vsub.f32 1.0, %v3468_v42  ;;  %v2893_v25 = vmul.f32 %v12521_v28, %v2829_v59  ;;  %v3279_v60 = vmul.f32 %v3215_v32, %v2319_v27  ;;  %v12555_v38 = vand.u32 2147483647, %v12547_v53  ;;  %v12557_v40 = vpop.f32.mrb[52].mxu1 }
 0x526   : > { %16138 = vst [vmem:[#allocation60_spill] sm:$0xff] %v12557_v40  ;;  %v3595_v17 = vmul.f32 %v3531_v48, %v2251_v52  ;;  %v12560_v7 = vmul.f32 0.5, %v12424_v58  ;;  %v2253_v62 = vsel %vm2189_vm12, 1.0, %v16063_v3  ;;  %v2894_v5 = vmul.f32 %v12525_v45, %v2830_v61  ;;  %v12566_v15 = vpop.f32.mrb[53].mxu1  ;;  %v1607_v40 = vpop.xlane.xlu0 %1606 }
 0x527   : > { %16139 = vst [vmem:[#allocation61_spill] sm:$0xff] %v12566_v15  ;;  %v3596_v51 = vmul.f32 %v3532_v20, %v2252_v57  ;;  %v2254_v27 = vsel %vm2190_vm13, 1.0, %v16063_v3  ;;  %v2957_v44 = vadd.f32 -0.28449672, %v2893_v25  ;;  %v12572_v55 = vand.u32 2147483647, %v12551_v29 }
 0x528   : > { %v12574_v52 = vpop.f32.mrb[54].mxu1  ;;  %v3659_v58 = vadd.f32 1.0, %v3595_v17  ;;  %v2958_v39 = vadd.f32 -0.28449672, %v2894_v5  ;;  %v3280_v6 = vmul.f32 %v3216_v19, %v12518_v24  ;;  %v2385_v32 = vmul.f32 0.3275911, %v12555_v38 }
 0x529   : > { %16140 = vst [vmem:[#allocation62_spill] sm:$0xff] %v12574_v52  ;;  %v12578_v22 = vpop.eup %8567  ;;  %v3660_v56 = vadd.f32 1.0, %v3596_v51  ;;  %v3021_v57 = vmul.f32 %v12521_v28, %v2957_v44  ;;  %v3399_v42 = vmul.f32 1.442695, %v3279_v60  ;;  %v2386_v13 = vmul.f32 0.3275911, %v12572_v55 }
 0x52a   : > { %v12582_v59 = vpop.f32.mrb[55].mxu1  ;;  %v12584_v48 = vpop.eup %8569  ;;  %v3723_v61 = vmul.f32 %v3659_v58, %v12463_v0  ;;  %v3022_v20 = vmul.f32 %v12525_v45, %v2958_v39  ;;  %v2639_v24 = vmul.f32 1.0614054, %v12578_v22  ;;  %v2449_v19 = vadd.f32 1.0, %v2385_v32 }
 0x52b   : > { %16141 = vst [vmem:[#allocation63_spill] sm:$0xff] %v12582_v59  ;;  %v3724_v25 = vmul.f32 %v3660_v56, %v12475_v49  ;;  %v3085_v17 = vadd.f32 0.2548296, %v3021_v57  ;;  %v2640_v5 = vmul.f32 1.0614054, %v12584_v48  ;;  %v2450_v51 = vadd.f32 1.0, %v2386_v13  ;;  %v1610_v59 = vpop.xlane.xlu1 %1609 }
 0x52c   : > { %v8572_v60 = vpop.eup %8571  ;;  %v3086_v44 = vadd.f32 0.2548296, %v3022_v20  ;;  %v2703_v15 = vadd.f32 -1.4531521, %v2639_v24  ;;  %v3401_v52 = vmul.f32 1.442695, %v3280_v6  ;;  %8575 = vrcp.f32 %v2449_v19 }
 0x52d   : > { %v8574_v8 = vpop.eup %8573  ;;  %v3769_v0 = vpack.c.bf16 %v3724_v25, %v3723_v61  ;;  %v3149_v58 = vmul.f32 %v12521_v28, %v3085_v17  ;;  %v2704_v39 = vadd.f32 -1.4531521, %v2640_v5  ;;  %8577 = vrcp.f32 %v2450_v51 }
 0x52e   : > { %v3150_v32 = vmul.f32 %v12525_v45, %v3086_v44  ;;  %v12594_v49 = vmul.f32 0.5, %v12488_v34  ;;  %v2767_v56 = vmul.f32 %v12578_v22, %v2703_v15  ;;  %8579 = vpow2.f32 %v3399_v42  ;;  %v12600_v34 = vld [vmem:[#allocation8] ss:$0 sm:$0xff] }
 0x52f   : > { %7973 = vmatprep.mubr.msk.bf16.mxu1 %vm1033_vm2, %v3769_v0  ;;  %v3469_v6 = vmul.f32 %v8572_v60, %v3149_v58  ;;  %v2768_v57 = vmul.f32 %v12584_v48, %v2704_v39  ;;  %v1674_v13 = vmul.f32 0.015625, %v1610_v59  ;;  %v1673_v20 = vmul.f32 0.015625, %v1607_v40  ;;  %v12611_v0 = vld [vmem:[#allocation10] ss:$0 sm:$0xff] }
 0x530   : > { %v3470_v61 = vmul.f32 %v8574_v8, %v3150_v32  ;;  %v2831_v24 = vadd.f32 1.4214138, %v2767_v56  ;;  %8581 = vpow2.f32 %v3401_v52  ;;  %v3217_v28 = vsub.f32 0.0, %v12555_v38 }
 0x531   : > { %v3533_v19 = vsub.f32 1.0, %v3469_v6  ;;  %v2832_v45 = vadd.f32 1.4214138, %v2768_v57  ;;  %v1738_v25 = vadd.f32 1e-05, %v1674_v13  ;;  %v1933_v15 = vmul.f32 %v12600_v34, %v12439_v50 }
 0x532   : > { %v3534_v42 = vsub.f32 1.0, %v3470_v61  ;;  %v2895_v17 = vmul.f32 %v12578_v22, %v2831_v24  ;;  %v3218_v5 = vsub.f32 0.0, %v12572_v55  ;;  %v1737_v59 = vadd.f32 1e-05, %v1673_v20 }
 0x533   : > { %v3597_v40 = vmul.f32 %v3533_v19, %v2253_v62  ;;  %vm2191_vm14 = vcmp.ge.f32.partialorder %v12498_v16, 0.0  ;;  %v2896_v8 = vmul.f32 %v12584_v48, %v2832_v45  ;;  %v1934_v52 = vmul.f32 %v12600_v34, %v12387_v9 }
 0x534   : > { %v3598_v51 = vmul.f32 %v3534_v42, %v2254_v27  ;;  %v2959_v60 = vadd.f32 -0.28449672, %v2895_v17  ;;  %v3281_v44 = vmul.f32 %v3217_v28, %v12555_v38  ;;  %v12614_v50 = vadd.f32 %v12611_v0, %v1933_v15 }
 0x535   : > { %v3661_v58 = vadd.f32 1.0, %v3597_v40  ;;  %v2960_v39 = vadd.f32 -0.28449672, %v2896_v8  ;;  %8583 = vrsqrt.f32 %v1738_v25  ;;  %v12617_v62 = vadd.f32 %v12611_v0, %v1934_v52 }
 0x536   : > { %v12619_v32 = vpop.eup %8575  ;;  %v3662_v56 = vadd.f32 1.0, %v3598_v51  ;;  %v3023_v9 = vmul.f32 %v12578_v22, %v2959_v60  ;;  %v3282_v27 = vmul.f32 %v3218_v5, %v12572_v55  ;;  %8585 = vrsqrt.f32 %v1737_v59 }
 0x537   : > { %v12623_v38 = vpop.eup %8577  ;;  %v3725_v6 = vmul.f32 %v3661_v58, %v12515_v41  ;;  %v3024_v57 = vmul.f32 %v12584_v48, %v2960_v39  ;;  %v2641_v13 = vmul.f32 1.0614054, %v12619_v32  ;;  %v12629_v20 = vmul.f32 0.70710677, %v12614_v50  ;;  %v12658_v39 = vld [vmem:[#allocation13] ss:$0 sm:$0xff] }
 0x538   : > { %v8580_v61 = vpop.eup %8579  ;;  %v3726_v24 = vmul.f32 %v3662_v56, %v12560_v7  ;;  %v3087_v28 = vadd.f32 0.2548296, %v3023_v9  ;;  %v2642_v19 = vmul.f32 1.0614054, %v12623_v38  ;;  %v12634_v55 = vmul.f32 0.70710677, %v12617_v62 }
 0x539   : > { %v2064_v45 = vmul.f32 0.5, %v12493_v2  ;;  %vm2192_vm15 = vcmp.ge.f32.partialorder %v12501_v23, 0.0  ;;  %v3088_v41 = vadd.f32 0.2548296, %v3024_v57  ;;  %v2705_v25 = vadd.f32 -1.4531521, %v2641_v13 }
 0x53a   : > { %v8582_v15 = vpop.eup %8581  ;;  %v3770_v42 = vpack.c.bf16 %v3726_v24, %v3725_v6  ;;  %v3151_v17 = vmul.f32 %v12578_v22, %v3087_v28  ;;  %v2706_v5 = vadd.f32 -1.4531521, %v2642_v19  ;;  %v3403_v59 = vmul.f32 1.442695, %v3281_v44 }
 0x53b   : > { %v2255_v7 = vsel %vm2191_vm14, 1.0, %v16063_v3  ;;  %v3152_v40 = vmul.f32 %v12584_v48, %v3088_v41  ;;  %v2769_v8 = vmul.f32 %v12619_v32, %v2705_v25  ;;  %v3405_v52 = vmul.f32 1.442695, %v3282_v27 }
 0x53c   : > { %7974 = vmatmul.mubr.msk.bf16.gmra.mrb[84].mxu1 %vm1033_vm2, %v3770_v42  ;;  %v3471_v2 = vmul.f32 %v8580_v61, %v3151_v17  ;;  %v2770_v51 = vmul.f32 %v12623_v38, %v2706_v5  ;;  %v12647_v60 = vand.u32 2147483647, %v12629_v20  ;;  %v12650_v22 = vand.u32 2147483647, %v12634_v55 }
 0x53d   : > { %v2256_v16 = vsel %vm2192_vm15, 1.0, %v16063_v3  ;;  %v3472_v44 = vmul.f32 %v8582_v15, %v3152_v40  ;;  %v12656_v48 = vmul.f32 0.5, %v12540_v10  ;;  %v2833_v58 = vadd.f32 1.4214138, %v2769_v8 }
 0x53e   : > { %v3535_v56 = vsub.f32 1.0, %v3471_v2  ;;  %v2834_v9 = vadd.f32 1.4214138, %v2770_v51  ;;  %8587 = vpow2.f32 %v3403_v59  ;;  %v2387_v27 = vmul.f32 0.3275911, %v12647_v60 }
 0x53f   : > { %v8584_v6 = vpop.eup %8583  ;;  %v3536_v57 = vsub.f32 1.0, %v3472_v44  ;;  %v2897_v13 = vmul.f32 %v12619_v32, %v2833_v58  ;;  %8589 = vpow2.f32 %v3405_v52  ;;  %v2388_v23 = vmul.f32 0.3275911, %v12650_v22  ;;  %v16142_v52 = vld [vmem:[#allocation45_spill] sm:$0xff]  ;;  %v16143_v44 = vld [vmem:[#allocation42_spill] sm:$0xff] }
 0x540   : > { %v8586_v61 = vpop.eup %8585  ;;  %v3599_v24 = vmul.f32 %v3535_v56, %v2255_v7  ;;  %v2898_v10 = vmul.f32 %v12623_v38, %v2834_v9  ;;  %v2451_v28 = vadd.f32 1.0, %v2387_v27  ;;  %v12666_v19 = vadd.f32 %v12295_v47, %v12658_v39 }
 0x541   : > { %v3600_v41 = vmul.f32 %v3536_v57, %v2256_v16  ;;  %v2961_v25 = vadd.f32 -0.28449672, %v2897_v13  ;;  %v2452_v15 = vadd.f32 1.0, %v2388_v23  ;;  %v12670_v42 = vadd.f32 %v12315_v54, %v12658_v39 }
 0x542   : > { %v3663_v17 = vadd.f32 1.0, %v3599_v24  ;;  %v2962_v5 = vadd.f32 -0.28449672, %v2898_v10  ;;  %8591 = vrcp.f32 %v2451_v28  ;;  %v12674_v59 = vadd.f32 %v12658_v39, %v12306_v26 }
 0x543   : > { %v3664_v7 = vadd.f32 1.0, %v3600_v41  ;;  %v3025_v40 = vmul.f32 %v12619_v32, %v2961_v25  ;;  %8593 = vrcp.f32 %v2452_v15  ;;  %v12679_v47 = vadd.f32 %v12658_v39, %v12320_v12 }
 0x544   : > { %v3727_v8 = vmul.f32 %v3663_v17, %v12594_v49  ;;  %v3026_v54 = vmul.f32 %v12623_v38, %v2962_v5  ;;  %v1866_v2 = vmul.f32 %v8584_v6, %v16142_v52  ;;  %v4199_v51 = vsel %vm1033_vm2, %v12666_v19, 0.0 }
 0x545   : > { %v3728_v16 = vmul.f32 %v3664_v7, %v2064_v45  ;;  %v3089_v26 = vadd.f32 0.2548296, %v3025_v40  ;;  %v1865_v58 = vmul.f32 %v8586_v61, %v16143_v44  ;;  %4200 = vadd.xlane.f32.xlu0 %v4199_v51  ;;  %v4202_v56 = vsel %vm1033_vm2, %v12670_v42, 0.0 }
 0x546   : > { %v12690_v12 = vmul.f32 0.5, %v12544_v21  ;;  %vm2193_vm0 = vcmp.ge.f32.partialorder %v12547_v53, 0.0  ;;  %v3090_v49 = vadd.f32 0.2548296, %v3026_v54  ;;  %v3219_v9 = vsub.f32 0.0, %v12647_v60  ;;  %4203 = vadd.xlane.f32.xlu1 %v4202_v56 }
 0x547   : > { %v3771_v27 = vpack.c.bf16 %v3728_v16, %v3727_v8  ;;  %vm2194_vm1 = vcmp.ge.f32.partialorder %v12551_v29, 0.0  ;;  %v3153_v45 = vmul.f32 %v12619_v32, %v3089_v26  ;;  %v12698_v6 = vadd.f32 %v12326_v46, %v12658_v39 }
 0x548   : > { %v8588_v57 = vpop.eup %8587  ;;  %v3154_v13 = vmul.f32 %v12623_v38, %v3090_v49  ;;  %v3220_v21 = vsub.f32 0.0, %v12650_v22  ;;  %v4193_v23 = vsel %vm1033_vm2, %v12674_v59, 0.0  ;;  %v12706_v61 = vadd.f32 %v12339_v35, %v12658_v39 }
 0x549   : > { %v8590_v24 = vpop.eup %8589  ;;  %7977 = vmatprep.mubr.msk.bf16.mxu1 %vm1033_vm2, %v3771_v27  ;;  %v3473_v32 = vmul.f32 %v8588_v57, %v3153_v45  ;;  %4194 = vadd.xlane.f32.xlu0 %v4193_v23  ;;  %v4196_v46 = vsel %vm1033_vm2, %v12679_v47, 0.0  ;;  %v1935_v10 = vmul.f32 %v12600_v34, %v1865_v58  ;;  %v1936_v38 = vmul.f32 %v12600_v34, %v1866_v2 }
 0x54a   : > { %v2257_v28 = vsel %vm2193_vm0, 1.0, %v16063_v3  ;;  %v3474_v41 = vmul.f32 %v8590_v24, %v3154_v13  ;;  %v3283_v35 = vmul.f32 %v3219_v9, %v12647_v60  ;;  %4197 = vadd.xlane.f32.xlu1 %v4196_v46  ;;  %v4211_v25 = vsel %vm1033_vm2, %v12698_v6, 0.0  ;;  %v12719_v15 = vpop.f32.mrb[56].mxu1 }
 0x54b   : > { %v3537_v17 = vsub.f32 1.0, %v3473_v32  ;;  %v12722_v5 = vadd.f32 %v12611_v0, %v1935_v10  ;;  %v12725_v7 = vadd.f32 %v12611_v0, %v1936_v38  ;;  %v4214_v53 = vsel %vm1033_vm2, %v12706_v61, 0.0  ;;  %v12729_v34 = vpop.f32.mrb[57].mxu1 }
 0x54c   : > { %v12731_v40 = vpop.eup %8591  ;;  %v2258_v60 = vsel %vm2194_vm1, 1.0, %v16063_v3  ;;  %v3538_v8 = vsub.f32 1.0, %v3474_v41  ;;  %v3284_v54 = vmul.f32 %v3220_v21, %v12650_v22  ;;  %v12739_v52 = vadd.f32 %v12658_v39, %v12334_v33  ;;  %v12741_v0 = vpop.f32.mrb[58].mxu1 }
 0x54d   : > { %v12743_v2 = vpop.eup %8593  ;;  %v3601_v51 = vmul.f32 %v3537_v17, %v2257_v28  ;;  %v2643_v16 = vmul.f32 1.0614054, %v12731_v40  ;;  %v12748_v26 = vadd.f32 %v12658_v39, %v12342_v11  ;;  %4212 = vadd.xlane.f32.xlu0 %v4211_v25  ;;  %v12752_v29 = vadd.f32 %v12401_v63, %v12658_v39  ;;  %v12754_v22 = vpop.f32.mrb[59].mxu1 }
 0x54e   : > { %v3602_v33 = vmul.f32 %v3538_v8, %v2258_v60  ;;  %v2644_v44 = vmul.f32 1.0614054, %v12743_v2  ;;  %v12758_v58 = vmul.f32 0.70710677, %v12722_v5  ;;  %v12761_v56 = vmul.f32 0.70710677, %v12725_v7  ;;  %4215 = vadd.xlane.f32.xlu1 %v4214_v53 }
 0x54f   : > { %v3665_v49 = vadd.f32 1.0, %v3601_v51  ;;  %v2707_v11 = vadd.f32 -1.4531521, %v2643_v16  ;;  %v3407_v9 = vmul.f32 1.442695, %v3283_v35  ;;  %v12765_v27 = vadd.f32 %v12409_v31, %v12658_v39 }
 0x550   : > { %v3666_v63 = vadd.f32 1.0, %v3602_v33  ;;  %v2708_v45 = vadd.f32 -1.4531521, %v2644_v44  ;;  %v3409_v57 = vmul.f32 1.442695, %v3284_v54  ;;  %v4205_v13 = vsel %vm1033_vm2, %v12739_v52, 0.0 }
 0x551   : > { %v3729_v21 = vmul.f32 %v3665_v49, %v12656_v48  ;;  %v2771_v23 = vmul.f32 %v12731_v40, %v2707_v11  ;;  %4206 = vadd.xlane.f32.xlu0 %v4205_v13  ;;  %v4208_v24 = vsel %vm1033_vm2, %v12748_v26, 0.0  ;;  %v4223_v32 = vsel %vm1033_vm2, %v12752_v29, 0.0 }
 0x552   : > { %v3730_v31 = vmul.f32 %v3666_v63, %v12690_v12  ;;  %v2772_v46 = vmul.f32 %v12743_v2, %v2708_v45  ;;  %v2325_v10 = vand.u32 2147483647, %v12758_v58  ;;  %v12779_v38 = vand.u32 2147483647, %v12761_v56  ;;  %4209 = vadd.xlane.f32.xlu1 %v4208_v24 }
 0x553   : > { %v2835_v48 = vadd.f32 1.4214138, %v2771_v23  ;;  %8595 = vpow2.f32 %v3407_v9  ;;  %v12783_v28 = vadd.f32 %v12658_v39, %v12406_v1  ;;  %v4226_v41 = vsel %vm1033_vm2, %v12765_v27, 0.0 }
 0x554   : > { %v3772_v35 = vpack.c.bf16 %v3730_v31, %v3729_v21  ;;  %v2836_v25 = vadd.f32 1.4214138, %v2772_v46  ;;  %v2389_v12 = vmul.f32 0.3275911, %v2325_v10  ;;  %v2390_v17 = vmul.f32 0.3275911, %v12779_v38 }
 0x555   : > { %v2899_v53 = vmul.f32 %v12731_v40, %v2835_v48  ;;  %8597 = vpow2.f32 %v3409_v57  ;;  %v12791_v60 = vadd.f32 %v12658_v39, %v12414_v14  ;;  %4224 = vadd.xlane.f32.xlu0 %v4223_v32  ;;  %v12797_v51 = vadd.f32 %v12419_v30, %v12658_v39 }
 0x556   : > { %7978 = vmatmul.mubr.msk.bf16.gmra.mrb[88].mxu1 %vm1033_vm2, %v3772_v35  ;;  %v2900_v1 = vmul.f32 %v12743_v2, %v2836_v25  ;;  %v2453_v8 = vadd.f32 1.0, %v2389_v12  ;;  %v2454_v54 = vadd.f32 1.0, %v2390_v17  ;;  %4227 = vadd.xlane.f32.xlu1 %v4226_v41  ;;  %v12801_v33 = vadd.f32 %v12431_v43, %v12658_v39 }
 0x557   : > { %v2963_v16 = vadd.f32 -0.28449672, %v2899_v53  ;;  %v4217_v14 = vsel %vm1033_vm2, %v12783_v28, 0.0  ;;  %v4220_v11 = vsel %vm1033_vm2, %v12791_v60, 0.0  ;;  %v4235_v9 = vsel %vm1033_vm2, %v12797_v51, 0.0 }
 0x558   : > { %v2964_v44 = vadd.f32 -0.28449672, %v2900_v1  ;;  %8599 = vrcp.f32 %v2453_v8  ;;  %v4238_v63 = vsel %vm1033_vm2, %v12801_v33, 0.0  ;;  %v12815_v57 = vadd.f32 %v12658_v39, %v12426_v4 }
 0x559   : > { %v3027_v49 = vmul.f32 %v12731_v40, %v2963_v16  ;;  %8601 = vrcp.f32 %v2454_v54  ;;  %4218 = vadd.xlane.f32.xlu0 %v4217_v14  ;;  %v12820_v23 = vadd.f32 %v12658_v39, %v12444_v37  ;;  %vm2195_vm3 = vcmp.ge.f32.partialorder %v12629_v20, 0.0 }
 0x55a   : > { %v3028_v30 = vmul.f32 %v12743_v2, %v2964_v44  ;;  %4221 = vadd.xlane.f32.xlu1 %v4220_v11  ;;  %v3221_v32 = vsub.f32 0.0, %v2325_v10  ;;  %v12826_v31 = vadd.f32 %v12450_v36, %v12658_v39  ;;  %vm2196_vm4 = vcmp.ge.f32.partialorder %v12634_v55, 0.0 }
 0x55b   : > { %v3091_v43 = vadd.f32 0.2548296, %v3027_v49  ;;  %v12832_v37 = vadd.f32 %v12469_v18, %v12658_v39  ;;  %v4229_v20 = vsel %vm1033_vm2, %v12815_v57, 0.0  ;;  %v4232_v36 = vsel %vm1033_vm2, %v12820_v23, 0.0  ;;  %v16144_v49 = vld [vmem:[#allocation58_spill] sm:$0xff] }
 0x55c   : > { %v3092_v45 = vadd.f32 0.2548296, %v3028_v30  ;;  %v2260_v55 = vsel %vm2196_vm4, 1.0, %v16063_v3  ;;  %v3285_v12 = vmul.f32 %v3221_v32, %v2325_v10  ;;  %v4247_v18 = vsel %vm1033_vm2, %v12826_v31, 0.0  ;;  %v16146_v32 = vld [vmem:[#allocation60_spill] sm:$0xff] }
 0x55d   : > { %v8596_v13 = vpop.eup %8595  ;;  %v3155_v21 = vmul.f32 %v12731_v40, %v3091_v43  ;;  %4236 = vadd.xlane.f32.xlu0 %v4235_v9  ;;  %v3222_v40 = vsub.f32 0.0, %v12779_v38  ;;  %v4250_v54 = vsel %vm1033_vm2, %v12832_v37, 0.0  ;;  %v2067_v44 = vmul.f32 0.5, %v12614_v50 }
 0x55e   : > { %v3156_v24 = vmul.f32 %v12743_v2, %v3092_v45  ;;  %4239 = vadd.xlane.f32.xlu1 %v4238_v63  ;;  %v2259_v2 = vsel %vm2195_vm3, 1.0, %v16063_v3  ;;  %v12856_v11 = vadd.f32 %v12658_v39, %v16144_v49  ;;  %v2068_v9 = vmul.f32 0.5, %v12617_v62  ;;  %v16145_v63 = vld [vmem:[#allocation59_spill] sm:$0xff] }
 0x55f   : > { %v8598_v4 = vpop.eup %8597  ;;  %v3475_v46 = vmul.f32 %v8596_v13, %v3155_v21  ;;  %v3286_v8 = vmul.f32 %v3222_v40, %v12779_v38  ;;  %v12863_v45 = vadd.f32 %v12658_v39, %v16145_v63  ;;  %v12898_v63 = vadd.f32 %v12719_v15, %v12658_v39 }
 0x560   : > { %v3476_v48 = vmul.f32 %v8598_v4, %v3156_v24  ;;  %v3411_v24 = vmul.f32 1.442695, %v3285_v12  ;;  %v12867_v4 = vadd.f32 %v16146_v32, %v12658_v39  ;;  %vm2197_vm5 = vcmp.ge.f32.partialorder %v12758_v58, 0.0 }
 0x561   : > { %v3539_v41 = vsub.f32 1.0, %v3475_v46  ;;  %4230 = vadd.xlane.f32.xlu0 %v4229_v20  ;;  %v16147_v20 = vld [vmem:[#allocation62_spill] sm:$0xff]  ;;  %v4244_v12 = vsel %vm1033_vm2, %v12863_v45, 0.0  ;;  %v4271_v15 = vsel %vm1033_vm2, %v12898_v63, 0.0  ;;  %vm2198_vm6 = vcmp.ge.f32.partialorder %v12761_v56, 0.0 }
 0x562   : > { %v12839_v35 = vpop.eup %8599  ;;  %v3540_v25 = vsub.f32 1.0, %v3476_v48  ;;  %4233 = vadd.xlane.f32.xlu1 %v4232_v36  ;;  %v12850_v16 = vpop.f32.mrb[60].mxu1  ;;  %v3413_v48 = vmul.f32 1.442695, %v3286_v8  ;;  %8603 = vpow2.f32 %v3411_v24  ;;  %v2261_v58 = vsel %vm2197_vm5, 1.0, %v16063_v3 }
 0x563   : > { %v12844_v17 = vpop.eup %8601  ;;  %v3603_v53 = vmul.f32 %v3539_v41, %v2259_v2  ;;  %v2645_v1 = vmul.f32 1.0614054, %v12839_v35  ;;  %v12858_v30 = vpop.f32.mrb[61].mxu1  ;;  %v12874_v2 = vadd.f32 %v16147_v20, %v12658_v39 }
 0x564   : > { %v3604_v14 = vmul.f32 %v3540_v25, %v2260_v55  ;;  %v2646_v10 = vmul.f32 1.0614054, %v12844_v17  ;;  %v7952_v13 = vpop.f32.mrb[62].mxu1  ;;  %v4241_v55 = vsel %vm1033_vm2, %v12856_v11, 0.0  ;;  %8605 = vpow2.f32 %v3413_v48 }
 0x565   : > { %v3667_v43 = vadd.f32 1.0, %v3603_v53  ;;  %v2709_v38 = vadd.f32 -1.4531521, %v2645_v1  ;;  %4248 = vadd.xlane.f32.xlu0 %v4247_v18  ;;  %v12869_v46 = vpop.f32.mrb[63].mxu1  ;;  %v4259_v1 = vsel %vm1033_vm2, %v12867_v4, 0.0 }
 0x566   : > { %v3668_v50 = vadd.f32 1.0, %v3604_v14  ;;  %v2710_v21 = vadd.f32 -1.4531521, %v2646_v10  ;;  %4251 = vadd.xlane.f32.xlu1 %v4250_v54  ;;  %v4262_v54 = vsel %vm1033_vm2, %v12874_v2, 0.0  ;;  %v16148_v14 = vld [vmem:[#allocation61_spill] sm:$0xff] }
 0x567   : > { %v3731_v40 = vmul.f32 %v3667_v43, %v2067_v44  ;;  %v2773_v62 = vmul.f32 %v12839_v35, %v2709_v38  ;;  %v12890_v10 = vadd.f32 %v12658_v39, %v16148_v14 }
 0x568   : > { %v3732_v41 = vmul.f32 %v3668_v50, %v2068_v9  ;;  %v2774_v36 = vmul.f32 %v12844_v17, %v2710_v21  ;;  %v16149_v9 = vld [vmem:[#allocation63_spill] sm:$0xff]  ;;  %v12903_v21 = vadd.f32 %v12741_v0, %v12658_v39 }
 0x569   : > { %v2837_v25 = vadd.f32 1.4214138, %v2773_v62  ;;  %4242 = vadd.xlane.f32.xlu0 %v4241_v55  ;;  %v12894_v43 = vadd.f32 %v12658_v39, %v16149_v9  ;;  %v4253_v32 = vsel %vm1033_vm2, %v12890_v10, 0.0  ;;  %v12918_v55 = vadd.f32 %v12658_v39, %v12729_v34 }
 0x56a   : > { %v3773_v18 = vpack.c.bf16 %v3732_v41, %v3731_v40  ;;  %v2838_v53 = vadd.f32 1.4214138, %v2774_v36  ;;  %4245 = vadd.xlane.f32.xlu1 %v4244_v12  ;;  %v4274_v0 = vsel %vm1033_vm2, %v12903_v21, 0.0  ;;  %v12931_v34 = vadd.f32 %v7952_v13, %v12658_v39 }
 0x56b   : > { %v2901_v8 = vmul.f32 %v12839_v35, %v2837_v25  ;;  %v4256_v62 = vsel %vm1033_vm2, %v12894_v43, 0.0  ;;  %v2069_v13 = vmul.f32 0.5, %v12722_v5  ;;  %v2070_v9 = vmul.f32 0.5, %v12725_v7 }
 0x56c   : > { %7981 = vmatprep.mubr.msk.bf16.mxu1 %vm1033_vm2, %v3773_v18  ;;  %v2902_v44 = vmul.f32 %v12844_v17, %v2838_v53  ;;  %v8604_v41 = vpop.eup %8603  ;;  %v12923_v18 = vadd.f32 %v12658_v39, %v12754_v22  ;;  %16151 = vst [vmem:[#allocation65_spill] sm:$0xff] %v12931_v34  ;;  %v4265_v22 = vsel %vm1033_vm2, %v12918_v55, 0.0 }
 0x56d   : > { %v2965_v49 = vadd.f32 -0.28449672, %v2901_v8  ;;  %4260 = vadd.xlane.f32.xlu0 %v4259_v1  ;;  %v2262_v8 = vsel %vm2198_vm6, 1.0, %v16063_v3 }
 0x56e   : > { %v2966_v38 = vadd.f32 -0.28449672, %v2902_v44  ;;  %4263 = vadd.xlane.f32.xlu1 %v4262_v54  ;;  %v8606_v25 = vpop.eup %8605  ;;  %v4268_v56 = vsel %vm1033_vm2, %v12923_v18, 0.0 }
 0x56f   : > { %v3029_v50 = vmul.f32 %v12839_v35, %v2965_v49  ;;  %v4286_v49 = vsel %vm1033_vm2, %v12931_v34, 0.0 }
 0x570   : > { %v3030_v24 = vmul.f32 %v12844_v17, %v2966_v38 }
 0x571   : > { %v3093_v40 = vadd.f32 0.2548296, %v3029_v50  ;;  %4254 = vadd.xlane.f32.xlu0 %v4253_v32  ;;  %v12947_v50 = vadd.f32 %v12658_v39, %v12858_v30  ;;  %v12951_v32 = vadd.f32 %v12658_v39, %v12869_v46 }
 0x572   : > { %v3094_v48 = vadd.f32 0.2548296, %v3030_v24  ;;  %4257 = vadd.xlane.f32.xlu1 %v4256_v62 }
 0x573   : > { %v3157_v20 = vmul.f32 %v12839_v35, %v3093_v40  ;;  %v4277_v62 = vsel %vm1033_vm2, %v12947_v50, 0.0  ;;  %v4280_v7 = vsel %vm1033_vm2, %v12951_v32, 0.0 }
 0x574   : > { %v3158_v36 = vmul.f32 %v12844_v17, %v3094_v48  ;;  %v12928_v17 = vadd.f32 %v12850_v16, %v12658_v39 }
 0x575   : > { %v3477_v12 = vmul.f32 %v8604_v41, %v3157_v20  ;;  %4272 = vadd.xlane.f32.xlu0 %v4271_v15 }
 0x576   : > { %v3478_v35 = vmul.f32 %v8606_v25, %v3158_v36  ;;  %4275 = vadd.xlane.f32.xlu1 %v4274_v0  ;;  %16150 = vst [vmem:[#allocation64_spill] sm:$0xff] %v12928_v17  ;;  %v4283_v16 = vsel %vm1033_vm2, %v12928_v17, 0.0 }
 0x577   : > { %v3541_v53 = vsub.f32 1.0, %v3477_v12 }
 0x578   : > { %v3542_v1 = vsub.f32 1.0, %v3478_v35 }
 0x579   : > { %v3605_v54 = vmul.f32 %v3541_v53, %v2261_v58  ;;  %4266 = vadd.xlane.f32.xlu0 %v4265_v22 }
 0x57a   : > { %v3606_v44 = vmul.f32 %v3542_v1, %v2262_v8  ;;  %4269 = vadd.xlane.f32.xlu1 %v4268_v56 }
 0x57b   : > { %v3669_v14 = vadd.f32 1.0, %v3605_v54 }
 0x57c   : > { %v3670_v38 = vadd.f32 1.0, %v3606_v44 }
 0x57d   : > { %v3733_v24 = vmul.f32 %v3669_v14, %v2069_v13  ;;  %4284 = vadd.xlane.f32.xlu0 %v4283_v16 }
 0x57e   : > { %v3734_v40 = vmul.f32 %v3670_v38, %v2070_v9  ;;  %4287 = vadd.xlane.f32.xlu1 %v4286_v49 }
 0x580   : > { %v3774_v5 = vpack.c.bf16 %v3734_v40, %v3733_v24 }
 0x581   : > { %4278 = vadd.xlane.f32.xlu0 %v4277_v62  ;;  %v7955_v48 = vpop.f32.mrb[64].mxu1 }
 0x582   : > { %7982 = vmatmul.mubr.msk.bf16.gmra.mrb[92].mxu1 %vm1033_vm2, %v3774_v5  ;;  %v12959_v30 = vadd.f32 %v7955_v48, %v12658_v39  ;;  %v4064_v15 = vpop.f32.mrb[65].mxu1  ;;  %4281 = vadd.xlane.f32.xlu1 %v4280_v7 }
 0x583   : > { %v7956_v46 = vpop.f32.mrb[66].mxu1  ;;  %v12962_v20 = vadd.f32 %v12658_v39, %v4064_v15 }
 0x584   : > { %16152 = vst [vmem:[#allocation66_spill] sm:$0xff] %v12959_v30  ;;  %v12965_v0 = vadd.f32 %v7956_v46, %v12658_v39  ;;  %v4067_v41 = vpop.f32.mrb[67].mxu1  ;;  %v4295_v36 = vsel %vm1033_vm2, %v12959_v30, 0.0 }
 0x585   : > { %16153 = vst [vmem:[#allocation69_spill] sm:$0xff] %v12962_v20  ;;  %4296 = vadd.xlane.f32.xlu0 %v4295_v36  ;;  %v12970_v25 = vadd.f32 %v12658_v39, %v4067_v41  ;;  %v4289_v35 = vsel %vm1033_vm2, %v12962_v20, 0.0 }
 0x586   : > { %16154 = vst [vmem:[#allocation70_spill] sm:$0xff] %v12965_v0  ;;  %v4298_v12 = vsel %vm1033_vm2, %v12965_v0, 0.0 }
 0x587   : > { %16155 = vst [vmem:[#allocation67_spill] sm:$0xff] %v12970_v25  ;;  %4299 = vadd.xlane.f32.xlu1 %v4298_v12  ;;  %v4292_v53 = vsel %vm1033_vm2, %v12970_v25, 0.0 }
 0x589   : > { %4290 = vadd.xlane.f32.xlu0 %v4289_v35 }
 0x58b   : > { %4293 = vadd.xlane.f32.xlu1 %v4292_v53 }
 0x59c   : > { %v7959_v58 = vpop.f32.mrb[68].mxu1 }
 0x59d   : > { %v12979_v1 = vadd.f32 %v7959_v58, %v12658_v39  ;;  %v4080_v22 = vpop.f32.mrb[69].mxu1 }
 0x59e   : > { %v7960_v8 = vpop.f32.mrb[70].mxu1  ;;  %v12982_v54 = vadd.f32 %v12658_v39, %v4080_v22 }
 0x59f   : > { %16156 = vst [vmem:[#allocation68_spill] sm:$0xff] %v12979_v1  ;;  %v12985_v56 = vadd.f32 %v7960_v8, %v12658_v39  ;;  %v4083_v44 = vpop.f32.mrb[71].mxu1  ;;  %v4307_v16 = vsel %vm1033_vm2, %v12979_v1, 0.0 }
 0x5a0   : > { %16157 = vst [vmem:[#allocation30_spill] sm:$0xff] %v12982_v54  ;;  %4308 = vadd.xlane.f32.xlu0 %v4307_v16  ;;  %v12990_v13 = vadd.f32 %v12658_v39, %v4083_v44  ;;  %v4301_v49 = vsel %vm1033_vm2, %v12982_v54, 0.0 }
 0x5a1   : > { %16158 = vst [vmem:[#allocation29_spill] sm:$0xff] %v12985_v56  ;;  %v4310_v14 = vsel %vm1033_vm2, %v12985_v56, 0.0 }
 0x5a2   : > { %16159 = vst [vmem:[#allocation34_spill] sm:$0xff] %v12990_v13  ;;  %4311 = vadd.xlane.f32.xlu1 %v4310_v14  ;;  %v4304_v9 = vsel %vm1033_vm2, %v12990_v13, 0.0 }
 0x5a4   : > { %4302 = vadd.xlane.f32.xlu0 %v4301_v49 }
 0x5a6   : > { %4305 = vadd.xlane.f32.xlu1 %v4304_v9 }
 0x5b8   : > { %v7963_v38 = vpop.f32.mrb[72].mxu1 }
 0x5b9   : > { %v12999_v24 = vadd.f32 %v7963_v38, %v12658_v39  ;;  %v4096_v40 = vpop.f32.mrb[73].mxu1 }
 0x5ba   : > { %v7964_v5 = vpop.f32.mrb[74].mxu1  ;;  %v13002_v62 = vadd.f32 %v12658_v39, %v4096_v40 }
 0x5bb   : > { %16160 = vst [vmem:[#allocation33_spill] sm:$0xff] %v12999_v24  ;;  %v13005_v48 = vadd.f32 %v7964_v5, %v12658_v39  ;;  %v4099_v7 = vpop.f32.mrb[75].mxu1  ;;  %v4319_v15 = vsel %vm1033_vm2, %v12999_v24, 0.0 }
 0x5bc   : > { %16161 = vst [vmem:[#allocation32_spill] sm:$0xff] %v13002_v62  ;;  %4320 = vadd.xlane.f32.xlu0 %v4319_v15  ;;  %v13010_v46 = vadd.f32 %v12658_v39, %v4099_v7  ;;  %v4313_v36 = vsel %vm1033_vm2, %v13002_v62, 0.0 }
 0x5bd   : > { %16162 = vst [vmem:[#allocation31_spill] sm:$0xff] %v13005_v48  ;;  %v4322_v41 = vsel %vm1033_vm2, %v13005_v48, 0.0 }
 0x5be   : > { %16163 = vst [vmem:[#allocation71_spill] sm:$0xff] %v13010_v46  ;;  %4323 = vadd.xlane.f32.xlu1 %v4322_v41  ;;  %v4316_v12 = vsel %vm1033_vm2, %v13010_v46, 0.0 }
 0x5c0   : > { %4314 = vadd.xlane.f32.xlu0 %v4313_v36 }
 0x5c2   : > { %4317 = vadd.xlane.f32.xlu1 %v4316_v12 }
 0x5d3   : > { %v4204_v3 = vpop.xlane.xlu1 %4203 }
 0x5d4   : > { %v4388_v62 = vmul.f32 0.015625, %v4204_v3 }
 0x5d5   : > { %v7967_v35 = vpop.f32.mrb[76].mxu1 }
 0x5d6   : > { %v13019_v53 = vadd.f32 %v7967_v35, %v12658_v39  ;;  %v4112_v58 = vpop.f32.mrb[77].mxu1  ;;  %v13126_v30 = vsub.f32 %v12670_v42, %v4388_v62 }
 0x5d7   : > { %v7968_v22 = vpop.f32.mrb[78].mxu1  ;;  %v13022_v8 = vadd.f32 %v12658_v39, %v4112_v58 }
 0x5d8   : > { %16164 = vst [vmem:[#allocation72_spill] sm:$0xff] %v13019_v53  ;;  %v13025_v44 = vadd.f32 %v7968_v22, %v12658_v39  ;;  %v4115_v16 = vpop.f32.mrb[79].mxu1  ;;  %v4331_v14 = vsel %vm1033_vm2, %v13019_v53, 0.0  ;;  %16181 = vst [vmem:[#allocation46_spill] sm:$0xff] %v13126_v30 }
 0x5d9   : > { %16165 = vst [vmem:[#allocation37_spill] sm:$0xff] %v13022_v8  ;;  %4332 = vadd.xlane.f32.xlu0 %v4331_v14  ;;  %v13030_v49 = vadd.f32 %v12658_v39, %v4115_v16  ;;  %v4325_v38 = vsel %vm1033_vm2, %v13022_v8, 0.0 }
 0x5da   : > { %16166 = vst [vmem:[#allocation36_spill] sm:$0xff] %v13025_v44  ;;  %v4334_v9 = vsel %vm1033_vm2, %v13025_v44, 0.0 }
 0x5db   : > { %16167 = vst [vmem:[#allocation73_spill] sm:$0xff] %v13030_v49  ;;  %4335 = vadd.xlane.f32.xlu1 %v4334_v9  ;;  %v4328_v40 = vsel %vm1033_vm2, %v13030_v49, 0.0 }
 0x5dd   : > { %4326 = vadd.xlane.f32.xlu0 %v4325_v38 }
 0x5df   : > { %4329 = vadd.xlane.f32.xlu1 %v4328_v40 }
 0x5f1   : > { %v7971_v5 = vpop.f32.mrb[80].mxu1 }
 0x5f2   : > { %v13039_v7 = vadd.f32 %v7971_v5, %v12658_v39  ;;  %v4128_v15 = vpop.f32.mrb[81].mxu1 }
 0x5f3   : > { %v7972_v41 = vpop.f32.mrb[82].mxu1  ;;  %v13042_v36 = vadd.f32 %v12658_v39, %v4128_v15 }
 0x5f4   : > { %16168 = vst [vmem:[#allocation74_spill] sm:$0xff] %v13039_v7  ;;  %v13045_v12 = vadd.f32 %v7972_v41, %v12658_v39  ;;  %v4131_v35 = vpop.f32.mrb[83].mxu1  ;;  %v4343_v58 = vsel %vm1033_vm2, %v13039_v7, 0.0 }
 0x5f5   : > { %16169 = vst [vmem:[#allocation75_spill] sm:$0xff] %v13042_v36  ;;  %4344 = vadd.xlane.f32.xlu0 %v4343_v58  ;;  %v13050_v22 = vadd.f32 %v12658_v39, %v4131_v35  ;;  %v4337_v14 = vsel %vm1033_vm2, %v13042_v36, 0.0 }
 0x5f6   : > { %16170 = vst [vmem:[#allocation76_spill] sm:$0xff] %v13045_v12  ;;  %v4346_v16 = vsel %vm1033_vm2, %v13045_v12, 0.0 }
 0x5f7   : > { %16171 = vst [vmem:[#allocation77_spill] sm:$0xff] %v13050_v22  ;;  %4347 = vadd.xlane.f32.xlu1 %v4346_v16  ;;  %v4340_v9 = vsel %vm1033_vm2, %v13050_v22, 0.0 }
 0x5f9   : > { %4338 = vadd.xlane.f32.xlu0 %v4337_v14 }
 0x5fb   : > { %4341 = vadd.xlane.f32.xlu1 %v4340_v9 }
 0x60f   : > { %v7975_v38 = vpop.f32.mrb[84].mxu1 }
 0x610   : > { %v13059_v40 = vadd.f32 %v7975_v38, %v12658_v39  ;;  %v4144_v5 = vpop.f32.mrb[85].mxu1 }
 0x611   : > { %v7976_v15 = vpop.f32.mrb[86].mxu1  ;;  %v13062_v41 = vadd.f32 %v12658_v39, %v4144_v5 }
 0x612   : > { %16172 = vst [vmem:[#allocation78_spill] sm:$0xff] %v13059_v40  ;;  %v13065_v35 = vadd.f32 %v7976_v15, %v12658_v39  ;;  %v4147_v58 = vpop.f32.mrb[87].mxu1  ;;  %v4355_v16 = vsel %vm1033_vm2, %v13059_v40, 0.0  ;;  %v4201_v15 = vpop.xlane.xlu0 %4200 }
 0x613   : > { %16173 = vst [vmem:[#allocation79_spill] sm:$0xff] %v13062_v41  ;;  %4356 = vadd.xlane.f32.xlu0 %v4355_v16  ;;  %v13070_v14 = vadd.f32 %v12658_v39, %v4147_v58  ;;  %v4349_v38 = vsel %vm1033_vm2, %v13062_v41, 0.0  ;;  %v4198_v40 = vpop.xlane.xlu1 %4197 }
 0x614   : > { %16174 = vst [vmem:[#allocation80_spill] sm:$0xff] %v13065_v35  ;;  %v4358_v9 = vsel %vm1033_vm2, %v13065_v35, 0.0  ;;  %v4386_v25 = vmul.f32 0.015625, %v4198_v40 }
 0x615   : > { %16175 = vst [vmem:[#allocation41_spill] sm:$0xff] %v13070_v14  ;;  %4359 = vadd.xlane.f32.xlu1 %v4358_v9  ;;  %v4352_v5 = vsel %vm1033_vm2, %v13070_v14, 0.0 }
 0x616   : > { %v4195_v12 = vpop.xlane.xlu0 %4194  ;;  %v13148_v62 = vsub.f32 %v12679_v47, %v4386_v25 }
 0x617   : > { %4350 = vadd.xlane.f32.xlu0 %v4349_v38  ;;  %v4216_v14 = vpop.xlane.xlu1 %4215  ;;  %v4385_v13 = vmul.f32 0.015625, %v4195_v12 }
 0x618   : > { %v4392_v40 = vmul.f32 0.015625, %v4216_v14 }
 0x619   : > { %4353 = vadd.xlane.f32.xlu1 %v4352_v5  ;;  %v13138_v12 = vsub.f32 %v12674_v59, %v4385_v13  ;;  %v4516_v59 = vmul.f32 %v13126_v30, %v13126_v30  ;;  %v4514_v30 = vmul.f32 %v13148_v62, %v13148_v62 }
 0x61a   : > { %v4213_v22 = vpop.xlane.xlu0 %4212  ;;  %v13165_v14 = vsub.f32 %v12706_v61, %v4392_v40 }
 0x61b   : > { %v4513_v47 = vmul.f32 %v13138_v12, %v13138_v12  ;;  %v4580_v40 = vsel %vm1033_vm2, %v4514_v30, 0.0 }
 0x61e   : > { %v4207_v44 = vpop.xlane.xlu0 %4206 }
 0x622   : > { %v4225_v49 = vpop.xlane.xlu0 %4224 }
 0x629   : > { %v7979_v16 = vpop.f32.mrb[88].mxu1 }
 0x62a   : > { %v13079_v58 = vadd.f32 %v7979_v16, %v12658_v39  ;;  %v4160_v7 = vpop.f32.mrb[89].mxu1 }
 0x62b   : > { %v7980_v35 = vpop.f32.mrb[90].mxu1  ;;  %v13082_v9 = vadd.f32 %v12658_v39, %v4160_v7 }
 0x62c   : > { %16176 = vst [vmem:[#allocation40_spill] sm:$0xff] %v13079_v58  ;;  %v13085_v38 = vadd.f32 %v7980_v35, %v12658_v39  ;;  %v4163_v41 = vpop.f32.mrb[91].mxu1  ;;  %v4367_v5 = vsel %vm1033_vm2, %v13079_v58, 0.0  ;;  %v4210_v35 = vpop.xlane.xlu1 %4209 }
 0x62d   : > { %16177 = vst [vmem:[#allocation38_spill] sm:$0xff] %v13082_v9  ;;  %4368 = vadd.xlane.f32.xlu0 %v4367_v5  ;;  %v13090_v36 = vadd.f32 %v12658_v39, %v4163_v41  ;;  %v4361_v7 = vsel %vm1033_vm2, %v13082_v9, 0.0  ;;  %v4219_v5 = vpop.xlane.xlu0 %4218 }
 0x62e   : > { %16178 = vst [vmem:[#allocation39_spill] sm:$0xff] %v13085_v38  ;;  %v4370_v16 = vsel %vm1033_vm2, %v13085_v38, 0.0 }
 0x62f   : > { %16179 = vst [vmem:[#allocation43_spill] sm:$0xff] %v13090_v36  ;;  %4371 = vadd.xlane.f32.xlu1 %v4370_v16  ;;  %v4364_v53 = vsel %vm1033_vm2, %v13090_v36, 0.0 }
 0x630   : > { %v4228_v58 = vpop.xlane.xlu1 %4227 }
 0x631   : > { %4362 = vadd.xlane.f32.xlu0 %v4361_v7  ;;  %v13100_v41 = vpop.xlane.xlu0 %4236 }
 0x633   : > { %4365 = vadd.xlane.f32.xlu1 %v4364_v53  ;;  %v4387_v53 = vmul.f32 0.015625, %v4201_v15 }
 0x634   : > { %v13098_v8 = vpop.xlane.xlu1 %4221 }
 0x635   : > { %v13104_v16 = vpop.xlane.xlu0 %4230  ;;  %v13119_v56 = vsub.f32 %v12666_v19, %v4387_v53  ;;  %v4391_v53 = vmul.f32 0.015625, %v4213_v22  ;;  %v4389_v22 = vmul.f32 0.015625, %v4207_v44  ;;  %v4395_v44 = vmul.f32 0.015625, %v4225_v49 }
 0x636   : > { %v4394_v30 = vmul.f32 0.015625, %v13098_v8 }
 0x637   : > { %16180 = vst [vmem:[#allocation49_spill] sm:$0xff] %v13119_v56  ;;  %v4515_v19 = vmul.f32 %v13119_v56, %v13119_v56  ;;  %v13187_v49 = vsub.f32 %v12752_v29, %v4395_v44 }
 0x638   : > { %v13102_v48 = vpop.xlane.xlu1 %4239  ;;  %v13211_v8 = vsub.f32 %v12791_v60, %v4394_v30 }
 0x639   : > { %v13108_v9 = vpop.xlane.xlu0 %4248 }
 0x63c   : > { %v13106_v38 = vpop.xlane.xlu1 %4233 }
 0x63d   : > { %v13112_v24 = vpop.xlane.xlu0 %4242 }
 0x640   : > { %v13110_v7 = vpop.xlane.xlu1 %4251 }
 0x641   : > { %v13116_v46 = vpop.xlane.xlu0 %4260 }
 0x644   : > { %v13114_v36 = vpop.xlane.xlu1 %4245 }
 0x645   : > { %v13133_v34 = vpop.xlane.xlu0 %4254 }
 0x648   : > { %v13121_v1 = vpop.xlane.xlu1 %4263 }
 0x649   : > { %v13154_v13 = vpop.xlane.xlu0 %4272 }
 0x655   : > { %v13123_v54 = vpop.f32.mrb[92].mxu1 }
 0x656   : > { %v4176_v0 = vpop.f32.mrb[93].mxu1 }
 0x657   : > { %v13129_v15 = vadd.f32 %v12658_v39, %v4176_v0  ;;  %v13131_v20 = vpop.f32.mrb[94].mxu1  ;;  %v13145_v0 = vpop.xlane.xlu1 %4257 }
 0x658   : > { %v4179_v3 = vpop.f32.mrb[95].mxu1 }
 0x659   : > { %v13141_v17 = vadd.f32 %v12658_v39, %v4179_v3  ;;  %v4373_v42 = vsel %vm1033_vm2, %v13129_v15, 0.0  ;;  %v13157_v39 = vsub.f32 %v12698_v6, %v4391_v53  ;;  %v4583_v3 = vsel %vm1033_vm2, %v4515_v19, 0.0 }
 0x65a   : > { %4374 = vadd.xlane.f32.xlu0 %v4373_v42  ;;  %v4390_v42 = vmul.f32 0.015625, %v4210_v35  ;;  %v13171_v6 = vsub.f32 %v12739_v52, %v4389_v22  ;;  %v4577_v19 = vsel %vm1033_vm2, %v4513_v47, 0.0  ;;  %v4396_v35 = vmul.f32 0.015625, %v4228_v58 }
 0x65b   : > { %v4376_v56 = vsel %vm1033_vm2, %v13141_v17, 0.0  ;;  %v13162_v25 = vpop.xlane.xlu1 %4275  ;;  %v4519_v53 = vmul.f32 %v13157_v39, %v13157_v39  ;;  %v4393_v22 = vmul.f32 0.015625, %v4219_v5  ;;  %v4399_v5 = vmul.f32 0.015625, %v13100_v41 }
 0x65c   : > { %4377 = vadd.xlane.f32.xlu1 %v4376_v56  ;;  %v4586_v56 = vsel %vm1033_vm2, %v4516_v59, 0.0  ;;  %v13179_v61 = vsub.f32 %v12748_v26, %v4390_v42  ;;  %v4520_v59 = vmul.f32 %v13165_v14, %v13165_v14  ;;  %v13193_v26 = vsub.f32 %v12765_v27, %v4396_v35 }
 0x65d   : > { %v4595_v47 = vsel %vm1033_vm2, %v4519_v53, 0.0  ;;  %v13202_v29 = vsub.f32 %v12783_v28, %v4393_v22  ;;  %v4523_v27 = vmul.f32 %v13187_v49, %v13187_v49  ;;  %v4400_v35 = vmul.f32 0.015625, %v13102_v48 }
 0x65e   : > { %4584 = vadd.xlane.f32.xlu0 %v4583_v3  ;;  %v13176_v3 = vpop.xlane.xlu0 %4266  ;;  %v4598_v58 = vsel %vm1033_vm2, %v4520_v59, 0.0  ;;  %v4518_v42 = vmul.f32 %v13179_v61, %v13179_v61  ;;  %v4524_v28 = vmul.f32 %v13193_v26, %v13193_v26  ;;  %v13218_v41 = vsub.f32 %v12797_v51, %v4399_v5 }
 0x65f   : > { %v13184_v52 = vpop.xlane.xlu1 %4269  ;;  %v4397_v59 = vmul.f32 0.015625, %v13104_v16  ;;  %v4607_v22 = vsel %vm1033_vm2, %v4523_v27, 0.0  ;;  %v13227_v48 = vsub.f32 %v12801_v33, %v4400_v35  ;;  %v4522_v51 = vmul.f32 %v13211_v8, %v13211_v8 }
 0x660   : > { %4587 = vadd.xlane.f32.xlu1 %v4586_v56  ;;  %v4517_v56 = vmul.f32 %v13171_v6, %v13171_v6  ;;  %v4610_v30 = vsel %vm1033_vm2, %v4524_v28, 0.0  ;;  %v4527_v33 = vmul.f32 %v13218_v41, %v13218_v41 }
 0x661   : > { %v13236_v16 = vsub.f32 %v12815_v57, %v4397_v59  ;;  %v4604_v27 = vsel %vm1033_vm2, %v4522_v51, 0.0  ;;  %v4528_v35 = vmul.f32 %v13227_v48, %v13227_v48 }
 0x662   : > { %4578 = vadd.xlane.f32.xlu0 %v4577_v19  ;;  %v13199_v19 = vpop.xlane.xlu0 %4284  ;;  %v4589_v44 = vsel %vm1033_vm2, %v4517_v56, 0.0  ;;  %v4398_v56 = vmul.f32 0.015625, %v13106_v38  ;;  %v4619_v28 = vsel %vm1033_vm2, %v4527_v33, 0.0 }
 0x663   : > { %v13208_v53 = vpop.xlane.xlu1 %4287 }
 0x664   : > { %4581 = vadd.xlane.f32.xlu1 %v4580_v40  ;;  %v4592_v40 = vsel %vm1033_vm2, %v4518_v42, 0.0  ;;  %v4403_v42 = vmul.f32 0.015625, %v13108_v9  ;;  %v13243_v38 = vsub.f32 %v12820_v23, %v4398_v56  ;;  %v4525_v23 = vmul.f32 %v13236_v16, %v13236_v16 }
 0x665   : > { %v4407_v56 = vmul.f32 0.015625, %v13116_v46 }
 0x666   : > { %4596 = vadd.xlane.f32.xlu0 %v4595_v47  ;;  %v4521_v47 = vmul.f32 %v13202_v29, %v13202_v29  ;;  %v13224_v60 = vpop.xlane.xlu0 %4278  ;;  %v13252_v9 = vsub.f32 %v12826_v31, %v4403_v42  ;;  %v4526_v31 = vmul.f32 %v13243_v38, %v13243_v38  ;;  %v4408_v42 = vmul.f32 0.015625, %v13121_v1 }
 0x667   : > { %v13286_v46 = vsub.f32 %v12867_v4, %v4407_v56 }
 0x668   : > { %4599 = vadd.xlane.f32.xlu1 %v4598_v58  ;;  %v13233_v58 = vpop.xlane.xlu1 %4281  ;;  %v4601_v5 = vsel %vm1033_vm2, %v4521_v47, 0.0  ;;  %v4622_v47 = vsel %vm1033_vm2, %v4528_v35, 0.0  ;;  %v4531_v51 = vmul.f32 %v13252_v9, %v13252_v9  ;;  %v13293_v1 = vsub.f32 %v12874_v2, %v4408_v42 }
 0x669   : > { %v4406_v35 = vmul.f32 0.015625, %v13145_v0  ;;  %v4410_v42 = vmul.f32 0.015625, %v13184_v52 }
 0x66a   : > { %4590 = vadd.xlane.f32.xlu0 %v4589_v44  ;;  %v4404_v44 = vmul.f32 0.015625, %v13110_v7  ;;  %v13249_v57 = vpop.xlane.xlu0 %4296 }
 0x66b   : > { %v13310_v0 = vsub.f32 %v12894_v43, %v4406_v35 }
 0x66c   : > { %4593 = vadd.xlane.f32.xlu1 %v4592_v40  ;;  %v4401_v40 = vmul.f32 0.015625, %v13112_v24  ;;  %v13258_v59 = vpop.xlane.xlu1 %4299  ;;  %v13261_v7 = vsub.f32 %v12832_v37, %v4404_v44  ;;  %v4405_v44 = vmul.f32 0.015625, %v13133_v34 }
 0x66e   : > { %4608 = vadd.xlane.f32.xlu0 %v4607_v22  ;;  %v4402_v22 = vmul.f32 0.015625, %v13114_v36  ;;  %v13268_v24 = vsub.f32 %v12856_v11, %v4401_v40  ;;  %v13274_v37 = vpop.xlane.xlu0 %4290  ;;  %v4532_v11 = vmul.f32 %v13261_v7, %v13261_v7  ;;  %v13302_v34 = vsub.f32 %v12890_v10, %v4405_v44  ;;  %v8999_v44 = vld [vmem:[#allocation13] ss:$0 sm:$0xff] }
 0x66f   : > { %v4409_v10 = vmul.f32 0.015625, %v13176_v3  ;;  %v13328_v3 = vadd.f32 %v8999_v44, %v13123_v54  ;;  %v13336_v52 = vadd.f32 %v8999_v44, %v13131_v20 }
 0x670   : > { %4611 = vadd.xlane.f32.xlu1 %v4610_v30  ;;  %v4613_v30 = vsel %vm1033_vm2, %v4525_v23, 0.0  ;;  %v13277_v36 = vsub.f32 %v12863_v45, %v4402_v22  ;;  %v13283_v33 = vpop.xlane.xlu1 %4293  ;;  %v4529_v45 = vmul.f32 %v13268_v24, %v13268_v24  ;;  %v4634_v40 = vsel %vm1033_vm2, %v4532_v11, 0.0 }
 0x671   : > { %v4535_v22 = vmul.f32 %v13286_v46, %v13286_v46 }
 0x672   : > { %4602 = vadd.xlane.f32.xlu0 %v4601_v5  ;;  %v4616_v5 = vsel %vm1033_vm2, %v4526_v31, 0.0  ;;  %v13299_v4 = vpop.xlane.xlu0 %4308  ;;  %v4625_v23 = vsel %vm1033_vm2, %v4529_v45, 0.0  ;;  %v4536_v31 = vmul.f32 %v13293_v1, %v13293_v1  ;;  %v13332_v45 = vsub.f32 %v12918_v55, %v4409_v10 }
 0x673   : > { %v4643_v56 = vsel %vm1033_vm2, %v4535_v22, 0.0  ;;  %v4413_v55 = vmul.f32 0.015625, %v13224_v60  ;;  %v4379_v22 = vsel %vm1033_vm2, %v13328_v3, 0.0 }
 0x674   : > { %4605 = vadd.xlane.f32.xlu1 %v4604_v27  ;;  %v4631_v27 = vsel %vm1033_vm2, %v4531_v51, 0.0  ;;  %v13307_v2 = vpop.xlane.xlu1 %4311  ;;  %v4646_v43 = vsel %vm1033_vm2, %v4536_v31, 0.0  ;;  %v4537_v20 = vmul.f32 %v13332_v45, %v13332_v45  ;;  %v4415_v31 = vmul.f32 0.015625, %v13199_v19 }
 0x675   : > { %v13365_v10 = vsub.f32 %v12947_v50, %v4413_v55  ;;  %v16182_v50 = vld [vmem:[#allocation64_spill] sm:$0xff] }
 0x676   : > { %4620 = vadd.xlane.f32.xlu0 %v4619_v28  ;;  %v4530_v28 = vmul.f32 %v13277_v36, %v13277_v36  ;;  %v13319_v51 = vpop.xlane.xlu0 %4302  ;;  %v13378_v44 = vsub.f32 %v16182_v50, %v4415_v31 }
 0x678   : > { %4623 = vadd.xlane.f32.xlu1 %v4622_v47  ;;  %v4628_v47 = vsel %vm1033_vm2, %v4530_v28, 0.0  ;;  %v13325_v11 = vpop.xlane.xlu1 %4305  ;;  %v13340_v28 = vsub.f32 %v12923_v18, %v4410_v42  ;;  %v4543_v31 = vmul.f32 %v13378_v44, %v13378_v44 }
 0x67a   : > { %4614 = vadd.xlane.f32.xlu0 %v4613_v30  ;;  %v4533_v30 = vmul.f32 %v13302_v34, %v13302_v34  ;;  %v13343_v54 = vpop.xlane.xlu0 %4320  ;;  %v4538_v60 = vmul.f32 %v13340_v28, %v13340_v28 }
 0x67c   : > { %4617 = vadd.xlane.f32.xlu1 %v4616_v5  ;;  %v4534_v5 = vmul.f32 %v13310_v0, %v13310_v0  ;;  %v4637_v35 = vsel %vm1033_vm2, %v4533_v30, 0.0 }
 0x67e   : > { %4632 = vadd.xlane.f32.xlu0 %v4631_v27  ;;  %v4411_v27 = vmul.f32 0.015625, %v13154_v13  ;;  %v4315_v30 = vpop.xlane.xlu0 %4314 }
 0x680   : > { %4635 = vadd.xlane.f32.xlu1 %v4634_v40  ;;  %v4412_v40 = vmul.f32 0.015625, %v13162_v25  ;;  %v13346_v13 = vsub.f32 %v12898_v63, %v4411_v27  ;;  %v13353_v25 = vpop.xlane.xlu1 %4323  ;;  %v4382_v63 = vsel %vm1033_vm2, %v13336_v52, 0.0  ;;  %v4417_v27 = vmul.f32 0.015625, %v13274_v37 }
 0x681   : > { %v4419_v37 = vmul.f32 0.015625, %v13249_v57 }
 0x682   : > { %4626 = vadd.xlane.f32.xlu0 %v4625_v23  ;;  %v4640_v23 = vsel %vm1033_vm2, %v4534_v5, 0.0  ;;  %v13356_v18 = vsub.f32 %v12903_v21, %v4412_v40  ;;  %v4539_v21 = vmul.f32 %v13346_v13, %v13346_v13 }
 0x684   : > { %4629 = vadd.xlane.f32.xlu1 %v4628_v47  ;;  %v4414_v47 = vmul.f32 0.015625, %v13233_v58  ;;  %v4416_v58 = vmul.f32 0.015625, %v13208_v53  ;;  %v4540_v19 = vmul.f32 %v13356_v18, %v13356_v18  ;;  %v4318_v5 = vpop.xlane.xlu1 %4317  ;;  %v4541_v53 = vmul.f32 %v13365_v10, %v13365_v10 }
 0x686   : > { %4644 = vadd.xlane.f32.xlu0 %v4643_v56  ;;  %v4649_v56 = vsel %vm1033_vm2, %v4537_v20, 0.0  ;;  %v13372_v42 = vsub.f32 %v12951_v32, %v4414_v47  ;;  %v16183_v32 = vld [vmem:[#allocation65_spill] sm:$0xff]  ;;  %v4658_v55 = vsel %vm1033_vm2, %v4540_v19, 0.0  ;;  %v13391_v20 = vpop.xlane.xlu0 %4332  ;;  %v16188_v19 = vld [vmem:[#allocation66_spill] sm:$0xff] }
 0x687   : > { %v13385_v40 = vsub.f32 %v16183_v32, %v4416_v58  ;;  %v16184_v47 = vld [vmem:[#allocation69_spill] sm:$0xff]  ;;  %v13410_v50 = vsub.f32 %v16188_v19, %v4419_v37  ;;  %v16190_v32 = vld [vmem:[#allocation70_spill] sm:$0xff] }
 0x688   : > { %4647 = vadd.xlane.f32.xlu1 %v4646_v43  ;;  %v4652_v43 = vsel %vm1033_vm2, %v4538_v60, 0.0  ;;  %v4661_v60 = vsel %vm1033_vm2, %v4541_v53, 0.0 }
 0x689   : > { %v4544_v57 = vmul.f32 %v13385_v40, %v13385_v40  ;;  %16189 = vst [vmem:[#allocation51_spill] sm:$0xff] %v13410_v50 }
 0x68a   : > { %4638 = vadd.xlane.f32.xlu0 %v4637_v35  ;;  %v4655_v35 = vsel %vm1033_vm2, %v4539_v21, 0.0  ;;  %v16186_v21 = vld [vmem:[#allocation67_spill] sm:$0xff] }
 0x68c   : > { %4641 = vadd.xlane.f32.xlu1 %v4640_v23  ;;  %v4418_v23 = vmul.f32 0.015625, %v13283_v33  ;;  %v4420_v33 = vmul.f32 0.015625, %v13258_v59  ;;  %v4327_v59 = vpop.xlane.xlu0 %4326 }
 0x68e   : > { %4380 = vadd.xlane.f32.xlu0 %v4379_v22  ;;  %v4542_v22 = vmul.f32 %v13372_v42, %v13372_v42  ;;  %v13404_v58 = vsub.f32 %v16186_v21, %v4418_v23  ;;  %v13417_v23 = vsub.f32 %v16190_v32, %v4420_v33  ;;  %v4547_v33 = vmul.f32 %v13410_v50, %v13410_v50 }
 0x690   : > { %4383 = vadd.xlane.f32.xlu1 %v4382_v63  ;;  %v13395_v63 = vsub.f32 %v16184_v47, %v4417_v27  ;;  %16187 = vst [vmem:[#allocation50_spill] sm:$0xff] %v13404_v58  ;;  %v4421_v27 = vmul.f32 0.015625, %v13319_v51  ;;  %16191 = vst [vmem:[#allocation47_spill] sm:$0xff] %v13417_v23  ;;  %v4546_v37 = vmul.f32 %v13404_v58, %v13404_v58  ;;  %v4423_v51 = vmul.f32 0.015625, %v13299_v4  ;;  %v4345_v4 = vpop.xlane.xlu0 %4344 }
 0x692   : > { %4650 = vadd.xlane.f32.xlu0 %v4649_v56  ;;  %16185 = vst [vmem:[#allocation48_spill] sm:$0xff] %v13395_v63  ;;  %v13400_v56 = vpop.xlane.xlu1 %4335  ;;  %v4545_v53 = vmul.f32 %v13395_v63, %v13395_v63  ;;  %v4676_v19 = vsel %vm1033_vm2, %v4546_v37, 0.0  ;;  %v4426_v37 = vmul.f32 0.015625, %v4318_v5  ;;  %v4428_v5 = vmul.f32 0.015625, %v13353_v25  ;;  %v16206_v25 = vld [vmem:[#allocation31_spill] sm:$0xff] }
 0x694   : > { %4653 = vadd.xlane.f32.xlu1 %v4652_v43  ;;  %v4664_v43 = vsel %vm1033_vm2, %v4542_v22, 0.0  ;;  %v4670_v22 = vsel %vm1033_vm2, %v4544_v57, 0.0  ;;  %v4673_v21 = vsel %vm1033_vm2, %v4545_v53, 0.0  ;;  %v4425_v53 = vmul.f32 0.015625, %v4315_v30  ;;  %v16200_v30 = vld [vmem:[#allocation32_spill] sm:$0xff] }
 0x696   : > { %4656 = vadd.xlane.f32.xlu0 %v4655_v35  ;;  %v4667_v35 = vsel %vm1033_vm2, %v4543_v31, 0.0  ;;  %v4330_v47 = vpop.xlane.xlu1 %4329 }
 0x698   : > { %4659 = vadd.xlane.f32.xlu1 %v4658_v55  ;;  %v4422_v55 = vmul.f32 0.015625, %v13325_v11  ;;  %v4424_v11 = vmul.f32 0.015625, %v13307_v2 }
 0x69a   : > { %4662 = vadd.xlane.f32.xlu0 %v4661_v60  ;;  %v16192_v60 = vld [vmem:[#allocation30_spill] sm:$0xff]  ;;  %v4348_v2 = vpop.xlane.xlu1 %4347 }
 0x69b   : > { %v13425_v31 = vsub.f32 %v16192_v60, %v4421_v27  ;;  %v16196_v27 = vld [vmem:[#allocation68_spill] sm:$0xff] }
 0x69c   : > { %4665 = vadd.xlane.f32.xlu1 %v4664_v43  ;;  %v16194_v43 = vld [vmem:[#allocation34_spill] sm:$0xff]  ;;  %v13438_v32 = vsub.f32 %v16196_v27, %v4423_v51  ;;  %v4427_v51 = vmul.f32 0.015625, %v13343_v54  ;;  %v13451_v27 = vsub.f32 %v16200_v30, %v4425_v53  ;;  %v16204_v53 = vld [vmem:[#allocation33_spill] sm:$0xff] }
 0x69d   : > { %16193 = vst [vmem:[#allocation35_spill] sm:$0xff] %v13425_v31  ;;  %v13432_v57 = vsub.f32 %v16194_v43, %v4422_v55  ;;  %v4549_v60 = vmul.f32 %v13425_v31, %v13425_v31  ;;  %v16198_v55 = vld [vmem:[#allocation29_spill] sm:$0xff]  ;;  %v4339_v31 = vpop.xlane.xlu0 %4338 }
 0x69e   : > { %4668 = vadd.xlane.f32.xlu0 %v4667_v35  ;;  %v4548_v35 = vmul.f32 %v13417_v23, %v13417_v23  ;;  %16197 = vst [vmem:[#allocation52_spill] sm:$0xff] %v13438_v32  ;;  %16201 = vst [vmem:[#allocation55_spill] sm:$0xff] %v13451_v27  ;;  %v13464_v30 = vsub.f32 %v16204_v53, %v4427_v51  ;;  %v4431_v51 = vmul.f32 0.015625, %v13391_v20 }
 0x69f   : > { %16195 = vst [vmem:[#allocation53_spill] sm:$0xff] %v13432_v57 }
 0x6a0   : > { %4671 = vadd.xlane.f32.xlu1 %v4670_v22  ;;  %v4679_v22 = vsel %vm1033_vm2, %v4547_v33, 0.0  ;;  %v4682_v43 = vsel %vm1033_vm2, %v4548_v35, 0.0  ;;  %v4685_v33 = vsel %vm1033_vm2, %v4549_v60, 0.0  ;;  %16205 = vst [vmem:[#allocation57_spill] sm:$0xff] %v13464_v30  ;;  %v4429_v60 = vmul.f32 0.015625, %v4327_v59  ;;  %v16208_v59 = vld [vmem:[#allocation37_spill] sm:$0xff] }
 0x6a2   : > { %4674 = vadd.xlane.f32.xlu0 %v4673_v21  ;;  %v13444_v21 = vsub.f32 %v16198_v55, %v4424_v11  ;;  %v16202_v11 = vld [vmem:[#allocation71_spill] sm:$0xff]  ;;  %v13477_v53 = vsub.f32 %v16208_v59, %v4429_v60  ;;  %v16212_v60 = vld [vmem:[#allocation72_spill] sm:$0xff] }
 0x6a3   : > { %v13458_v35 = vsub.f32 %v16202_v11, %v4426_v37  ;;  %v13470_v37 = vsub.f32 %v16206_v25, %v4428_v5  ;;  %v4430_v11 = vmul.f32 0.015625, %v4330_v47  ;;  %v4432_v47 = vmul.f32 0.015625, %v13400_v56  ;;  %v16214_v56 = vld [vmem:[#allocation36_spill] sm:$0xff] }
 0x6a4   : > { %4677 = vadd.xlane.f32.xlu1 %v4676_v19  ;;  %16199 = vst [vmem:[#allocation44_spill] sm:$0xff] %v13444_v21  ;;  %v4550_v19 = vmul.f32 %v13432_v57, %v13432_v57  ;;  %v4552_v54 = vmul.f32 %v13444_v21, %v13444_v21  ;;  %16209 = vst [vmem:[#allocation45_spill] sm:$0xff] %v13477_v53 }
 0x6a5   : > { %16203 = vst [vmem:[#allocation54_spill] sm:$0xff] %v13458_v35  ;;  %16207 = vst [vmem:[#allocation56_spill] sm:$0xff] %v13470_v37  ;;  %v4554_v21 = vmul.f32 %v13458_v35, %v13458_v35  ;;  %v4556_v20 = vmul.f32 %v13470_v37, %v13470_v37 }
 0x6a6   : > { %4680 = vadd.xlane.f32.xlu0 %v4679_v22  ;;  %v4551_v22 = vmul.f32 %v13438_v32, %v13438_v32  ;;  %v4688_v55 = vsel %vm1033_vm2, %v4550_v19, 0.0  ;;  %v4694_v19 = vsel %vm1033_vm2, %v4552_v54, 0.0  ;;  %v16210_v54 = vld [vmem:[#allocation73_spill] sm:$0xff] }
 0x6a7   : > { %v13484_v25 = vsub.f32 %v16210_v54, %v4430_v11  ;;  %v4700_v35 = vsel %vm1033_vm2, %v4554_v21, 0.0  ;;  %v13496_v11 = vsub.f32 %v16214_v56, %v4432_v47  ;;  %v4706_v21 = vsel %vm1033_vm2, %v4556_v20, 0.0 }
 0x6a8   : > { %4683 = vadd.xlane.f32.xlu1 %v4682_v43  ;;  %v4342_v43 = vpop.xlane.xlu1 %4341  ;;  %v4691_v32 = vsel %vm1033_vm2, %v4551_v22, 0.0  ;;  %v4436_v47 = vmul.f32 0.015625, %v4348_v2 }
 0x6a9   : > { %16211 = vst [vmem:[#allocation42_spill] sm:$0xff] %v13484_v25  ;;  %16215 = vst [vmem:[#allocation59_spill] sm:$0xff] %v13496_v11  ;;  %v4434_v54 = vmul.f32 0.015625, %v4342_v43  ;;  %v16218_v43 = vld [vmem:[#allocation77_spill] sm:$0xff] }
 0x6aa   : > { %4686 = vadd.xlane.f32.xlu0 %v4685_v33  ;;  %v4553_v33 = vmul.f32 %v13451_v27, %v13451_v27 }
 0x6ab   : > { %v13508_v56 = vsub.f32 %v16218_v43, %v4434_v54  ;;  %v8220_v54 = vld [vmem:[#allocation17 + $0x8] sm:$0xff]  }
 0x6ac   : > { %4689 = vadd.xlane.f32.xlu1 %v4688_v55  ;;  %v4357_v55 = vpop.xlane.xlu0 %4356  ;;  %v4697_v22 = vsel %vm1033_vm2, %v4553_v33, 0.0  ;;  %v4360_v5 = vpop.xlane.xlu1 %4359  ;;  %v4433_v33 = vmul.f32 0.015625, %v4339_v31  ;;  %v16216_v31 = vld [vmem:[#allocation75_spill] sm:$0xff] }
 0x6ad   : > { %16219 = vst [vmem:[#allocation62_spill] sm:$0xff] %v13508_v56 }
 0x6ae   : > { %4692 = vadd.xlane.f32.xlu0 %v4691_v32  ;;  %v4555_v32 = vmul.f32 %v13464_v30, %v13464_v30 }
 0x6b0   : > { %4695 = vadd.xlane.f32.xlu1 %v4694_v19  ;;  %v13490_v19 = vsub.f32 %v16212_v60, %v4431_v51  ;;  %v4703_v59 = vsel %vm1033_vm2, %v4555_v32, 0.0  ;;  %v4351_v30 = vpop.xlane.xlu0 %4350  ;;  %v4354_v37 = vpop.xlane.xlu1 %4353  ;;  %v4435_v51 = vmul.f32 0.015625, %v4345_v4  ;;  %v13502_v60 = vsub.f32 %v16216_v31, %v4433_v33  ;;  %v16220_v33 = vld [vmem:[#allocation74_spill] sm:$0xff] }
 0x6b1   : > { %v4437_v31 = vmul.f32 0.015625, %v4351_v30  ;;  %v4439_v30 = vmul.f32 0.015625, %v4357_v55 }
 0x6b2   : > { %4698 = vadd.xlane.f32.xlu0 %v4697_v22  ;;  %16213 = vst [vmem:[#allocation58_spill] sm:$0xff] %v13490_v19  ;;  %v4557_v22 = vmul.f32 %v13477_v53, %v13477_v53  ;;  %16217 = vst [vmem:[#allocation60_spill] sm:$0xff] %v13502_v60  ;;  %v8219_v53 = vld [vmem:[#allocation17] sm:$0xff]   ;;  %v4561_v2 = vmul.f32 %v13502_v60, %v13502_v60 }
 0x6b3   : > { %7985 = vmatprep.subr.bf16.mxu0 %v8219_v53 }
 0x6b4   : > { %4701 = vadd.xlane.f32.xlu1 %v4700_v35  ;;  %v4558_v35 = vmul.f32 %v13484_v25, %v13484_v25  ;;  %v4709_v32 = vsel %vm1033_vm2, %v4557_v22, 0.0  ;;  %7986 = vmatpush3.bf16.msra.mxu0 %v8219_v53  ;;  %v13514_v22 = vsub.f32 %v16220_v33, %v4435_v51  ;;  %v4562_v53 = vmul.f32 %v13508_v56, %v13508_v56  ;;  %v16224_v51 = vld [vmem:[#allocation79_spill] sm:$0xff] }
 0x6b5   : > { %7987 = vmatprep.subr.bf16.mxu0 %v8220_v54 }
 0x6b6   : > { %4704 = vadd.xlane.f32.xlu0 %v4703_v59  ;;  %v4559_v59 = vmul.f32 %v13490_v19, %v13490_v19  ;;  %v4712_v20 = vsel %vm1033_vm2, %v4558_v35, 0.0  ;;  %16221 = vst [vmem:[#allocation61_spill] sm:$0xff] %v13514_v22  ;;  %v16222_v35 = vld [vmem:[#allocation76_spill] sm:$0xff]  ;;  %v4724_v56 = vsel %vm1033_vm2, %v4562_v53, 0.0 }
 0x6b7   : > { %v13520_v43 = vsub.f32 %v16222_v35, %v4436_v47  ;;  %v8221_v47 = vld [vmem:[#allocation17 + $0x10] sm:$0xff]  }
 0x6b8   : > { %4707 = vadd.xlane.f32.xlu1 %v4706_v21  ;;  %v4560_v21 = vmul.f32 %v13496_v11, %v13496_v11  ;;  %v4715_v19 = vsel %vm1033_vm2, %v4559_v59, 0.0  ;;  %v4438_v11 = vmul.f32 0.015625, %v4354_v37  ;;  %7988 = vmatpush3.bf16.msra.mxu0 %v8220_v54  ;;  %v13526_v59 = vsub.f32 %v16224_v51, %v4437_v31  ;;  %v16228_v31 = vld [vmem:[#allocation78_spill] sm:$0xff] }
 0x6b9   : > { %16223 = vst [vmem:[#allocation63_spill] sm:$0xff] %v13520_v43  ;;  %v4440_v37 = vmul.f32 0.015625, %v4360_v5  ;;  %v4564_v55 = vmul.f32 %v13520_v43, %v13520_v43  ;;  %7989 = vmatprep.subr.bf16.mxu0 %v8221_v47 }
 0x6ba   : > { %4710 = vadd.xlane.f32.xlu0 %v4709_v32  ;;  %v4369_v4 = vpop.xlane.xlu0 %4368  ;;  %v4718_v25 = vsel %vm1033_vm2, %v4560_v21, 0.0  ;;  %16225 = vst [vmem:[#allocation64_spill] sm:$0xff] %v13526_v59  ;;  %v16226_v21 = vld [vmem:[#allocation41_spill] sm:$0xff]  ;;  %v4565_v5 = vmul.f32 %v13526_v59, %v13526_v59 }
 0x6bb   : > { %v13532_v35 = vsub.f32 %v16226_v21, %v4438_v11  ;;  %v8222_v11 = vld [vmem:[#allocation17 + $0x18] sm:$0xff]   ;;  %v4730_v43 = vsel %vm1033_vm2, %v4564_v55, 0.0 }
 0x6bc   : > { %4713 = vadd.xlane.f32.xlu1 %v4712_v20  ;;  %v4372_v32 = vpop.xlane.xlu1 %4371  ;;  %v4721_v20 = vsel %vm1033_vm2, %v4561_v2, 0.0  ;;  %7990 = vmatpush3.bf16.msra.mxu0 %v8221_v47  ;;  %v13538_v2 = vsub.f32 %v16228_v31, %v4439_v30  ;;  %v4443_v30 = vmul.f32 0.015625, %v4369_v4  ;;  %v16232_v47 = vld [vmem:[#allocation38_spill] sm:$0xff]  ;;  %v16236_v4 = vld [vmem:[#allocation40_spill] sm:$0xff] }
 0x6bd   : > { %16227 = vst [vmem:[#allocation65_spill] sm:$0xff] %v13532_v35  ;;  %7991 = vmatprep.subr.bf16.mxu0 %v8222_v11 }
 0x6be   : > { %4716 = vadd.xlane.f32.xlu0 %v4715_v19  ;;  %v4563_v19 = vmul.f32 %v13514_v22, %v13514_v22  ;;  %v4363_v33 = vpop.xlane.xlu0 %4362  ;;  %16229 = vst [vmem:[#allocation69_spill] sm:$0xff] %v13538_v2  ;;  %v4567_v31 = vmul.f32 %v13538_v2, %v13538_v2 }
 0x6bf   : > { %v4441_v54 = vmul.f32 0.015625, %v4363_v33  ;;  %v4733_v33 = vsel %vm1033_vm2, %v4565_v5, 0.0 }
 0x6c0   : > { %4719 = vadd.xlane.f32.xlu1 %v4718_v25  ;;  %v4366_v25 = vpop.xlane.xlu1 %4365  ;;  %v4727_v51 = vsel %vm1033_vm2, %v4563_v19, 0.0  ;;  %7992 = vmatpush3.bf16.msra.mxu0 %v8222_v11  ;;  %v13562_v11 = vsub.f32 %v16236_v4, %v4443_v30 }
 0x6c1   : > { %v4442_v21 = vmul.f32 0.015625, %v4366_v25  ;;  %v13550_v19 = vsub.f32 %v16232_v47, %v4441_v54  ;;  %v16234_v25 = vld [vmem:[#allocation43_spill] sm:$0xff]  ;;  %v4739_v54 = vsel %vm1033_vm2, %v4567_v31, 0.0 }
 0x6c2   : > { %4722 = vadd.xlane.f32.xlu0 %v4721_v20  ;;  %v16230_v20 = vld [vmem:[#allocation80_spill] sm:$0xff]  ;;  %16237 = vst [vmem:[#allocation30_spill] sm:$0xff] %v13562_v11  ;;  %v4571_v30 = vmul.f32 %v13562_v11, %v13562_v11 }
 0x6c3   : > { %v13544_v53 = vsub.f32 %v16230_v20, %v4440_v37  ;;  %16233 = vst [vmem:[#allocation66_spill] sm:$0xff] %v13550_v19  ;;  %v4444_v37 = vmul.f32 0.015625, %v4372_v32  ;;  %v4569_v5 = vmul.f32 %v13550_v19, %v13550_v19  ;;  %v16238_v20 = vld [vmem:[#allocation39_spill] sm:$0xff]  ;;  %v13596_v19 = vld [vmem:[#allocation16] ss:$0 sm:$0xff] }
 0x6c4   : > { %4725 = vadd.xlane.f32.xlu1 %v4724_v56  ;;  %v4566_v56 = vmul.f32 %v13532_v35, %v13532_v35 }
 0x6c5   : > { %16231 = vst [vmem:[#allocation67_spill] sm:$0xff] %v13544_v53  ;;  %v13568_v32 = vsub.f32 %v16238_v20, %v4444_v37  ;;  %v4745_v47 = vsel %vm1033_vm2, %v4569_v5, 0.0  ;;  %v4751_v37 = vsel %vm1033_vm2, %v4571_v30, 0.0 }
 0x6c6   : > { %4728 = vadd.xlane.f32.xlu0 %v4727_v51  ;;  %v13556_v51 = vsub.f32 %v16234_v25, %v4442_v21  ;;  %v4736_v55 = vsel %vm1033_vm2, %v4566_v56, 0.0 }
 0x6c7   : > { %16239 = vst [vmem:[#allocation34_spill] sm:$0xff] %v13568_v32  ;;  %v4572_v31 = vmul.f32 %v13568_v32, %v13568_v32 }
 0x6c8   : > { %4731 = vadd.xlane.f32.xlu1 %v4730_v43  ;;  %16235 = vst [vmem:[#allocation70_spill] sm:$0xff] %v13556_v51  ;;  %v4568_v43 = vmul.f32 %v13544_v53, %v13544_v53  ;;  %v4570_v56 = vmul.f32 %v13556_v51, %v13556_v51  ;;  %v13593_v51 = vld [vmem:[#allocation14] ss:$0 sm:$0xff] }
 0x6c9   : > { %v4754_v25 = vsel %vm1033_vm2, %v4572_v31, 0.0 }
 0x6ca   : > { %4734 = vadd.xlane.f32.xlu0 %v4733_v33  ;;  %v4742_v21 = vsel %vm1033_vm2, %v4568_v43, 0.0  ;;  %v4748_v33 = vsel %vm1033_vm2, %v4570_v56, 0.0 }
 0x6cc   : > { %4737 = vadd.xlane.f32.xlu1 %v4736_v55 }
 0x6ce   : > { %4740 = vadd.xlane.f32.xlu0 %v4739_v54 }
 0x6d0   : > { %4743 = vadd.xlane.f32.xlu1 %v4742_v21 }
 0x6d2   : > { %4746 = vadd.xlane.f32.xlu0 %v4745_v47 }
 0x6d4   : > { %4749 = vadd.xlane.f32.xlu1 %v4748_v33 }
 0x6d6   : > { %4752 = vadd.xlane.f32.xlu0 %v4751_v37 }
 0x6d8   : > { %4755 = vadd.xlane.f32.xlu1 %v4754_v25 }
 0x6e7   : > { %v4375_v55 = vpop.xlane.xlu0 %4374 }
 0x6e8   : > { %v4445_v43 = vmul.f32 0.015625, %v4375_v55 }
 0x6e9   : > { %v4378_v4 = vpop.xlane.xlu1 %4377 }
 0x6ea   : > { %v13582_v54 = vsub.f32 %v13129_v15, %v4445_v43  ;;  %v4446_v5 = vmul.f32 0.015625, %v4378_v4 }
 0x6eb   : > { %v4585_v20 = vpop.xlane.xlu0 %4584 }
 0x6ec   : > { %16240 = vst [vmem:[#allocation68_spill] sm:$0xff] %v13582_v54  ;;  %v13585_v21 = vsub.f32 %v13141_v17, %v4446_v5  ;;  %v4771_v56 = vmul.f32 0.015625, %v4585_v20  ;;  %v4573_v47 = vmul.f32 %v13582_v54, %v13582_v54 }
 0x6ed   : > { %v4588_v30 = vpop.xlane.xlu1 %4587 }
 0x6ee   : > { %16241 = vst [vmem:[#allocation29_spill] sm:$0xff] %v13585_v21  ;;  %v4835_v33 = vadd.f32 1e-05, %v4771_v56  ;;  %v4772_v37 = vmul.f32 0.015625, %v4588_v30  ;;  %v4757_v31 = vsel %vm1033_vm2, %v4573_v47, 0.0  ;;  %v4574_v25 = vmul.f32 %v13585_v21, %v13585_v21 }
 0x6ef   : > { %4758 = vadd.xlane.f32.xlu0 %v4757_v31  ;;  %v4579_v15 = vpop.xlane.xlu0 %4578 }
 0x6f0   : > { %8607 = vrsqrt.f32 %v4835_v33  ;;  %v4836_v55 = vadd.f32 1e-05, %v4772_v37  ;;  %v4760_v43 = vsel %vm1033_vm2, %v4574_v25, 0.0  ;;  %v4769_v17 = vmul.f32 0.015625, %v4579_v15  ;;  %v16242_v33 = vld [vmem:[#allocation49_spill] sm:$0xff] }
 0x6f1   : > { %4761 = vadd.xlane.f32.xlu1 %v4760_v43  ;;  %v4582_v4 = vpop.xlane.xlu1 %4581 }
 0x6f2   : > { %8609 = vrsqrt.f32 %v4836_v55  ;;  %v4770_v20 = vmul.f32 0.015625, %v4582_v4  ;;  %v4833_v54 = vadd.f32 1e-05, %v4769_v17  ;;  %v16243_v17 = vld [vmem:[#allocation46_spill] sm:$0xff] }
 0x6f3   : > { %v4597_v5 = vpop.xlane.xlu0 %4596 }
 0x6f4   : > { %v4775_v30 = vmul.f32 0.015625, %v4597_v5  ;;  %v4834_v47 = vadd.f32 1e-05, %v4770_v20  ;;  %8611 = vrsqrt.f32 %v4833_v54 }
 0x6f5   : > { %v4600_v56 = vpop.xlane.xlu1 %4599 }
 0x6f6   : > { %v4776_v11 = vmul.f32 0.015625, %v4600_v56  ;;  %v4839_v25 = vadd.f32 1e-05, %v4775_v30  ;;  %8613 = vrsqrt.f32 %v4834_v47 }
 0x6f7   : > { %v4591_v32 = vpop.xlane.xlu0 %4590 }
 0x6f8   : > { %v4840_v5 = vadd.f32 1e-05, %v4776_v11  ;;  %v4773_v54 = vmul.f32 0.015625, %v4591_v32  ;;  %8615 = vrsqrt.f32 %v4839_v25 }
 0x6f9   : > { %v4594_v21 = vpop.xlane.xlu1 %4593 }
 0x6fa   : > { %v8608_v31 = vpop.eup %8607  ;;  %v4774_v56 = vmul.f32 0.015625, %v4594_v21  ;;  %8617 = vrsqrt.f32 %v4840_v5 }
 0x6fb   : > { %v4963_v37 = vmul.f32 %v8608_v31, %v16242_v33  ;;  %v4609_v15 = vpop.xlane.xlu0 %4608 }
 0x6fc   : > { %v8610_v43 = vpop.eup %8609  ;;  %v4779_v30 = vmul.f32 0.015625, %v4609_v15  ;;  %v4838_v22 = vadd.f32 1e-05, %v4774_v56 }
 0x6fd   : > { %v5033_v55 = vmul.f32 %v13593_v51, %v4963_v37  ;;  %v4964_v4 = vmul.f32 %v8610_v43, %v16243_v17  ;;  %v4612_v20 = vpop.xlane.xlu1 %4611  ;;  %v4837_v37 = vadd.f32 1e-05, %v4773_v54 }
 0x6fe   : > { %v4780_v47 = vmul.f32 0.015625, %v4612_v20  ;;  %v8612_v11 = vpop.eup %8611 }
 0x6ff   : > { %v5103_v53 = vadd.f32 %v13596_v19, %v5033_v55  ;;  %v5034_v2 = vmul.f32 %v13593_v51, %v4964_v4  ;;  %v4603_v31 = vpop.xlane.xlu0 %4602  ;;  %v4843_v55 = vadd.f32 1e-05, %v4779_v30  ;;  %v4961_v15 = vmul.f32 %v8612_v11, %v13138_v12 }
 0x700   : > { %v4777_v43 = vmul.f32 0.015625, %v4603_v31  ;;  %v4844_v4 = vadd.f32 1e-05, %v4780_v47  ;;  %v8614_v57 = vpop.eup %8613  ;;  %8619 = vrsqrt.f32 %v4837_v37  ;;  %v16244_v11 = vmov -1.0  }
 0x701   : > { %v5231_v33 = vmul.f32 0.70710677, %v5103_v53  ;;  %v5104_v35 = vadd.f32 %v13596_v19, %v5034_v2  ;;  %v4606_v59 = vpop.xlane.xlu1 %4605  ;;  %8621 = vrsqrt.f32 %v4838_v22  ;;  %v13604_v31 = vmul.f32 0.5, %v5103_v53 }
 0x702   : > { %v4778_v21 = vmul.f32 0.015625, %v4606_v59  ;;  %v4841_v2 = vadd.f32 1e-05, %v4777_v43  ;;  %8623 = vrsqrt.f32 %v4843_v55  ;;  %v8616_v59 = vpop.eup %8615  ;;  %v4962_v30 = vmul.f32 %v8614_v57, %v13148_v62 }
 0x703   : > { %v5423_v17 = vand.u32 2147483647, %v5231_v33  ;;  %v5232_v32 = vmul.f32 0.70710677, %v5104_v35  ;;  %v4621_v60 = vpop.xlane.xlu0 %4620  ;;  %vm5295_vm7 = vcmp.ge.f32.partialorder %v5231_v33, 0.0  ;;  %8625 = vrsqrt.f32 %v4844_v4 }
 0x704   : > { %v4842_v54 = vadd.f32 1e-05, %v4778_v21  ;;  %v4783_v47 = vmul.f32 0.015625, %v4621_v60  ;;  %v13607_v58 = vmul.f32 0.5, %v5104_v35  ;;  %v5031_v12 = vmul.f32 %v13593_v51, %v4961_v15  ;;  %v8618_v22 = vpop.eup %8617 }
 0x705   : > { %v6319_v27 = vsub.f32 0.0, %v5423_v17  ;;  %v4624_v25 = vpop.xlane.xlu1 %4623  ;;  %v5487_v5 = vmul.f32 0.3275911, %v5423_v17  ;;  %v5424_v20 = vand.u32 2147483647, %v5232_v32  ;;  %8627 = vrsqrt.f32 %v4841_v2 }
 0x706   : > { %v4784_v37 = vmul.f32 0.015625, %v4624_v25  ;;  %vm5296_vm8 = vcmp.ge.f32.partialorder %v5232_v32, 0.0  ;;  %8629 = vrsqrt.f32 %v4842_v54  ;;  %v4967_v62 = vmul.f32 %v8616_v59, %v13157_v39 }
 0x707   : > { %v4615_v56 = vpop.xlane.xlu0 %4614  ;;  %v6383_v23 = vmul.f32 %v6319_v27, %v5423_v17  ;;  %v5551_v43 = vadd.f32 1.0, %v5487_v5  ;;  %v5488_v53 = vmul.f32 0.3275911, %v5424_v20  ;;  %v13611_v17 = vsel %vm5295_vm7, 1.0, %v16244_v11 }
 0x708   : > { %v4781_v57 = vmul.f32 0.015625, %v4615_v56  ;;  %v6320_v60 = vsub.f32 0.0, %v5424_v20  ;;  %v5032_v35 = vmul.f32 %v13593_v51, %v4962_v30  ;;  %v4847_v21 = vadd.f32 1e-05, %v4783_v47 }
 0x709   : > { %v4618_v50 = vpop.xlane.xlu1 %4617  ;;  %v6449_v33 = vmul.f32 1.442695, %v6383_v23  ;;  %v13616_v25 = vsel %vm5296_vm8, 1.0, %v16244_v11  ;;  %v4968_v32 = vmul.f32 %v8618_v22, %v13165_v14  ;;  %v4848_v15 = vadd.f32 1e-05, %v4784_v37 }
 0x70a   : > { %v4782_v55 = vmul.f32 0.015625, %v4618_v50  ;;  %8631 = vrcp.f32 %v5551_v43  ;;  %v5552_v5 = vadd.f32 1.0, %v5488_v53  ;;  %v13620_v39 = vadd.f32 %v13596_v19, %v5031_v12  ;;  %v8620_v56 = vpop.eup %8619 }
 0x70b   : > { %v4633_v27 = vpop.xlane.xlu0 %4632  ;;  %8633 = vpow2.f32 %v6449_v33  ;;  %v13623_v59 = vmul.f32 %v13593_v51, %v4967_v62  ;;  %v4845_v50 = vadd.f32 1e-05, %v4781_v57  ;;  %v8622_v47 = vpop.eup %8621  ;;  %v6384_v63 = vmul.f32 %v6320_v60, %v5424_v20 }
 0x70c   : > { %v4787_v2 = vmul.f32 0.015625, %v4633_v27  ;;  %8635 = vrsqrt.f32 %v4847_v21  ;;  %v4846_v14 = vadd.f32 1e-05, %v4782_v55  ;;  %v5102_v22 = vadd.f32 %v13596_v19, %v5032_v35  ;;  %v8624_v43 = vpop.eup %8623 }
 0x70d   : > { %v4636_v4 = vpop.xlane.xlu1 %4635  ;;  %8637 = vrsqrt.f32 %v4848_v15  ;;  %v13627_v12 = vmul.f32 0.70710677, %v13620_v39  ;;  %v8626_v33 = vpop.eup %8625  ;;  %v13630_v62 = vmul.f32 %v13593_v51, %v4968_v32  ;;  %v4965_v21 = vmul.f32 %v8620_v56, %v13171_v6 }
 0x70e   : > { %v4788_v54 = vmul.f32 0.015625, %v4636_v4  ;;  %v4851_v53 = vadd.f32 1e-05, %v4787_v2  ;;  %8639 = vrcp.f32 %v5552_v5  ;;  %v13632_v20 = vmul.f32 0.70710677, %v5102_v22 }
 0x70f   : > { %v4627_v23 = vpop.xlane.xlu0 %4626  ;;  %16245 = vst [vmem:[#allocation32_spill] sm:$0xff] %v13630_v62  ;;  %v8628_v60 = vpop.eup %8627  ;;  %8641 = vrsqrt.f32 %v4845_v50  ;;  %v4966_v2 = vmul.f32 %v8622_v47, %v13179_v61  ;;  %v13637_v5 = vand.u32 2147483647, %v13627_v12  ;;  %v6451_v32 = vmul.f32 1.442695, %v6384_v63 }
 0x710   : > { %v4785_v30 = vmul.f32 0.015625, %v4627_v23  ;;  %v4852_v57 = vadd.f32 1e-05, %v4788_v54  ;;  %v8630_v15 = vpop.eup %8629  ;;  %8643 = vrsqrt.f32 %v4846_v14  ;;  %v4971_v54 = vmul.f32 %v8624_v43, %v13187_v49 }
 0x711   : > { %v4630_v37 = vpop.xlane.xlu1 %4629  ;;  %v4972_v62 = vmul.f32 %v8626_v33, %v13193_v26  ;;  %8645 = vrsqrt.f32 %v4851_v53  ;;  %v4969_v6 = vmul.f32 %v8628_v60, %v13202_v29  ;;  %v13643_v50 = vand.u32 2147483647, %v13632_v20 }
 0x712   : > { %v4786_v27 = vmul.f32 0.015625, %v4630_v37  ;;  %v4849_v35 = vadd.f32 1e-05, %v4785_v30  ;;  %8647 = vrsqrt.f32 %v4852_v57  ;;  %v5485_v61 = vmul.f32 0.3275911, %v13637_v5 }
 0x713   : > { %v4645_v4 = vpop.xlane.xlu0 %4644  ;;  %v5035_v30 = vmul.f32 %v13593_v51, %v4965_v21  ;;  %v4970_v47 = vmul.f32 %v8630_v15, %v13211_v8  ;;  %v13651_v49 = vmul.f32 %v13593_v51, %v4966_v2  ;;  %v5486_v29 = vmul.f32 0.3275911, %v13643_v50 }
 0x714   : > { %v4791_v55 = vmul.f32 0.015625, %v4645_v4  ;;  %v4850_v23 = vadd.f32 1e-05, %v4786_v27  ;;  %8649 = vrsqrt.f32 %v4849_v35  ;;  %v13648_v14 = vpop.eup %8631  ;;  %v5549_v43 = vadd.f32 1.0, %v5485_v61 }
 0x715   : > { %v4648_v37 = vpop.xlane.xlu1 %4647  ;;  %v13654_v53 = vpop.eup %8633  ;;  %v13657_v27 = vmul.f32 %v13593_v51, %v4971_v54  ;;  %v13660_v8 = vmul.f32 %v13593_v51, %v4972_v62  ;;  %v13663_v4 = vmul.f32 %v13593_v51, %v4969_v6  ;;  %vm5293_vm9 = vcmp.ge.f32.partialorder %v13627_v12, 0.0 }
 0x716   : > { %v4855_v63 = vadd.f32 1e-05, %v4791_v55  ;;  %8651 = vrsqrt.f32 %v4850_v23  ;;  %v4792_v33 = vmul.f32 0.015625, %v4648_v37  ;;  %v8636_v57 = vpop.eup %8635  ;;  %v5550_v21 = vadd.f32 1.0, %v5486_v29 }
 0x717   : > { %v4639_v56 = vpop.xlane.xlu0 %4638  ;;  %8653 = vpow2.f32 %v6451_v32  ;;  %16246 = vst [vmem:[#allocation71_spill] sm:$0xff] %v13657_v27  ;;  %16247 = vst [vmem:[#allocation33_spill] sm:$0xff] %v13660_v8  ;;  %v8638_v35 = vpop.eup %8637  ;;  %v13667_v55 = vmul.f32 %v13593_v51, %v4970_v47  ;;  %v13670_v15 = vmul.f32 0.5, %v13620_v39  ;;  %v13672_v62 = vmul.f32 0.5, %v5102_v22 }
 0x718   : > { %8655 = vrcp.f32 %v5549_v43  ;;  %v13674_v2 = vpop.eup %8639  ;;  %v4789_v23 = vmul.f32 0.015625, %v4639_v56  ;;  %vm5294_vm10 = vcmp.ge.f32.partialorder %v13632_v20, 0.0  ;;  %v4975_v6 = vmul.f32 %v8636_v57, %v13218_v41 }
 0x719   : > { %v4642_v26 = vpop.xlane.xlu1 %4641  ;;  %16248 = vst [vmem:[#allocation31_spill] sm:$0xff] %v13667_v55  ;;  %8657 = vrsqrt.f32 %v4855_v63  ;;  %v8642_v54 = vpop.eup %8641  ;;  %v4856_v61 = vadd.f32 1e-05, %v4792_v33  ;;  %v13681_v39 = vsel %vm5293_vm9, 1.0, %v16244_v11  ;;  %v4976_v63 = vmul.f32 %v8638_v35, %v13227_v48 }
 0x71a   : > { %8659 = vrcp.f32 %v5550_v21  ;;  %v8644_v22 = vpop.eup %8643  ;;  %v4790_v29 = vmul.f32 0.015625, %v4642_v26  ;;  %v6317_v20 = vsub.f32 0.0, %v13637_v5  ;;  %v13692_v33 = vsel %vm5294_vm10, 1.0, %v16244_v11 }
 0x71b   : > { %v4381_v60 = vpop.xlane.xlu0 %4380  ;;  %v5743_v12 = vmul.f32 1.0614054, %v13648_v14  ;;  %v13696_v57 = vadd.f32 %v13596_v19, %v5035_v30  ;;  %v4973_v26 = vmul.f32 %v8642_v54, %v13236_v16  ;;  %8661 = vrsqrt.f32 %v4856_v61 }
 0x71c   : > { %v4447_v37 = vmul.f32 0.015625, %v4381_v60  ;;  %v8646_v60 = vpop.eup %8645  ;;  %v13709_v16 = vmul.f32 %v13593_v51, %v4976_v63  ;;  %v6381_v27 = vmul.f32 %v6317_v20, %v13637_v5  ;;  %v5744_v20 = vmul.f32 1.0614054, %v13674_v2 }
 0x71d   : > { %v4384_v32 = vpop.xlane.xlu1 %4383  ;;  %v8648_v48 = vpop.eup %8647  ;;  %v13721_v63 = vmul.f32 %v13593_v51, %v4973_v26 }
 0x71e   : > { %v4448_v47 = vmul.f32 0.015625, %v4384_v32  ;;  %v13685_v56 = vsub.f32 %v13328_v3, %v4447_v37  ;;  %v4853_v3 = vadd.f32 1e-05, %v4789_v23  ;;  %v6318_v37 = vsub.f32 0.0, %v13643_v50  ;;  %16252 = vst [vmem:[#allocation36_spill] sm:$0xff] %v13709_v16 }
 0x71f   : > { %v4651_v43 = vpop.xlane.xlu0 %4650  ;;  %v13703_v32 = vmul.f32 %v13593_v51, %v4975_v6  ;;  %v4854_v23 = vadd.f32 1e-05, %v4790_v29  ;;  %v4979_v6 = vmul.f32 %v8646_v60, %v13252_v9 }
 0x720   : > { %16249 = vst [vmem:[#allocation37_spill] sm:$0xff] %v13685_v56  ;;  %v13689_v41 = vsub.f32 %v13336_v52, %v4448_v47  ;;  %v4575_v35 = vmul.f32 %v13685_v56, %v13685_v56  ;;  %v8650_v52 = vpop.eup %8649  ;;  %v4974_v47 = vmul.f32 %v8644_v22, %v13243_v38  ;;  %v4980_v38 = vmul.f32 %v8648_v48, %v13261_v7 }
 0x721   : > { %v4654_v21 = vpop.xlane.xlu1 %4653  ;;  %16251 = vst [vmem:[#allocation72_spill] sm:$0xff] %v13703_v32  ;;  %v8652_v8 = vpop.eup %8651  ;;  %v4793_v61 = vmul.f32 0.015625, %v4651_v43  ;;  %v4977_v29 = vmul.f32 %v8650_v52, %v13268_v24  ;;  %8663 = vrsqrt.f32 %v4853_v3  ;;  %v6382_v60 = vmul.f32 %v6318_v37, %v13643_v50 }
 0x722   : > { %16250 = vst [vmem:[#allocation73_spill] sm:$0xff] %v13689_v41  ;;  %v4576_v30 = vmul.f32 %v13689_v41, %v13689_v41  ;;  %v4763_v54 = vsel %vm1033_vm2, %v4575_v35, 0.0  ;;  %v13713_v55 = vpop.eup %8653  ;;  %v13726_v9 = vmul.f32 %v13593_v51, %v4974_v47  ;;  %v4978_v7 = vmul.f32 %v8652_v8, %v13277_v36 }
 0x723   : > { %v4657_v56 = vpop.xlane.xlu0 %4656  ;;  %4764 = vadd.xlane.f32.xlu0 %v4763_v54  ;;  %v13718_v41 = vpop.eup %8655  ;;  %8665 = vrsqrt.f32 %v4854_v23  ;;  %v6445_v24 = vmul.f32 1.442695, %v6381_v27  ;;  %v5807_v3 = vadd.f32 -1.4531521, %v5743_v12  ;;  %v5808_v52 = vadd.f32 -1.4531521, %v5744_v20 }
 0x724   : > { %v4766_v22 = vsel %vm1033_vm2, %v4576_v30, 0.0  ;;  %v8658_v35 = vpop.eup %8657  ;;  %v5741_v43 = vmul.f32 1.0614054, %v13718_v41  ;;  %v13734_v30 = vmul.f32 %v13593_v51, %v4979_v6  ;;  %v13737_v54 = vmul.f32 %v13593_v51, %v4980_v38 }
 0x725   : > { %4767 = vadd.xlane.f32.xlu1 %v4766_v22  ;;  %v4660_v5 = vpop.xlane.xlu1 %4659  ;;  %v13731_v48 = vpop.eup %8659  ;;  %v4857_v47 = vadd.f32 1e-05, %v4793_v61  ;;  %v13741_v8 = vmul.f32 %v13593_v51, %v4977_v29  ;;  %v4794_v50 = vmul.f32 0.015625, %v4654_v21  ;;  %v5871_v23 = vmul.f32 %v13648_v14, %v5807_v3 }
 0x726   : > { %16253 = vst [vmem:[#allocation75_spill] sm:$0xff] %v13734_v30  ;;  %16254 = vst [vmem:[#allocation77_spill] sm:$0xff] %v13737_v54  ;;  %v5742_v36 = vmul.f32 1.0614054, %v13731_v48  ;;  %v5805_v22 = vadd.f32 -1.4531521, %v5741_v43  ;;  %v13745_v27 = vmul.f32 %v13593_v51, %v4978_v7  ;;  %v4983_v12 = vmul.f32 %v8658_v35, %v13286_v46  ;;  %v8662_v30 = vpop.eup %8661 }
 0x727   : > { %v4663_v26 = vpop.xlane.xlu0 %4662  ;;  %16255 = vst [vmem:[#allocation74_spill] sm:$0xff] %v13741_v8  ;;  %v6447_v20 = vmul.f32 1.442695, %v6382_v60  ;;  %8667 = vpow2.f32 %v6445_v24  ;;  %v5872_v54 = vmul.f32 %v13674_v2, %v5808_v52  ;;  %v5935_v29 = vadd.f32 1.4214138, %v5871_v23 }
 0x728   : > { %16256 = vst [vmem:[#allocation76_spill] sm:$0xff] %v13745_v27  ;;  %v5806_v6 = vadd.f32 -1.4531521, %v5742_v36  ;;  %v5869_v61 = vmul.f32 %v13718_v41, %v5805_v22  ;;  %8669 = vrsqrt.f32 %v4857_v47  ;;  %v4795_v21 = vmul.f32 0.015625, %v4657_v56 }
 0x729   : > { %v4666_v37 = vpop.xlane.xlu1 %4665  ;;  %v4796_v43 = vmul.f32 0.015625, %v4660_v5  ;;  %v4858_v8 = vadd.f32 1e-05, %v4794_v50  ;;  %v5936_v16 = vadd.f32 1.4214138, %v5872_v54  ;;  %v5999_v46 = vmul.f32 %v13648_v14, %v5935_v29 }
 0x72a   : > { %v5870_v3 = vmul.f32 %v13731_v48, %v5806_v6  ;;  %v5933_v27 = vadd.f32 1.4214138, %v5869_v61  ;;  %v13753_v35 = vmul.f32 %v13593_v51, %v4983_v12  ;;  %v4797_v60 = vmul.f32 0.015625, %v4663_v26 }
 0x72b   : > { %v4669_v38 = vpop.xlane.xlu0 %4668  ;;  %8671 = vpow2.f32 %v6447_v20  ;;  %v8664_v52 = vpop.eup %8663  ;;  %v4798_v36 = vmul.f32 0.015625, %v4666_v37  ;;  %v6000_v5 = vmul.f32 %v13674_v2, %v5936_v16  ;;  %v6063_v47 = vadd.f32 -0.28449672, %v5999_v46 }
 0x72c   : > { %16257 = vst [vmem:[#allocation79_spill] sm:$0xff] %v13753_v35  ;;  %v5934_v24 = vadd.f32 1.4214138, %v5870_v3  ;;  %v5997_v56 = vmul.f32 %v13718_v41, %v5933_v27  ;;  %v4859_v50 = vadd.f32 1e-05, %v4795_v21  ;;  %v4799_v6 = vmul.f32 0.015625, %v4669_v38 }
 0x72d   : > { %v4672_v7 = vpop.xlane.xlu1 %4671  ;;  %v4860_v23 = vadd.f32 1e-05, %v4796_v43  ;;  %v8666_v61 = vpop.eup %8665  ;;  %v4984_v12 = vmul.f32 %v8662_v30, %v13293_v1  ;;  %v6064_v20 = vadd.f32 -0.28449672, %v6000_v5  ;;  %8673 = vrsqrt.f32 %v4858_v8 }
 0x72e   : > { %v5998_v54 = vmul.f32 %v13731_v48, %v5934_v24  ;;  %v4800_v29 = vmul.f32 0.015625, %v4672_v7  ;;  %v6061_v3 = vadd.f32 -0.28449672, %v5997_v56  ;;  %v4861_v37 = vadd.f32 1e-05, %v4797_v60 }
 0x72f   : > { %v4675_v22 = vpop.xlane.xlu0 %4674  ;;  %v4981_v27 = vmul.f32 %v8664_v52, %v13302_v34  ;;  %v4862_v16 = vadd.f32 1e-05, %v4798_v36  ;;  %v6127_v38 = vmul.f32 %v13648_v14, %v6063_v47  ;;  %8675 = vrsqrt.f32 %v4859_v50 }
 0x730   : > { %v4801_v35 = vmul.f32 0.015625, %v4675_v22  ;;  %v6062_v32 = vadd.f32 -0.28449672, %v5998_v54  ;;  %v6125_v21 = vmul.f32 %v13718_v41, %v6061_v3  ;;  %v4863_v43 = vadd.f32 1e-05, %v4799_v6 }
 0x731   : > { %v4678_v26 = vpop.xlane.xlu1 %4677  ;;  %v8668_v30 = vpop.eup %8667  ;;  %8677 = vrsqrt.f32 %v4860_v23  ;;  %v4864_v7 = vadd.f32 1e-05, %v4800_v29  ;;  %v6128_v22 = vmul.f32 %v13674_v2, %v6064_v20  ;;  %v6191_v6 = vadd.f32 0.2548296, %v6127_v38 }
 0x732   : > { %v4802_v24 = vmul.f32 0.015625, %v4678_v26  ;;  %v6126_v1 = vmul.f32 %v13731_v48, %v6062_v32  ;;  %v6189_v60 = vadd.f32 0.2548296, %v6125_v21  ;;  %v8670_v56 = vpop.eup %8669  ;;  %8679 = vrsqrt.f32 %v4861_v37 }
 0x733   : > { %v4681_v46 = vpop.xlane.xlu0 %4680  ;;  %v4865_v34 = vadd.f32 1e-05, %v4801_v35  ;;  %8681 = vrsqrt.f32 %v4862_v16  ;;  %v4982_v32 = vmul.f32 %v8666_v61, %v13310_v0  ;;  %v6192_v35 = vadd.f32 0.2548296, %v6128_v22 }
 0x734   : > { %v4803_v52 = vmul.f32 0.015625, %v4681_v46  ;;  %v6190_v36 = vadd.f32 0.2548296, %v6126_v1  ;;  %v6253_v50 = vmul.f32 %v13718_v41, %v6189_v60  ;;  %8683 = vrsqrt.f32 %v4863_v43 }
 0x735   : > { %v4684_v8 = vpop.xlane.xlu1 %4683  ;;  %v8672_v54 = vpop.eup %8671  ;;  %v4866_v23 = vadd.f32 1e-05, %v4802_v24  ;;  %8685 = vrsqrt.f32 %v4864_v7  ;;  %v13768_v37 = vmul.f32 %v13593_v51, %v4984_v12  ;;  %v13771_v41 = vmul.f32 %v13593_v51, %v4981_v27 }
 0x736   : > { %v4804_v5 = vmul.f32 0.015625, %v4684_v8  ;;  %v6254_v29 = vmul.f32 %v13731_v48, %v6190_v36  ;;  %v6573_v3 = vmul.f32 %v8668_v30, %v6253_v50  ;;  %8687 = vrsqrt.f32 %v4865_v34 }
 0x737   : > { %v4687_v47 = vpop.xlane.xlu0 %4686  ;;  %v4867_v16 = vadd.f32 1e-05, %v4803_v52  ;;  %v6255_v61 = vmul.f32 %v13648_v14, %v6191_v6  ;;  %v8674_v48 = vpop.eup %8673  ;;  %8689 = vrsqrt.f32 %v4866_v23  ;;  %v6256_v1 = vmul.f32 %v13674_v2, %v6192_v35 }
 0x738   : > { %v4805_v26 = vmul.f32 0.015625, %v4687_v47  ;;  %v6574_v46 = vmul.f32 %v8672_v54, %v6254_v29  ;;  %v4868_v21 = vadd.f32 1e-05, %v4804_v5  ;;  %v6637_v0 = vsub.f32 1.0, %v6573_v3 }
 0x739   : > { %v4690_v20 = vpop.xlane.xlu1 %4689  ;;  %v13776_v12 = vmul.f32 %v13593_v51, %v4982_v32  ;;  %v6575_v27 = vmul.f32 %v13654_v53, %v6255_v61  ;;  %v8676_v60 = vpop.eup %8675  ;;  %8691 = vrsqrt.f32 %v4867_v16  ;;  %v6576_v22 = vmul.f32 %v13713_v55, %v6256_v1 }
 0x73a   : > { %v6638_v43 = vsub.f32 1.0, %v6574_v46  ;;  %v4806_v24 = vmul.f32 0.015625, %v4690_v20  ;;  %v4869_v30 = vadd.f32 1e-05, %v4805_v26  ;;  %v6701_v7 = vmul.f32 %v6637_v0, %v13681_v39 }
 0x73b   : > { %v4693_v38 = vpop.xlane.xlu0 %4692  ;;  %v8678_v52 = vpop.eup %8677  ;;  %8693 = vrsqrt.f32 %v4868_v21  ;;  %v6639_v2 = vsub.f32 1.0, %v6575_v27  ;;  %v13784_v5 = vadd.f32 %v13596_v19, %v13651_v49  ;;  %v6640_v53 = vsub.f32 1.0, %v6576_v22 }
 0x73c   : > { %v6702_v14 = vmul.f32 %v6638_v43, %v13692_v33  ;;  %v4807_v34 = vmul.f32 0.015625, %v4693_v38  ;;  %v6765_v36 = vadd.f32 1.0, %v6701_v7  ;;  %v8680_v47 = vpop.eup %8679  ;;  %v4870_v50 = vadd.f32 1e-05, %v4806_v24  ;;  %v16258_v43 = vld [vmem:[#allocation48_spill] sm:$0xff] }
 0x73d   : > { %v4696_v8 = vpop.xlane.xlu1 %4695  ;;  %v8682_v54 = vpop.eup %8681  ;;  %v4985_v32 = vmul.f32 %v8670_v56, %v13332_v45  ;;  %8695 = vrsqrt.f32 %v4869_v30  ;;  %v6703_v55 = vmul.f32 %v6639_v2, %v13611_v17  ;;  %v4986_v29 = vmul.f32 %v8674_v48, %v13340_v28 }
 0x73e   : > { %v6766_v39 = vadd.f32 1.0, %v6702_v14  ;;  %v4808_v6 = vmul.f32 0.015625, %v4696_v8  ;;  %v4871_v33 = vadd.f32 1e-05, %v4807_v34  ;;  %v8684_v23 = vpop.eup %8683  ;;  %v6829_v26 = vmul.f32 %v6765_v36, %v13670_v15 }
 0x73f   : > { %v6704_v3 = vmul.f32 %v6640_v53, %v13616_v25  ;;  %v4699_v20 = vpop.xlane.xlu0 %4698  ;;  %v8686_v35 = vpop.eup %8685  ;;  %v4987_v16 = vmul.f32 %v8676_v60, %v13346_v13  ;;  %v4988_v46 = vmul.f32 %v8678_v52, %v13356_v18  ;;  %v6767_v45 = vadd.f32 1.0, %v6703_v55 }
 0x740   : > { %v6830_v49 = vmul.f32 %v6766_v39, %v13672_v62  ;;  %v4872_v56 = vadd.f32 1e-05, %v4808_v6  ;;  %v8688_v21 = vpop.eup %8687  ;;  %v4989_v17 = vmul.f32 %v8680_v47, %v13365_v10  ;;  %8697 = vrsqrt.f32 %v4870_v50  ;;  %v16261_v6 = vld [vmem:[#allocation32_spill] sm:$0xff] }
 0x741   : > { %v6768_v28 = vadd.f32 1.0, %v6704_v3  ;;  %v4990_v15 = vmul.f32 %v8682_v54, %v13372_v42  ;;  %v4991_v62 = vmul.f32 %v8684_v23, %v13378_v44  ;;  %8699 = vrsqrt.f32 %v4871_v33  ;;  %v8690_v61 = vpop.eup %8689  ;;  %v4702_v2 = vpop.xlane.xlu1 %4701 }
 0x742   : > { %v6901_v0 = vpack.c.bf16 %v6830_v49, %v6829_v26  ;;  %v4809_v25 = vmul.f32 0.015625, %v4699_v20  ;;  %v6831_v13 = vmul.f32 %v6767_v45, %v13604_v31  ;;  %v5233_v38 = vmul.f32 0.70710677, %v13696_v57  ;;  %v16264_v49 = vld [vmem:[#allocation47_spill] sm:$0xff] }
 0x743   : > { %v6832_v18 = vmul.f32 %v6768_v28, %v13607_v58  ;;  %v5234_v10 = vmul.f32 0.70710677, %v13784_v5  ;;  %v13803_v48 = vmul.f32 %v13593_v51, %v4985_v32  ;;  %v4992_v42 = vmul.f32 %v8686_v35, %v13385_v40  ;;  %v8692_v24 = vpop.eup %8691  ;;  %v16259_v40 = vld [vmem:[#allocation50_spill] sm:$0xff]  ;;  %v16262_v32 = vld [vmem:[#allocation51_spill] sm:$0xff] }
 0x744   : > { %7993 = vmatprep.mubr.msk.bf16.mxu0 %vm1033_vm2, %v6901_v0  ;;  %v4993_v44 = vmul.f32 %v8688_v21, %v16258_v43  ;;  %8701 = vrsqrt.f32 %v4872_v56  ;;  %v13808_v1 = vmul.f32 %v13593_v51, %v4986_v29  ;;  %v13811_v31 = vmul.f32 %v13593_v51, %v4987_v16  ;;  %v16265_v16 = vld [vmem:[#allocation35_spill] sm:$0xff] }
 0x745   : > { %v6902_v58 = vpack.c.bf16 %v6832_v18, %v6831_v13  ;;  %v5425_v30 = vand.u32 2147483647, %v5233_v38  ;;  %v8694_v7 = vpop.eup %8693  ;;  %v13814_v27 = vmul.f32 %v13593_v51, %v4988_v46  ;;  %v13817_v8 = vmul.f32 %v13593_v51, %v4989_v17  ;;  %v16268_v13 = vld [vmem:[#allocation53_spill] sm:$0xff] }
 0x746   : > { %v4994_v60 = vmul.f32 %v8690_v61, %v16259_v40  ;;  %v4873_v14 = vadd.f32 1e-05, %v4809_v25  ;;  %v13821_v22 = vmul.f32 %v13593_v51, %v4990_v15  ;;  %v13824_v34 = vmul.f32 %v13593_v51, %v4991_v62  ;;  %v4705_v62 = vpop.xlane.xlu0 %4704 }
 0x747   : > { %7994 = vmatmul.mubr.msk.bf16.vlgmr.msra.gmra.mrb[32].mxu0 %vm1033_vm2, %v6902_v58  ;;  %v5426_v52 = vand.u32 2147483647, %v5234_v10  ;;  %v5489_v36 = vmul.f32 0.3275911, %v5425_v30  ;;  %v8696_v47 = vpop.eup %8695  ;;  %v13828_v39 = vmul.f32 %v13593_v51, %v4992_v42  ;;  %v13831_v50 = vmul.f32 %v13593_v51, %v4993_v44 }
 0x748   : > { %v5107_v53 = vadd.f32 %v13596_v19, %v13623_v59  ;;  %v5108_v54 = vadd.f32 %v13596_v19, %v16261_v6  ;;  %v4995_v55 = vmul.f32 %v8692_v24, %v16262_v32  ;;  %v6321_v29 = vsub.f32 0.0, %v5425_v30  ;;  %v16270_v24 = vld [vmem:[#allocation52_spill] sm:$0xff]  ;;  %v16272_v32 = vld [vmem:[#allocation31_spill] sm:$0xff] }
 0x749   : > { %16260 = vst [vmem:[#allocation41_spill] sm:$0xff] %v13831_v50  ;;  %v5490_v33 = vmul.f32 0.3275911, %v5426_v52  ;;  %v5553_v23 = vadd.f32 1.0, %v5489_v36  ;;  %v13839_v26 = vmul.f32 %v13593_v51, %v4994_v60  ;;  %v4996_v3 = vmul.f32 %v8694_v7, %v16264_v49  ;;  %v16271_v36 = vld [vmem:[#allocation44_spill] sm:$0xff] }
 0x74a   : > { %8703 = vrsqrt.f32 %v4873_v14  ;;  %v4810_v20 = vmul.f32 0.015625, %v4702_v2  ;;  %v8698_v35 = vpop.eup %8697  ;;  %v4997_v46 = vmul.f32 %v8696_v47, %v16265_v16  ;;  %vm5297_vm11 = vcmp.ge.f32.partialorder %v5233_v38, 0.0  ;;  %v4708_v14 = vpop.xlane.xlu1 %4707 }
 0x74b   : > { %16263 = vst [vmem:[#allocation78_spill] sm:$0xff] %v13839_v26  ;;  %v5554_v59 = vadd.f32 1.0, %v5490_v33  ;;  %8705 = vrcp.f32 %v5553_v23  ;;  %v8700_v45 = vpop.eup %8699  ;;  %vm5298_vm12 = vcmp.ge.f32.partialorder %v5234_v10, 0.0  ;;  %v6322_v56 = vsub.f32 0.0, %v5426_v52 }
 0x74c   : > { %v5235_v21 = vmul.f32 0.70710677, %v5107_v53  ;;  %v13843_v17 = vmul.f32 0.70710677, %v5108_v54  ;;  %v13846_v0 = vmul.f32 %v13593_v51, %v4995_v55  ;;  %v13849_v28 = vmul.f32 0.5, %v13696_v57 }
 0x74d   : > { %8707 = vrcp.f32 %v5554_v59  ;;  %v6385_v15 = vmul.f32 %v6321_v29, %v5425_v30  ;;  %v13852_v61 = vmul.f32 %v13593_v51, %v4996_v3  ;;  %v4998_v18 = vmul.f32 %v8698_v35, %v16268_v13  ;;  %v4711_v3 = vpop.xlane.xlu0 %4710 }
 0x74e   : > { %16266 = vst [vmem:[#allocation80_spill] sm:$0xff] %v13846_v0  ;;  %v8702_v25 = vpop.eup %8701  ;;  %v13856_v42 = vmul.f32 0.5, %v13784_v5  ;;  %v4874_v43 = vadd.f32 1e-05, %v4810_v20  ;;  %v13859_v44 = vmul.f32 %v13593_v51, %v4997_v46  ;;  %v4999_v58 = vmul.f32 %v8700_v45, %v16270_v24 }
 0x74f   : > { %16267 = vst [vmem:[#allocation38_spill] sm:$0xff] %v13852_v61  ;;  %v13864_v57 = vsel %vm5297_vm11, 1.0, %v16244_v11  ;;  %v13868_v30 = vsel %vm5298_vm12, 1.0, %v16244_v11  ;;  %v6386_v7 = vmul.f32 %v6322_v56, %v5426_v52  ;;  %v5427_v40 = vand.u32 2147483647, %v5235_v21 }
 0x750   : > { %16269 = vst [vmem:[#allocation43_spill] sm:$0xff] %v13859_v44  ;;  %v5428_v60 = vand.u32 2147483647, %v13843_v17  ;;  %v4811_v5 = vmul.f32 0.015625, %v4705_v62  ;;  %v5000_v2 = vmul.f32 %v8702_v25, %v16271_v36  ;;  %v6453_v47 = vmul.f32 1.442695, %v6385_v15 }
 0x751   : > { %v5109_v6 = vadd.f32 %v13596_v19, %v13663_v4  ;;  %v5110_v38 = vadd.f32 %v13596_v19, %v16272_v32  ;;  %v13877_v55 = vmul.f32 %v13593_v51, %v4998_v18  ;;  %8709 = vrsqrt.f32 %v4874_v43  ;;  %v16276_v25 = vld [vmem:[#allocation55_spill] sm:$0xff] }
 0x752   : > { %v5491_v10 = vmul.f32 0.3275911, %v5427_v40  ;;  %v5492_v52 = vmul.f32 0.3275911, %v5428_v60  ;;  %v13880_v33 = vmul.f32 %v13593_v51, %v4999_v58  ;;  %v13882_v23 = vmul.f32 0.5, %v5107_v53 }
 0x753   : > { %16273 = vst [vmem:[#allocation40_spill] sm:$0xff] %v13877_v55  ;;  %v13884_v29 = vmul.f32 0.5, %v5108_v54  ;;  %v4812_v49 = vmul.f32 0.015625, %v4708_v14  ;;  %v6455_v4 = vmul.f32 1.442695, %v6386_v7  ;;  %v13889_v45 = vmul.f32 %v13593_v51, %v5000_v2 }
 0x754   : > { %16274 = vst [vmem:[#allocation39_spill] sm:$0xff] %v13880_v33  ;;  %v8704_v20 = vpop.eup %8703  ;;  %v5555_v35 = vadd.f32 1.0, %v5491_v10  ;;  %v5556_v16 = vadd.f32 1.0, %v5492_v52  ;;  %v4875_v46 = vadd.f32 1e-05, %v4811_v5  ;;  %8711 = vpow2.f32 %v6453_v47 }
 0x755   : > { %v13886_v59 = vpop.eup %8705  ;;  %16275 = vst [vmem:[#allocation49_spill] sm:$0xff] %v13889_v45  ;;  %v13891_v56 = vmul.f32 0.70710677, %v5109_v6  ;;  %v13893_v15 = vmul.f32 0.70710677, %v5110_v38  ;;  %vm5299_vm13 = vcmp.ge.f32.partialorder %v5235_v21, 0.0  ;;  %v5001_v13 = vmul.f32 %v8704_v20, %v16276_v25 }
 0x756   : > { %v5745_v53 = vmul.f32 1.0614054, %v13886_v59  ;;  %8713 = vrcp.f32 %v5555_v35  ;;  %v4813_v54 = vmul.f32 0.015625, %v4711_v3  ;;  %vm5300_vm14 = vcmp.ge.f32.partialorder %v13843_v17, 0.0 }
 0x757   : > { %v13896_v62 = vpop.eup %8707  ;;  %8715 = vrcp.f32 %v5556_v16  ;;  %v4876_v18 = vadd.f32 1e-05, %v4812_v49  ;;  %v6323_v58 = vsub.f32 0.0, %v5427_v40  ;;  %v13902_v7 = vsel %vm5299_vm13, 1.0, %v16244_v11 }
 0x758   : > { %v5746_v43 = vmul.f32 1.0614054, %v13896_v62  ;;  %v5809_v24 = vadd.f32 -1.4531521, %v5745_v53  ;;  %8717 = vpow2.f32 %v6455_v4  ;;  %v6324_v5 = vsub.f32 0.0, %v5428_v60 }
 0x759   : > { %v5429_v21 = vand.u32 2147483647, %v13891_v56  ;;  %v5430_v14 = vand.u32 2147483647, %v13893_v15  ;;  %v13908_v17 = vsel %vm5300_vm14, 1.0, %v16244_v11  ;;  %v13911_v32 = vmul.f32 %v13593_v51, %v5001_v13 }
 0x75a   : > { %v5810_v36 = vadd.f32 -1.4531521, %v5746_v43  ;;  %v5873_v2 = vmul.f32 %v13886_v59, %v5809_v24  ;;  %v4877_v47 = vadd.f32 1e-05, %v4813_v54  ;;  %8719 = vrsqrt.f32 %v4875_v46  ;;  %v16278_v24 = vld [vmem:[#allocation54_spill] sm:$0xff] }
 0x75b   : > { %16277 = vst [vmem:[#allocation46_spill] sm:$0xff] %v13911_v32  ;;  %v5493_v10 = vmul.f32 0.3275911, %v5429_v21  ;;  %v5494_v52 = vmul.f32 0.3275911, %v5430_v14  ;;  %v8710_v49 = vpop.eup %8709  ;;  %v6387_v4 = vmul.f32 %v6323_v58, %v5427_v40  ;;  %8721 = vrsqrt.f32 %v4876_v18 }
 0x75c   : > { %v5874_v3 = vmul.f32 %v13896_v62, %v5810_v36  ;;  %v5937_v20 = vadd.f32 1.4214138, %v5873_v2  ;;  %v6388_v35 = vmul.f32 %v6324_v5, %v5428_v60  ;;  %v13914_v16 = vmul.f32 0.5, %v5109_v6  ;;  %v16279_v36 = vld [vmem:[#allocation71_spill] sm:$0xff]  ;;  %v16280_v5 = vld [vmem:[#allocation33_spill] sm:$0xff] }
 0x75d   : > { %v5557_v53 = vadd.f32 1.0, %v5493_v10  ;;  %v5558_v25 = vadd.f32 1.0, %v5494_v52  ;;  %8723 = vrsqrt.f32 %v4877_v47  ;;  %v13917_v13 = vmul.f32 0.5, %v5110_v38 }
 0x75e   : > { %v5938_v43 = vadd.f32 1.4214138, %v5874_v3  ;;  %v6001_v54 = vmul.f32 %v13886_v59, %v5937_v20  ;;  %v8712_v46 = vpop.eup %8711  ;;  %v5002_v32 = vmul.f32 %v8710_v49, %v16278_v24  ;;  %v6325_v45 = vsub.f32 0.0, %v5429_v21 }
 0x75f   : > { %8725 = vrcp.f32 %v5557_v53  ;;  %v13922_v40 = vadd.f32 %v13596_v19, %v16279_v36  ;;  %v6457_v58 = vmul.f32 1.442695, %v6387_v4  ;;  %v13929_v2 = vadd.f32 %v13596_v19, %v16280_v5 }
 0x760   : > { %v13924_v60 = vpop.eup %8713  ;;  %v6002_v6 = vmul.f32 %v13896_v62, %v5938_v43  ;;  %v6065_v18 = vadd.f32 -0.28449672, %v6001_v54  ;;  %v6459_v10 = vmul.f32 1.442695, %v6388_v35  ;;  %8727 = vrcp.f32 %v5558_v25  ;;  %v4714_v54 = vpop.xlane.xlu1 %4713 }
 0x761   : > { %v13931_v38 = vpop.eup %8715  ;;  %v5747_v47 = vmul.f32 1.0614054, %v13924_v60  ;;  %v6326_v52 = vsub.f32 0.0, %v5430_v14  ;;  %vm5301_vm15 = vcmp.ge.f32.partialorder %v13891_v56, 0.0  ;;  %v13938_v4 = vmul.f32 %v13593_v51, %v5002_v32 }
 0x762   : > { %v8718_v49 = vpop.eup %8717  ;;  %v6066_v3 = vadd.f32 -0.28449672, %v6002_v6  ;;  %v6129_v20 = vmul.f32 %v13886_v59, %v6065_v18  ;;  %v5748_v53 = vmul.f32 1.0614054, %v13931_v38  ;;  %v6389_v43 = vmul.f32 %v6325_v45, %v5429_v21 }
 0x763   : > { %16281 = vst [vmem:[#allocation48_spill] sm:$0xff] %v13938_v4  ;;  %v5811_v19 = vadd.f32 -1.4531521, %v5747_v47  ;;  %v13941_v24 = vmul.f32 0.70710677, %v13922_v40  ;;  %8729 = vpow2.f32 %v6457_v58  ;;  %v13949_v51 = vsel %vm5301_vm15, 1.0, %v16244_v11 }
 0x764   : > { %v6130_v35 = vmul.f32 %v13896_v62, %v6066_v3  ;;  %v6193_v25 = vadd.f32 0.2548296, %v6129_v20  ;;  %v5812_v36 = vadd.f32 -1.4531521, %v5748_v53  ;;  %v13945_v6 = vmul.f32 0.70710677, %v13929_v2  ;;  %v8720_v18 = vpop.eup %8719 }
 0x765   : > { %v5875_v5 = vmul.f32 %v13924_v60, %v5811_v19  ;;  %v6390_v56 = vmul.f32 %v6326_v52, %v5430_v14  ;;  %v13951_v45 = vpop.eup %8721  ;;  %v4814_v3 = vmul.f32 0.015625, %v4714_v54  ;;  %8731 = vpow2.f32 %v6459_v10 }
 0x766   : > { %v6194_v21 = vadd.f32 0.2548296, %v6130_v35  ;;  %v6257_v32 = vmul.f32 %v13886_v59, %v6193_v25  ;;  %v5876_v47 = vmul.f32 %v13931_v38, %v5812_v36  ;;  %v6461_v53 = vmul.f32 1.442695, %v6389_v43  ;;  %v16282_v35 = vld [vmem:[#allocation57_spill] sm:$0xff] }
 0x767   : > { %v5939_v20 = vadd.f32 1.4214138, %v5875_v5  ;;  %v5431_v4 = vand.u32 2147483647, %v13941_v24  ;;  %v13956_v33 = vpop.eup %8723  ;;  %v5432_v14 = vand.u32 2147483647, %v13945_v6  ;;  %v5003_v25 = vmul.f32 %v8720_v18, %v16282_v35 }
 0x768   : > { %v6258_v58 = vmul.f32 %v13896_v62, %v6194_v21  ;;  %v6577_v19 = vmul.f32 %v8712_v46, %v6257_v32  ;;  %v5940_v55 = vadd.f32 1.4214138, %v5876_v47  ;;  %v6463_v54 = vmul.f32 1.442695, %v6390_v56 }
 0x769   : > { %v13960_v52 = vpop.eup %8725  ;;  %v6003_v59 = vmul.f32 %v13924_v60, %v5939_v20  ;;  %v5495_v36 = vmul.f32 0.3275911, %v5431_v4  ;;  %vm5302_vm0 = vcmp.ge.f32.partialorder %v13893_v15, 0.0  ;;  %8733 = vpow2.f32 %v6461_v53 }
 0x76a   : > { %v6578_v10 = vmul.f32 %v8718_v49, %v6258_v58  ;;  %v6641_v43 = vsub.f32 1.0, %v6577_v19  ;;  %v6004_v5 = vmul.f32 %v13931_v38, %v5940_v55  ;;  %v5749_v62 = vmul.f32 1.0614054, %v13960_v52  ;;  %v13967_v46 = vpop.eup %8727 }
 0x76b   : > { %v6067_v21 = vadd.f32 -0.28449672, %v6003_v59  ;;  %v5496_v32 = vmul.f32 0.3275911, %v5432_v14  ;;  %v5559_v47 = vadd.f32 1.0, %v5495_v36  ;;  %vm5303_vm1 = vcmp.ge.f32.partialorder %v13941_v24, 0.0 }
 0x76c   : > { %v6642_v44 = vsub.f32 1.0, %v6578_v10  ;;  %v6705_v20 = vmul.f32 %v6641_v43, %v13864_v57  ;;  %v6068_v18 = vadd.f32 -0.28449672, %v6004_v5  ;;  %v5750_v56 = vmul.f32 1.0614054, %v13967_v46 }
 0x76d   : > { %v6131_v49 = vmul.f32 %v13924_v60, %v6067_v21  ;;  %v5813_v58 = vadd.f32 -1.4531521, %v5749_v62  ;;  %v5560_v55 = vadd.f32 1.0, %v5496_v32  ;;  %8735 = vrcp.f32 %v5559_v47  ;;  %v8730_v53 = vpop.eup %8729  ;;  %v4717_v62 = vpop.xlane.xlu0 %4716 }
 0x76e   : > { %v6706_v19 = vmul.f32 %v6642_v44, %v13868_v30  ;;  %v6769_v35 = vadd.f32 1.0, %v6705_v20  ;;  %v6132_v61 = vmul.f32 %v13931_v38, %v6068_v18  ;;  %v5814_v59 = vadd.f32 -1.4531521, %v5750_v56 }
 0x76f   : > { %v6195_v0 = vadd.f32 0.2548296, %v6131_v49  ;;  %v5877_v36 = vmul.f32 %v13960_v52, %v5813_v58  ;;  %8737 = vrcp.f32 %v5560_v55  ;;  %v6327_v57 = vsub.f32 0.0, %v5431_v4  ;;  %v8732_v32 = vpop.eup %8731 }
 0x770   : > { %v6770_v10 = vadd.f32 1.0, %v6706_v19  ;;  %v6196_v43 = vadd.f32 0.2548296, %v6132_v61  ;;  %v5878_v5 = vmul.f32 %v13967_v46, %v5814_v59  ;;  %v6328_v21 = vsub.f32 0.0, %v5432_v14 }
 0x771   : > { %v6259_v47 = vmul.f32 %v13924_v60, %v6195_v0  ;;  %v5941_v44 = vadd.f32 1.4214138, %v5877_v36  ;;  %8739 = vpow2.f32 %v6463_v54  ;;  %v4878_v30 = vadd.f32 1e-05, %v4814_v3  ;;  %v13982_v3 = vld [vmem:[#allocation14] ss:$0 sm:$0xff] }
 0x772   : > { %v6833_v20 = vmul.f32 %v6769_v35, %v13849_v28  ;;  %v6834_v18 = vmul.f32 %v6770_v10, %v13856_v42  ;;  %v6260_v56 = vmul.f32 %v13931_v38, %v6196_v43  ;;  %v5942_v49 = vadd.f32 1.4214138, %v5878_v5  ;;  %v16283_v35 = vld [vmem:[#allocation56_spill] sm:$0xff] }
 0x773   : > { %v6579_v58 = vmul.f32 %v8730_v53, %v6259_v47  ;;  %v6005_v61 = vmul.f32 %v13960_v52, %v5941_v44  ;;  %v6391_v55 = vmul.f32 %v6327_v57, %v5431_v4  ;;  %v4815_v19 = vmul.f32 0.015625, %v4717_v62  ;;  %v8734_v60 = vpop.eup %8733 }
 0x774   : > { %v6903_v59 = vpack.c.bf16 %v6834_v18, %v6833_v20  ;;  %v6580_v26 = vmul.f32 %v8732_v32, %v6260_v56  ;;  %v6006_v50 = vmul.f32 %v13967_v46, %v5942_v49  ;;  %v6392_v0 = vmul.f32 %v6328_v21, %v5432_v14  ;;  %v4720_v14 = vpop.xlane.xlu1 %4719  ;;  %v4723_v32 = vpop.xlane.xlu0 %4722 }
 0x775   : > { %v6643_v54 = vsub.f32 1.0, %v6579_v58  ;;  %v13985_v28 = vmul.f32 %v13982_v3, %v5003_v25  ;;  %v5366_v42 = vsel %vm5302_vm0, 1.0, %v16244_v11  ;;  %v6069_v38 = vadd.f32 -0.28449672, %v6005_v61 }
 0x776   : > { %7997 = vmatprep.mubr.msk.bf16.mxu0 %vm1033_vm2, %v6903_v59  ;;  %v6644_v4 = vsub.f32 1.0, %v6580_v26  ;;  %v5004_v53 = vmul.f32 %v13951_v45, %v16283_v35  ;;  %v6070_v36 = vadd.f32 -0.28449672, %v6006_v50  ;;  %8741 = vrsqrt.f32 %v4878_v30  ;;  %v14002_v30 = vld [vmem:[#allocation16] ss:$0 sm:$0xff] }
 0x777   : > { %v13993_v57 = vpop.eup %8735  ;;  %v6707_v10 = vmul.f32 %v6643_v54, %v13902_v7  ;;  %v6133_v25 = vmul.f32 %v13960_v52, %v6069_v38  ;;  %v6465_v43 = vmul.f32 1.442695, %v6391_v55  ;;  %v4879_v5 = vadd.f32 1e-05, %v4815_v19 }
 0x778   : > { %v6708_v15 = vmul.f32 %v6644_v4, %v13908_v17  ;;  %v6134_v21 = vmul.f32 %v13967_v46, %v6070_v36  ;;  %v5751_v26 = vmul.f32 1.0614054, %v13993_v57  ;;  %v6467_v62 = vmul.f32 1.442695, %v6392_v0 }
 0x779   : > { %v14000_v45 = vpop.eup %8737  ;;  %v6771_v50 = vadd.f32 1.0, %v6707_v10  ;;  %v6197_v47 = vadd.f32 0.2548296, %v6133_v25  ;;  %v4816_v44 = vmul.f32 0.015625, %v4720_v14  ;;  %v14006_v7 = vadd.f32 %v14002_v30, %v13721_v63 }
 0x77a   : > { %v6772_v20 = vadd.f32 1.0, %v6708_v15  ;;  %v6198_v18 = vadd.f32 0.2548296, %v6134_v21  ;;  %v5752_v17 = vmul.f32 1.0614054, %v14000_v45  ;;  %v14011_v56 = vadd.f32 %v14002_v30, %v13726_v9 }
 0x77b   : > { %v8740_v49 = vpop.eup %8739  ;;  %v6261_v58 = vmul.f32 %v13960_v52, %v6197_v47  ;;  %v5815_v61 = vadd.f32 -1.4531521, %v5751_v26  ;;  %8743 = vpow2.f32 %v6465_v43  ;;  %v4817_v55 = vmul.f32 0.015625, %v4723_v32  ;;  %v16284_v47 = vld [vmem:[#allocation45_spill] sm:$0xff] }
 0x77c   : > { %v6835_v19 = vmul.f32 %v6771_v50, %v13882_v23  ;;  %v6836_v59 = vmul.f32 %v6772_v20, %v13884_v29  ;;  %v6262_v63 = vmul.f32 %v13967_v46, %v6198_v18  ;;  %v5816_v0 = vadd.f32 -1.4531521, %v5752_v17 }
 0x77d   : > { %v6581_v54 = vmul.f32 %v8734_v60, %v6261_v58  ;;  %v5879_v38 = vmul.f32 %v13993_v57, %v5815_v61  ;;  %v4880_v4 = vadd.f32 1e-05, %v4816_v44  ;;  %v14019_v9 = vmul.f32 0.70710677, %v14006_v7  ;;  %v16285_v58 = vld [vmem:[#allocation42_spill] sm:$0xff] }
 0x77e   : > { %v6904_v35 = vpack.c.bf16 %v6836_v59, %v6835_v19  ;;  %v6582_v36 = vmul.f32 %v8740_v49, %v6262_v63  ;;  %v5880_v52 = vmul.f32 %v14000_v45, %v5816_v0  ;;  %v14023_v14 = vmul.f32 0.70710677, %v14011_v56  ;;  %v4726_v49 = vpop.xlane.xlu1 %4725 }
 0x77f   : > { %v6645_v23 = vsub.f32 1.0, %v6581_v54  ;;  %v14026_v29 = vmul.f32 0.5, %v13922_v40  ;;  %v5943_v46 = vadd.f32 1.4214138, %v5879_v38  ;;  %8745 = vpow2.f32 %v6467_v62 }
 0x780   : > { %v8742_v60 = vpop.eup %8741  ;;  %7998 = vmatmul.mubr.msk.bf16.gmra.mrb[36].mxu0 %vm1033_vm2, %v6904_v35  ;;  %v6646_v10 = vsub.f32 1.0, %v6582_v36  ;;  %v5944_v25 = vadd.f32 1.4214138, %v5880_v52  ;;  %8747 = vrsqrt.f32 %v4879_v5  ;;  %v4881_v43 = vadd.f32 1e-05, %v4817_v55 }
 0x781   : > { %v6709_v15 = vmul.f32 %v6645_v23, %v13949_v51  ;;  %v6007_v21 = vmul.f32 %v13993_v57, %v5943_v46  ;;  %8749 = vrsqrt.f32 %v4880_v4  ;;  %v14032_v26 = vand.u32 2147483647, %v14019_v9  ;;  %v16286_v46 = vld [vmem:[#allocation72_spill] sm:$0xff] }
 0x782   : > { %v14035_v40 = vmul.f32 %v13982_v3, %v5004_v53  ;;  %v6710_v32 = vmul.f32 %v6646_v10, %v5366_v42  ;;  %v6008_v62 = vmul.f32 %v14000_v45, %v5944_v25  ;;  %v14039_v50 = vand.u32 2147483647, %v14023_v14 }
 0x783   : > { %v5005_v5 = vmul.f32 %v13956_v33, %v16284_v47  ;;  %v6773_v44 = vadd.f32 1.0, %v6709_v15  ;;  %v6071_v51 = vadd.f32 -0.28449672, %v6007_v21  ;;  %v5497_v20 = vmul.f32 0.3275911, %v14032_v26  ;;  %v16287_v15 = vld [vmem:[#allocation36_spill] sm:$0xff] }
 0x784   : > { %v6774_v18 = vadd.f32 1.0, %v6710_v32  ;;  %v6072_v17 = vadd.f32 -0.28449672, %v6008_v62  ;;  %v5498_v53 = vmul.f32 0.3275911, %v14039_v50  ;;  %v5006_v61 = vmul.f32 %v8742_v60, %v16285_v58 }
 0x785   : > { %v8744_v42 = vpop.eup %8743  ;;  %v6135_v55 = vmul.f32 %v13993_v57, %v6071_v51  ;;  %8751 = vrsqrt.f32 %v4881_v43  ;;  %v5561_v19 = vadd.f32 1.0, %v5497_v20  ;;  %v6837_v33 = vmul.f32 %v6773_v44, %v13914_v16 }
 0x786   : > { %v6838_v59 = vmul.f32 %v6774_v18, %v13917_v13  ;;  %v6136_v63 = vmul.f32 %v14000_v45, %v6072_v17  ;;  %v5562_v0 = vadd.f32 1.0, %v5498_v53  ;;  %vm5304_vm3 = vcmp.ge.f32.partialorder %v13945_v6, 0.0 }
 0x787   : > { %v6199_v54 = vadd.f32 0.2548296, %v6135_v55  ;;  %8753 = vrcp.f32 %v5561_v19  ;;  %v4818_v38 = vmul.f32 0.015625, %v4726_v49  ;;  %v5176_v35 = vmul.f32 0.5, %v13929_v2 }
 0x788   : > { %v6905_v4 = vpack.c.bf16 %v6838_v59, %v6837_v33  ;;  %v6200_v36 = vadd.f32 0.2548296, %v6136_v63  ;;  %8755 = vrcp.f32 %v5562_v0  ;;  %v14054_v23 = vmul.f32 %v13982_v3, %v5005_v5 }
 0x789   : > { %v8746_v52 = vpop.eup %8745  ;;  %v5367_v16 = vsel %vm5303_vm1, 1.0, %v16244_v11  ;;  %v6263_v13 = vmul.f32 %v13993_v57, %v6199_v54  ;;  %v5115_v60 = vadd.f32 %v14002_v30, %v16286_v46  ;;  %v14064_v2 = vmul.f32 %v13982_v3, %v5006_v61 }
 0x78a   : > { %v8748_v10 = vpop.eup %8747  ;;  %8001 = vmatprep.mubr.msk.bf16.mxu0 %vm1033_vm2, %v6905_v4  ;;  %v5368_v25 = vsel %vm5304_vm3, 1.0, %v16244_v11  ;;  %v6264_v43 = vmul.f32 %v14000_v45, %v6200_v36  ;;  %v5116_v24 = vadd.f32 %v14002_v30, %v16287_v15  ;;  %v14073_v32 = vmul.f32 0.5, %v14006_v7  ;;  %v16288_v45 = vld [vmem:[#allocation58_spill] sm:$0xff]  ;;  %v16289_v7 = vld [vmem:[#allocation59_spill] sm:$0xff] }
 0x78b   : > { %v8750_v21 = vpop.eup %8749  ;;  %v6583_v57 = vmul.f32 %v8744_v42, %v6263_v13  ;;  %v4882_v62 = vadd.f32 1e-05, %v4818_v38  ;;  %v14075_v47 = vmul.f32 0.70710677, %v5115_v60  ;;  %vm5305_vm4 = vcmp.ge.f32.partialorder %v14019_v9, 0.0 }
 0x78c   : > { %v6584_v5 = vmul.f32 %v8746_v52, %v6264_v43  ;;  %v6329_v44 = vsub.f32 0.0, %v14032_v26  ;;  %v14079_v6 = vmul.f32 0.70710677, %v5116_v24  ;;  %v5007_v20 = vmul.f32 %v8748_v10, %v16288_v45  ;;  %v4729_v43 = vpop.xlane.xlu0 %4728 }
 0x78d   : > { %v6647_v51 = vsub.f32 1.0, %v6583_v57  ;;  %vm5306_vm5 = vcmp.ge.f32.partialorder %v14023_v14, 0.0  ;;  %v5435_v18 = vand.u32 2147483647, %v14075_v47  ;;  %v5008_v53 = vmul.f32 %v8750_v21, %v16289_v7 }
 0x78e   : > { %v6648_v17 = vsub.f32 1.0, %v6584_v5  ;;  %v14086_v49 = vmul.f32 0.5, %v14011_v56  ;;  %v6330_v42 = vsub.f32 0.0, %v14039_v50  ;;  %8757 = vrsqrt.f32 %v4882_v62 }
 0x78f   : > { %v8752_v58 = vpop.eup %8751  ;;  %v6711_v61 = vmul.f32 %v6647_v51, %v5367_v16  ;;  %v5436_v55 = vand.u32 2147483647, %v14079_v6  ;;  %v5499_v19 = vmul.f32 0.3275911, %v5435_v18  ;;  %v14093_v14 = vsel %vm5305_vm4, 1.0, %v16244_v11  ;;  %v16290_v16 = vld [vmem:[#allocation60_spill] sm:$0xff] }
 0x790   : > { %v6712_v33 = vmul.f32 %v6648_v17, %v5368_v25  ;;  %v14096_v59 = vsel %vm5306_vm5, 1.0, %v16244_v11  ;;  %v6393_v56 = vmul.f32 %v6329_v44, %v14032_v26  ;;  %v14102_v54 = vmul.f32 %v13982_v3, %v5007_v20 }
 0x791   : > { %v14099_v63 = vpop.eup %8753  ;;  %v6775_v0 = vadd.f32 1.0, %v6711_v61  ;;  %v5500_v38 = vmul.f32 0.3275911, %v5436_v55  ;;  %v5563_v4 = vadd.f32 1.0, %v5499_v19  ;;  %v5009_v9 = vmul.f32 %v8752_v58, %v16290_v16  ;;  %v16291_v58 = vld [vmem:[#allocation74_spill] sm:$0xff]  ;;  %v4732_v61 = vpop.xlane.xlu1 %4731  ;;  %v16292_v19 = vld [vmem:[#allocation76_spill] sm:$0xff] }
 0x792   : > { %v14104_v36 = vpop.eup %8755  ;;  %v6776_v52 = vadd.f32 1.0, %v6712_v33  ;;  %v5753_v13 = vmul.f32 1.0614054, %v14099_v63  ;;  %v6394_v46 = vmul.f32 %v6330_v42, %v14039_v50  ;;  %v14110_v10 = vmul.f32 %v13982_v3, %v5008_v53 }
 0x793   : > { %v5754_v26 = vmul.f32 1.0614054, %v14104_v36  ;;  %v5564_v25 = vadd.f32 1.0, %v5500_v38  ;;  %8759 = vrcp.f32 %v5563_v4  ;;  %v6839_v15 = vmul.f32 %v6775_v0, %v14026_v29 }
 0x794   : > { %v6840_v21 = vmul.f32 %v6776_v52, %v5176_v35  ;;  %v5817_v57 = vadd.f32 -1.4531521, %v5753_v13  ;;  %v6469_v62 = vmul.f32 1.442695, %v6393_v56  ;;  %v6331_v44 = vsub.f32 0.0, %v5435_v18 }
 0x795   : > { %v5818_v5 = vadd.f32 -1.4531521, %v5754_v26  ;;  %8761 = vrcp.f32 %v5564_v25  ;;  %v6332_v51 = vsub.f32 0.0, %v5436_v55  ;;  %v6471_v20 = vmul.f32 1.442695, %v6394_v46  ;;  %v4735_v25 = vpop.xlane.xlu0 %4734 }
 0x796   : > { %v6906_v45 = vpack.c.bf16 %v6840_v21, %v6839_v15  ;;  %v5881_v50 = vmul.f32 %v14099_v63, %v5817_v57  ;;  %v4819_v17 = vmul.f32 0.015625, %v4729_v43  ;;  %v14116_v53 = vmul.f32 0.5, %v5115_v60 }
 0x797   : > { %v5882_v7 = vmul.f32 %v14104_v36, %v5818_v5  ;;  %v14118_v42 = vmul.f32 0.5, %v5116_v24  ;;  %v14122_v29 = vadd.f32 %v14002_v30, %v16291_v58  ;;  %8763 = vpow2.f32 %v6469_v62 }
 0x798   : > { %8002 = vmatmul.mubr.msk.bf16.gmra.mrb[40].mxu0 %vm1033_vm2, %v6906_v45  ;;  %v5945_v35 = vadd.f32 1.4214138, %v5881_v50  ;;  %vm5307_vm6 = vcmp.ge.f32.partialorder %v14075_v47, 0.0  ;;  %v14128_v33 = vadd.f32 %v14002_v30, %v16292_v19  ;;  %v8758_v56 = vpop.eup %8757  ;;  %vm5308_vm7 = vcmp.ge.f32.partialorder %v14079_v6, 0.0  ;;  %v16293_v6 = vld [vmem:[#allocation62_spill] sm:$0xff] }
 0x799   : > { %v5946_v60 = vadd.f32 1.4214138, %v5882_v7  ;;  %v6395_v24 = vmul.f32 %v6331_v44, %v5435_v18  ;;  %v6396_v0 = vmul.f32 %v6332_v51, %v5436_v55  ;;  %8765 = vpow2.f32 %v6471_v20 }
 0x79a   : > { %v6009_v38 = vmul.f32 %v14099_v63, %v5945_v35  ;;  %v14133_v4 = vmul.f32 0.70710677, %v14122_v29  ;;  %v14136_v52 = vmul.f32 0.70710677, %v14128_v33  ;;  %v14140_v16 = vsel %vm5307_vm6, 1.0, %v16244_v11 }
 0x79b   : > { %v6010_v47 = vmul.f32 %v14104_v36, %v5946_v60  ;;  %v4883_v13 = vadd.f32 1e-05, %v4819_v17  ;;  %v4820_v46 = vmul.f32 0.015625, %v4732_v61  ;;  %v5010_v18 = vmul.f32 %v8758_v56, %v16293_v6  ;;  %v4738_v56 = vpop.xlane.xlu1 %4737 }
 0x79c   : > { %v6073_v26 = vadd.f32 -0.28449672, %v6009_v38  ;;  %v14144_v55 = vsel %vm5308_vm7, 1.0, %v16244_v11  ;;  %v5437_v43 = vand.u32 2147483647, %v14133_v4  ;;  %v14150_v21 = vmul.f32 %v13982_v3, %v5009_v9 }
 0x79d   : > { %v14147_v15 = vpop.eup %8759  ;;  %v6074_v57 = vadd.f32 -0.28449672, %v6010_v47  ;;  %v6473_v62 = vmul.f32 1.442695, %v6395_v24  ;;  %v6475_v5 = vmul.f32 1.442695, %v6396_v0  ;;  %8767 = vrsqrt.f32 %v4883_v13 }
 0x79e   : > { %v6137_v44 = vmul.f32 %v14099_v63, %v6073_v26  ;;  %v5755_v51 = vmul.f32 1.0614054, %v14147_v15  ;;  %v14155_v45 = vand.u32 2147483647, %v14136_v52  ;;  %v5501_v50 = vmul.f32 0.3275911, %v5437_v43 }
 0x79f   : > { %v14157_v20 = vpop.eup %8761  ;;  %v6138_v17 = vmul.f32 %v14104_v36, %v6074_v57  ;;  %v4884_v7 = vadd.f32 1e-05, %v4820_v46  ;;  %v4821_v58 = vmul.f32 0.015625, %v4735_v25  ;;  %v14161_v35 = vmul.f32 %v13982_v3, %v5010_v18 }
 0x7a0   : > { %v6201_v9 = vadd.f32 0.2548296, %v6137_v44  ;;  %v5756_v61 = vmul.f32 1.0614054, %v14157_v20  ;;  %v5819_v19 = vadd.f32 -1.4531521, %v5755_v51  ;;  %8769 = vpow2.f32 %v6473_v62 }
 0x7a1   : > { %16294 = vst [vmem:[#allocation50_spill] sm:$0xff] %v14161_v35  ;;  %v6202_v60 = vadd.f32 0.2548296, %v6138_v17  ;;  %v5502_v24 = vmul.f32 0.3275911, %v14155_v45  ;;  %v5565_v0 = vadd.f32 1.0, %v5501_v50  ;;  %v8764_v38 = vpop.eup %8763  ;;  %8771 = vpow2.f32 %v6475_v5 }
 0x7a2   : > { %v6265_v47 = vmul.f32 %v14099_v63, %v6201_v9  ;;  %v5820_v26 = vadd.f32 -1.4531521, %v5756_v61  ;;  %v5883_v13 = vmul.f32 %v14147_v15, %v5819_v19  ;;  %v4822_v18 = vmul.f32 0.015625, %v4738_v56  ;;  %v16295_v35 = vld [vmem:[#allocation75_spill] sm:$0xff] }
 0x7a3   : > { %v6266_v46 = vmul.f32 %v14104_v36, %v6202_v60  ;;  %v5566_v6 = vadd.f32 1.0, %v5502_v24  ;;  %8773 = vrcp.f32 %v5565_v0  ;;  %v8766_v25 = vpop.eup %8765  ;;  %v4885_v51 = vadd.f32 1e-05, %v4821_v58  ;;  %v16296_v58 = vld [vmem:[#allocation77_spill] sm:$0xff] }
 0x7a4   : > { %v6585_v57 = vmul.f32 %v8764_v38, %v6265_v47  ;;  %v5884_v44 = vmul.f32 %v14157_v20, %v5820_v26  ;;  %v5947_v62 = vadd.f32 1.4214138, %v5883_v13  ;;  %v6333_v50 = vsub.f32 0.0, %v5437_v43 }
 0x7a5   : > { %v6586_v17 = vmul.f32 %v8766_v25, %v6266_v46  ;;  %8775 = vrcp.f32 %v5566_v6  ;;  %v14171_v63 = vadd.f32 %v14002_v30, %v16295_v35  ;;  %v14175_v19 = vmul.f32 0.5, %v14122_v29 }
 0x7a6   : > { %v6649_v9 = vsub.f32 1.0, %v6585_v57  ;;  %v5948_v5 = vadd.f32 1.4214138, %v5884_v44  ;;  %v6011_v36 = vmul.f32 %v14147_v15, %v5947_v62  ;;  %8777 = vrsqrt.f32 %v4884_v7  ;;  %v16297_v62 = vld [vmem:[#allocation61_spill] sm:$0xff] }
 0x7a7   : > { %v6650_v61 = vsub.f32 1.0, %v6586_v17  ;;  %v14178_v56 = vmul.f32 0.5, %v14128_v33  ;;  %v14182_v60 = vadd.f32 %v14002_v30, %v16296_v58  ;;  %8779 = vrsqrt.f32 %v4885_v51  ;;  %v8768_v38 = vpop.eup %8767 }
 0x7a8   : > { %v6713_v24 = vmul.f32 %v6649_v9, %v14093_v14  ;;  %v6012_v35 = vmul.f32 %v14157_v20, %v5948_v5  ;;  %v6075_v0 = vadd.f32 -0.28449672, %v6011_v36  ;;  %v6397_v47 = vmul.f32 %v6333_v50, %v5437_v43 }
 0x7a9   : > { %v6714_v7 = vmul.f32 %v6650_v61, %v14096_v59  ;;  %v4886_v26 = vadd.f32 1e-05, %v4822_v18  ;;  %v14188_v29 = vmul.f32 0.70710677, %v14171_v63  ;;  %vm5309_vm8 = vcmp.ge.f32.partialorder %v14133_v4, 0.0 }
 0x7aa   : > { %v6777_v33 = vadd.f32 1.0, %v6713_v24  ;;  %v6076_v13 = vadd.f32 -0.28449672, %v6012_v35  ;;  %v6139_v46 = vmul.f32 %v14147_v15, %v6075_v0  ;;  %v8770_v6 = vpop.eup %8769  ;;  %v6334_v25 = vsub.f32 0.0, %v14155_v45 }
 0x7ab   : > { %v6778_v14 = vadd.f32 1.0, %v6714_v7  ;;  %v14194_v57 = vmul.f32 0.70710677, %v14182_v60  ;;  %v5439_v59 = vand.u32 2147483647, %v14188_v29  ;;  %v8772_v43 = vpop.eup %8771  ;;  %v5011_v51 = vmul.f32 %v8768_v38, %v16297_v62 }
 0x7ac   : > { %v6140_v18 = vmul.f32 %v14157_v20, %v6076_v13  ;;  %v6203_v44 = vadd.f32 0.2548296, %v6139_v46  ;;  %vm5310_vm9 = vcmp.ge.f32.partialorder %v14136_v52, 0.0  ;;  %v6841_v50 = vmul.f32 %v6777_v33, %v14073_v32 }
 0x7ad   : > { %v14200_v17 = vpop.eup %8773  ;;  %v6842_v9 = vmul.f32 %v6778_v14, %v14086_v49  ;;  %v6477_v5 = vmul.f32 1.442695, %v6397_v47  ;;  %v14205_v36 = vand.u32 2147483647, %v14194_v57  ;;  %8781 = vrsqrt.f32 %v4886_v26 }
 0x7ae   : > { %v6204_v61 = vadd.f32 0.2548296, %v6140_v18  ;;  %v6267_v58 = vmul.f32 %v14147_v15, %v6203_v44  ;;  %v5757_v24 = vmul.f32 1.0614054, %v14200_v17  ;;  %v6398_v38 = vmul.f32 %v6334_v25, %v14155_v45 }
 0x7af   : > { %v14209_v35 = vpop.eup %8775  ;;  %v6907_v0 = vpack.c.bf16 %v6842_v9, %v6841_v50  ;;  %v5503_v7 = vmul.f32 0.3275911, %v5439_v59  ;;  %v5504_v32 = vmul.f32 0.3275911, %v14205_v36  ;;  %8783 = vpow2.f32 %v6477_v5  ;;  %v16298_v50 = vld [vmem:[#allocation63_spill] sm:$0xff] }
 0x7b0   : > { %v8778_v33 = vpop.eup %8777  ;;  %v6268_v49 = vmul.f32 %v14157_v20, %v6204_v61  ;;  %v6587_v47 = vmul.f32 %v8770_v6, %v6267_v58  ;;  %v5758_v13 = vmul.f32 1.0614054, %v14209_v35  ;;  %v5821_v46 = vadd.f32 -1.4531521, %v5757_v24 }
 0x7b1   : > { %8005 = vmatprep.mubr.msk.bf16.mxu0 %vm1033_vm2, %v6907_v0  ;;  %v5567_v15 = vadd.f32 1.0, %v5503_v7  ;;  %v5568_v26 = vadd.f32 1.0, %v5504_v32  ;;  %v6335_v14 = vsub.f32 0.0, %v5439_v59  ;;  %v8780_v18 = vpop.eup %8779  ;;  %v5012_v9 = vmul.f32 %v8778_v33, %v16298_v50 }
 0x7b2   : > { %v6588_v44 = vmul.f32 %v8772_v43, %v6268_v49  ;;  %v6651_v62 = vsub.f32 1.0, %v6587_v47  ;;  %v5822_v45 = vadd.f32 -1.4531521, %v5758_v13  ;;  %v5885_v25 = vmul.f32 %v14200_v17, %v5821_v46  ;;  %v4741_v43 = vpop.xlane.xlu0 %4740  ;;  %v4744_v49 = vpop.xlane.xlu1 %4743 }
 0x7b3   : > { %v14221_v20 = vsel %vm5309_vm8, 1.0, %v16244_v11  ;;  %v6479_v6 = vmul.f32 1.442695, %v6398_v38  ;;  %8785 = vrcp.f32 %v5567_v15  ;;  %v14226_v0 = vmul.f32 %v13982_v3, %v5011_v51 }
 0x7b4   : > { %v6652_v61 = vsub.f32 1.0, %v6588_v44  ;;  %v6715_v5 = vmul.f32 %v6651_v62, %v14140_v16  ;;  %v5886_v58 = vmul.f32 %v14209_v35, %v5822_v45  ;;  %v5949_v24 = vadd.f32 1.4214138, %v5885_v25 }
 0x7b5   : > { %v14231_v7 = vsel %vm5310_vm9, 1.0, %v16244_v11  ;;  %8787 = vrcp.f32 %v5568_v26  ;;  %v6399_v4 = vmul.f32 %v6335_v14, %v5439_v59  ;;  %v14236_v47 = vmul.f32 %v13982_v3, %v5012_v9 }
 0x7b6   : > { %v6716_v38 = vmul.f32 %v6652_v61, %v14144_v55  ;;  %v6779_v32 = vadd.f32 1.0, %v6715_v5  ;;  %v5950_v33 = vadd.f32 1.4214138, %v5886_v58  ;;  %v6013_v16 = vmul.f32 %v14200_v17, %v5949_v24 }
 0x7b7   : > { %8789 = vpow2.f32 %v6479_v6  ;;  %v4823_v51 = vmul.f32 0.015625, %v4741_v43  ;;  %v14240_v13 = vadd.f32 %v14002_v30, %v13771_v41  ;;  %v8782_v52 = vpop.eup %8781  ;;  %v14244_v55 = vmul.f32 0.5, %v14171_v63  ;;  %v16299_v6 = vld [vmem:[#allocation64_spill] sm:$0xff] }
 0x7b8   : > { %v6780_v46 = vadd.f32 1.0, %v6716_v38  ;;  %v6014_v59 = vmul.f32 %v14209_v35, %v5950_v33  ;;  %v6077_v15 = vadd.f32 -0.28449672, %v6013_v16  ;;  %v6336_v26 = vsub.f32 0.0, %v14205_v36 }
 0x7b9   : > { %v6481_v14 = vmul.f32 1.442695, %v6399_v4  ;;  %v4824_v44 = vmul.f32 0.015625, %v4744_v49  ;;  %v14249_v62 = vadd.f32 %v14002_v30, %v13776_v12  ;;  %v6843_v45 = vmul.f32 %v6779_v32, %v14116_v53  ;;  %v8784_v9 = vpop.eup %8783  ;;  %v16300_v53 = vld [vmem:[#allocation65_spill] sm:$0xff] }
 0x7ba   : > { %v6844_v41 = vmul.f32 %v6780_v46, %v14118_v42  ;;  %v6078_v25 = vadd.f32 -0.28449672, %v6014_v59  ;;  %v6141_v50 = vmul.f32 %v14200_v17, %v6077_v15  ;;  %v5013_v61 = vmul.f32 %v8780_v18, %v16299_v6  ;;  %v4747_v42 = vpop.xlane.xlu0 %4746 }
 0x7bb   : > { %v4887_v63 = vadd.f32 1e-05, %v4823_v51  ;;  %v14256_v5 = vmul.f32 0.70710677, %v14240_v13  ;;  %v14259_v58 = vmul.f32 0.70710677, %v14249_v62  ;;  %v5014_v4 = vmul.f32 %v8782_v52, %v16300_v53 }
 0x7bc   : > { %v6908_v24 = vpack.c.bf16 %v6844_v41, %v6843_v45  ;;  %v6142_v12 = vmul.f32 %v14209_v35, %v6078_v25  ;;  %v6205_v43 = vadd.f32 0.2548296, %v6141_v50  ;;  %v6400_v32 = vmul.f32 %v6336_v26, %v14205_v36 }
 0x7bd   : > { %v14263_v38 = vpop.eup %8785  ;;  %v4888_v33 = vadd.f32 1e-05, %v4824_v44  ;;  %v5441_v18 = vand.u32 2147483647, %v14256_v5  ;;  %v14268_v16 = vand.u32 2147483647, %v14259_v58  ;;  %8791 = vpow2.f32 %v6481_v14 }
 0x7be   : > { %8006 = vmatmul.mubr.msk.bf16.gmra.mrb[44].mxu0 %vm1033_vm2, %v6908_v24  ;;  %v6206_v49 = vadd.f32 0.2548296, %v6142_v12  ;;  %v6269_v51 = vmul.f32 %v14200_v17, %v6205_v43  ;;  %v5759_v46 = vmul.f32 1.0614054, %v14263_v38  ;;  %8793 = vrsqrt.f32 %v4887_v63 }
 0x7bf   : > { %v14273_v52 = vpop.eup %8787  ;;  %v4825_v59 = vmul.f32 0.015625, %v4747_v42  ;;  %v5505_v15 = vmul.f32 0.3275911, %v5441_v18  ;;  %v5506_v36 = vmul.f32 0.3275911, %v14268_v16  ;;  %vm5311_vm10 = vcmp.ge.f32.partialorder %v14188_v29, 0.0 }
 0x7c0   : > { %v6270_v26 = vmul.f32 %v14209_v35, %v6206_v49  ;;  %v6589_v44 = vmul.f32 %v8784_v9, %v6269_v51  ;;  %v5760_v45 = vmul.f32 1.0614054, %v14273_v52  ;;  %v5823_v41 = vadd.f32 -1.4531521, %v5759_v46 }
 0x7c1   : > { %v8790_v25 = vpop.eup %8789  ;;  %8795 = vrsqrt.f32 %v4888_v33  ;;  %v5569_v17 = vadd.f32 1.0, %v5505_v15  ;;  %v5570_v50 = vadd.f32 1.0, %v5506_v36  ;;  %v6483_v12 = vmul.f32 1.442695, %v6400_v32  ;;  %v4750_v36 = vpop.xlane.xlu1 %4749 }
 0x7c2   : > { %v6590_v14 = vmul.f32 %v8790_v25, %v6270_v26  ;;  %v6653_v6 = vsub.f32 1.0, %v6589_v44  ;;  %v5824_v24 = vadd.f32 -1.4531521, %v5760_v45  ;;  %v5887_v63 = vmul.f32 %v14263_v38, %v5823_v41 }
 0x7c3   : > { %v4889_v43 = vadd.f32 1e-05, %v4825_v59  ;;  %8797 = vrcp.f32 %v5569_v17  ;;  %v6337_v53 = vsub.f32 0.0, %v5441_v18  ;;  %v14283_v51 = vmul.f32 %v13982_v3, %v5013_v61 }
 0x7c4   : > { %v6654_v35 = vsub.f32 1.0, %v6590_v14  ;;  %v6717_v9 = vmul.f32 %v6653_v6, %v14221_v20  ;;  %v5888_v42 = vmul.f32 %v14273_v52, %v5824_v24  ;;  %v5951_v49 = vadd.f32 1.4214138, %v5887_v63 }
 0x7c5   : > { %v14286_v33 = vmul.f32 0.5, %v14182_v60  ;;  %vm5312_vm11 = vcmp.ge.f32.partialorder %v14194_v57, 0.0  ;;  %8799 = vrcp.f32 %v5570_v50  ;;  %v14292_v20 = vmul.f32 %v13982_v3, %v5014_v4  ;;  %v16301_v50 = vld [vmem:[#allocation79_spill] sm:$0xff] }
 0x7c6   : > { %v6718_v32 = vmul.f32 %v6654_v35, %v14231_v7  ;;  %v6781_v46 = vadd.f32 1.0, %v6717_v9  ;;  %v5952_v59 = vadd.f32 1.4214138, %v5888_v42  ;;  %v6015_v15 = vmul.f32 %v14263_v38, %v5951_v49 }
 0x7c7   : > { %v5375_v61 = vsel %vm5311_vm10, 1.0, %v16244_v11  ;;  %8801 = vpow2.f32 %v6483_v12  ;;  %v6401_v60 = vmul.f32 %v6337_v53, %v5441_v18  ;;  %v8792_v26 = vpop.eup %8791  ;;  %v5376_v25 = vsel %vm5312_vm11, 1.0, %v16244_v11 }
 0x7c8   : > { %v6782_v44 = vadd.f32 1.0, %v6718_v32  ;;  %v6016_v45 = vmul.f32 %v14273_v52, %v5952_v59  ;;  %v6079_v41 = vadd.f32 -0.28449672, %v6015_v15  ;;  %8803 = vrsqrt.f32 %v4889_v43  ;;  %v8794_v7 = vpop.eup %8793 }
 0x7c9   : > { %v6338_v4 = vsub.f32 0.0, %v14268_v16  ;;  %v4826_v17 = vmul.f32 0.015625, %v4750_v36  ;;  %v14304_v29 = vadd.f32 %v14002_v30, %v16301_v50  ;;  %v6845_v18 = vmul.f32 %v6781_v46, %v14175_v19  ;;  %v16302_v36 = vld [vmem:[#allocation69_spill] sm:$0xff] }
 0x7ca   : > { %v6846_v14 = vmul.f32 %v6782_v44, %v14178_v56  ;;  %v6080_v6 = vadd.f32 -0.28449672, %v6016_v45  ;;  %v6143_v24 = vmul.f32 %v14263_v38, %v6079_v41  ;;  %v14310_v12 = vmul.f32 0.5, %v14240_v13 }
 0x7cb   : > { %v8796_v63 = vpop.eup %8795  ;;  %v6485_v57 = vmul.f32 1.442695, %v6401_v60  ;;  %v14314_v43 = vadd.f32 %v14002_v30, %v13768_v37  ;;  %v14317_v53 = vmul.f32 0.70710677, %v14304_v29  ;;  %vm5313_vm12 = vcmp.ge.f32.partialorder %v14256_v5, 0.0 }
 0x7cc   : > { %v6909_v35 = vpack.c.bf16 %v6846_v14, %v6845_v18  ;;  %v6144_v19 = vmul.f32 %v14273_v52, %v6080_v6  ;;  %v6207_v9 = vadd.f32 0.2548296, %v6143_v24  ;;  %v6402_v42 = vmul.f32 %v6338_v4, %v14268_v16 }
 0x7cd   : > { %v14321_v56 = vpop.eup %8797  ;;  %v4890_v13 = vadd.f32 1e-05, %v4826_v17  ;;  %v14325_v49 = vmul.f32 0.70710677, %v14314_v43  ;;  %v5443_v37 = vand.u32 2147483647, %v14317_v53  ;;  %v5015_v60 = vmul.f32 %v8794_v7, %v16302_v36 }
 0x7ce   : > { %8009 = vmatprep.mubr.msk.bf16.mxu0 %vm1033_vm2, %v6909_v35  ;;  %v6208_v32 = vadd.f32 0.2548296, %v6144_v19  ;;  %v6271_v46 = vmul.f32 %v14263_v38, %v6207_v9  ;;  %vm5314_vm13 = vcmp.ge.f32.partialorder %v14259_v58, 0.0  ;;  %v5761_v59 = vmul.f32 1.0614054, %v14321_v56  ;;  %v16303_v19 = vld [vmem:[#allocation67_spill] sm:$0xff] }
 0x7cf   : > { %v14332_v15 = vpop.eup %8799  ;;  %8805 = vpow2.f32 %v6485_v57  ;;  %v14336_v16 = vand.u32 2147483647, %v14325_v49  ;;  %v5507_v44 = vmul.f32 0.3275911, %v5443_v37  ;;  %v6487_v50 = vmul.f32 1.442695, %v6402_v42 }
 0x7d0   : > { %v6272_v45 = vmul.f32 %v14273_v52, %v6208_v32  ;;  %v6591_v41 = vmul.f32 %v8792_v26, %v6271_v46  ;;  %v5762_v4 = vmul.f32 1.0614054, %v14332_v15  ;;  %v5825_v17 = vadd.f32 -1.4531521, %v5761_v59 }
 0x7d1   : > { %v8802_v38 = vpop.eup %8801  ;;  %8807 = vrsqrt.f32 %v4890_v13  ;;  %v5508_v18 = vmul.f32 0.3275911, %v14336_v16  ;;  %v5571_v14 = vadd.f32 1.0, %v5507_v44  ;;  %v5016_v9 = vmul.f32 %v8796_v63, %v16303_v19  ;;  %v16304_v13 = vld [vmem:[#allocation66_spill] sm:$0xff] }
 0x7d2   : > { %v8804_v6 = vpop.eup %8803  ;;  %v6592_v24 = vmul.f32 %v8802_v38, %v6272_v45  ;;  %v6655_v7 = vsub.f32 1.0, %v6591_v41  ;;  %v5826_v57 = vadd.f32 -1.4531521, %v5762_v4  ;;  %v5889_v35 = vmul.f32 %v14321_v56, %v5825_v17 }
 0x7d3   : > { %v5572_v36 = vadd.f32 1.0, %v5508_v18  ;;  %8809 = vrcp.f32 %v5571_v14  ;;  %v6339_v52 = vsub.f32 0.0, %v5443_v37  ;;  %v5017_v59 = vmul.f32 %v8804_v6, %v16304_v13 }
 0x7d4   : > { %v6656_v26 = vsub.f32 1.0, %v6592_v24  ;;  %v6719_v32 = vmul.f32 %v6655_v7, %v5375_v61  ;;  %v5890_v46 = vmul.f32 %v14332_v15, %v5826_v57  ;;  %v5953_v42 = vadd.f32 1.4214138, %v5889_v35  ;;  %v4753_v61 = vpop.xlane.xlu0 %4752 }
 0x7d5   : > { %v14346_v44 = vmul.f32 0.5, %v14249_v62  ;;  %v14351_v45 = vsel %vm5313_vm12, 1.0, %v16244_v11  ;;  %8811 = vrcp.f32 %v5572_v36  ;;  %v14355_v38 = vmul.f32 %v13982_v3, %v5015_v60 }
 0x7d6   : > { %v6720_v63 = vmul.f32 %v6656_v26, %v5376_v25  ;;  %v6783_v41 = vadd.f32 1.0, %v6719_v32  ;;  %v5954_v4 = vadd.f32 1.4214138, %v5890_v46  ;;  %v6017_v17 = vmul.f32 %v14321_v56, %v5953_v42 }
 0x7d7   : > { %v14360_v62 = vsel %vm5314_vm13, 1.0, %v16244_v11  ;;  %8813 = vpow2.f32 %v6487_v50  ;;  %v6403_v18 = vmul.f32 %v6339_v52, %v5443_v37  ;;  %v14363_v14 = vmul.f32 %v13982_v3, %v5016_v9  ;;  %v4756_v9 = vpop.xlane.xlu1 %4755 }
 0x7d8   : > { %v6784_v5 = vadd.f32 1.0, %v6720_v63  ;;  %v6018_v25 = vmul.f32 %v14332_v15, %v5954_v4  ;;  %v6081_v6 = vadd.f32 -0.28449672, %v6017_v17  ;;  %v14367_v7 = vmul.f32 %v13982_v3, %v5017_v59 }
 0x7d9   : > { %v8806_v24 = vpop.eup %8805  ;;  %v4827_v60 = vmul.f32 0.015625, %v4753_v61  ;;  %v14371_v57 = vadd.f32 %v14002_v30, %v13803_v48  ;;  %v14375_v58 = vadd.f32 %v14002_v30, %v13808_v1  ;;  %v6847_v37 = vmul.f32 %v6783_v41, %v14244_v55 }
 0x7da   : > { %v6848_v50 = vmul.f32 %v6784_v5, %v14286_v33  ;;  %v6082_v35 = vadd.f32 -0.28449672, %v6018_v25  ;;  %v6145_v19 = vmul.f32 %v14321_v56, %v6081_v6  ;;  %v14381_v3 = vmul.f32 0.5, %v14304_v29 }
 0x7db   : > { %v8808_v36 = vpop.eup %8807  ;;  %v6340_v52 = vsub.f32 0.0, %v14336_v16  ;;  %v6489_v48 = vmul.f32 1.442695, %v6403_v18  ;;  %v14385_v26 = vmul.f32 0.70710677, %v14371_v57  ;;  %vm5315_vm14 = vcmp.ge.f32.partialorder %v14317_v53, 0.0 }
 0x7dc   : > { %v6910_v1 = vpack.c.bf16 %v6848_v50, %v6847_v37  ;;  %v6146_v32 = vmul.f32 %v14332_v15, %v6082_v35  ;;  %v6209_v55 = vadd.f32 0.2548296, %v6145_v19  ;;  %v14389_v33 = vmul.f32 0.70710677, %v14375_v58  ;;  %v16305_v37 = vld [vmem:[#allocation70_spill] sm:$0xff] }
 0x7dd   : > { %v14391_v46 = vpop.eup %8809  ;;  %v4891_v42 = vadd.f32 1e-05, %v4827_v60  ;;  %v4828_v29 = vmul.f32 0.015625, %v4756_v9  ;;  %v14395_v13 = vand.u32 2147483647, %v14385_v26  ;;  %vm5316_vm15 = vcmp.ge.f32.partialorder %v14325_v49, 0.0 }
 0x7de   : > { %8010 = vmatmul.mubr.msk.bf16.gmra.mrb[48].mxu0 %vm1033_vm2, %v6910_v1  ;;  %v6210_v59 = vadd.f32 0.2548296, %v6146_v32  ;;  %v6273_v63 = vmul.f32 %v14321_v56, %v6209_v55  ;;  %v5763_v41 = vmul.f32 1.0614054, %v14391_v46  ;;  %v6404_v17 = vmul.f32 %v6340_v52, %v14336_v16 }
 0x7df   : > { %v14401_v4 = vpop.eup %8811  ;;  %8815 = vpow2.f32 %v6489_v48  ;;  %v14405_v61 = vand.u32 2147483647, %v14389_v33  ;;  %v5509_v18 = vmul.f32 0.3275911, %v14395_v13  ;;  %v5018_v50 = vmul.f32 %v8808_v36, %v16305_v37 }
 0x7e0   : > { %v6274_v5 = vmul.f32 %v14332_v15, %v6210_v59  ;;  %v6593_v25 = vmul.f32 %v8806_v24, %v6273_v63  ;;  %v5764_v6 = vmul.f32 1.0614054, %v14401_v4  ;;  %v5827_v56 = vadd.f32 -1.4531521, %v5763_v41 }
 0x7e1   : > { %v8814_v60 = vpop.eup %8813  ;;  %8817 = vrsqrt.f32 %v4891_v42  ;;  %v5510_v35 = vmul.f32 0.3275911, %v14405_v61  ;;  %v5573_v19 = vadd.f32 1.0, %v5509_v18  ;;  %v6491_v1 = vmul.f32 1.442695, %v6404_v17 }
 0x7e2   : > { %v6594_v16 = vmul.f32 %v8814_v60, %v6274_v5  ;;  %v6657_v9 = vsub.f32 1.0, %v6593_v25  ;;  %v5828_v52 = vadd.f32 -1.4531521, %v5764_v6  ;;  %v5891_v48 = vmul.f32 %v14391_v46, %v5827_v56  ;;  %v14426_v5 = vld [vmem:[#allocation14] ss:$0 sm:$0xff] }
 0x7e3   : > { %v4892_v32 = vadd.f32 1e-05, %v4828_v29  ;;  %v5574_v55 = vadd.f32 1.0, %v5510_v35  ;;  %8819 = vrcp.f32 %v5573_v19  ;;  %v14416_v36 = vmul.f32 0.5, %v14314_v43 }
 0x7e4   : > { %v6658_v15 = vsub.f32 1.0, %v6594_v16  ;;  %v6721_v24 = vmul.f32 %v6657_v9, %v14351_v45  ;;  %v5892_v59 = vmul.f32 %v14401_v4, %v5828_v52  ;;  %v5955_v63 = vadd.f32 1.4214138, %v5891_v48 }
 0x7e5   : > { %8821 = vrcp.f32 %v5574_v55  ;;  %v5127_v42 = vadd.f32 %v14002_v30, %v13811_v31  ;;  %v14422_v41 = vadd.f32 %v14002_v30, %v13814_v27  ;;  %v14429_v25 = vmul.f32 %v14426_v5, %v5018_v50 }
 0x7e6   : > { %v6722_v29 = vmul.f32 %v6658_v15, %v14360_v62  ;;  %v6785_v17 = vadd.f32 1.0, %v6721_v24  ;;  %v5956_v18 = vadd.f32 1.4214138, %v5892_v59  ;;  %v6019_v45 = vmul.f32 %v14391_v46, %v5955_v63 }
 0x7e7   : > { %v5379_v43 = vsel %vm5315_vm14, 1.0, %v16244_v11  ;;  %v14437_v31 = vsel %vm5316_vm15, 1.0, %v16244_v11  ;;  %8823 = vpow2.f32 %v6491_v1  ;;  %v14441_v56 = vmul.f32 0.5, %v14371_v57 }
 0x7e8   : > { %v6786_v27 = vadd.f32 1.0, %v6722_v29  ;;  %v6020_v30 = vmul.f32 %v14401_v4, %v5956_v18  ;;  %v6083_v62 = vadd.f32 -0.28449672, %v6019_v45  ;;  %8825 = vrsqrt.f32 %v4892_v32  ;;  %v14478_v45 = vld [vmem:[#allocation16] ss:$0 sm:$0xff] }
 0x7e9   : > { %v8816_v6 = vpop.eup %8815  ;;  %v6341_v60 = vsub.f32 0.0, %v14395_v13  ;;  %v14444_v37 = vmul.f32 0.70710677, %v5127_v42  ;;  %v14447_v53 = vmul.f32 0.70710677, %v14422_v41  ;;  %v6849_v49 = vmul.f32 %v6785_v17, %v14310_v12 }
 0x7ea   : > { %v6850_v50 = vmul.f32 %v6786_v27, %v14346_v44  ;;  %v6084_v35 = vadd.f32 -0.28449672, %v6020_v30  ;;  %v6147_v19 = vmul.f32 %v14391_v46, %v6083_v62  ;;  %v14453_v9 = vmul.f32 0.5, %v14375_v58 }
 0x7eb   : > { %v8818_v16 = vpop.eup %8817  ;;  %v6342_v57 = vsub.f32 0.0, %v14405_v61  ;;  %v14457_v52 = vand.u32 2147483647, %v14444_v37  ;;  %v14460_v48 = vand.u32 2147483647, %v14447_v53  ;;  %vm5317_vm0 = vcmp.ge.f32.partialorder %v14385_v26, 0.0 }
 0x7ec   : > { %v6911_v1 = vpack.c.bf16 %v6850_v50, %v6849_v49  ;;  %v6148_v12 = vmul.f32 %v14401_v4, %v6084_v35  ;;  %v6211_v32 = vadd.f32 0.2548296, %v6147_v19  ;;  %v6405_v55 = vmul.f32 %v6341_v60, %v14395_v13 }
 0x7ed   : > { %v14464_v44 = vpop.eup %8819  ;;  %v14467_v58 = vmul.f32 0.5, %v5127_v42  ;;  %v5511_v15 = vmul.f32 0.3275911, %v14457_v52  ;;  %v5512_v24 = vmul.f32 0.3275911, %v14460_v48  ;;  %vm5318_vm1 = vcmp.ge.f32.partialorder %v14389_v33, 0.0 }
 0x7ee   : > { %8013 = vmatprep.mubr.msk.bf16.mxu0 %vm1033_vm2, %v6911_v1  ;;  %v6212_v59 = vadd.f32 0.2548296, %v6148_v12  ;;  %v6275_v63 = vmul.f32 %v14391_v46, %v6211_v32  ;;  %v5765_v29 = vmul.f32 1.0614054, %v14464_v44  ;;  %v6406_v18 = vmul.f32 %v6342_v57, %v14405_v61  ;;  %v16306_v1 = vld [vmem:[#allocation30_spill] sm:$0xff] }
 0x7ef   : > { %v14475_v17 = vpop.eup %8821  ;;  %v5575_v13 = vadd.f32 1.0, %v5511_v15  ;;  %v5576_v42 = vadd.f32 1.0, %v5512_v24  ;;  %v14482_v27 = vadd.f32 %v14478_v45, %v13817_v8  ;;  %v14489_v50 = vsel %vm5317_vm0, 1.0, %v16244_v11 }
 0x7f0   : > { %v6276_v30 = vmul.f32 %v14401_v4, %v6212_v59  ;;  %v6595_v62 = vmul.f32 %v8816_v6, %v6275_v63  ;;  %v5766_v46 = vmul.f32 1.0614054, %v14475_v17  ;;  %v5829_v60 = vadd.f32 -1.4531521, %v5765_v29 }
 0x7f1   : > { %v8824_v49 = vpop.eup %8823  ;;  %v6493_v61 = vmul.f32 1.442695, %v6405_v55  ;;  %8827 = vrcp.f32 %v5575_v13  ;;  %v14493_v35 = vadd.f32 %v14478_v45, %v13821_v22  ;;  %v5019_v12 = vmul.f32 %v8818_v16, %v16306_v1 }
 0x7f2   : > { %v14495_v8 = vpop.eup %8825  ;;  %v6596_v19 = vmul.f32 %v8824_v49, %v6276_v30  ;;  %v6659_v4 = vsub.f32 1.0, %v6595_v62  ;;  %v5830_v6 = vadd.f32 -1.4531521, %v5766_v46  ;;  %v5893_v57 = vmul.f32 %v14464_v44, %v5829_v60 }
 0x7f3   : > { %v6495_v32 = vmul.f32 1.442695, %v6406_v18  ;;  %8829 = vrcp.f32 %v5576_v42  ;;  %v14500_v26 = vmul.f32 0.70710677, %v14482_v27  ;;  %v14506_v59 = vsel %vm5318_vm1, 1.0, %v16244_v11 }
 0x7f4   : > { %v6660_v55 = vsub.f32 1.0, %v6596_v19  ;;  %v6723_v15 = vmul.f32 %v6659_v4, %v5379_v43  ;;  %v5894_v24 = vmul.f32 %v14475_v17, %v5830_v6  ;;  %v5957_v22 = vadd.f32 1.4214138, %v5893_v57 }
 0x7f5   : > { %8831 = vpow2.f32 %v6493_v61  ;;  %v14509_v63 = vmul.f32 0.70710677, %v14493_v35  ;;  %v14512_v16 = vand.u32 2147483647, %v14500_v26  ;;  %v14517_v42 = vmul.f32 %v14426_v5, %v5019_v12 }
 0x7f6   : > { %v6724_v29 = vmul.f32 %v6660_v55, %v14437_v31  ;;  %v6787_v18 = vadd.f32 1.0, %v6723_v15  ;;  %v5958_v13 = vadd.f32 1.4214138, %v5894_v24  ;;  %v6021_v43 = vmul.f32 %v14464_v44, %v5957_v22 }
 0x7f7   : > { %8833 = vpow2.f32 %v6495_v32  ;;  %v6343_v33 = vsub.f32 0.0, %v14457_v52  ;;  %v14521_v30 = vand.u32 2147483647, %v14509_v63  ;;  %v14525_v49 = vmul.f32 0.5, %v14422_v41 }
 0x7f8   : > { %v6788_v62 = vadd.f32 1.0, %v6724_v29  ;;  %v6022_v46 = vmul.f32 %v14475_v17, %v5958_v13  ;;  %v6085_v60 = vadd.f32 -0.28449672, %v6021_v43  ;;  %vm5319_vm3 = vcmp.ge.f32.partialorder %v14444_v37, 0.0 }
 0x7f9   : > { %v6344_v31 = vsub.f32 0.0, %v14460_v48  ;;  %v5513_v61 = vmul.f32 0.3275911, %v14512_v16  ;;  %v5514_v19 = vmul.f32 0.3275911, %v14521_v30  ;;  %v6851_v4 = vmul.f32 %v6787_v18, %v14381_v3 }
 0x7fa   : > { %v6852_v6 = vmul.f32 %v6788_v62, %v14416_v36  ;;  %v6086_v57 = vadd.f32 -0.28449672, %v6022_v46  ;;  %v6149_v1 = vmul.f32 %v14464_v44, %v6085_v60  ;;  %vm5320_vm4 = vcmp.ge.f32.partialorder %v14447_v53, 0.0 }
 0x7fb   : > { %v14534_v12 = vpop.eup %8827  ;;  %v6407_v41 = vmul.f32 %v6343_v33, %v14457_v52  ;;  %v5577_v32 = vadd.f32 1.0, %v5513_v61  ;;  %v5578_v55 = vadd.f32 1.0, %v5514_v19  ;;  %v6408_v36 = vmul.f32 %v6344_v31, %v14460_v48 }
 0x7fc   : > { %v6912_v15 = vpack.c.bf16 %v6852_v6, %v6851_v4  ;;  %v6150_v24 = vmul.f32 %v14475_v17, %v6086_v57  ;;  %v6213_v22 = vadd.f32 0.2548296, %v6149_v1  ;;  %v5767_v29 = vmul.f32 1.0614054, %v14534_v12  ;;  %v16307_v4 = vld [vmem:[#allocation34_spill] sm:$0xff] }
 0x7fd   : > { %v14540_v3 = vpop.eup %8829  ;;  %8835 = vrcp.f32 %v5577_v32  ;;  %v14545_v18 = vadd.f32 %v14478_v45, %v13824_v34  ;;  %v14549_v52 = vadd.f32 %v14478_v45, %v13828_v39  ;;  %v14557_v48 = vsel %vm5319_vm3, 1.0, %v16244_v11 }
 0x7fe   : > { %8014 = vmatmul.mubr.msk.bf16.gmra.mrb[52].mxu0 %vm1033_vm2, %v6912_v15  ;;  %v6214_v13 = vadd.f32 0.2548296, %v6150_v24  ;;  %v6277_v43 = vmul.f32 %v14464_v44, %v6213_v22  ;;  %v5768_v33 = vmul.f32 1.0614054, %v14540_v3  ;;  %v5831_v62 = vadd.f32 -1.4531521, %v5767_v29 }
 0x7ff   : > { %v8832_v46 = vpop.eup %8831  ;;  %v14562_v34 = vsel %vm5320_vm4, 1.0, %v16244_v11  ;;  %v6497_v39 = vmul.f32 1.442695, %v6407_v41  ;;  %8837 = vrcp.f32 %v5578_v55  ;;  %v14568_v6 = vmul.f32 %v14495_v8, %v16307_v4 }
 0x800   : > { %v6278_v60 = vmul.f32 %v14475_v17, %v6214_v13  ;;  %v6597_v31 = vmul.f32 %v8832_v46, %v6277_v43  ;;  %v5832_v44 = vadd.f32 -1.4531521, %v5768_v33  ;;  %v5895_v61 = vmul.f32 %v14534_v12, %v5831_v62 }
 0x801   : > { %v8834_v19 = vpop.eup %8833  ;;  %v6499_v37 = vmul.f32 1.442695, %v6408_v36  ;;  %v14571_v57 = vmul.f32 0.70710677, %v14545_v18  ;;  %v14574_v53 = vmul.f32 0.70710677, %v14549_v52  ;;  %8839 = vpow2.f32 %v6497_v39 }
 0x802   : > { %v6598_v1 = vmul.f32 %v8834_v19, %v6278_v60  ;;  %v6661_v41 = vsub.f32 1.0, %v6597_v31  ;;  %v5896_v17 = vmul.f32 %v14540_v3, %v5832_v44  ;;  %v5959_v32 = vadd.f32 1.4214138, %v5895_v61 }
 0x803   : > { %v6345_v55 = vsub.f32 0.0, %v14512_v16  ;;  %v6346_v15 = vsub.f32 0.0, %v14521_v30  ;;  %v5451_v8 = vand.u32 2147483647, %v14571_v57  ;;  %8841 = vpow2.f32 %v6499_v37 }
 0x804   : > { %v6662_v24 = vsub.f32 1.0, %v6598_v1  ;;  %v6725_v22 = vmul.f32 %v6661_v41, %v14489_v50  ;;  %v5960_v29 = vadd.f32 1.4214138, %v5896_v17  ;;  %v6023_v36 = vmul.f32 %v14534_v12, %v5959_v32 }
 0x805   : > { %v14583_v13 = vmul.f32 0.5, %v14482_v27  ;;  %v5452_v43 = vand.u32 2147483647, %v14574_v53  ;;  %v5515_v33 = vmul.f32 0.3275911, %v5451_v8  ;;  %v14591_v50 = vmul.f32 0.5, %v14493_v35 }
 0x806   : > { %v6726_v62 = vmul.f32 %v6662_v24, %v14506_v59  ;;  %v6789_v46 = vadd.f32 1.0, %v6725_v22  ;;  %v6024_v39 = vmul.f32 %v14540_v3, %v5960_v29  ;;  %v6087_v60 = vadd.f32 -0.28449672, %v6023_v36  ;;  %v16308_v36 = vld [vmem:[#allocation41_spill] sm:$0xff] }
 0x807   : > { %v14588_v31 = vpop.eup %8835  ;;  %v6409_v44 = vmul.f32 %v6345_v55, %v14512_v16  ;;  %v5516_v61 = vmul.f32 0.3275911, %v5452_v43  ;;  %v5579_v19 = vadd.f32 1.0, %v5515_v33  ;;  %vm5321_vm5 = vcmp.ge.f32.partialorder %v14500_v26, 0.0 }
 0x808   : > { %v6790_v27 = vadd.f32 1.0, %v6726_v62  ;;  %v6088_v4 = vadd.f32 -0.28449672, %v6024_v39  ;;  %v6151_v37 = vmul.f32 %v14534_v12, %v6087_v60  ;;  %v6410_v59 = vmul.f32 %v6346_v15, %v14521_v30 }
 0x809   : > { %v14597_v1 = vpop.eup %8837  ;;  %v6853_v41 = vmul.f32 %v6789_v46, %v14441_v56  ;;  %v5769_v17 = vmul.f32 1.0614054, %v14588_v31  ;;  %v5580_v35 = vadd.f32 1.0, %v5516_v61  ;;  %8843 = vrcp.f32 %v5579_v19  ;;  %v16309_v61 = vld [vmem:[#allocation78_spill] sm:$0xff] }
 0x80a   : > { %v6854_v16 = vmul.f32 %v6790_v27, %v14453_v9  ;;  %v6152_v32 = vmul.f32 %v14540_v3, %v6088_v4  ;;  %v6215_v55 = vadd.f32 0.2548296, %v6151_v37  ;;  %v5770_v24 = vmul.f32 1.0614054, %v14597_v1 }
 0x80b   : > { %v5833_v22 = vadd.f32 -1.4531521, %v5769_v17  ;;  %v6501_v29 = vmul.f32 1.442695, %v6409_v44  ;;  %8845 = vrcp.f32 %v5580_v35  ;;  %v14606_v30 = vadd.f32 %v14478_v45, %v16308_v36  ;;  %v8840_v46 = vpop.eup %8839 }
 0x80c   : > { %v6913_v15 = vpack.c.bf16 %v6854_v16, %v6853_v41  ;;  %v6216_v56 = vadd.f32 0.2548296, %v6152_v32  ;;  %v6279_v33 = vmul.f32 %v14534_v12, %v6215_v55  ;;  %v5834_v62 = vadd.f32 -1.4531521, %v5770_v24 }
 0x80d   : > { %v5897_v9 = vmul.f32 %v14588_v31, %v5833_v22  ;;  %v6503_v39 = vmul.f32 1.442695, %v6410_v59  ;;  %v6347_v60 = vsub.f32 0.0, %v5451_v8  ;;  %v14612_v19 = vadd.f32 %v14478_v45, %v16309_v61  ;;  %v8842_v41 = vpop.eup %8841 }
 0x80e   : > { %8017 = vmatprep.mubr.msk.bf16.mxu0 %vm1033_vm2, %v6913_v15  ;;  %v6280_v44 = vmul.f32 %v14540_v3, %v6216_v56  ;;  %v6599_v27 = vmul.f32 %v8840_v46, %v6279_v33  ;;  %v5898_v4 = vmul.f32 %v14597_v1, %v5834_v62  ;;  %v6348_v37 = vsub.f32 0.0, %v5452_v43 }
 0x80f   : > { %vm5322_vm6 = vcmp.ge.f32.partialorder %v14509_v63, 0.0  ;;  %v5961_v12 = vadd.f32 1.4214138, %v5897_v9  ;;  %8847 = vpow2.f32 %v6501_v29  ;;  %v14619_v59 = vmul.f32 0.70710677, %v14606_v30 }
 0x810   : > { %v6600_v17 = vmul.f32 %v8842_v41, %v6280_v44  ;;  %v6663_v35 = vsub.f32 1.0, %v6599_v27  ;;  %v5962_v16 = vadd.f32 1.4214138, %v5898_v4  ;;  %v14622_v32 = vmul.f32 0.70710677, %v14612_v19 }
 0x811   : > { %v6025_v3 = vmul.f32 %v14588_v31, %v5961_v12  ;;  %8849 = vpow2.f32 %v6503_v39  ;;  %v6411_v55 = vmul.f32 %v6347_v60, %v5451_v8  ;;  %v14626_v24 = vand.u32 2147483647, %v14619_v59 }
 0x812   : > { %v6664_v22 = vsub.f32 1.0, %v6600_v17  ;;  %v6727_v36 = vmul.f32 %v6663_v35, %v14557_v48  ;;  %v6026_v29 = vmul.f32 %v14597_v1, %v5962_v16  ;;  %v6412_v15 = vmul.f32 %v6348_v37, %v5452_v43 }
 0x813   : > { %v14630_v56 = vpop.eup %8843  ;;  %v5385_v33 = vsel %vm5321_vm5, 1.0, %v16244_v11  ;;  %v5386_v62 = vsel %vm5322_vm6, 1.0, %v16244_v11  ;;  %v6089_v8 = vadd.f32 -0.28449672, %v6025_v3  ;;  %v14639_v46 = vand.u32 2147483647, %v14622_v32 }
 0x814   : > { %v6728_v9 = vmul.f32 %v6664_v22, %v14562_v34  ;;  %v6791_v48 = vadd.f32 1.0, %v6727_v36  ;;  %v6090_v39 = vadd.f32 -0.28449672, %v6026_v29  ;;  %v5771_v43 = vmul.f32 1.0614054, %v14630_v56 }
 0x815   : > { %v14643_v60 = vpop.eup %8845  ;;  %v6153_v61 = vmul.f32 %v14588_v31, %v6089_v8  ;;  %v6505_v26 = vmul.f32 1.442695, %v6411_v55  ;;  %v5517_v44 = vmul.f32 0.3275911, %v14626_v24  ;;  %v5518_v63 = vmul.f32 0.3275911, %v14639_v46 }
 0x816   : > { %v6792_v27 = vadd.f32 1.0, %v6728_v9  ;;  %v6154_v4 = vmul.f32 %v14597_v1, %v6090_v39  ;;  %v5772_v37 = vmul.f32 1.0614054, %v14643_v60  ;;  %v6507_v41 = vmul.f32 1.442695, %v6412_v15  ;;  %v16310_v9 = vld [vmem:[#allocation80_spill] sm:$0xff] }
 0x817   : > { %v6217_v34 = vadd.f32 0.2548296, %v6153_v61  ;;  %v5835_v12 = vadd.f32 -1.4531521, %v5771_v43  ;;  %v5581_v17 = vadd.f32 1.0, %v5517_v44  ;;  %v5582_v35 = vadd.f32 1.0, %v5518_v63 }
 0x818   : > { %v6855_v16 = vmul.f32 %v6791_v48, %v14467_v58  ;;  %v6856_v3 = vmul.f32 %v6792_v27, %v14525_v49  ;;  %v6218_v22 = vadd.f32 0.2548296, %v6154_v4  ;;  %v5836_v55 = vadd.f32 -1.4531521, %v5772_v37  ;;  %v16311_v27 = vld [vmem:[#allocation38_spill] sm:$0xff] }
 0x819   : > { %v8848_v36 = vpop.eup %8847  ;;  %v6281_v29 = vmul.f32 %v14588_v31, %v6217_v34  ;;  %v5899_v8 = vmul.f32 %v14630_v56, %v5835_v12  ;;  %8851 = vrcp.f32 %v5581_v17  ;;  %v14656_v39 = vadd.f32 %v14478_v45, %v16310_v9 }
 0x81a   : > { %v6914_v15 = vpack.c.bf16 %v6856_v3, %v6855_v16  ;;  %v6282_v43 = vmul.f32 %v14597_v1, %v6218_v22  ;;  %v5900_v61 = vmul.f32 %v14643_v60, %v5836_v55  ;;  %8853 = vrcp.f32 %v5582_v35 }
 0x81b   : > { %v8850_v58 = vpop.eup %8849  ;;  %v6601_v49 = vmul.f32 %v8848_v36, %v6281_v29  ;;  %v14661_v48 = vmul.f32 0.5, %v14545_v18  ;;  %vm5323_vm7 = vcmp.ge.f32.partialorder %v14571_v57, 0.0  ;;  %v5963_v31 = vadd.f32 1.4214138, %v5899_v8 }
 0x81c   : > { %8018 = vmatmul.mubr.msk.bf16.gmra.mrb[56].mxu0 %vm1033_vm2, %v6914_v15  ;;  %v6602_v44 = vmul.f32 %v8850_v58, %v6282_v43  ;;  %v5964_v63 = vadd.f32 1.4214138, %v5900_v61  ;;  %8855 = vpow2.f32 %v6505_v26  ;;  %v14667_v4 = vadd.f32 %v14478_v45, %v16311_v27 }
 0x81d   : > { %v6665_v1 = vsub.f32 1.0, %v6601_v49  ;;  %v6027_v37 = vmul.f32 %v14630_v56, %v5963_v31  ;;  %8857 = vpow2.f32 %v6507_v41  ;;  %v6349_v34 = vsub.f32 0.0, %v14626_v24 }
 0x81e   : > { %v6666_v18 = vsub.f32 1.0, %v6602_v44  ;;  %vm5324_vm8 = vcmp.ge.f32.partialorder %v14574_v53, 0.0  ;;  %v6028_v12 = vmul.f32 %v14643_v60, %v5964_v63  ;;  %v14674_v17 = vmul.f32 0.70710677, %v14656_v39 }
 0x81f   : > { %v6729_v35 = vmul.f32 %v6665_v1, %v5385_v33  ;;  %v6091_v26 = vadd.f32 -0.28449672, %v6027_v37  ;;  %v6350_v16 = vsub.f32 0.0, %v14639_v46  ;;  %v14678_v3 = vmul.f32 0.70710677, %v14667_v4 }
 0x820   : > { %v6730_v22 = vmul.f32 %v6666_v18, %v5386_v62  ;;  %v14681_v41 = vmul.f32 0.5, %v14549_v52  ;;  %v6092_v55 = vadd.f32 -0.28449672, %v6028_v12  ;;  %v5455_v36 = vand.u32 2147483647, %v14674_v17 }
 0x821   : > { %v6793_v29 = vadd.f32 1.0, %v6729_v35  ;;  %v5387_v8 = vsel %vm5323_vm7, 1.0, %v16244_v11  ;;  %v6155_v33 = vmul.f32 %v14630_v56, %v6091_v26  ;;  %v6413_v9 = vmul.f32 %v6349_v34, %v14626_v24 }
 0x822   : > { %v6794_v15 = vadd.f32 1.0, %v6730_v22  ;;  %v5388_v62 = vsel %vm5324_vm8, 1.0, %v16244_v11  ;;  %v6156_v52 = vmul.f32 %v14643_v60, %v6092_v55  ;;  %v5456_v43 = vand.u32 2147483647, %v14678_v3 }
 0x823   : > { %v14694_v61 = vpop.eup %8851  ;;  %v6857_v58 = vmul.f32 %v6793_v29, %v14583_v13  ;;  %v6219_v49 = vadd.f32 0.2548296, %v6155_v33  ;;  %v6414_v57 = vmul.f32 %v6350_v16, %v14639_v46  ;;  %v5519_v31 = vmul.f32 0.3275911, %v5455_v36 }
 0x824   : > { %v14698_v44 = vpop.eup %8853  ;;  %v6858_v24 = vmul.f32 %v6794_v15, %v14591_v50  ;;  %v6220_v63 = vadd.f32 0.2548296, %v6156_v52  ;;  %v5773_v53 = vmul.f32 1.0614054, %v14694_v61  ;;  %v5520_v27 = vmul.f32 0.3275911, %v5456_v43 }
 0x825   : > { %v6283_v1 = vmul.f32 %v14630_v56, %v6219_v49  ;;  %v5774_v37 = vmul.f32 1.0614054, %v14698_v44  ;;  %v6509_v34 = vmul.f32 1.442695, %v6413_v9  ;;  %v5583_v18 = vadd.f32 1.0, %v5519_v31 }
 0x826   : > { %v8856_v12 = vpop.eup %8855  ;;  %v6915_v13 = vpack.c.bf16 %v6858_v24, %v6857_v58  ;;  %v6284_v35 = vmul.f32 %v14643_v60, %v6220_v63  ;;  %v5837_v46 = vadd.f32 -1.4531521, %v5773_v53  ;;  %v5584_v26 = vadd.f32 1.0, %v5520_v27  ;;  %v4759_v24 = vpop.xlane.xlu0 %4758 }
 0x827   : > { %v8858_v16 = vpop.eup %8857  ;;  %v6603_v22 = vmul.f32 %v8856_v12, %v6283_v1  ;;  %v5838_v55 = vadd.f32 -1.4531521, %v5774_v37  ;;  %8859 = vrcp.f32 %v5583_v18  ;;  %v6351_v50 = vsub.f32 0.0, %v5455_v36  ;;  %v16312_v18 = vld [vmem:[#allocation43_spill] sm:$0xff] }
 0x828   : > { %8021 = vmatprep.mubr.msk.bf16.mxu0 %vm1033_vm2, %v6915_v13  ;;  %v6604_v29 = vmul.f32 %v8858_v16, %v6284_v35  ;;  %v5901_v56 = vmul.f32 %v14694_v61, %v5837_v46  ;;  %v6511_v33 = vmul.f32 1.442695, %v6414_v57  ;;  %8861 = vrcp.f32 %v5584_v26  ;;  %v16313_v46 = vld [vmem:[#allocation40_spill] sm:$0xff] }
 0x829   : > { %v6667_v9 = vsub.f32 1.0, %v6603_v22  ;;  %v14708_v15 = vmul.f32 0.5, %v14606_v30  ;;  %v14711_v60 = vmul.f32 0.5, %v14612_v19  ;;  %v5902_v52 = vmul.f32 %v14698_v44, %v5838_v55 }
 0x82a   : > { %v6668_v58 = vsub.f32 1.0, %v6604_v29  ;;  %vm5325_vm9 = vcmp.ge.f32.partialorder %v14619_v59, 0.0  ;;  %v5965_v49 = vadd.f32 1.4214138, %v5901_v56  ;;  %v6352_v31 = vsub.f32 0.0, %v5456_v43 }
 0x82b   : > { %v6731_v63 = vmul.f32 %v6667_v9, %v5387_v8  ;;  %v5966_v53 = vadd.f32 1.4214138, %v5902_v52  ;;  %8863 = vpow2.f32 %v6509_v34  ;;  %v6415_v57 = vmul.f32 %v6351_v50, %v5455_v36 }
 0x82c   : > { %v6732_v27 = vmul.f32 %v6668_v58, %v5388_v62  ;;  %vm5326_vm10 = vcmp.ge.f32.partialorder %v14622_v32, 0.0  ;;  %v6029_v30 = vmul.f32 %v14694_v61, %v5965_v49  ;;  %8865 = vpow2.f32 %v6511_v33 }
 0x82d   : > { %v6795_v19 = vadd.f32 1.0, %v6731_v63  ;;  %v6030_v1 = vmul.f32 %v14698_v44, %v5966_v53  ;;  %v4829_v37 = vmul.f32 0.015625, %v4759_v24  ;;  %v14720_v12 = vadd.f32 %v14478_v45, %v16312_v18 }
 0x82e   : > { %v6796_v13 = vadd.f32 1.0, %v6732_v27  ;;  %v6093_v35 = vadd.f32 -0.28449672, %v6029_v30  ;;  %v6416_v8 = vmul.f32 %v6352_v31, %v5456_v43  ;;  %v14724_v36 = vadd.f32 %v14478_v45, %v16313_v46  ;;  %v4762_v43 = vpop.xlane.xlu1 %4761 }
 0x82f   : > { %v14728_v62 = vmul.f32 %v14426_v5, %v14568_v6  ;;  %v6094_v34 = vadd.f32 -0.28449672, %v6030_v1  ;;  %v6513_v26 = vmul.f32 1.442695, %v6415_v57  ;;  %v14731_v16 = vmul.f32 0.70710677, %v14720_v12 }
 0x830   : > { %v6859_v22 = vmul.f32 %v6795_v19, %v14661_v48  ;;  %v6860_v55 = vmul.f32 %v6796_v13, %v14681_v41  ;;  %v6157_v50 = vmul.f32 %v14694_v61, %v6093_v35  ;;  %v14737_v29 = vmul.f32 0.70710677, %v14724_v36 }
 0x831   : > { %v14739_v56 = vpop.eup %8859  ;;  %v5389_v6 = vsel %vm5325_vm9, 1.0, %v16244_v11  ;;  %v6158_v33 = vmul.f32 %v14698_v44, %v6094_v34  ;;  %v4893_v9 = vadd.f32 1e-05, %v4829_v37  ;;  %v14746_v52 = vand.u32 2147483647, %v14731_v16 }
 0x832   : > { %v14748_v48 = vpop.eup %8861  ;;  %v6916_v41 = vpack.c.bf16 %v6860_v55, %v6859_v22  ;;  %v6221_v58 = vadd.f32 0.2548296, %v6157_v50  ;;  %v5775_v49 = vmul.f32 1.0614054, %v14739_v56  ;;  %v6515_v31 = vmul.f32 1.442695, %v6416_v8 }
 0x833   : > { %v6222_v24 = vadd.f32 0.2548296, %v6158_v33  ;;  %v5776_v63 = vmul.f32 1.0614054, %v14748_v48  ;;  %8867 = vpow2.f32 %v6513_v26  ;;  %v4830_v53 = vmul.f32 0.015625, %v4762_v43 }
 0x834   : > { %8022 = vmatmul.mubr.msk.bf16.gmra.mrb[60].mxu0 %vm1033_vm2, %v6916_v41  ;;  %v6285_v59 = vmul.f32 %v14694_v61, %v6221_v58  ;;  %v5839_v57 = vadd.f32 -1.4531521, %v5775_v49  ;;  %v14755_v27 = vand.u32 2147483647, %v14737_v29  ;;  %v5521_v30 = vmul.f32 0.3275911, %v14746_v52 }
 0x835   : > { %v8864_v19 = vpop.eup %8863  ;;  %v5390_v1 = vsel %vm5326_vm10, 1.0, %v16244_v11  ;;  %v6286_v37 = vmul.f32 %v14698_v44, %v6222_v24  ;;  %v5840_v18 = vadd.f32 -1.4531521, %v5776_v63  ;;  %8869 = vrsqrt.f32 %v4893_v9  ;;  %v16314_v58 = vld [vmem:[#allocation39_spill] sm:$0xff]  ;;  %v16315_v24 = vld [vmem:[#allocation49_spill] sm:$0xff] }
 0x836   : > { %v8866_v13 = vpop.eup %8865  ;;  %v6605_v35 = vmul.f32 %v8864_v19, %v6285_v59  ;;  %v5903_v8 = vmul.f32 %v14739_v56, %v5839_v57  ;;  %v5522_v61 = vmul.f32 0.3275911, %v14755_v27  ;;  %v5585_v46 = vadd.f32 1.0, %v5521_v30 }
 0x837   : > { %v6606_v34 = vmul.f32 %v8866_v13, %v6286_v37  ;;  %v14765_v26 = vmul.f32 0.5, %v14656_v39  ;;  %v5904_v22 = vmul.f32 %v14748_v48, %v5840_v18  ;;  %8871 = vpow2.f32 %v6515_v31 }
 0x838   : > { %v6669_v32 = vsub.f32 1.0, %v6605_v35  ;;  %v5967_v55 = vadd.f32 1.4214138, %v5903_v8  ;;  %v4894_v50 = vadd.f32 1e-05, %v4830_v53  ;;  %v5586_v44 = vadd.f32 1.0, %v5522_v61 }
 0x839   : > { %v6670_v43 = vsub.f32 1.0, %v6606_v34  ;;  %vm5327_vm11 = vcmp.ge.f32.partialorder %v14674_v17, 0.0  ;;  %v5968_v33 = vadd.f32 1.4214138, %v5904_v22  ;;  %8873 = vrcp.f32 %v5585_v46 }
 0x83a   : > { %v6733_v9 = vmul.f32 %v6669_v32, %v5389_v6  ;;  %v6031_v41 = vmul.f32 %v14739_v56, %v5967_v55  ;;  %8875 = vrcp.f32 %v5586_v44  ;;  %v14772_v39 = vadd.f32 %v14478_v45, %v16314_v58 }
 0x83b   : > { %v6734_v49 = vmul.f32 %v6670_v43, %v5390_v1  ;;  %vm5328_vm12 = vcmp.ge.f32.partialorder %v14678_v3, 0.0  ;;  %v6032_v31 = vmul.f32 %v14748_v48, %v5968_v33  ;;  %v14778_v63 = vadd.f32 %v14478_v45, %v16315_v24 }
 0x83c   : > { %v6797_v53 = vadd.f32 1.0, %v6733_v9  ;;  %v14781_v59 = vmul.f32 0.5, %v14667_v4  ;;  %v6095_v6 = vadd.f32 -0.28449672, %v6031_v41  ;;  %8877 = vrsqrt.f32 %v4894_v50  ;;  %v16316_v41 = vld [vmem:[#allocation68_spill] sm:$0xff] }
 0x83d   : > { %v8868_v57 = vpop.eup %8867  ;;  %v6798_v30 = vadd.f32 1.0, %v6734_v49  ;;  %v5391_v19 = vsel %vm5327_vm11, 1.0, %v16244_v11  ;;  %v6096_v1 = vadd.f32 -0.28449672, %v6032_v31  ;;  %v6353_v3 = vsub.f32 0.0, %v14746_v52 }
 0x83e   : > { %v5392_v37 = vsel %vm5328_vm12, 1.0, %v16244_v11  ;;  %v6159_v18 = vmul.f32 %v14739_v56, %v6095_v6  ;;  %v6354_v13 = vsub.f32 0.0, %v14755_v27  ;;  %v14791_v4 = vmul.f32 0.70710677, %v14772_v39 }
 0x83f   : > { %v8870_v35 = vpop.eup %8869  ;;  %v6861_v8 = vmul.f32 %v6797_v53, %v14708_v15  ;;  %v6862_v61 = vmul.f32 %v6798_v30, %v14711_v60  ;;  %v6160_v17 = vmul.f32 %v14748_v48, %v6096_v1  ;;  %v14797_v46 = vmul.f32 0.70710677, %v14778_v63 }
 0x840   : > { %v6223_v34 = vadd.f32 0.2548296, %v6159_v18  ;;  %v14800_v22 = vmul.f32 0.5, %v14720_v12  ;;  %vm5329_vm13 = vcmp.ge.f32.partialorder %v14731_v16, 0.0  ;;  %v14804_v32 = vand.u32 2147483647, %v14791_v4 }
 0x841   : > { %v8872_v55 = vpop.eup %8871  ;;  %v6917_v50 = vpack.c.bf16 %v6862_v61, %v6861_v8  ;;  %v6224_v44 = vadd.f32 0.2548296, %v6160_v17  ;;  %v14807_v15 = vmul.f32 0.5, %v14724_v36  ;;  %v6417_v60 = vmul.f32 %v6353_v3, %v14746_v52  ;;  %v16318_v17 = vld [vmem:[#allocation48_spill] sm:$0xff] }
 0x842   : > { %v6287_v43 = vmul.f32 %v14739_v56, %v6223_v34  ;;  %vm5330_vm14 = vcmp.ge.f32.partialorder %v14737_v29, 0.0  ;;  %v14813_v12 = vand.u32 2147483647, %v14797_v46  ;;  %v5523_v16 = vmul.f32 0.3275911, %v14804_v32 }
 0x843   : > { %v14816_v33 = vpop.eup %8873  ;;  %8025 = vmatprep.mubr.msk.bf16.mxu0 %vm1033_vm2, %v6917_v50  ;;  %v6288_v9 = vmul.f32 %v14748_v48, %v6224_v44  ;;  %v5021_v36 = vmul.f32 %v8870_v35, %v16316_v41  ;;  %v14822_v58 = vsel %vm5329_vm13, 1.0, %v16244_v11  ;;  %v6418_v56 = vmul.f32 %v6354_v13, %v14755_v27  ;;  %v16317_v48 = vld [vmem:[#allocation46_spill] sm:$0xff] }
 0x844   : > { %v14825_v52 = vpop.eup %8875  ;;  %v6607_v49 = vmul.f32 %v8868_v57, %v6287_v43  ;;  %v5777_v31 = vmul.f32 1.0614054, %v14816_v33  ;;  %v5524_v24 = vmul.f32 0.3275911, %v14813_v12  ;;  %v5587_v53 = vadd.f32 1.0, %v5523_v16  ;;  %v16319_v16 = vld [vmem:[#allocation29_spill] sm:$0xff] }
 0x845   : > { %v6608_v6 = vmul.f32 %v8872_v55, %v6288_v9  ;;  %v5778_v30 = vmul.f32 1.0614054, %v14825_v52  ;;  %v6517_v1 = vmul.f32 1.442695, %v6417_v60  ;;  %v14832_v3 = vadd.f32 %v14478_v45, %v16317_v48 }
 0x846   : > { %v8878_v18 = vpop.eup %8877  ;;  %v6671_v35 = vsub.f32 1.0, %v6607_v49  ;;  %v5841_v8 = vadd.f32 -1.4531521, %v5777_v31  ;;  %v5588_v27 = vadd.f32 1.0, %v5524_v24  ;;  %8879 = vrcp.f32 %v5587_v53 }
 0x847   : > { %v6672_v13 = vsub.f32 1.0, %v6608_v6  ;;  %v5842_v57 = vadd.f32 -1.4531521, %v5778_v30  ;;  %v6519_v61 = vmul.f32 1.442695, %v6418_v56  ;;  %v14836_v34 = vadd.f32 %v14478_v45, %v16318_v17 }
 0x848   : > { %v6735_v55 = vmul.f32 %v6671_v35, %v5391_v19  ;;  %v14841_v50 = vsel %vm5330_vm14, 1.0, %v16244_v11  ;;  %v5905_v44 = vmul.f32 %v14816_v33, %v5841_v8  ;;  %8881 = vrcp.f32 %v5588_v27 }
 0x849   : > { %v6736_v60 = vmul.f32 %v6672_v13, %v5392_v37  ;;  %v14845_v43 = vmul.f32 %v14426_v5, %v5021_v36  ;;  %v14848_v9 = vmul.f32 %v8878_v18, %v16319_v16  ;;  %v5906_v41 = vmul.f32 %v14825_v52, %v5842_v57 }
 0x84a   : > { %v6799_v56 = vadd.f32 1.0, %v6735_v55  ;;  %v5969_v49 = vadd.f32 1.4214138, %v5905_v44  ;;  %8883 = vpow2.f32 %v6517_v1  ;;  %v14852_v19 = vmul.f32 0.70710677, %v14832_v3 }
 0x84b   : > { %v6800_v29 = vadd.f32 1.0, %v6736_v60  ;;  %v5970_v31 = vadd.f32 1.4214138, %v5906_v41  ;;  %8885 = vpow2.f32 %v6519_v61  ;;  %v14855_v24 = vmul.f32 0.70710677, %v14836_v34 }
 0x84c   : > { %v6033_v5 = vmul.f32 %v14816_v33, %v5969_v49  ;;  %vm5331_vm15 = vcmp.ge.f32.partialorder %v14791_v4, 0.0  ;;  %v6355_v37 = vsub.f32 0.0, %v14804_v32  ;;  %v14861_v36 = vand.u32 2147483647, %v14852_v19 }
 0x84d   : > { %v6863_v53 = vmul.f32 %v6799_v56, %v14765_v26  ;;  %v6864_v6 = vmul.f32 %v6800_v29, %v14781_v59  ;;  %v6034_v30 = vmul.f32 %v14825_v52, %v5970_v31  ;;  %v6356_v1 = vsub.f32 0.0, %v14813_v12 }
 0x84e   : > { %v6097_v48 = vadd.f32 -0.28449672, %v6033_v5  ;;  %v14868_v18 = vmul.f32 0.5, %v14772_v39  ;;  %v14871_v35 = vmul.f32 0.5, %v14778_v63  ;;  %v14874_v8 = vand.u32 2147483647, %v14855_v24 }
 0x84f   : > { %v6918_v27 = vpack.c.bf16 %v6864_v6, %v6863_v53  ;;  %v6098_v13 = vadd.f32 -0.28449672, %v6034_v30  ;;  %vm5332_vm0 = vcmp.ge.f32.partialorder %v14797_v46, 0.0  ;;  %v5525_v26 = vmul.f32 0.3275911, %v14861_v36 }
 0x850   : > { %v14878_v59 = vpop.eup %8879  ;;  %v6161_v57 = vmul.f32 %v14816_v33, %v6097_v48  ;;  %v14884_v39 = vsel %vm5331_vm15, 1.0, %v16244_v11  ;;  %v6419_v63 = vmul.f32 %v6355_v37, %v14804_v32  ;;  %v5526_v61 = vmul.f32 0.3275911, %v14874_v8 }
 0x851   : > { %8026 = vmatmul.mubr.msk.bf16.gmra.mrb[64].mxu0 %vm1033_vm2, %v6918_v27  ;;  %v6162_v17 = vmul.f32 %v14825_v52, %v6098_v13  ;;  %v5779_v55 = vmul.f32 1.0614054, %v14878_v59  ;;  %v6420_v44 = vmul.f32 %v6356_v1, %v14813_v12  ;;  %v5589_v60 = vadd.f32 1.0, %v5525_v26 }
 0x852   : > { %v14892_v16 = vpop.eup %8881  ;;  %v6225_v41 = vadd.f32 0.2548296, %v6161_v57  ;;  %v5590_v56 = vadd.f32 1.0, %v5526_v61  ;;  %v14896_v4 = vadd.f32 %v14478_v45, %v13985_v28  ;;  %v14900_v32 = vadd.f32 %v14478_v45, %v14035_v40 }
 0x853   : > { %v6226_v49 = vadd.f32 0.2548296, %v6162_v17  ;;  %v5780_v29 = vmul.f32 1.0614054, %v14892_v16  ;;  %v5843_v31 = vadd.f32 -1.4531521, %v5779_v55  ;;  %8887 = vrcp.f32 %v5589_v60 }
 0x854   : > { %v8884_v5 = vpop.eup %8883  ;;  %v6289_v12 = vmul.f32 %v14816_v33, %v6225_v41  ;;  %v14907_v37 = vsel %vm5332_vm0, 1.0, %v16244_v11  ;;  %v6521_v53 = vmul.f32 1.442695, %v6419_v63  ;;  %8889 = vrcp.f32 %v5590_v56 }
 0x855   : > { %v8886_v28 = vpop.eup %8885  ;;  %v6290_v6 = vmul.f32 %v14825_v52, %v6226_v49  ;;  %v5844_v40 = vadd.f32 -1.4531521, %v5780_v29  ;;  %v5907_v30 = vmul.f32 %v14878_v59, %v5843_v31  ;;  %v14912_v1 = vmul.f32 0.5, %v14832_v3 }
 0x856   : > { %v6609_v48 = vmul.f32 %v8884_v5, %v6289_v12  ;;  %v6523_v27 = vmul.f32 1.442695, %v6420_v44  ;;  %v14915_v33 = vmul.f32 0.70710677, %v14896_v4  ;;  %v14918_v46 = vmul.f32 0.70710677, %v14900_v32 }
 0x857   : > { %v6610_v13 = vmul.f32 %v8886_v28, %v6290_v6  ;;  %v5908_v26 = vmul.f32 %v14892_v16, %v5844_v40  ;;  %v5971_v57 = vadd.f32 1.4214138, %v5907_v30  ;;  %v14922_v52 = vmul.f32 0.5, %v14836_v34 }
 0x858   : > { %v6673_v63 = vsub.f32 1.0, %v6609_v48  ;;  %8891 = vpow2.f32 %v6521_v53  ;;  %v6357_v3 = vsub.f32 0.0, %v14861_v36  ;;  %v5463_v61 = vand.u32 2147483647, %v14915_v33 }
 0x859   : > { %v6674_v17 = vsub.f32 1.0, %v6610_v13  ;;  %v5972_v55 = vadd.f32 1.4214138, %v5908_v26  ;;  %v6035_v44 = vmul.f32 %v14878_v59, %v5971_v57  ;;  %v6358_v60 = vsub.f32 0.0, %v14874_v8 }
 0x85a   : > { %v6737_v41 = vmul.f32 %v6673_v63, %v14822_v58  ;;  %8893 = vpow2.f32 %v6523_v27  ;;  %v5464_v56 = vand.u32 2147483647, %v14918_v46  ;;  %v5527_v49 = vmul.f32 0.3275911, %v5463_v61 }
 0x85b   : > { %v6738_v34 = vmul.f32 %v6674_v17, %v14841_v50  ;;  %v6036_v29 = vmul.f32 %v14892_v16, %v5972_v55  ;;  %v6099_v31 = vadd.f32 -0.28449672, %v6035_v44  ;;  %vm5333_vm1 = vcmp.ge.f32.partialorder %v14852_v19, 0.0 }
 0x85c   : > { %v6801_v5 = vadd.f32 1.0, %v6737_v41  ;;  %v6421_v12 = vmul.f32 %v6357_v3, %v14861_v36  ;;  %v5528_v53 = vmul.f32 0.3275911, %v5464_v56  ;;  %v5591_v28 = vadd.f32 1.0, %v5527_v49 }
 0x85d   : > { %v14934_v6 = vpop.eup %8887  ;;  %v6802_v40 = vadd.f32 1.0, %v6738_v34  ;;  %v6100_v58 = vadd.f32 -0.28449672, %v6036_v29  ;;  %v6163_v30 = vmul.f32 %v14878_v59, %v6099_v31  ;;  %vm5334_vm3 = vcmp.ge.f32.partialorder %v14855_v24, 0.0 }
 0x85e   : > { %v6422_v50 = vmul.f32 %v6358_v60, %v14874_v8  ;;  %v14939_v48 = vpop.eup %8889  ;;  %v6865_v27 = vmul.f32 %v6801_v5, %v14800_v22  ;;  %v5781_v13 = vmul.f32 1.0614054, %v14934_v6  ;;  %v5592_v26 = vadd.f32 1.0, %v5528_v53 }
 0x85f   : > { %8895 = vrcp.f32 %v5591_v28  ;;  %v6866_v36 = vmul.f32 %v6802_v40, %v14807_v15  ;;  %v6164_v57 = vmul.f32 %v14892_v16, %v6100_v58  ;;  %v6227_v63 = vadd.f32 0.2548296, %v6163_v30 }
 0x860   : > { %v5782_v3 = vmul.f32 1.0614054, %v14939_v48  ;;  %v5845_v17 = vadd.f32 -1.4531521, %v5781_v13  ;;  %v6525_v55 = vmul.f32 1.442695, %v6421_v12  ;;  %8897 = vrcp.f32 %v5592_v26 }
 0x861   : > { %v14948_v8 = vadd.f32 %v14478_v45, %v14054_v23  ;;  %v6919_v44 = vpack.c.bf16 %v6866_v36, %v6865_v27  ;;  %v6228_v22 = vadd.f32 0.2548296, %v6164_v57  ;;  %v6291_v60 = vmul.f32 %v14878_v59, %v6227_v63 }
 0x862   : > { %v5846_v41 = vadd.f32 -1.4531521, %v5782_v3  ;;  %v8892_v49 = vpop.eup %8891  ;;  %v5909_v15 = vmul.f32 %v14934_v6, %v5845_v17  ;;  %v6527_v34 = vmul.f32 1.442695, %v6422_v50  ;;  %v6359_v29 = vsub.f32 0.0, %v5463_v61 }
 0x863   : > { %v14954_v31 = vadd.f32 %v14478_v45, %v14064_v2  ;;  %8029 = vmatprep.mubr.msk.bf16.mxu0 %vm1033_vm2, %v6919_v44  ;;  %v6292_v5 = vmul.f32 %v14892_v16, %v6228_v22  ;;  %v6611_v23 = vmul.f32 %v8892_v49, %v6291_v60  ;;  %v6360_v53 = vsub.f32 0.0, %v5464_v56 }
 0x864   : > { %v5910_v12 = vmul.f32 %v14939_v48, %v5846_v41  ;;  %v8894_v28 = vpop.eup %8893  ;;  %v14962_v59 = vsel %vm5333_vm1, 1.0, %v16244_v11  ;;  %v5973_v40 = vadd.f32 1.4214138, %v5909_v15  ;;  %8899 = vpow2.f32 %v6525_v55 }
 0x865   : > { %v14965_v58 = vmul.f32 0.70710677, %v14948_v8  ;;  %v6612_v2 = vmul.f32 %v8894_v28, %v6292_v5  ;;  %v6675_v45 = vsub.f32 1.0, %v6611_v23  ;;  %v14968_v16 = vmul.f32 0.70710677, %v14954_v31 }
 0x866   : > { %v5974_v30 = vadd.f32 1.4214138, %v5910_v12  ;;  %v6037_v50 = vmul.f32 %v14934_v6, %v5973_v40  ;;  %8901 = vpow2.f32 %v6527_v34  ;;  %v6423_v27 = vmul.f32 %v6359_v29, %v5463_v61 }
 0x867   : > { %v14972_v13 = vand.u32 2147483647, %v14965_v58  ;;  %v6676_v19 = vsub.f32 1.0, %v6612_v2  ;;  %v6739_v26 = vmul.f32 %v6675_v45, %v14884_v39  ;;  %v6424_v57 = vmul.f32 %v6360_v53, %v5464_v56 }
 0x868   : > { %v6038_v36 = vmul.f32 %v14939_v48, %v5974_v30  ;;  %v5398_v3 = vsel %vm5334_vm3, 1.0, %v16244_v11  ;;  %v6101_v17 = vadd.f32 -0.28449672, %v6037_v50  ;;  %v14982_v55 = vmul.f32 0.5, %v14896_v4 }
 0x869   : > { %v14976_v63 = vpop.eup %8895  ;;  %v14985_v61 = vand.u32 2147483647, %v14968_v16  ;;  %v6740_v44 = vmul.f32 %v6676_v19, %v14907_v37  ;;  %v6803_v22 = vadd.f32 1.0, %v6739_v26  ;;  %v6529_v49 = vmul.f32 1.442695, %v6423_v27 }
 0x86a   : > { %v6102_v39 = vadd.f32 -0.28449672, %v6038_v36  ;;  %v5783_v60 = vmul.f32 1.0614054, %v14976_v63  ;;  %v14989_v56 = vpop.eup %8897  ;;  %v6165_v41 = vmul.f32 %v14934_v6, %v6101_v17  ;;  %v5529_v24 = vmul.f32 0.3275911, %v14972_v13 }
 0x86b   : > { %v5530_v15 = vmul.f32 0.3275911, %v14985_v61  ;;  %v6804_v4 = vadd.f32 1.0, %v6740_v44  ;;  %v5784_v29 = vmul.f32 1.0614054, %v14989_v56  ;;  %v6867_v28 = vmul.f32 %v6803_v22, %v14868_v18 }
 0x86c   : > { %v6166_v34 = vmul.f32 %v14939_v48, %v6102_v39  ;;  %v6531_v5 = vmul.f32 1.442695, %v6424_v57  ;;  %v6229_v37 = vadd.f32 0.2548296, %v6165_v41  ;;  %v5847_v23 = vadd.f32 -1.4531521, %v5783_v60 }
 0x86d   : > { %v5593_v12 = vadd.f32 1.0, %v5529_v24  ;;  %v5594_v53 = vadd.f32 1.0, %v5530_v15  ;;  %v6868_v40 = vmul.f32 %v6804_v4, %v14871_v35  ;;  %v5848_v45 = vadd.f32 -1.4531521, %v5784_v29  ;;  %v15000_v19 = vld [vmem:[#allocation16] ss:$0 sm:$0xff] }
 0x86e   : > { %v6230_v2 = vadd.f32 0.2548296, %v6166_v34  ;;  %v8900_v30 = vpop.eup %8899  ;;  %v6293_v50 = vmul.f32 %v14934_v6, %v6229_v37  ;;  %v5911_v27 = vmul.f32 %v14976_v63, %v5847_v23  ;;  %v15004_v26 = vadd.f32 %v15000_v19, %v14102_v54 }
 0x86f   : > { %8903 = vrcp.f32 %v5593_v12  ;;  %v6920_v36 = vpack.c.bf16 %v6868_v40, %v6867_v28  ;;  %v5912_v18 = vmul.f32 %v14989_v56, %v5848_v45  ;;  %v15009_v44 = vmul.f32 0.5, %v14900_v32 }
 0x870   : > { %v6294_v57 = vmul.f32 %v14939_v48, %v6230_v2  ;;  %8905 = vrcp.f32 %v5594_v53  ;;  %v8902_v35 = vpop.eup %8901  ;;  %v6613_v17 = vmul.f32 %v8900_v30, %v6293_v50  ;;  %vm5335_vm4 = vcmp.ge.f32.partialorder %v14915_v33, 0.0 }
 0x871   : > { %v5975_v6 = vadd.f32 1.4214138, %v5911_v27  ;;  %8030 = vmatmul.mubr.msk.bf16.gmra.mrb[68].mxu0 %vm1033_vm2, %v6920_v36  ;;  %v5976_v39 = vadd.f32 1.4214138, %v5912_v18  ;;  %8907 = vpow2.f32 %v6529_v49  ;;  %v15015_v54 = vadd.f32 %v15000_v19, %v14110_v10 }
 0x872   : > { %v6614_v22 = vmul.f32 %v8902_v35, %v6294_v57  ;;  %v6677_v48 = vsub.f32 1.0, %v6613_v17  ;;  %8909 = vpow2.f32 %v6531_v5  ;;  %v6361_v41 = vsub.f32 0.0, %v14972_v13 }
 0x873   : > { %v6039_v60 = vmul.f32 %v14976_v63, %v5975_v6  ;;  %vm5336_vm5 = vcmp.ge.f32.partialorder %v14918_v46, 0.0  ;;  %v6040_v24 = vmul.f32 %v14989_v56, %v5976_v39  ;;  %v15022_v15 = vmul.f32 0.70710677, %v15004_v26 }
 0x874   : > { %v6678_v32 = vsub.f32 1.0, %v6614_v22  ;;  %v6741_v49 = vmul.f32 %v6677_v48, %v14962_v59  ;;  %v6362_v10 = vsub.f32 0.0, %v14985_v61  ;;  %v15027_v34 = vmul.f32 0.70710677, %v15015_v54 }
 0x875   : > { %v6103_v4 = vadd.f32 -0.28449672, %v6039_v60  ;;  %v5399_v5 = vsel %vm5335_vm4, 1.0, %v16244_v11  ;;  %v6104_v37 = vadd.f32 -0.28449672, %v6040_v24  ;;  %v5400_v12 = vsel %vm5336_vm5, 1.0, %v16244_v11 }
 0x876   : > { %v6742_v29 = vmul.f32 %v6678_v32, %v5398_v3  ;;  %v15033_v46 = vand.u32 2147483647, %v15022_v15  ;;  %v6805_v23 = vadd.f32 1.0, %v6741_v49  ;;  %v6425_v53 = vmul.f32 %v6361_v41, %v14972_v13 }
 0x877   : > { %v6167_v59 = vmul.f32 %v14976_v63, %v6103_v4  ;;  %v6168_v40 = vmul.f32 %v14989_v56, %v6104_v37  ;;  %v15040_v3 = vmul.f32 0.5, %v14948_v8  ;;  %v15043_v33 = vand.u32 2147483647, %v15027_v34 }
 0x878   : > { %v6806_v28 = vadd.f32 1.0, %v6742_v29  ;;  %v6869_v45 = vmul.f32 %v6805_v23, %v14912_v1  ;;  %v6426_v50 = vmul.f32 %v6362_v10, %v14985_v61  ;;  %v5531_v27 = vmul.f32 0.3275911, %v15033_v46 }
 0x879   : > { %v15045_v2 = vpop.eup %8903  ;;  %v6231_v30 = vadd.f32 0.2548296, %v6167_v59  ;;  %v6232_v57 = vadd.f32 0.2548296, %v6168_v40  ;;  %v5532_v18 = vmul.f32 0.3275911, %v15043_v33  ;;  %v15067_v29 = vadd.f32 %v15000_v19, %v14150_v21 }
 0x87a   : > { %v15050_v36 = vpop.eup %8905  ;;  %v6870_v13 = vmul.f32 %v6806_v28, %v14922_v52  ;;  %v5785_v8 = vmul.f32 1.0614054, %v15045_v2  ;;  %v6533_v6 = vmul.f32 1.442695, %v6425_v53  ;;  %v5595_v1 = vadd.f32 1.0, %v5531_v27  ;;  %v16320_v59 = vld [vmem:[#allocation50_spill] sm:$0xff] }
 0x87b   : > { %v6295_v35 = vmul.f32 %v14976_v63, %v6231_v30  ;;  %v5786_v17 = vmul.f32 1.0614054, %v15050_v36  ;;  %v8908_v22 = vpop.eup %8907  ;;  %v6296_v61 = vmul.f32 %v14989_v56, %v6232_v57  ;;  %v5596_v60 = vadd.f32 1.0, %v5532_v18 }
 0x87c   : > { %v6921_v39 = vpack.c.bf16 %v6870_v13, %v6869_v45  ;;  %v5849_v48 = vadd.f32 -1.4531521, %v5785_v8  ;;  %v8910_v41 = vpop.eup %8909  ;;  %v6535_v24 = vmul.f32 1.442695, %v6426_v50  ;;  %8911 = vrcp.f32 %v5595_v1 }
 0x87d   : > { %v6615_v32 = vmul.f32 %v8908_v22, %v6295_v35  ;;  %v5850_v52 = vadd.f32 -1.4531521, %v5786_v17  ;;  %v6616_v49 = vmul.f32 %v8910_v41, %v6296_v61  ;;  %v15060_v63 = vmul.f32 0.5, %v14954_v31  ;;  %v15113_v41 = vld [vmem:[#allocation14] ss:$0 sm:$0xff] }
 0x87e   : > { %8033 = vmatprep.mubr.msk.bf16.mxu0 %vm1033_vm2, %v6921_v39  ;;  %v5913_v4 = vmul.f32 %v15045_v2, %v5849_v48  ;;  %8913 = vrcp.f32 %v5596_v60  ;;  %vm5337_vm6 = vcmp.ge.f32.partialorder %v14965_v58, 0.0  ;;  %v15071_v53 = vadd.f32 %v15000_v19, %v16320_v59 }
 0x87f   : > { %v6679_v10 = vsub.f32 1.0, %v6615_v32  ;;  %v5914_v56 = vmul.f32 %v15050_v36, %v5850_v52  ;;  %v6680_v37 = vsub.f32 1.0, %v6616_v49  ;;  %8915 = vpow2.f32 %v6533_v6 }
 0x880   : > { %v5977_v23 = vadd.f32 1.4214138, %v5913_v4  ;;  %vm5338_vm7 = vcmp.ge.f32.partialorder %v14968_v16, 0.0  ;;  %8917 = vpow2.f32 %v6535_v24  ;;  %v6363_v30 = vsub.f32 0.0, %v15033_v46 }
 0x881   : > { %v6743_v31 = vmul.f32 %v6679_v10, %v5399_v5  ;;  %v5978_v28 = vadd.f32 1.4214138, %v5914_v56  ;;  %v6744_v40 = vmul.f32 %v6680_v37, %v5400_v12  ;;  %v6364_v21 = vsub.f32 0.0, %v15043_v33 }
 0x882   : > { %v6041_v45 = vmul.f32 %v15045_v2, %v5977_v23  ;;  %v15079_v13 = vmul.f32 0.70710677, %v15067_v29  ;;  %v15082_v57 = vmul.f32 0.70710677, %v15071_v53  ;;  %v5401_v16 = vsel %vm5337_vm6, 1.0, %v16244_v11 }
 0x883   : > { %v6807_v50 = vadd.f32 1.0, %v6743_v31  ;;  %v6042_v27 = vmul.f32 %v15050_v36, %v5978_v28  ;;  %v6808_v5 = vadd.f32 1.0, %v6744_v40  ;;  %v5402_v12 = vsel %vm5338_vm7, 1.0, %v16244_v11 }
 0x884   : > { %v6105_v8 = vadd.f32 -0.28449672, %v6041_v45  ;;  %v15089_v35 = vmul.f32 0.5, %v15004_v26  ;;  %v15092_v17 = vmul.f32 0.5, %v15015_v54  ;;  %vm5339_vm8 = vcmp.ge.f32.partialorder %v15022_v15, 0.0 }
 0x885   : > { %v6106_v18 = vadd.f32 -0.28449672, %v6042_v27  ;;  %v6871_v6 = vmul.f32 %v6807_v50, %v14982_v55  ;;  %v6872_v1 = vmul.f32 %v6808_v5, %v15009_v44  ;;  %v6427_v58 = vmul.f32 %v6363_v30, %v15033_v46 }
 0x886   : > { %v6169_v22 = vmul.f32 %v15045_v2, %v6105_v8  ;;  %v15099_v39 = vpop.eup %8911  ;;  %v6428_v26 = vmul.f32 %v6364_v21, %v15043_v33  ;;  %v15104_v48 = vand.u32 2147483647, %v15079_v13  ;;  %v15107_v54 = vand.u32 2147483647, %v15082_v57 }
 0x887   : > { %v6170_v61 = vmul.f32 %v15050_v36, %v6106_v18  ;;  %v6922_v55 = vpack.c.bf16 %v6872_v1, %v6871_v6  ;;  %vm5340_vm9 = vcmp.ge.f32.partialorder %v15027_v34, 0.0  ;;  %v5787_v46 = vmul.f32 1.0614054, %v15099_v39 }
 0x888   : > { %v15109_v60 = vpop.eup %8913  ;;  %v6233_v44 = vadd.f32 0.2548296, %v6169_v22  ;;  %v15117_v32 = vmul.f32 %v15113_v41, %v14848_v9  ;;  %v5533_v24 = vmul.f32 0.3275911, %v15104_v48  ;;  %v6537_v56 = vmul.f32 1.442695, %v6427_v58 }
 0x889   : > { %v6234_v33 = vadd.f32 0.2548296, %v6170_v61  ;;  %v5788_v52 = vmul.f32 1.0614054, %v15109_v60  ;;  %v8916_v49 = vpop.eup %8915  ;;  %8034 = vmatmul.mubr.msk.bf16.gmra.mrb[72].mxu0 %vm1033_vm2, %v6922_v55  ;;  %v5851_v10 = vadd.f32 -1.4531521, %v5787_v46  ;;  %v15128_v21 = vadd.f32 %v15000_v19, %v14226_v0 }
 0x88a   : > { %v6297_v4 = vmul.f32 %v15045_v2, %v6233_v44  ;;  %v5534_v37 = vmul.f32 0.3275911, %v15107_v54  ;;  %v8918_v23 = vpop.eup %8917  ;;  %v6539_v9 = vmul.f32 1.442695, %v6428_v26  ;;  %v5597_v28 = vadd.f32 1.0, %v5533_v24 }
 0x88b   : > { %v6298_v59 = vmul.f32 %v15050_v36, %v6234_v33  ;;  %v5852_v31 = vadd.f32 -1.4531521, %v5788_v52  ;;  %v5915_v45 = vmul.f32 %v15099_v39, %v5851_v10  ;;  %v15133_v27 = vadd.f32 %v15000_v19, %v14236_v47 }
 0x88c   : > { %v6617_v40 = vmul.f32 %v8916_v49, %v6297_v4  ;;  %v5598_v30 = vadd.f32 1.0, %v5534_v37  ;;  %8919 = vrcp.f32 %v5597_v28  ;;  %v15138_v5 = vsel %vm5339_vm8, 1.0, %v16244_v11 }
 0x88d   : > { %v6618_v50 = vmul.f32 %v8918_v23, %v6298_v59  ;;  %v5916_v2 = vmul.f32 %v15109_v60, %v5852_v31  ;;  %v5979_v8 = vadd.f32 1.4214138, %v5915_v45  ;;  %v15143_v0 = vsel %vm5340_vm9, 1.0, %v16244_v11 }
 0x88e   : > { %v6681_v36 = vsub.f32 1.0, %v6617_v40  ;;  %8921 = vrcp.f32 %v5598_v30  ;;  %v15147_v22 = vmul.f32 0.70710677, %v15128_v21  ;;  %v15151_v61 = vmul.f32 0.5, %v15067_v29 }
 0x88f   : > { %v6682_v18 = vsub.f32 1.0, %v6618_v50  ;;  %v5980_v6 = vadd.f32 1.4214138, %v5916_v2  ;;  %8923 = vpow2.f32 %v6537_v56  ;;  %v6043_v47 = vmul.f32 %v15099_v39, %v5979_v8 }
 0x890   : > { %v6745_v1 = vmul.f32 %v6681_v36, %v5401_v16  ;;  %8925 = vpow2.f32 %v6539_v9  ;;  %v15154_v26 = vmul.f32 0.70710677, %v15133_v27  ;;  %v6365_v44 = vsub.f32 0.0, %v15104_v48 }
 0x891   : > { %v6746_v15 = vmul.f32 %v6682_v18, %v5402_v12  ;;  %v6044_v58 = vmul.f32 %v15109_v60, %v5980_v6  ;;  %v6107_v55 = vadd.f32 -0.28449672, %v6043_v47  ;;  %v5471_v16 = vand.u32 2147483647, %v15147_v22 }
 0x892   : > { %v6809_v34 = vadd.f32 1.0, %v6745_v1  ;;  %v15159_v52 = vmul.f32 0.5, %v15071_v53  ;;  %v6366_v12 = vsub.f32 0.0, %v15107_v54  ;;  %vm5341_vm10 = vcmp.ge.f32.partialorder %v15079_v13, 0.0 }
 0x893   : > { %v6810_v46 = vadd.f32 1.0, %v6746_v15  ;;  %v6108_v33 = vadd.f32 -0.28449672, %v6044_v58  ;;  %v6171_v24 = vmul.f32 %v15099_v39, %v6107_v55  ;;  %vm5342_vm11 = vcmp.ge.f32.partialorder %v15082_v57, 0.0 }
 0x894   : > { %v15166_v29 = vand.u32 2147483647, %v15154_v26  ;;  %v6873_v49 = vmul.f32 %v6809_v34, %v15040_v3  ;;  %v5535_v56 = vmul.f32 0.3275911, %v5471_v16  ;;  %v6429_v37 = vmul.f32 %v6365_v44, %v15104_v48 }
 0x895   : > { %v6874_v4 = vmul.f32 %v6810_v46, %v15060_v63  ;;  %v6172_v10 = vmul.f32 %v15109_v60, %v6108_v33  ;;  %v6235_v53 = vadd.f32 0.2548296, %v6171_v24  ;;  %v15175_v59 = vadd.f32 %v15000_v19, %v14283_v51 }
 0x896   : > { %v5536_v23 = vmul.f32 0.3275911, %v15166_v29  ;;  %v15177_v31 = vpop.eup %8919  ;;  %v6430_v3 = vmul.f32 %v6366_v12, %v15107_v54  ;;  %v5599_v40 = vadd.f32 1.0, %v5535_v56  ;;  %v15186_v50 = vadd.f32 %v15000_v19, %v14292_v20  ;;  %v15196_v20 = vpop.f32.mrb[32].mxu0 }
 0x897   : > { %v6923_v9 = vpack.c.bf16 %v6874_v4, %v6873_v49  ;;  %v6236_v28 = vadd.f32 0.2548296, %v6172_v10  ;;  %v6299_v45 = vmul.f32 %v15099_v39, %v6235_v53  ;;  %v5789_v30 = vmul.f32 1.0614054, %v15177_v31  ;;  %v15203_v58 = vpop.f32.mrb[33].mxu0 }
 0x898   : > { %v15180_v63 = vpop.eup %8921  ;;  %v5600_v48 = vadd.f32 1.0, %v5536_v23  ;;  %8927 = vrcp.f32 %v5599_v40  ;;  %v6367_v54 = vsub.f32 0.0, %v5471_v16  ;;  %v15194_v39 = vsel %vm5341_vm10, 1.0, %v16244_v11  ;;  %v15209_v46 = vpop.f32.mrb[34].mxu0 }
 0x899   : > { %v8924_v51 = vpop.eup %8923  ;;  %8037 = vmatprep.mubr.msk.bf16.mxu0 %vm1033_vm2, %v6923_v9  ;;  %v6300_v2 = vmul.f32 %v15109_v60, %v6236_v28  ;;  %v5790_v36 = vmul.f32 1.0614054, %v15180_v63  ;;  %v5853_v6 = vadd.f32 -1.4531521, %v5789_v30  ;;  %v15201_v60 = vsel %vm5342_vm11, 1.0, %v16244_v11  ;;  %v15215_v49 = vpop.f32.mrb[35].mxu0 }
 0x89a   : > { %v8926_v8 = vpop.eup %8925  ;;  %v6619_v18 = vmul.f32 %v8924_v51, %v6299_v45  ;;  %8929 = vrcp.f32 %v5600_v48  ;;  %v6541_v15 = vmul.f32 1.442695, %v6429_v37  ;;  %v6543_v13 = vmul.f32 1.442695, %v6430_v3  ;;  %v15220_v37 = vpop.f32.mrb[36].mxu0 }
 0x89b   : > { %v6620_v1 = vmul.f32 %v8926_v8, %v6300_v2  ;;  %v5854_v47 = vadd.f32 -1.4531521, %v5790_v36  ;;  %v5917_v55 = vmul.f32 %v15177_v31, %v5853_v6  ;;  %v15207_v44 = vmul.f32 0.70710677, %v15175_v59  ;;  %v15226_v28 = vpop.f32.mrb[37].mxu0 }
 0x89c   : > { %v6683_v34 = vsub.f32 1.0, %v6619_v18  ;;  %v6431_v24 = vmul.f32 %v6367_v54, %v5471_v16  ;;  %v15213_v57 = vmul.f32 0.70710677, %v15186_v50  ;;  %v6368_v56 = vsub.f32 0.0, %v15166_v29  ;;  %v15230_v45 = vpop.f32.mrb[38].mxu0 }
 0x89d   : > { %v6684_v33 = vsub.f32 1.0, %v6620_v1  ;;  %v5918_v12 = vmul.f32 %v15180_v63, %v5854_v47  ;;  %v5981_v10 = vadd.f32 1.4214138, %v5917_v55  ;;  %v5473_v53 = vand.u32 2147483647, %v15207_v44  ;;  %v15233_v2 = vpop.f32.mrb[39].mxu0 }
 0x89e   : > { %v6747_v4 = vmul.f32 %v6683_v34, %v15138_v5  ;;  %8931 = vpow2.f32 %v6541_v15  ;;  %v15224_v16 = vmul.f32 0.5, %v15128_v21  ;;  %v5474_v5 = vand.u32 2147483647, %v15213_v57  ;;  %v15239_v18 = vpop.f32.mrb[40].mxu0 }
 0x89f   : > { %v6748_v23 = vmul.f32 %v6684_v33, %v15143_v0  ;;  %v5982_v9 = vadd.f32 1.4214138, %v5918_v12  ;;  %v6045_v40 = vmul.f32 %v15177_v31, %v5981_v10  ;;  %8933 = vpow2.f32 %v6543_v13  ;;  %v15245_v55 = vpop.f32.mrb[41].mxu0 }
 0x8a0   : > { %v6811_v3 = vadd.f32 1.0, %v6747_v4  ;;  %v6545_v51 = vmul.f32 1.442695, %v6431_v24  ;;  %v5537_v0 = vmul.f32 0.3275911, %v5473_v53  ;;  %v15236_v21 = vmul.f32 0.5, %v15133_v27 }
 0x8a1   : > { %v6812_v30 = vadd.f32 1.0, %v6748_v23  ;;  %v6046_v48 = vmul.f32 %v15180_v63, %v5982_v9  ;;  %v6109_v36 = vadd.f32 -0.28449672, %v6045_v40  ;;  %v6432_v54 = vmul.f32 %v6368_v56, %v15166_v29  ;;  %v15251_v24 = vpop.f32.mrb[42].mxu0 }
 0x8a2   : > { %v5538_v8 = vmul.f32 0.3275911, %v5474_v5  ;;  %v15241_v6 = vpop.eup %8927  ;;  %v6875_v1 = vmul.f32 %v6811_v3, %v15089_v35  ;;  %v5601_v34 = vadd.f32 1.0, %v5537_v0  ;;  %v6369_v12 = vsub.f32 0.0, %v5473_v53 }
 0x8a3   : > { %v6876_v47 = vmul.f32 %v6812_v30, %v15092_v17  ;;  %v6110_v15 = vadd.f32 -0.28449672, %v6046_v48  ;;  %v6173_v27 = vmul.f32 %v15177_v31, %v6109_v36  ;;  %v5791_v33 = vmul.f32 1.0614054, %v15241_v6  ;;  %v15255_v17 = vpop.f32.mrb[43].mxu0 }
 0x8a4   : > { %v15247_v13 = vpop.eup %8929  ;;  %v5602_v29 = vadd.f32 1.0, %v5538_v8  ;;  %8935 = vrcp.f32 %v5601_v34  ;;  %v15259_v9 = vadd.f32 %v15000_v19, %v14355_v38  ;;  %v6370_v30 = vsub.f32 0.0, %v5474_v5 }
 0x8a5   : > { %v6924_v4 = vpack.c.bf16 %v6876_v47, %v6875_v1  ;;  %v6174_v10 = vmul.f32 %v15180_v63, %v6110_v15  ;;  %v5792_v35 = vmul.f32 1.0614054, %v15247_v13  ;;  %v6237_v56 = vadd.f32 0.2548296, %v6173_v27  ;;  %v15269_v1 = vpop.f32.mrb[44].mxu0 }
 0x8a6   : > { %v5855_v23 = vadd.f32 -1.4531521, %v5791_v33  ;;  %8937 = vrcp.f32 %v5602_v29  ;;  %v15264_v48 = vadd.f32 %v15000_v19, %v14363_v14  ;;  %vm5343_vm12 = vcmp.ge.f32.partialorder %v15147_v22, 0.0  ;;  %v15274_v27 = vpop.f32.mrb[45].mxu0 }
 0x8a7   : > { %8038 = vmatmul.mubr.msk.bf16.gmra.mrb[76].mxu0 %vm1033_vm2, %v6924_v4  ;;  %v6238_v3 = vadd.f32 0.2548296, %v6174_v10  ;;  %v5856_v40 = vadd.f32 -1.4531521, %v5792_v35  ;;  %v6301_v0 = vmul.f32 %v15177_v31, %v6237_v56  ;;  %v6547_v8 = vmul.f32 1.442695, %v6432_v54 }
 0x8a8   : > { %v5919_v36 = vmul.f32 %v15241_v6, %v5855_v23  ;;  %v8932_v38 = vpop.eup %8931  ;;  %vm5344_vm13 = vcmp.ge.f32.partialorder %v15154_v26, 0.0  ;;  %v6433_v34 = vmul.f32 %v6369_v12, %v5473_v53  ;;  %16321 = vst [vmem:[#allocation32_spill] sm:$0xff] %v15274_v27  ;;  %v15277_v29 = vmul.f32 0.70710677, %v15259_v9  ;;  %v15282_v35 = vpop.f32.mrb[46].mxu0 }
 0x8a9   : > { %v6302_v47 = vmul.f32 %v15180_v63, %v6238_v3  ;;  %v5920_v15 = vmul.f32 %v15247_v13, %v5856_v40  ;;  %v8934_v14 = vpop.eup %8933  ;;  %v6621_v33 = vmul.f32 %v8932_v38, %v6301_v0  ;;  %v15280_v54 = vmul.f32 0.70710677, %v15264_v48  ;;  %16322 = vst [vmem:[#allocation51_spill] sm:$0xff] %v15282_v35  ;;  %v15290_v23 = vpop.f32.mrb[47].mxu0 }
 0x8aa   : > { %v5983_v31 = vadd.f32 1.4214138, %v5919_v36  ;;  %8939 = vpow2.f32 %v6545_v51  ;;  %v6434_v63 = vmul.f32 %v6370_v30, %v5474_v5  ;;  %v15287_v53 = vsel %vm5343_vm12, 1.0, %v16244_v11  ;;  %16323 = vst [vmem:[#allocation47_spill] sm:$0xff] %v15290_v23 }
 0x8ab   : > { %v6622_v4 = vmul.f32 %v8934_v14, %v6302_v47  ;;  %v5984_v10 = vadd.f32 1.4214138, %v5920_v15  ;;  %v6685_v56 = vsub.f32 1.0, %v6621_v33  ;;  %8941 = vpow2.f32 %v6547_v8 }
 0x8ac   : > { %v6047_v12 = vmul.f32 %v15241_v6, %v5983_v31  ;;  %v15295_v40 = vsel %vm5344_vm13, 1.0, %v16244_v11  ;;  %v6549_v51 = vmul.f32 1.442695, %v6433_v34  ;;  %v5475_v22 = vand.u32 2147483647, %v15277_v29 }
 0x8ad   : > { %v6686_v3 = vsub.f32 1.0, %v6622_v4  ;;  %v6048_v5 = vmul.f32 %v15247_v13, %v5984_v10  ;;  %v6749_v30 = vmul.f32 %v6685_v56, %v15194_v39  ;;  %v15301_v36 = vand.u32 2147483647, %v15280_v54 }
 0x8ae   : > { %v6111_v0 = vadd.f32 -0.28449672, %v6047_v12  ;;  %v15303_v8 = vpop.eup %8935  ;;  %v6551_v15 = vmul.f32 1.442695, %v6434_v63  ;;  %v15308_v26 = vadd.f32 %v15000_v19, %v14367_v7  ;;  %vm5345_vm14 = vcmp.ge.f32.partialorder %v15207_v44, 0.0 }
 0x8af   : > { %v6750_v38 = vmul.f32 %v6686_v3, %v15201_v60  ;;  %v6112_v47 = vadd.f32 -0.28449672, %v6048_v5  ;;  %v6813_v34 = vadd.f32 1.0, %v6749_v30  ;;  %v5793_v33 = vmul.f32 1.0614054, %v15303_v8 }
 0x8b0   : > { %v15310_v14 = vpop.eup %8937  ;;  %v6175_v39 = vmul.f32 %v15241_v6, %v6111_v0  ;;  %v5539_v31 = vmul.f32 0.3275911, %v5475_v22  ;;  %v5540_v63 = vmul.f32 0.3275911, %v15301_v36  ;;  %vm5346_vm15 = vcmp.ge.f32.partialorder %v15213_v57, 0.0 }
 0x8b1   : > { %v6814_v4 = vadd.f32 1.0, %v6750_v38  ;;  %v6176_v10 = vmul.f32 %v15247_v13, %v6112_v47  ;;  %v5794_v60 = vmul.f32 1.0614054, %v15310_v14  ;;  %v6877_v7 = vmul.f32 %v6813_v34, %v15151_v61  ;;  %v15319_v5 = vpop.f32.mrb[48].mxu0 }
 0x8b2   : > { %v6239_v56 = vadd.f32 0.2548296, %v6175_v39  ;;  %v5857_v12 = vadd.f32 -1.4531521, %v5793_v33  ;;  %v5603_v3 = vadd.f32 1.0, %v5539_v31  ;;  %v5604_v35 = vadd.f32 1.0, %v5540_v63 }
 0x8b3   : > { %v6878_v30 = vmul.f32 %v6814_v4, %v15159_v52  ;;  %v6240_v0 = vadd.f32 0.2548296, %v6176_v10  ;;  %v5858_v23 = vadd.f32 -1.4531521, %v5794_v60  ;;  %v15322_v27 = vpop.f32.mrb[49].mxu0  ;;  %v15328_v61 = vadd.f32 %v15000_v19, %v14429_v25 }
 0x8b4   : > { %v6303_v38 = vmul.f32 %v15241_v6, %v6239_v56  ;;  %v5921_v47 = vmul.f32 %v15303_v8, %v5857_v12  ;;  %8943 = vrcp.f32 %v5603_v3  ;;  %v15330_v34 = vpop.f32.mrb[50].mxu0  ;;  %v8940_v39 = vpop.eup %8939  ;;  %v6371_v63 = vsub.f32 0.0, %v5475_v22 }
 0x8b5   : > { %16324 = vst [vmem:[#allocation35_spill] sm:$0xff] %v15330_v34  ;;  %v6925_v33 = vpack.c.bf16 %v6878_v30, %v6877_v7  ;;  %v6304_v52 = vmul.f32 %v15247_v13, %v6240_v0  ;;  %v5922_v31 = vmul.f32 %v15310_v14, %v5858_v23  ;;  %8945 = vrcp.f32 %v5604_v35  ;;  %v15334_v4 = vpop.f32.mrb[51].mxu0  ;;  %v8942_v10 = vpop.eup %8941 }
 0x8b6   : > { %16325 = vst [vmem:[#allocation53_spill] sm:$0xff] %v15334_v4  ;;  %v6623_v6 = vmul.f32 %v8940_v39, %v6303_v38  ;;  %v5985_v60 = vadd.f32 1.4214138, %v5921_v47  ;;  %8947 = vpow2.f32 %v6549_v51  ;;  %v6372_v23 = vsub.f32 0.0, %v15301_v36 }
 0x8b7   : > { %8041 = vmatprep.mubr.msk.bf16.mxu0 %vm1033_vm2, %v6925_v33  ;;  %v6624_v25 = vmul.f32 %v8942_v10, %v6304_v52  ;;  %v5986_v56 = vadd.f32 1.4214138, %v5922_v31  ;;  %8949 = vpow2.f32 %v6551_v15  ;;  %v15341_v35 = vmul.f32 0.70710677, %v15308_v26 }
 0x8b8   : > { %v6687_v7 = vsub.f32 1.0, %v6623_v6  ;;  %v6049_v13 = vmul.f32 %v15303_v8, %v5985_v60  ;;  %v15344_v3 = vmul.f32 0.5, %v15175_v59  ;;  %v15348_v30 = vmul.f32 0.70710677, %v15328_v61 }
 0x8b9   : > { %v6688_v12 = vsub.f32 1.0, %v6624_v25  ;;  %v6050_v51 = vmul.f32 %v15310_v14, %v5986_v56  ;;  %v15352_v15 = vmul.f32 0.5, %v15186_v50  ;;  %v6435_v47 = vmul.f32 %v6371_v63, %v5475_v22 }
 0x8ba   : > { %v6751_v0 = vmul.f32 %v6687_v7, %v15287_v53  ;;  %v6113_v38 = vadd.f32 -0.28449672, %v6049_v13  ;;  %v5409_v33 = vsel %vm5345_vm14, 1.0, %v16244_v11  ;;  %v5410_v59 = vsel %vm5346_vm15, 1.0, %v16244_v11 }
 0x8bb   : > { %v6752_v39 = vmul.f32 %v6688_v12, %v15295_v40  ;;  %v6114_v52 = vadd.f32 -0.28449672, %v6050_v51  ;;  %v6436_v53 = vmul.f32 %v6372_v23, %v15301_v36  ;;  %v5477_v50 = vand.u32 2147483647, %v15341_v35 }
 0x8bc   : > { %v6815_v31 = vadd.f32 1.0, %v6751_v0  ;;  %v6177_v10 = vmul.f32 %v15303_v8, %v6113_v38  ;;  %v15366_v40 = vmul.f32 0.5, %v15259_v9  ;;  %v15369_v44 = vand.u32 2147483647, %v15348_v30 }
 0x8bd   : > { %v6816_v6 = vadd.f32 1.0, %v6752_v39  ;;  %v6178_v22 = vmul.f32 %v15310_v14, %v6114_v52  ;;  %v6553_v25 = vmul.f32 1.442695, %v6435_v47  ;;  %v5541_v56 = vmul.f32 0.3275911, %v5477_v50 }
 0x8be   : > { %v15371_v60 = vpop.eup %8943  ;;  %v6879_v57 = vmul.f32 %v6815_v31, %v15224_v16  ;;  %v6241_v63 = vadd.f32 0.2548296, %v6177_v10  ;;  %v5542_v9 = vmul.f32 0.3275911, %v15369_v44  ;;  %v6555_v38 = vmul.f32 1.442695, %v6436_v53 }
 0x8bf   : > { %v15374_v7 = vpop.eup %8945  ;;  %v6880_v36 = vmul.f32 %v6816_v6, %v15236_v21  ;;  %v6242_v13 = vadd.f32 0.2548296, %v6178_v22  ;;  %v5795_v23 = vmul.f32 1.0614054, %v15371_v60  ;;  %v5605_v39 = vadd.f32 1.0, %v5541_v56 }
 0x8c0   : > { %v8948_v12 = vpop.eup %8947  ;;  %v6305_v51 = vmul.f32 %v15303_v8, %v6241_v63  ;;  %v5796_v0 = vmul.f32 1.0614054, %v15374_v7  ;;  %v5606_v10 = vadd.f32 1.0, %v5542_v9  ;;  %v6373_v6 = vsub.f32 0.0, %v5477_v50 }
 0x8c1   : > { %v8950_v16 = vpop.eup %8949  ;;  %v6926_v52 = vpack.c.bf16 %v6880_v36, %v6879_v57  ;;  %v6306_v47 = vmul.f32 %v15310_v14, %v6242_v13  ;;  %v5859_v31 = vadd.f32 -1.4531521, %v5795_v23  ;;  %8951 = vrcp.f32 %v5605_v39  ;;  %v4765_v36 = vpop.xlane.xlu0 %4764 }
 0x8c2   : > { %v6625_v4 = vmul.f32 %v8948_v12, %v6305_v51  ;;  %v5860_v21 = vadd.f32 -1.4531521, %v5796_v0  ;;  %8953 = vrcp.f32 %v5606_v10  ;;  %v15386_v8 = vadd.f32 %v15000_v19, %v14517_v42 }
 0x8c3   : > { %8042 = vmatmul.mubr.msk.bf16.gmra.mrb[80].mxu0 %vm1033_vm2, %v6926_v52  ;;  %v6626_v22 = vmul.f32 %v8950_v16, %v6306_v47  ;;  %v5923_v34 = vmul.f32 %v15371_v60, %v5859_v31  ;;  %vm5347_vm0 = vcmp.ge.f32.partialorder %v15277_v29, 0.0  ;;  %v15392_v57 = vadd.f32 %v15000_v19, %v14728_v62 }
 0x8c4   : > { %v6689_v53 = vsub.f32 1.0, %v6625_v4  ;;  %v5924_v14 = vmul.f32 %v15374_v7, %v5860_v21  ;;  %vm5348_vm1 = vcmp.ge.f32.partialorder %v15280_v54, 0.0  ;;  %8955 = vpow2.f32 %v6553_v25 }
 0x8c5   : > { %v6690_v63 = vsub.f32 1.0, %v6626_v22  ;;  %v5987_v56 = vadd.f32 1.4214138, %v5923_v34  ;;  %8957 = vpow2.f32 %v6555_v38  ;;  %v6437_v42 = vmul.f32 %v6373_v6, %v5477_v50 }
 0x8c6   : > { %v6753_v13 = vmul.f32 %v6689_v53, %v5409_v33  ;;  %v5988_v23 = vadd.f32 1.4214138, %v5924_v14  ;;  %v6374_v12 = vsub.f32 0.0, %v15369_v44  ;;  %v15398_v51 = vmul.f32 0.70710677, %v15386_v8 }
 0x8c7   : > { %v6754_v9 = vmul.f32 %v6690_v63, %v5410_v59  ;;  %v6051_v4 = vmul.f32 %v15371_v60, %v5987_v56  ;;  %v15402_v39 = vmul.f32 0.70710677, %v15392_v57  ;;  %v4831_v34 = vmul.f32 0.015625, %v4765_v36 }
 0x8c8   : > { %v6817_v62 = vadd.f32 1.0, %v6753_v13  ;;  %v6052_v0 = vmul.f32 %v15374_v7, %v5988_v23  ;;  %v15405_v33 = vmul.f32 0.5, %v15264_v48  ;;  %v5479_v59 = vand.u32 2147483647, %v15398_v51 }
 0x8c9   : > { %v6818_v25 = vadd.f32 1.0, %v6754_v9  ;;  %v6115_v50 = vadd.f32 -0.28449672, %v6051_v4  ;;  %v5411_v38 = vsel %vm5347_vm0, 1.0, %v16244_v11  ;;  %v5412_v16 = vsel %vm5348_vm1, 1.0, %v16244_v11 }
 0x8ca   : > { %v6116_v52 = vadd.f32 -0.28449672, %v6052_v0  ;;  %v6557_v47 = vmul.f32 1.442695, %v6437_v42  ;;  %v6881_v31 = vmul.f32 %v6817_v62, %v15344_v3  ;;  %v5480_v21 = vand.u32 2147483647, %v15402_v39 }
 0x8cb   : > { %v6882_v10 = vmul.f32 %v6818_v25, %v15352_v15  ;;  %v6179_v48 = vmul.f32 %v15371_v60, %v6115_v50  ;;  %v15418_v6 = vpop.eup %8951  ;;  %v6438_v29 = vmul.f32 %v6374_v12, %v15369_v44  ;;  %v5543_v53 = vmul.f32 0.3275911, %v5479_v59  ;;  %v4768_v50 = vpop.xlane.xlu1 %4767 }
 0x8cc   : > { %v6180_v22 = vmul.f32 %v15374_v7, %v6116_v52  ;;  %v4895_v14 = vadd.f32 1e-05, %v4831_v34  ;;  %v15422_v54 = vpop.eup %8953  ;;  %v5797_v3 = vmul.f32 1.0614054, %v15418_v6  ;;  %v5544_v36 = vmul.f32 0.3275911, %v5480_v21 }
 0x8cd   : > { %v6927_v63 = vpack.c.bf16 %v6882_v10, %v6881_v31  ;;  %v6243_v56 = vadd.f32 0.2548296, %v6179_v48  ;;  %v5798_v13 = vmul.f32 1.0614054, %v15422_v54  ;;  %8959 = vpow2.f32 %v6557_v47 }
 0x8ce   : > { %v6244_v15 = vadd.f32 0.2548296, %v6180_v22  ;;  %v5607_v23 = vadd.f32 1.0, %v5543_v53  ;;  %v8956_v42 = vpop.eup %8955  ;;  %v5861_v44 = vadd.f32 -1.4531521, %v5797_v3  ;;  %v5608_v4 = vadd.f32 1.0, %v5544_v36 }
 0x8cf   : > { %8045 = vmatprep.mubr.msk.bf16.mxu0 %vm1033_vm2, %v6927_v63  ;;  %v6307_v9 = vmul.f32 %v15371_v60, %v6243_v56  ;;  %v6375_v12 = vsub.f32 0.0, %v5479_v59  ;;  %v8958_v62 = vpop.eup %8957  ;;  %v5862_v34 = vadd.f32 -1.4531521, %v5798_v13  ;;  %v6559_v25 = vmul.f32 1.442695, %v6438_v29 }
 0x8d0   : > { %v6308_v0 = vmul.f32 %v15374_v7, %v6244_v15  ;;  %8961 = vrcp.f32 %v5607_v23  ;;  %vm5349_vm3 = vcmp.ge.f32.partialorder %v15341_v35, 0.0  ;;  %v5925_v47 = vmul.f32 %v15418_v6, %v5861_v44 }
 0x8d1   : > { %v6627_v52 = vmul.f32 %v8956_v42, %v6307_v9  ;;  %8963 = vrcp.f32 %v5608_v4  ;;  %v5926_v10 = vmul.f32 %v15422_v54, %v5862_v34  ;;  %v6376_v60 = vsub.f32 0.0, %v5480_v21  ;;  %v15432_v48 = vpop.f32.mrb[52].mxu0 }
 0x8d2   : > { %v6628_v31 = vmul.f32 %v8958_v62, %v6308_v0  ;;  %8965 = vrsqrt.f32 %v4895_v14  ;;  %v5989_v53 = vadd.f32 1.4214138, %v5925_v47  ;;  %v6439_v7 = vmul.f32 %v6375_v12, %v5479_v59  ;;  %v15434_v29 = vpop.f32.mrb[53].mxu0 }
 0x8d3   : > { %v6691_v22 = vsub.f32 1.0, %v6627_v52  ;;  %v4832_v63 = vmul.f32 0.015625, %v4768_v50  ;;  %v5990_v3 = vadd.f32 1.4214138, %v5926_v10  ;;  %8967 = vpow2.f32 %v6559_v25  ;;  %v15440_v15 = vpop.f32.mrb[54].mxu0 }
 0x8d4   : > { %v6692_v56 = vsub.f32 1.0, %v6628_v31  ;;  %v15438_v36 = vadd.f32 %v15000_v19, %v14845_v43  ;;  %v6053_v14 = vmul.f32 %v15418_v6, %v5989_v53  ;;  %v15445_v42 = vadd.f32 %v15000_v19, %v15117_v32  ;;  %v15447_v59 = vpop.f32.mrb[55].mxu0 }
 0x8d5   : > { %v6755_v13 = vmul.f32 %v6691_v22, %v5411_v38  ;;  %v4896_v23 = vadd.f32 1e-05, %v4832_v63  ;;  %v6054_v44 = vmul.f32 %v15422_v54, %v5990_v3  ;;  %v6440_v4 = vmul.f32 %v6376_v60, %v5480_v21 }
 0x8d6   : > { %v6756_v9 = vmul.f32 %v6692_v56, %v5412_v16  ;;  %v15451_v12 = vmul.f32 0.70710677, %v15438_v36  ;;  %v6117_v62 = vadd.f32 -0.28449672, %v6053_v14  ;;  %v6561_v0 = vmul.f32 1.442695, %v6439_v7 }
 0x8d7   : > { %v6819_v43 = vadd.f32 1.0, %v6755_v13  ;;  %8969 = vrsqrt.f32 %v4896_v23  ;;  %v8960_v38 = vpop.eup %8959  ;;  %v15454_v25 = vmul.f32 0.5, %v15308_v26  ;;  %v6118_v19 = vadd.f32 -0.28449672, %v6054_v44  ;;  %v16326_v14 = vld [vmem:[#allocation37_spill] sm:$0xff] }
 0x8d8   : > { %v6820_v34 = vadd.f32 1.0, %v6756_v9  ;;  %v15457_v32 = vmul.f32 0.70710677, %v15445_v42  ;;  %vm5350_vm4 = vcmp.ge.f32.partialorder %v15348_v30, 0.0  ;;  %v5413_v16 = vsel %vm5349_vm3, 1.0, %v16244_v11 }
 0x8d9   : > { %v6181_v21 = vmul.f32 %v15418_v6, %v6117_v62  ;;  %v5481_v50 = vand.u32 2147483647, %v15451_v12  ;;  %v6883_v47 = vmul.f32 %v6819_v43, %v15366_v40  ;;  %v6182_v31 = vmul.f32 %v15422_v54, %v6118_v19  ;;  %v9006_v30 = vld [vmem:[#allocation16] ss:$0 sm:$0xff] }
 0x8da   : > { %v15465_v52 = vpop.eup %8961  ;;  %v6884_v26 = vmul.f32 %v6820_v34, %v15405_v33  ;;  %v5482_v10 = vand.u32 2147483647, %v15457_v32  ;;  %8971 = vpow2.f32 %v6561_v0  ;;  %v6563_v53 = vmul.f32 1.442695, %v6440_v4 }
 0x8db   : > { %v15471_v60 = vpop.eup %8963  ;;  %v6245_v22 = vadd.f32 0.2548296, %v6181_v21  ;;  %v5799_v35 = vmul.f32 1.0614054, %v15465_v52  ;;  %v6246_v56 = vadd.f32 0.2548296, %v6182_v31 }
 0x8dc   : > { %v8966_v7 = vpop.eup %8965  ;;  %v6928_v63 = vpack.c.bf16 %v6884_v26, %v6883_v47  ;;  %v5800_v3 = vmul.f32 1.0614054, %v15471_v60  ;;  %v5545_v13 = vmul.f32 0.3275911, %v5481_v50  ;;  %v5546_v9 = vmul.f32 0.3275911, %v5482_v10 }
 0x8dd   : > { %v6309_v40 = vmul.f32 %v15418_v6, %v6245_v22  ;;  %v5863_v33 = vadd.f32 -1.4531521, %v5799_v35  ;;  %v5023_v23 = vmul.f32 %v8966_v7, %v16326_v14  ;;  %v8968_v44 = vpop.eup %8967  ;;  %v6310_v43 = vmul.f32 %v15422_v54, %v6246_v56  ;;  %v16327_v56 = vld [vmem:[#allocation73_spill] sm:$0xff] }
 0x8de   : > { %8046 = vmatmul.mubr.msk.bf16.gmra.mrb[84].mxu0 %vm1033_vm2, %v6928_v63  ;;  %v5864_v62 = vadd.f32 -1.4531521, %v5800_v3  ;;  %v5609_v0 = vadd.f32 1.0, %v5545_v13  ;;  %v6377_v4 = vsub.f32 0.0, %v5481_v50  ;;  %v5610_v47 = vadd.f32 1.0, %v5546_v9 }
 0x8df   : > { %v6629_v34 = vmul.f32 %v8960_v38, %v6309_v40  ;;  %v5927_v19 = vmul.f32 %v15465_v52, %v5863_v33  ;;  %v5093_v21 = vmul.f32 %v15113_v41, %v5023_v23  ;;  %v5414_v6 = vsel %vm5350_vm4, 1.0, %v16244_v11 }
 0x8e0   : > { %v6630_v26 = vmul.f32 %v8968_v44, %v6310_v43  ;;  %v5928_v31 = vmul.f32 %v15471_v60, %v5864_v62  ;;  %8973 = vrcp.f32 %v5609_v0  ;;  %v6378_v7 = vsub.f32 0.0, %v5482_v10  ;;  %v15492_v62 = vld [vmem:[#allocation19] ss:$0 sm:$0xff] }
 0x8e1   : > { %v8970_v22 = vpop.eup %8969  ;;  %v6693_v35 = vsub.f32 1.0, %v6629_v34  ;;  %v5991_v54 = vadd.f32 1.4214138, %v5927_v19  ;;  %8975 = vrcp.f32 %v5610_v47  ;;  %v6441_v33 = vmul.f32 %v6377_v4, %v5481_v50 }
 0x8e2   : > { %v6694_v63 = vsub.f32 1.0, %v6630_v26  ;;  %v5992_v38 = vadd.f32 1.4214138, %v5928_v31  ;;  %8977 = vpow2.f32 %v6563_v53  ;;  %v5024_v3 = vmul.f32 %v8970_v22, %v16327_v56 }
 0x8e3   : > { %v6757_v13 = vmul.f32 %v6693_v35, %v5413_v16  ;;  %v6055_v40 = vmul.f32 %v15465_v52, %v5991_v54  ;;  %v15487_v14 = vadd.f32 %v9006_v30, %v5093_v21  ;;  %v5222_v23 = vmul.f32 0.5, %v15328_v61 }
 0x8e4   : > { %v6758_v9 = vmul.f32 %v6694_v63, %v5414_v6  ;;  %v6056_v44 = vmul.f32 %v15471_v60, %v5992_v38  ;;  %v5094_v43 = vmul.f32 %v15113_v41, %v5024_v3  ;;  %v8972_v0 = vpop.eup %8971  ;;  %v15495_v34 = vmul.f32 0.5, %v15386_v8 }
 0x8e5   : > { %v6821_v53 = vadd.f32 1.0, %v6757_v13  ;;  %v6119_v16 = vadd.f32 -0.28449672, %v6055_v40  ;;  %v6442_v19 = vmul.f32 %v6378_v7, %v5482_v10  ;;  %v15500_v61 = vmul.f32 0.70710677, %v15487_v14 }
 0x8e6   : > { %v6822_v50 = vadd.f32 1.0, %v6758_v9  ;;  %v6120_v4 = vadd.f32 -0.28449672, %v6056_v44  ;;  %v15497_v21 = vadd.f32 %v9006_v30, %v5094_v43  ;;  %v6565_v41 = vmul.f32 1.442695, %v6441_v33 }
 0x8e7   : > { %v6183_v47 = vmul.f32 %v15465_v52, %v6119_v16  ;;  %v7103_v6 = vadd.f32 %v15196_v20, %v15492_v62  ;;  %v7095_v8 = vadd.f32 %v15492_v62, %v15203_v58  ;;  %v6885_v26 = vmul.f32 %v6821_v53, %v15454_v25 }
 0x8e8   : > { %v6886_v10 = vmul.f32 %v6822_v50, %v5222_v23  ;;  %v6184_v31 = vmul.f32 %v15471_v60, %v6120_v4  ;;  %v15510_v22 = vmul.f32 0.70710677, %v15497_v21  ;;  %v6567_v54 = vmul.f32 1.442695, %v6442_v19 }
 0x8e9   : > { %v6247_v35 = vadd.f32 0.2548296, %v6183_v47  ;;  %v5483_v7 = vand.u32 2147483647, %v15500_v61  ;;  %7351 = vst [vmem:[%s15515_s30 + $0x10] sm:$0xff] %v7103_v6  ;;  %7349 = vst [vmem:[%s15515_s30] sm:$0xff] %v7095_v8  ;;  %v7106_v20 = vadd.f32 %v15209_v46, %v15492_v62  ;;  %v5224_v63 = vmul.f32 0.5, %v15392_v57 }
 0x8ea   : > { %v15521_v58 = vpop.eup %8973  ;;  %v6929_v25 = vpack.c.bf16 %v6886_v10, %v6885_v26  ;;  %vm5351_vm5 = vcmp.ge.f32.partialorder %v15398_v51, 0.0  ;;  %v6248_v38 = vadd.f32 0.2548296, %v6184_v31  ;;  %vm5352_vm6 = vcmp.ge.f32.partialorder %v15402_v39, 0.0 }
 0x8eb   : > { %v15525_v56 = vpop.eup %8975  ;;  %v6311_v3 = vmul.f32 %v15465_v52, %v6247_v35  ;;  %v5801_v13 = vmul.f32 1.0614054, %v15521_v58  ;;  %v5484_v40 = vand.u32 2147483647, %v15510_v22  ;;  %7352 = vst [vmem:[%s15515_s30 + $0x18] sm:$0xff] %v7106_v20  ;;  %8979 = vpow2.f32 %v6565_v41 }
 0x8ec   : > { %v8978_v46 = vpop.eup %8977  ;;  %8049 = vmatprep.mubr.msk.bf16.mxu0 %vm1033_vm2, %v6929_v25  ;;  %v6312_v33 = vmul.f32 %v15471_v60, %v6248_v38  ;;  %v5802_v57 = vmul.f32 1.0614054, %v15525_v56  ;;  %v5547_v30 = vmul.f32 0.3275911, %v5483_v7  ;;  %8981 = vpow2.f32 %v6567_v54 }
 0x8ed   : > { %v6631_v23 = vmul.f32 %v8972_v0, %v6311_v3  ;;  %v5865_v9 = vadd.f32 -1.4531521, %v5801_v13  ;;  %v5548_v44 = vmul.f32 0.3275911, %v5484_v40  ;;  %v6379_v16 = vsub.f32 0.0, %v5483_v7 }
 0x8ee   : > { %v6632_v43 = vmul.f32 %v8978_v46, %v6312_v33  ;;  %v5866_v52 = vadd.f32 -1.4531521, %v5802_v57  ;;  %v5611_v53 = vadd.f32 1.0, %v5547_v30  ;;  %v6380_v47 = vsub.f32 0.0, %v5484_v40 }
 0x8ef   : > { %v6695_v19 = vsub.f32 1.0, %v6631_v23  ;;  %v5929_v50 = vmul.f32 %v15521_v58, %v5865_v9  ;;  %v5612_v4 = vadd.f32 1.0, %v5548_v44  ;;  %v5415_v60 = vsel %vm5351_vm5, 1.0, %v16244_v11  ;;  %v15540_v0 = vpop.f32.mrb[56].mxu0 }
 0x8f0   : > { %v6696_v6 = vsub.f32 1.0, %v6632_v43  ;;  %v5930_v41 = vmul.f32 %v15525_v56, %v5866_v52  ;;  %8983 = vrcp.f32 %v5611_v53  ;;  %v5416_v8 = vsel %vm5352_vm6, 1.0, %v16244_v11  ;;  %v15545_v31 = vpop.f32.mrb[57].mxu0  ;;  %v16328_v52 = vld [vmem:[#allocation32_spill] sm:$0xff] }
 0x8f1   : > { %v6759_v26 = vmul.f32 %v6695_v19, %v5415_v60  ;;  %v5993_v10 = vadd.f32 1.4214138, %v5929_v50  ;;  %8985 = vrcp.f32 %v5612_v4  ;;  %v15547_v51 = vmul.f32 %v6379_v16, %v5483_v7  ;;  %v15551_v25 = vpop.f32.mrb[58].mxu0  ;;  %v16329_v16 = vld [vmem:[#allocation51_spill] sm:$0xff] }
 0x8f2   : > { %v6760_v35 = vmul.f32 %v6696_v6, %v5416_v8  ;;  %v5994_v54 = vadd.f32 1.4214138, %v5930_v41  ;;  %v7098_v20 = vadd.f32 %v15492_v62, %v15215_v49  ;;  %v15554_v3 = vmul.f32 %v6380_v47, %v5484_v40  ;;  %v15558_v46 = vpop.f32.mrb[59].mxu0  ;;  %v16330_v50 = vld [vmem:[#allocation47_spill] sm:$0xff] }
 0x8f3   : > { %v6823_v38 = vadd.f32 1.0, %v6759_v26  ;;  %v6057_v39 = vmul.f32 %v15521_v58, %v5993_v10  ;;  %v7119_v13 = vadd.f32 %v15220_v37, %v15492_v62  ;;  %v7111_v49 = vadd.f32 %v15492_v62, %v15226_v28  ;;  %v16331_v60 = vld [vmem:[#allocation35_spill] sm:$0xff]  ;;  %v16332_v26 = vld [vmem:[#allocation53_spill] sm:$0xff] }
 0x8f4   : > { %v6824_v7 = vadd.f32 1.0, %v6760_v35  ;;  %v6058_v33 = vmul.f32 %v15525_v56, %v5994_v54  ;;  %7350 = vst [vmem:[%s15515_s30 + $0x8] sm:$0xff] %v7098_v20  ;;  %v7122_v57 = vadd.f32 %v15230_v45, %v15492_v62  ;;  %vm5353_vm7 = vcmp.ge.f32.partialorder %v15451_v12, 0.0 }
 0x8f5   : > { %v6887_v40 = vmul.f32 %v6823_v38, %v15495_v34  ;;  %v6121_v37 = vadd.f32 -0.28449672, %v6057_v39  ;;  %7355 = vst [vmem:[%s15515_s30 + $0x30] sm:$0xff] %v7119_v13  ;;  %v7114_v30 = vadd.f32 %v15492_v62, %v15233_v2  ;;  %v7135_v23 = vadd.f32 %v15239_v18, %v15492_v62  ;;  %v8980_v9 = vpop.eup %8979  ;;  %7353 = vst [vmem:[%s15515_s30 + $0x20] sm:$0xff] %v7111_v49 }
 0x8f6   : > { %v6888_v28 = vmul.f32 %v6824_v7, %v5224_v63  ;;  %v6122_v44 = vadd.f32 -0.28449672, %v6058_v33  ;;  %7356 = vst [vmem:[%s15515_s30 + $0x38] sm:$0xff] %v7122_v57  ;;  %v7127_v45 = vadd.f32 %v15492_v62, %v15245_v55  ;;  %v7138_v34 = vadd.f32 %v15251_v24, %v15492_v62  ;;  %v8982_v43 = vpop.eup %8981 }
 0x8f7   : > { %v6185_v2 = vmul.f32 %v15521_v58, %v6121_v37  ;;  %7354 = vst [vmem:[%s15515_s30 + $0x28] sm:$0xff] %v7114_v30  ;;  %7359 = vst [vmem:[%s15515_s30 + $0x50] sm:$0xff] %v7135_v23  ;;  %v7130_v18 = vadd.f32 %v15492_v62, %v15255_v17  ;;  %v7151_v63 = vadd.f32 %v15269_v1, %v15492_v62  ;;  %vm5354_vm8 = vcmp.ge.f32.partialorder %v15457_v32, 0.0 }
 0x8f8   : > { %v7143_v55 = vadd.f32 %v15492_v62, %v16328_v52  ;;  %v6930_v53 = vpack.c.bf16 %v6888_v28, %v6887_v40  ;;  %v6186_v24 = vmul.f32 %v15525_v56, %v6122_v44  ;;  %7357 = vst [vmem:[%s15515_s30 + $0x40] sm:$0xff] %v7127_v45  ;;  %7360 = vst [vmem:[%s15515_s30 + $0x58] sm:$0xff] %v7138_v34  ;;  %v6571_v40 = vmul.f32 1.442695, %v15554_v3 }
 0x8f9   : > { %v7154_v19 = vadd.f32 %v16329_v16, %v15492_v62  ;;  %v7146_v4 = vadd.f32 %v15492_v62, %v16330_v50  ;;  %v6249_v17 = vadd.f32 0.2548296, %v6185_v2  ;;  %7358 = vst [vmem:[%s15515_s30 + $0x48] sm:$0xff] %v7130_v18  ;;  %7363 = vst [vmem:[%s15515_s30 + $0x70] sm:$0xff] %v7151_v63  ;;  %v7167_v1 = vadd.f32 %v15319_v5, %v15492_v62 }
 0x8fa   : > { %7361 = vst [vmem:[%s15515_s30 + $0x60] sm:$0xff] %v7143_v55  ;;  %v7159_v47 = vadd.f32 %v15492_v62, %v15322_v27  ;;  %v7170_v6 = vadd.f32 %v16331_v60, %v15492_v62  ;;  %v15604_v41 = vpop.eup %8983  ;;  %8050 = vmatmul.mubr.msk.bf16.gmra.mrb[88].mxu0 %vm1033_vm2, %v6930_v53  ;;  %v6250_v8 = vadd.f32 0.2548296, %v6186_v24  ;;  %v7162_v5 = vadd.f32 %v15492_v62, %v16332_v26 }
 0x8fb   : > { %7364 = vst [vmem:[%s15515_s30 + $0x78] sm:$0xff] %v7154_v19  ;;  %7362 = vst [vmem:[%s15515_s30 + $0x68] sm:$0xff] %v7146_v4  ;;  %v7183_v10 = vadd.f32 %v15432_v48, %v15492_v62  ;;  %v7175_v27 = vadd.f32 %v15492_v62, %v15434_v29  ;;  %v15615_v35 = vpop.eup %8985  ;;  %v6313_v54 = vmul.f32 %v15521_v58, %v6249_v17  ;;  %v5803_v20 = vmul.f32 1.0614054, %v15604_v41 }
 0x8fc   : > { %7367 = vst [vmem:[%s15515_s30 + $0x90] sm:$0xff] %v7167_v1  ;;  %7365 = vst [vmem:[%s15515_s30 + $0x80] sm:$0xff] %v7159_v47  ;;  %v7186_v38 = vadd.f32 %v15440_v15, %v15492_v62  ;;  %v7178_v48 = vadd.f32 %v15492_v62, %v15447_v59  ;;  %v6314_v39 = vmul.f32 %v15525_v56, %v6250_v8  ;;  %v5804_v29 = vmul.f32 1.0614054, %v15615_v35 }
 0x8fd   : > { %7368 = vst [vmem:[%s15515_s30 + $0x98] sm:$0xff] %v7170_v6  ;;  %7366 = vst [vmem:[%s15515_s30 + $0x88] sm:$0xff] %v7162_v5  ;;  %v7199_v58 = vadd.f32 %v15540_v0, %v15492_v62  ;;  %v7191_v13 = vadd.f32 %v15492_v62, %v15545_v31  ;;  %v6633_v15 = vmul.f32 %v8980_v9, %v6313_v54  ;;  %v5867_v7 = vadd.f32 -1.4531521, %v5803_v20 }
 0x8fe   : > { %7371 = vst [vmem:[%s15515_s30 + $0xb0] sm:$0xff] %v7183_v10  ;;  %7369 = vst [vmem:[%s15515_s30 + $0xa0] sm:$0xff] %v7175_v27  ;;  %v7202_v59 = vadd.f32 %v15551_v25, %v15492_v62  ;;  %v7194_v56 = vadd.f32 %v15492_v62, %v15558_v46  ;;  %v6634_v33 = vmul.f32 %v8982_v43, %v6314_v39  ;;  %v5868_v49 = vadd.f32 -1.4531521, %v5804_v29 }
 0x8ff   : > { %7372 = vst [vmem:[%s15515_s30 + $0xb8] sm:$0xff] %v7186_v38  ;;  %7370 = vst [vmem:[%s15515_s30 + $0xa8] sm:$0xff] %v7178_v48  ;;  %v6569_v0 = vmul.f32 1.442695, %v15547_v51  ;;  %v6697_v31 = vsub.f32 1.0, %v6633_v15  ;;  %v5931_v57 = vmul.f32 %v15604_v41, %v5867_v7  ;;  %v5417_v25 = vsel %vm5353_vm7, 1.0, %v16244_v11 }
 0x900   : > { %7375 = vst [vmem:[%s15515_s30 + $0xd0] sm:$0xff] %v7199_v58  ;;  %7373 = vst [vmem:[%s15515_s30 + $0xc0] sm:$0xff] %v7191_v13  ;;  %v6698_v46 = vsub.f32 1.0, %v6634_v33  ;;  %v5932_v32 = vmul.f32 %v15615_v35, %v5868_v49  ;;  %v5418_v37 = vsel %vm5354_vm8, 1.0, %v16244_v11  ;;  %v5225_v3 = vmul.f32 0.5, %v15438_v36 }
 0x901   : > { %7376 = vst [vmem:[%s15515_s30 + $0xd8] sm:$0xff] %v7202_v59  ;;  %7374 = vst [vmem:[%s15515_s30 + $0xc8] sm:$0xff] %v7194_v56  ;;  %v6761_v30 = vmul.f32 %v6697_v31, %v5417_v25  ;;  %v5995_v51 = vadd.f32 1.4214138, %v5931_v57  ;;  %8987 = vpow2.f32 %v6569_v0  ;;  %v5226_v45 = vmul.f32 0.5, %v15445_v42 }
 0x902   : > { %v6762_v23 = vmul.f32 %v6698_v46, %v5418_v37  ;;  %v5996_v9 = vadd.f32 1.4214138, %v5932_v32  ;;  %8989 = vpow2.f32 %v6571_v40  ;;  %vm5355_vm9 = vcmp.ge.f32.partialorder %v15500_v61, 0.0 }
 0x903   : > { %v6825_v28 = vadd.f32 1.0, %v6761_v30  ;;  %v6059_v44 = vmul.f32 %v15604_v41, %v5995_v51  ;;  %vm5356_vm10 = vcmp.ge.f32.partialorder %v15510_v22, 0.0  ;;  %v5419_v27 = vsel %vm5355_vm9, 1.0, %v16244_v11 }
 0x904   : > { %v6826_v12 = vadd.f32 1.0, %v6762_v23  ;;  %v6060_v34 = vmul.f32 %v15615_v35, %v5996_v9  ;;  %v5420_v20 = vsel %vm5356_vm10, 1.0, %v16244_v11  ;;  %v5227_v39 = vmul.f32 0.5, %v15487_v14 }
 0x905   : > { %v6123_v43 = vadd.f32 -0.28449672, %v6059_v44  ;;  %v6889_v2 = vmul.f32 %v6825_v28, %v5225_v3  ;;  %v5228_v61 = vmul.f32 0.5, %v15497_v21 }
 0x906   : > { %v6890_v18 = vmul.f32 %v6826_v12, %v5226_v45  ;;  %v6124_v63 = vadd.f32 -0.28449672, %v6060_v34 }
 0x907   : > { %v6187_v52 = vmul.f32 %v15604_v41, %v6123_v43  ;;  %v8023_v24 = vpop.f32.mrb[60].mxu0 }
 0x908   : > { %v6931_v55 = vpack.c.bf16 %v6890_v18, %v6889_v2  ;;  %v6188_v53 = vmul.f32 %v15615_v35, %v6124_v63  ;;  %v7215_v36 = vadd.f32 %v8023_v24, %v15492_v62  ;;  %v7206_v19 = vpop.f32.mrb[61].mxu0 }
 0x909   : > { %v6251_v16 = vadd.f32 0.2548296, %v6187_v52  ;;  %v7207_v50 = vadd.f32 %v15492_v62, %v7206_v19  ;;  %v8024_v4 = vpop.f32.mrb[62].mxu0 }
 0x90a   : > { %8053 = vmatprep.mubr.msk.bf16.mxu0 %vm1033_vm2, %v6931_v55  ;;  %v6252_v42 = vadd.f32 0.2548296, %v6188_v53  ;;  %7379 = vst [vmem:[%s15515_s30 + $0xf0] sm:$0xff] %v7215_v36  ;;  %v7218_v1 = vadd.f32 %v8024_v4, %v15492_v62  ;;  %v7209_v47 = vpop.f32.mrb[63].mxu0 }
 0x90b   : > { %v6315_v17 = vmul.f32 %v15604_v41, %v6251_v16  ;;  %v8988_v60 = vpop.eup %8987  ;;  %7377 = vst [vmem:[%s15515_s30 + $0xe0] sm:$0xff] %v7207_v50  ;;  %v7210_v8 = vadd.f32 %v15492_v62, %v7209_v47 }
 0x90c   : > { %v6316_v6 = vmul.f32 %v15615_v35, %v6252_v42  ;;  %v8990_v26 = vpop.eup %8989  ;;  %7380 = vst [vmem:[%s15515_s30 + $0xf8] sm:$0xff] %v7218_v1 }
 0x90d   : > { %v6635_v5 = vmul.f32 %v8988_v60, %v6315_v17  ;;  %7378 = vst [vmem:[%s15515_s30 + $0xe8] sm:$0xff] %v7210_v8 }
 0x90e   : > { %v6636_v10 = vmul.f32 %v8990_v26, %v6316_v6 }
 0x90f   : > { %v6699_v41 = vsub.f32 1.0, %v6635_v5 }
 0x910   : > { %v6700_v54 = vsub.f32 1.0, %v6636_v10 }
 0x911   : > { %v6763_v35 = vmul.f32 %v6699_v41, %v5419_v27 }
 0x912   : > { %v6764_v38 = vmul.f32 %v6700_v54, %v5420_v20 }
 0x913   : > { %v6827_v48 = vadd.f32 1.0, %v6763_v35 }
 0x914   : > { %v6828_v29 = vadd.f32 1.0, %v6764_v38 }
 0x915   : > { %v6891_v22 = vmul.f32 %v6827_v48, %v5227_v39 }
 0x916   : > { %v6892_v58 = vmul.f32 %v6828_v29, %v5228_v61 }
 0x918   : > { %v6932_v13 = vpack.c.bf16 %v6892_v58, %v6891_v22 }
 0x91a   : > { %8054 = vmatmul.mubr.msk.bf16.gmra.mrb[92].mxu0 %vm1033_vm2, %v6932_v13 }
 0x924   : > { %v8027_v15 = vpop.f32.mrb[64].mxu0 }
 0x925   : > { %v7231_v11 = vadd.f32 %v8027_v15, %v15492_v62  ;;  %v7222_v7 = vpop.f32.mrb[65].mxu0 }
 0x926   : > { %v7223_v59 = vadd.f32 %v15492_v62, %v7222_v7  ;;  %v8028_v56 = vpop.f32.mrb[66].mxu0 }
 0x927   : > { %7383 = vst [vmem:[%s15515_s30 + $0x110] sm:$0xff] %v7231_v11  ;;  %v7234_v14 = vadd.f32 %v8028_v56, %v15492_v62  ;;  %v7225_v21 = vpop.f32.mrb[67].mxu0 }
 0x928   : > { %7381 = vst [vmem:[%s15515_s30 + $0x100] sm:$0xff] %v7223_v59  ;;  %v7226_v33 = vadd.f32 %v15492_v62, %v7225_v21 }
 0x929   : > { %7384 = vst [vmem:[%s15515_s30 + $0x118] sm:$0xff] %v7234_v14 }
 0x92a   : > { %7382 = vst [vmem:[%s15515_s30 + $0x108] sm:$0xff] %v7226_v33 }
 0x944   : > { %v8031_v49 = vpop.f32.mrb[68].mxu0 }
 0x945   : > { %v7247_v0 = vadd.f32 %v8031_v49, %v15492_v62  ;;  %v7238_v31 = vpop.f32.mrb[69].mxu0 }
 0x946   : > { %v7239_v57 = vadd.f32 %v15492_v62, %v7238_v31  ;;  %v8032_v40 = vpop.f32.mrb[70].mxu0 }
 0x947   : > { %7387 = vst [vmem:[%s15515_s30 + $0x130] sm:$0xff] %v7247_v0  ;;  %v7250_v25 = vadd.f32 %v8032_v40, %v15492_v62  ;;  %v7241_v46 = vpop.f32.mrb[71].mxu0 }
 0x948   : > { %7385 = vst [vmem:[%s15515_s30 + $0x120] sm:$0xff] %v7239_v57  ;;  %v7242_v32 = vadd.f32 %v15492_v62, %v7241_v46 }
 0x949   : > { %7388 = vst [vmem:[%s15515_s30 + $0x138] sm:$0xff] %v7250_v25 }
 0x94a   : > { %7386 = vst [vmem:[%s15515_s30 + $0x128] sm:$0xff] %v7242_v32 }
 0x95c   : > { %v8035_v37 = vpop.f32.mrb[72].mxu0 }
 0x95d   : > { %v7263_v30 = vadd.f32 %v8035_v37, %v15492_v62  ;;  %v7254_v51 = vpop.f32.mrb[73].mxu0 }
 0x95e   : > { %v7255_v23 = vadd.f32 %v15492_v62, %v7254_v51  ;;  %v8036_v9 = vpop.f32.mrb[74].mxu0 }
 0x95f   : > { %7391 = vst [vmem:[%s15515_s30 + $0x150] sm:$0xff] %v7263_v30  ;;  %v7266_v28 = vadd.f32 %v8036_v9, %v15492_v62  ;;  %v7257_v44 = vpop.f32.mrb[75].mxu0 }
 0x960   : > { %7389 = vst [vmem:[%s15515_s30 + $0x140] sm:$0xff] %v7255_v23  ;;  %v7258_v3 = vadd.f32 %v15492_v62, %v7257_v44 }
 0x961   : > { %7392 = vst [vmem:[%s15515_s30 + $0x158] sm:$0xff] %v7266_v28 }
 0x962   : > { %7390 = vst [vmem:[%s15515_s30 + $0x148] sm:$0xff] %v7258_v3 }
 0x97a   : > { %v8039_v45 = vpop.f32.mrb[76].mxu0 }
 0x97b   : > { %v7279_v12 = vadd.f32 %v8039_v45, %v15492_v62  ;;  %v7270_v34 = vpop.f32.mrb[77].mxu0 }
 0x97c   : > { %v7271_v43 = vadd.f32 %v15492_v62, %v7270_v34  ;;  %v8040_v2 = vpop.f32.mrb[78].mxu0 }
 0x97d   : > { %7395 = vst [vmem:[%s15515_s30 + $0x170] sm:$0xff] %v7279_v12  ;;  %v7282_v18 = vadd.f32 %v8040_v2, %v15492_v62  ;;  %v7273_v63 = vpop.f32.mrb[79].mxu0 }
 0x97e   : > { %7393 = vst [vmem:[%s15515_s30 + $0x160] sm:$0xff] %v7271_v43  ;;  %v7274_v52 = vadd.f32 %v15492_v62, %v7273_v63 }
 0x97f   : > { %7396 = vst [vmem:[%s15515_s30 + $0x178] sm:$0xff] %v7282_v18 }
 0x980   : > { %7394 = vst [vmem:[%s15515_s30 + $0x168] sm:$0xff] %v7274_v52 }
 0x996   : > { %v8043_v55 = vpop.f32.mrb[80].mxu0 }
 0x997   : > { %v7295_v53 = vadd.f32 %v8043_v55, %v15492_v62  ;;  %v7286_v24 = vpop.f32.mrb[81].mxu0 }
 0x998   : > { %v7287_v16 = vadd.f32 %v15492_v62, %v7286_v24  ;;  %v8044_v36 = vpop.f32.mrb[82].mxu0 }
 0x999   : > { %7399 = vst [vmem:[%s15515_s30 + $0x190] sm:$0xff] %v7295_v53  ;;  %v7298_v19 = vadd.f32 %v8044_v36, %v15492_v62  ;;  %v7289_v42 = vpop.f32.mrb[83].mxu0 }
 0x99a   : > { %7397 = vst [vmem:[%s15515_s30 + $0x180] sm:$0xff] %v7287_v16  ;;  %v7290_v50 = vadd.f32 %v15492_v62, %v7289_v42 }
 0x99b   : > { %7400 = vst [vmem:[%s15515_s30 + $0x198] sm:$0xff] %v7298_v19 }
 0x99c   : > { %7398 = vst [vmem:[%s15515_s30 + $0x188] sm:$0xff] %v7290_v50 }
 0x9b1   : > { %v8047_v4 = vpop.f32.mrb[84].mxu0 }
 0x9b2   : > { %v7311_v17 = vadd.f32 %v8047_v4, %v15492_v62  ;;  %v7302_v1 = vpop.f32.mrb[85].mxu0 }
 0x9b3   : > { %v7303_v47 = vadd.f32 %v15492_v62, %v7302_v1  ;;  %v8048_v60 = vpop.f32.mrb[86].mxu0 }
 0x9b4   : > { %7403 = vst [vmem:[%s15515_s30 + $0x1b0] sm:$0xff] %v7311_v17  ;;  %v7314_v6 = vadd.f32 %v8048_v60, %v15492_v62  ;;  %v7305_v8 = vpop.f32.mrb[87].mxu0 }
 0x9b5   : > { %7401 = vst [vmem:[%s15515_s30 + $0x1a0] sm:$0xff] %v7303_v47  ;;  %v7306_v26 = vadd.f32 %v15492_v62, %v7305_v8 }
 0x9b6   : > { %7404 = vst [vmem:[%s15515_s30 + $0x1b8] sm:$0xff] %v7314_v6 }
 0x9b7   : > { %7402 = vst [vmem:[%s15515_s30 + $0x1a8] sm:$0xff] %v7306_v26 }
 0x9cd   : > { %v8051_v5 = vpop.f32.mrb[88].mxu0 }
 0x9ce   : > { %v7327_v10 = vadd.f32 %v8051_v5, %v15492_v62  ;;  %v7318_v41 = vpop.f32.mrb[89].mxu0 }
 0x9cf   : > { %v7319_v27 = vadd.f32 %v15492_v62, %v7318_v41  ;;  %v8052_v54 = vpop.f32.mrb[90].mxu0 }
 0x9d0   : > { %7407 = vst [vmem:[%s15515_s30 + $0x1d0] sm:$0xff] %v7327_v10  ;;  %v7330_v20 = vadd.f32 %v8052_v54, %v15492_v62  ;;  %v7321_v35 = vpop.f32.mrb[91].mxu0 }
 0x9d1   : > { %7405 = vst [vmem:[%s15515_s30 + $0x1c0] sm:$0xff] %v7319_v27  ;;  %v7322_v38 = vadd.f32 %v15492_v62, %v7321_v35 }
 0x9d2   : > { %7408 = vst [vmem:[%s15515_s30 + $0x1d8] sm:$0xff] %v7330_v20 }
 0x9d3   : > { %7406 = vst [vmem:[%s15515_s30 + $0x1c8] sm:$0xff] %v7322_v38 }
 0x9ed   : > { %v8055_v48 = vpop.f32.mrb[92].mxu0 }
 0x9ee   : > { %v7343_v39 = vadd.f32 %v8055_v48, %v15492_v62  ;;  %v7334_v61 = vpop.f32.mrb[93].mxu0 }
 0x9ef   : > { %v7335_v29 = vadd.f32 %v15492_v62, %v7334_v61  ;;  %v8056_v22 = vpop.f32.mrb[94].mxu0 }
 0x9f0   : > { %7411 = vst [vmem:[%s15515_s30 + $0x1f0] sm:$0xff] %v7343_v39  ;;  %v7346_v58 = vadd.f32 %v8056_v22, %v15492_v62  ;;  %v7337_v13 = vpop.f32.mrb[95].mxu0 }
 0x9f1   : > { %7409 = vst [vmem:[%s15515_s30 + $0x1e0] sm:$0xff] %v7335_v29  ;;  %v7338_v15 = vadd.f32 %v15492_v62, %v7337_v13 }
 0x9f2   : > { %7412 = vst [vmem:[%s15515_s30 + $0x1f8] sm:$0xff] %v7346_v58 }
 0x9f3   : > { %7410 = vst [vmem:[%s15515_s30 + $0x1e8] sm:$0xff] %v7338_v15 }
 0x9f4   : > { %9330 = shalt.err (!%p9327_p0)
}
 0x9f5   : > { %s9331_s11 = scalar_lea.hbm %s15743_s15, 8192  ;;  %s9335_s16 = scalar_lea.hbm %s16333_s27, 16384 }
 0x9f6   : > { %p9332_p5 = scmp.ne.s32.totalorder %s15743_s15, %s9331_s11  ;;  %p9336_p9 = scmp.lt.u32.totalorder %s15743_s15, %s16333_s27 }
 0x9f7   : > { %p9337_p4 = scmp.lt.u32.totalorder %s9335_s16, %s9331_s11  ;;  %p9339_p1 = scmp.lt.u32.totalorder %s9331_s11, %s15743_s15 }
 0x9f8   : > { %p9333_p7 = pnand %p9332_p5, %p16334_p3 }
 0x9f9   : > { %p9338_p13 = por %p9337_p4, %p9336_p9 }
 0x9fa   : > { %p9334_p6 = pneg %p9333_p7 }
 0x9fb   : > { %p9340_p2 = por %p9339_p1, %p9338_p13 }
 0x9fd   : > { %p9341_p8 = pnand %p9340_p2, %p9334_p6 }
 0x9ff   : > { %9344 = shalt.err (!%p9341_p8)
}
 0xa00   : > { %s9422_s0 = smov 128   ;;  %s9423_s1 = smov 8  }
 0xa01   : > { %8103 = dma.vmem_to_hbm [thread:$0]  (%p16334_p3), %s15745_s14, 8192, %s15743_s15, %s7414_s23, %s9422_s0, %s9422_s0, %s9423_s1  }
 0xa02 PF: > { %s7442_s24 = sand.u32 1, %s9391_s17   ;;  %p16335_p10 = scmp.ne.s32.totalorder %s15960_s26, 0 }
 0xa03   : > { %p16336_p11 = scmp.ge.s32.totalorder %s9403_s20, 2  ;;  %s7443_s11 = scalar_lea.sflag [#allocation4], %s7442_s24 }
 0xa05   : > { %p8141_p12 = pnand %p16336_p11, %p16335_p10 }
 0xa07   : > { %9386 = dma.done.wait (!%p8141_p12), %s7443_s11, 8192  }
 0xa08   : > { %9388 = vsyncadd (!%p8141_p12), %s7443_s11, 4294959104  ;;  %p29_p0 = scmp.ge.s32.totalorder %s9740_s29, 4   ;;  %s16337_s17 = smov %s9395_s18 }
 0xa09   : > { %s16338_s18 = smov %s9399_s19  ;;  %s16339_s19 = smov %s9751_s25 }
 0xa0a   : > { %s16340_s20 = smov %s9740_s29  ;;  %31 = sbr.rel (!%p29_p0) target bundleno = 15 (0xf), region = 149 }
 0xa11   :  { %7448 = vsyncpa [#allocation3], 1 }
 0xa12   :  { %7450 = vsyncpa [#allocation3 + $0x1], 1 }
 0xa13   :  { %7451 = vsyncpa [#allocation6], 1 }
 0xa14   :  { %7452 = vsyncpa [#allocation9], 1 }
 0xa15   :  { %7453 = vsyncpa [#allocation12], 1 }
 0xa16   :  { %7454 = vsyncpa [#allocation15], 1 }
 0xa17   :  { %7455 = vsyncpa [#allocation18], 1 }
 0xa18   :  { %7456 = vsyncpa [#allocation4], 1 }
 0xa19   :  { %7458 = vsyncpa [#allocation4 + $0x1], 1 }

</bundles_post_ra>
